<compile_context>
chip_gen: v6e
topology: v6e:2x2x1
jax: 0.10.0
libtpu: 0.0.40
codegen_flags: <defaults>
</compile_context>

<pallas_src>
import math
import functools

import jax
import jax.numpy as jnp
from jax.experimental import pallas as pl
from jax.experimental.pallas import tpu as pltpu

# Full f32 matmul precision so the MXU path matches the pure-JAX reference closely.
jax.config.update("jax_default_matmul_precision", "highest")


# ---------------- shared math helpers (used by kernel and reference) ----------------

def _layer_norm(x, w, b, eps):
    mu = jnp.mean(x, axis=-1, keepdims=True)
    var = jnp.mean((x - mu) ** 2, axis=-1, keepdims=True)
    return (x - mu) * jax.lax.rsqrt(var + eps) * w + b


def _log_softmax(y):
    m = jnp.max(y, axis=-1, keepdims=True)
    z = y - m
    return z - jnp.log(jnp.sum(jnp.exp(z), axis=-1, keepdims=True))


# ---------------- BlockSpec helpers (index maps get the scalar-prefetch ref too) ----------------

def _w_spec(shape):
    """Weight shared by every grid step."""
    return pl.BlockSpec(tuple(shape), lambda b, l, lens, _z=(0,) * len(shape): _z)


def _layer_spec(shape):
    """(1,)+shape block out of a (nlayers,)+shape stack, selected by the layer index."""
    return pl.BlockSpec((1,) + tuple(shape),
                        lambda b, l, lens, _z=(0,) * len(shape): (l,) + _z)


def _batch_spec(shape):
    """(1,)+shape block out of a (B,)+shape array, selected by the batch index."""
    return pl.BlockSpec((1,) + tuple(shape),
                        lambda b, l, lens, _z=(0,) * len(shape): (b,) + _z)


# ---------------- the single fused kernel ----------------

def _dh_gem_kernel(lens_ref,
                   x_ref, cp_ref,
                   amp_w_ref, amp_b_ref, cwy_ref, cwcp_ref, cb_ref, pe_ref,
                   wqkv_ref, bqkv_ref, wo_ref, bo_ref,
                   ln1w_ref, ln1b_ref, w1_ref, b1_ref, w2_ref, b2_ref,
                   ln2w_ref, ln2b_ref,
                   cpw_ref, cpb_ref, dswd_ref, dsws_ref, dswcp_ref, dsb_ref,
                   dawd_ref, dawds_ref, saws_ref, sawds_ref,
                   ddw_ref, ddb_ref, sdw_ref, sdb_ref,
                   dy_ref, sy_ref,
                   h_ref,
                   *, nhead, eps):
    dot = functools.partial(jnp.dot, preferred_element_type=jnp.float32)
    L, E = pe_ref.shape
    Dh = E // nhead
    b_idx = pl.program_id(0)
    layer = pl.program_id(1)

    # -------- prologue (layer == 0): amplifiers + sqrt(E) + PositionalEncoding --------
    @pl.when(layer == 0)
    def _prologue():
        x = x_ref[0]                                              # (2, L, 1) demand / supply
        y = x * amp_w_ref[...][:, None, :] + amp_b_ref[...][:, None, :]   # stage-1 -> (2, L, E)
        part = dot(y.reshape(2 * L, E), cwy_ref[...]).reshape(2, L, E)
        ctx = dot(cp_ref[0], cwcp_ref[...]) + cb_ref[...]         # (1, E) com/pos context
        amp = part + ctx[None, :, :]                              # stage-2
        # PositionalEncoding.forward (dropout = identity in eval) fused with sqrt(E) scale.
        h_ref[...] = amp * math.sqrt(E) + pe_ref[...][None, :, :]

    # -------- one transformer encoder layer (runs every grid step) --------
    x2 = h_ref[...].reshape(2 * L, E)
    qkv = (dot(x2, wqkv_ref[0]) + bqkv_ref[0]).reshape(2, L, 3 * E)

    row = jax.lax.broadcasted_iota(jnp.int32, (L, L), 0)
    col = jax.lax.broadcasted_iota(jnp.int32, (L, L), 1)
    causal = jnp.where(row >= col, 0.0, -1e30)                    # in-kernel causal mask
    scale = 1.0 / math.sqrt(Dh)

    heads = []
    # TODO(synk): fold the head axis into a single 4-D batched einsum once Mosaic's
    # multi-batch dot_general / 4-D transpose path is verified; at Dh=8 this unrolled
    # form lowers to the same per-head matmuls without relying on those lowerings.
    for h in range(nhead):
        qh = qkv[:, :, h * Dh:(h + 1) * Dh]
        kh = qkv[:, :, E + h * Dh:E + (h + 1) * Dh]
        vh = qkv[:, :, 2 * E + h * Dh:2 * E + (h + 1) * Dh]
        s = jnp.einsum("bqd,bkd->bqk", qh, kh,
                       preferred_element_type=jnp.float32) * scale + causal[None]
        m = jnp.max(s, axis=-1, keepdims=True)
        e = jnp.exp(s - m)
        p = e / jnp.sum(e, axis=-1, keepdims=True)                # exact softmax divide
        heads.append(jnp.einsum("bqk,bkd->bqd", p, vh,
                                preferred_element_type=jnp.float32))
    attn_o = jnp.concatenate(heads, axis=-1).reshape(2 * L, E)
    attn = dot(attn_o, wo_ref[0]) + bo_ref[0]                     # single ExE out-projection

    src = _layer_norm(x2 + attn, ln1w_ref[0], ln1b_ref[0], eps)
    ff = jnp.maximum(dot(src, w1_ref[0]) + b1_ref[0], 0.0)
    ff = dot(ff, w2_ref[0]) + b2_ref[0]
    src = _layer_norm(src + ff, ln2w_ref[0], ln2b_ref[0], eps)
    h_ref[...] = src.reshape(2, L, E)

    # -------- epilogue (last layer): last-valid-step gather + decode heads --------
    @pl.when(layer == pl.num_programs(1) - 1)
    def _epilogue():
        length = lens_ref[b_idx]                                  # SMEM scalar (prefetched)
        sel = (jax.lax.broadcasted_iota(jnp.int32, (L, 1), 0)
               == length - 1).astype(jnp.float32)                 # one-hot over time
        last = jnp.sum(h_ref[...] * sel[None, :, :], axis=1)      # (2, E)
        enc_d, enc_s = last[0:1], last[1:2]

        ctx = dot(cp_ref[0], cpw_ref[...]) + cpb_ref[...]
        ds = (dot(enc_d, dswd_ref[...]) + dot(enc_s, dsws_ref[...])
              + dot(ctx, dswcp_ref[...]) + dsb_ref[...])
        d_att = dot(enc_d, dawd_ref[...]) + dot(ds, dawds_ref[...])   # bias-free
        s_att = dot(enc_s, saws_ref[...]) + dot(ds, sawds_ref[...])   # bias-free
        d_y = dot(d_att, ddw_ref[...]) + ddb_ref[...]             # (1, CLpad); pads pinned low
        s_y = dot(s_att, sdw_ref[...]) + sdb_ref[...]
        dy_ref[...] = _log_softmax(d_y)[None]
        sy_ref[...] = _log_softmax(s_y)[None]


# ---------------- forward wrapper ----------------

def dh_gem_forward(prm, x, l, c, p, t_s, t_e, *, nhead, class_num):
    d_x, s_x = x
    B, L = d_x.shape
    E = prm["pe"].shape[1]
    nlayers = prm["in_proj_w"].shape[0]
    nhid = prm["lin1_w"].shape[2]
    CLpad = prm["d_dec_w"].shape[1]

    # DyComPosHGNN gather at end time t_e (tiny, data-dependent -> stays in XLA).
    c_emb = prm["com_embs"][t_e, c]                               # (B, C)
    p_emb = prm["pos_embs"][t_e, p]                               # (B, C)
    cp_emb = jnp.concatenate([c_emb, p_emb], axis=-1)[:, None, :]  # (B, 1, 2C)
    twoC = cp_emb.shape[2]

    # demand/supply stacked on a "path" axis; all stacking/duplication handled in-kernel.
    x_paths = jnp.stack([d_x, s_x], axis=1)[..., None]            # (B, 2, L, 1)
    pe = prm["pe"][:L]

    kernel = functools.partial(_dh_gem_kernel, nhead=nhead, eps=1e-5)
    out_spec = pl.BlockSpec((1, 1, CLpad), lambda b, l_, lens: (b, 0, 0))

    grid_spec = pltpu.PrefetchScalarGridSpec(
        num_scalar_prefetch=1,                                    # sequence lengths -> SMEM
        grid=(B, nlayers),
        in_specs=[
            _batch_spec((2, L, 1)),                               # x_paths
            _batch_spec((1, twoC)),                               # cp_emb
            _w_spec((2, E)), _w_spec((2, E)),                     # amp_w, amp_b
            _w_spec((E, E)), _w_spec((twoC, E)), _w_spec((1, E)),  # compos_w_y, _w_cp, _b
            _w_spec((L, E)),                                      # pe
            _layer_spec((E, 3 * E)), _layer_spec((1, 3 * E)),     # in_proj w/b
            _layer_spec((E, E)), _layer_spec((1, E)),             # out_proj w/b
            _layer_spec((1, E)), _layer_spec((1, E)),             # ln1 w/b
            _layer_spec((E, nhid)), _layer_spec((1, nhid)),       # lin1 w/b
            _layer_spec((nhid, E)), _layer_spec((1, E)),          # lin2 w/b
            _layer_spec((1, E)), _layer_spec((1, E)),             # ln2 w/b
            _w_spec((twoC, E)), _w_spec((1, E)),                  # cp_w, cp_b
            _w_spec((E, E)), _w_spec((E, E)), _w_spec((E, E)), _w_spec((1, E)),  # ds_*
            _w_spec((E, E)), _w_spec((E, E)),                     # da_w_d, da_w_ds
            _w_spec((E, E)), _w_spec((E, E)),                     # sa_w_s, sa_w_ds
            _w_spec((E, CLpad)), _w_spec((1, CLpad)),             # d_dec w/b (padded)
            _w_spec((E, CLpad)), _w_spec((1, CLpad)),             # s_dec w/b (padded)
        ],
        out_specs=(out_spec, out_spec),
        scratch_shapes=[pltpu.VMEM((2, L, E), jnp.float32)],      # encoder state, VMEM-resident
    )

    dy, sy = pl.pallas_call(
        kernel,
        out_shape=(jax.ShapeDtypeStruct((B, 1, CLpad), jnp.float32),
                   jax.ShapeDtypeStruct((B, 1, CLpad), jnp.float32)),
        grid_spec=grid_spec,
        compiler_params=pltpu.CompilerParams(
            dimension_semantics=("parallel", "arbitrary"),        # batch sharded on v7x megacore
            vmem_limit_bytes=32 * 1024 * 1024),
    )(l.astype(jnp.int32), x_paths, cp_emb,
      prm["amp_w"], prm["amp_b"], prm["compos_w_y"], prm["compos_w_cp"], prm["compos_b"], pe,
      prm["in_proj_w"], prm["in_proj_b"], prm["out_proj_w"], prm["out_proj_b"],
      prm["ln1_w"], prm["ln1_b"], prm["lin1_w"], prm["lin1_b"],
      prm["lin2_w"], prm["lin2_b"], prm["ln2_w"], prm["ln2_b"],
      prm["cp_w"], prm["cp_b"],
      prm["ds_w_d"], prm["ds_w_s"], prm["ds_w_cp"], prm["ds_b"],
      prm["da_w_d"], prm["da_w_ds"], prm["sa_w_s"], prm["sa_w_ds"],
      prm["d_dec_w"], prm["d_dec_b"], prm["s_dec_w"], prm["s_dec_b"])

    return dy[:, 0, :class_num], sy[:, 0, :class_num]


# ---------------- pure-JAX reference (same parameterization) ----------------

def reference_forward(prm, x, l, c, p, t_s, t_e, *, nhead, class_num):
    d_x, s_x = x
    B, L = d_x.shape
    E = prm["pe"].shape[1]
    nlayers = prm["in_proj_w"].shape[0]
    Dh = E // nhead
    c_emb = prm["com_embs"][t_e, c]
    p_emb = prm["pos_embs"][t_e, p]
    cp = jnp.concatenate([c_emb, p_emb], axis=-1)                 # (B, 2C)
    xs = jnp.stack([d_x, s_x], axis=1)                            # (B, 2, L)
    y = xs[..., None] * prm["amp_w"][None, :, None, :] + prm["amp_b"][None, :, None, :]
    ctx = cp @ prm["compos_w_cp"] + prm["compos_b"]
    h = y @ prm["compos_w_y"] + ctx[:, None, None, :]
    h = h * math.sqrt(E) + prm["pe"][:L]
    causal = jnp.where(jnp.arange(L)[:, None] >= jnp.arange(L)[None, :], 0.0, -1e30)
    for li in range(nlayers):
        qkv = h @ prm["in_proj_w"][li] + prm["in_proj_b"][li]
        q = qkv[..., :E].reshape(B, 2, L, nhead, Dh)
        k = qkv[..., E:2 * E].reshape(B, 2, L, nhead, Dh)
        v = qkv[..., 2 * E:].reshape(B, 2, L, nhead, Dh)
        s = jnp.einsum("bplhd,bpmhd->bphlm", q, k) / math.sqrt(Dh) + causal
        a = jax.nn.softmax(s, axis=-1)
        o = jnp.einsum("bphlm,bpmhd->bplhd", a, v).reshape(B, 2, L, E)
        attn = o @ prm["out_proj_w"][li] + prm["out_proj_b"][li]
        src = _layer_norm(h + attn, prm["ln1_w"][li], prm["ln1_b"][li], 1e-5)
        ff = jnp.maximum(src @ prm["lin1_w"][li] + prm["lin1_b"][li], 0.0)
        ff = ff @ prm["lin2_w"][li] + prm["lin2_b"][li]
        h = _layer_norm(src + ff, prm["ln2_w"][li], prm["ln2_b"][li], 1e-5)
    sel = jax.nn.one_hot(l - 1, L, dtype=h.dtype)                 # (B, L)
    last = jnp.einsum("bple,bl->bpe", h, sel)                     # (B, 2, E)
    enc_d, enc_s = last[:, 0], last[:, 1]
    ctx2 = cp @ prm["cp_w"] + prm["cp_b"]
    ds = enc_d @ prm["ds_w_d"] + enc_s @ prm["ds_w_s"] + ctx2 @ prm["ds_w_cp"] + prm["ds_b"]
    d_att = enc_d @ prm["da_w_d"] + ds @ prm["da_w_ds"]
    s_att = enc_s @ prm["sa_w_s"] + ds @ prm["sa_w_ds"]
    d_y = _log_softmax(d_att @ prm["d_dec_w"] + prm["d_dec_b"])
    s_y = _log_softmax(s_att @ prm["s_dec_w"] + prm["s_dec_b"])
    return d_y[:, :class_num], s_y[:, :class_num]


# ---------------- deterministic parameter init ----------------

def init_params(key, *, companies_num, positions_num, T, E, C, class_num,
                nhead, nhid, nlayers, max_len=100):
    ks = iter(jax.random.split(key, 48))

    def nrm(shape, scale=0.1):
        return jax.random.normal(next(ks), shape, jnp.float32) * scale

    prm = {}
    # precomputed "dynamic graph" embedding tables (stand-in for the DGL HGNN rollout)
    prm["com_embs"] = nrm((T, companies_num, C), 0.5)
    prm["pos_embs"] = nrm((T, positions_num, C), 0.5)
    # amplifier stage-1: row 0 = demand, row 1 = supply
    prm["amp_w"] = nrm((2, E))
    prm["amp_b"] = nrm((2, E))
    # amplifier stage-2 Linear(E + 2C, E) stored split (identical math, no in-kernel concat)
    prm["compos_w_y"] = nrm((E, E))
    prm["compos_w_cp"] = nrm((2 * C, E))
    prm["compos_b"] = nrm((1, E))
    # PositionalEncoding table (exact interleaved sin/cos formula of the PyTorch module)
    pos = jnp.arange(max_len, dtype=jnp.float32)[:, None]
    div = jnp.exp(jnp.arange(0, E, 2, dtype=jnp.float32) * (-math.log(10000.0) / E))
    prm["pe"] = jnp.stack([jnp.sin(pos * div), jnp.cos(pos * div)], axis=-1).reshape(max_len, E)
    # transformer encoder layers, stacked on a leading (nlayers, ...) axis
    prm["in_proj_w"] = nrm((nlayers, E, 3 * E)); prm["in_proj_b"] = nrm((nlayers, 1, 3 * E))
    prm["out_proj_w"] = nrm((nlayers, E, E));    prm["out_proj_b"] = nrm((nlayers, 1, E))
    prm["ln1_w"] = jnp.ones((nlayers, 1, E), jnp.float32)
    prm["ln1_b"] = jnp.zeros((nlayers, 1, E), jnp.float32)
    prm["lin1_w"] = nrm((nlayers, E, nhid));     prm["lin1_b"] = nrm((nlayers, 1, nhid))
    prm["lin2_w"] = nrm((nlayers, nhid, E));     prm["lin2_b"] = nrm((nlayers, 1, E))
    prm["ln2_w"] = jnp.ones((nlayers, 1, E), jnp.float32)
    prm["ln2_b"] = jnp.zeros((nlayers, 1, E), jnp.float32)
    # decode heads (concat-linears stored pre-split; identical math)
    prm["cp_w"] = nrm((2 * C, E)); prm["cp_b"] = nrm((1, E))
    prm["ds_w_d"] = nrm((E, E)); prm["ds_w_s"] = nrm((E, E)); prm["ds_w_cp"] = nrm((E, E))
    prm["ds_b"] = nrm((1, E))
    prm["da_w_d"] = nrm((E, E)); prm["da_w_ds"] = nrm((E, E))     # bias=False
    prm["sa_w_s"] = nrm((E, E)); prm["sa_w_ds"] = nrm((E, E))     # bias=False
    # classifier heads padded to a lane-dense 128-wide output; padded columns get zero
    # weight and a -1e30 bias so log-softmax over the real columns is unchanged.
    class_pad = max(128, pl.cdiv(class_num, 128) * 128)
    for name in ("d_dec", "s_dec"):
        w = nrm((E, class_num)); b = nrm((1, class_num))
        prm[name + "_w"] = jnp.zeros((E, class_pad), jnp.float32).at[:, :class_num].set(w)
        prm[name + "_b"] = jnp.full((1, class_pad), -1e30, jnp.float32).at[:, :class_num].set(b)
    return prm


# ---------------- main ----------------

if __name__ == "__main__":
    B, L = 2, 8
    E, C = 32, 16
    class_num = 6
    nhead, nhid, nlayers = 4, 64, 2
    companies_num, positions_num, T = 6, 5, 3

    key = jax.random.PRNGKey(0)
    k_prm, k_d, k_s = jax.random.split(key, 3)
    prm = init_params(k_prm, companies_num=companies_num, positions_num=positions_num,
                      T=T, E=E, C=C, class_num=class_num,
                      nhead=nhead, nhid=nhid, nlayers=nlayers)

    d_x = jax.random.normal(k_d, (B, L), jnp.float32)
    s_x = jax.random.normal(k_s, (B, L), jnp.float32)
    l = jnp.array([8, 5], dtype=jnp.int32)
    c = jnp.array([1, 3], dtype=jnp.int32)
    p = jnp.array([0, 4], dtype=jnp.int32)
    t_s = jnp.array([0, 1], dtype=jnp.int32)
    t_e = jnp.array([2, 1], dtype=jnp.int32)

    fwd = jax.jit(functools.partial(dh_gem_forward, nhead=nhead, class_num=class_num))
    d_y, s_y = fwd(prm, (d_x, s_x), l, c, p, t_s, t_e)
    jax.block_until_ready((d_y, s_y))

    assert d_y.shape == (B, class_num) and s_y.shape == (B, class_num)
    assert bool(jnp.all(jnp.isfinite(d_y))) and bool(jnp.all(jnp.isfinite(s_y)))

    # correctness vs. pure-JAX reference
    d_ref, s_ref = reference_forward(prm, (d_x, s_x), l, c, p, t_s, t_e,
                                     nhead=nhead, class_num=class_num)
    assert bool(jnp.allclose(d_y, d_ref, atol=1e-3, rtol=1e-3)), (
        "demand mismatch, max abs err = %e" % float(jnp.max(jnp.abs(d_y - d_ref))))
    assert bool(jnp.allclose(s_y, s_ref, atol=1e-3, rtol=1e-3)), (
        "supply mismatch, max abs err = %e" % float(jnp.max(jnp.abs(s_y - s_ref))))

    print("KERNEL_OK")
</pallas_src>

<mosaic_0001>
module attributes {stable_mosaic.version = 11 : i64} {
  func.func @_dh_gem_kernel(%arg0: i32, %arg1: i32, %arg2: memref<2xi32, #tpu.memory_space<smem>>, %arg3: memref<1x2x8x1xf32, #tpu.memory_space<vmem>>, %arg4: memref<1x1x32xf32, #tpu.memory_space<vmem>>, %arg5: memref<2x32xf32, #tpu.memory_space<vmem>>, %arg6: memref<2x32xf32, #tpu.memory_space<vmem>>, %arg7: memref<32x32xf32, #tpu.memory_space<vmem>>, %arg8: memref<32x32xf32, #tpu.memory_space<vmem>>, %arg9: memref<1x32xf32, #tpu.memory_space<vmem>>, %arg10: memref<8x32xf32, #tpu.memory_space<vmem>>, %arg11: memref<1x32x96xf32, #tpu.memory_space<vmem>>, %arg12: memref<1x1x96xf32, #tpu.memory_space<vmem>>, %arg13: memref<1x32x32xf32, #tpu.memory_space<vmem>>, %arg14: memref<1x1x32xf32, #tpu.memory_space<vmem>>, %arg15: memref<1x1x32xf32, #tpu.memory_space<vmem>>, %arg16: memref<1x1x32xf32, #tpu.memory_space<vmem>>, %arg17: memref<1x32x64xf32, #tpu.memory_space<vmem>>, %arg18: memref<1x1x64xf32, #tpu.memory_space<vmem>>, %arg19: memref<1x64x32xf32, #tpu.memory_space<vmem>>, %arg20: memref<1x1x32xf32, #tpu.memory_space<vmem>>, %arg21: memref<1x1x32xf32, #tpu.memory_space<vmem>>, %arg22: memref<1x1x32xf32, #tpu.memory_space<vmem>>, %arg23: memref<32x32xf32, #tpu.memory_space<vmem>>, %arg24: memref<1x32xf32, #tpu.memory_space<vmem>>, %arg25: memref<32x32xf32, #tpu.memory_space<vmem>>, %arg26: memref<32x32xf32, #tpu.memory_space<vmem>>, %arg27: memref<32x32xf32, #tpu.memory_space<vmem>>, %arg28: memref<1x32xf32, #tpu.memory_space<vmem>>, %arg29: memref<32x32xf32, #tpu.memory_space<vmem>>, %arg30: memref<32x32xf32, #tpu.memory_space<vmem>>, %arg31: memref<32x32xf32, #tpu.memory_space<vmem>>, %arg32: memref<32x32xf32, #tpu.memory_space<vmem>>, %arg33: memref<32x128xf32, #tpu.memory_space<vmem>>, %arg34: memref<1x128xf32, #tpu.memory_space<vmem>>, %arg35: memref<32x128xf32, #tpu.memory_space<vmem>>, %arg36: memref<1x128xf32, #tpu.memory_space<vmem>>, %arg37: memref<1x1x128xf32, #tpu.memory_space<vmem>>, %arg38: memref<1x1x128xf32, #tpu.memory_space<vmem>>, %arg39: memref<2x8x32xf32, #tpu.memory_space<vmem>>) attributes {dimension_semantics = [#tpu.dimension_semantics<parallel>, #tpu.dimension_semantics<arbitrary>], iteration_bounds = array<i64: 2, 2>, scalar_prefetch = 1 : i64, scratch_operands = 1 : i64, tpu.core_type = #tpu.core_type<tc>, window_params = [{transform_indices = @transform_0, window_bounds = array<i64: 1, 2, 8, 1>}, {transform_indices = @transform_1, window_bounds = array<i64: 1, 1, 32>}, {pipeline_mode = #tpu.pipeline_mode<synchronous>, transform_indices = @transform_2, window_bounds = array<i64: 2, 32>}, {pipeline_mode = #tpu.pipeline_mode<synchronous>, transform_indices = @transform_3, window_bounds = array<i64: 2, 32>}, {pipeline_mode = #tpu.pipeline_mode<synchronous>, transform_indices = @transform_4, window_bounds = array<i64: 32, 32>}, {pipeline_mode = #tpu.pipeline_mode<synchronous>, transform_indices = @transform_5, window_bounds = array<i64: 32, 32>}, {pipeline_mode = #tpu.pipeline_mode<synchronous>, transform_indices = @transform_6, window_bounds = array<i64: 1, 32>}, {pipeline_mode = #tpu.pipeline_mode<synchronous>, transform_indices = @transform_7, window_bounds = array<i64: 8, 32>}, {transform_indices = @transform_8, window_bounds = array<i64: 1, 32, 96>}, {transform_indices = @transform_9, window_bounds = array<i64: 1, 1, 96>}, {transform_indices = @transform_10, window_bounds = array<i64: 1, 32, 32>}, {transform_indices = @transform_11, window_bounds = array<i64: 1, 1, 32>}, {transform_indices = @transform_12, window_bounds = array<i64: 1, 1, 32>}, {transform_indices = @transform_13, window_bounds = array<i64: 1, 1, 32>}, {transform_indices = @transform_14, window_bounds = array<i64: 1, 32, 64>}, {transform_indices = @transform_15, window_bounds = array<i64: 1, 1, 64>}, {transform_indices = @transform_16, window_bounds = array<i64: 1, 64, 32>}, {transform_indices = @transform_17, window_bounds = array<i64: 1, 1, 32>}, {transform_indices = @transform_18, window_bounds = array<i64: 1, 1, 32>}, {transform_indices = @transform_19, window_bounds = array<i64: 1, 1, 32>}, {pipeline_mode = #tpu.pipeline_mode<synchronous>, transform_indices = @transform_20, window_bounds = array<i64: 32, 32>}, {pipeline_mode = #tpu.pipeline_mode<synchronous>, transform_indices = @transform_21, window_bounds = array<i64: 1, 32>}, {pipeline_mode = #tpu.pipeline_mode<synchronous>, transform_indices = @transform_22, window_bounds = array<i64: 32, 32>}, {pipeline_mode = #tpu.pipeline_mode<synchronous>, transform_indices = @transform_23, window_bounds = array<i64: 32, 32>}, {pipeline_mode = #tpu.pipeline_mode<synchronous>, transform_indices = @transform_24, window_bounds = array<i64: 32, 32>}, {pipeline_mode = #tpu.pipeline_mode<synchronous>, transform_indices = @transform_25, window_bounds = array<i64: 1, 32>}, {pipeline_mode = #tpu.pipeline_mode<synchronous>, transform_indices = @transform_26, window_bounds = array<i64: 32, 32>}, {pipeline_mode = #tpu.pipeline_mode<synchronous>, transform_indices = @transform_27, window_bounds = array<i64: 32, 32>}, {pipeline_mode = #tpu.pipeline_mode<synchronous>, transform_indices = @transform_28, window_bounds = array<i64: 32, 32>}, {pipeline_mode = #tpu.pipeline_mode<synchronous>, transform_indices = @transform_29, window_bounds = array<i64: 32, 32>}, {pipeline_mode = #tpu.pipeline_mode<synchronous>, transform_indices = @transform_30, window_bounds = array<i64: 32, 128>}, {pipeline_mode = #tpu.pipeline_mode<synchronous>, transform_indices = @transform_31, window_bounds = array<i64: 1, 128>}, {pipeline_mode = #tpu.pipeline_mode<synchronous>, transform_indices = @transform_32, window_bounds = array<i64: 32, 128>}, {pipeline_mode = #tpu.pipeline_mode<synchronous>, transform_indices = @transform_33, window_bounds = array<i64: 1, 128>}, {transform_indices = @transform_34, window_bounds = array<i64: 1, 1, 128>}, {transform_indices = @transform_35, window_bounds = array<i64: 1, 1, 128>}]} {
    %c0_i32 = arith.constant 0 : i32
    %0 = arith.cmpi eq, %arg1, %c0_i32 : i32
    %1 = arith.extui %0 : i1 to i32
    %c0_i32_0 = arith.constant 0 : i32
    %2 = arith.cmpi ne, %1, %c0_i32_0 : i32
    scf.if %2 {
      %c0_79 = arith.constant 0 : index
      %c0_80 = arith.constant 0 : index
      %c0_81 = arith.constant 0 : index
      %c0_82 = arith.constant 0 : index
      %179 = vector.load %arg3[%c0_79, %c0_80, %c0_81, %c0_82] : memref<1x2x8x1xf32, #tpu.memory_space<vmem>>, vector<1x2x8x1xf32>
      %180 = vector.shape_cast %179 : vector<1x2x8x1xf32> to vector<2x8x1xf32>
      %c0_83 = arith.constant 0 : index
      %c0_84 = arith.constant 0 : index
      %181 = vector.load %arg5[%c0_83, %c0_84] : memref<2x32xf32, #tpu.memory_space<vmem>>, vector<2x32xf32>
      %182 = vector.shape_cast %181 : vector<2x32xf32> to vector<2x1x32xf32>
      %183 = vector.broadcast %180 : vector<2x8x1xf32> to vector<2x8x32xf32>
      %184 = vector.broadcast %182 : vector<2x1x32xf32> to vector<2x8x32xf32>
      %185 = arith.mulf %183, %184 : vector<2x8x32xf32>
      %c0_85 = arith.constant 0 : index
      %c0_86 = arith.constant 0 : index
      %186 = vector.load %arg6[%c0_85, %c0_86] : memref<2x32xf32, #tpu.memory_space<vmem>>, vector<2x32xf32>
      %187 = vector.shape_cast %186 : vector<2x32xf32> to vector<2x1x32xf32>
      %188 = vector.broadcast %187 : vector<2x1x32xf32> to vector<2x8x32xf32>
      %189 = arith.addf %185, %188 : vector<2x8x32xf32>
      %190 = vector.shape_cast %189 : vector<2x8x32xf32> to vector<16x32xf32>
      %c0_87 = arith.constant 0 : index
      %c0_88 = arith.constant 0 : index
      %191 = vector.load %arg7[%c0_87, %c0_88] : memref<32x32xf32, #tpu.memory_space<vmem>>, vector<32x32xf32>
      %cst_89 = arith.constant dense<0.000000e+00> : vector<16x32xf32>
      %192 = tpu.matmul %190, %191, %cst_89 {dimension_numbers = #tpu.dot_dimension_numbers<[1], [0], [0], [1], [0, 0, 1, 1], [], []>, precision = #tpu.contract_precision<fp32>} : vector<16x32xf32>, vector<32x32xf32>, vector<16x32xf32> -> vector<16x32xf32>
      %193 = vector.shape_cast %192 : vector<16x32xf32> to vector<2x8x32xf32>
      %c0_90 = arith.constant 0 : index
      %c0_91 = arith.constant 0 : index
      %c0_92 = arith.constant 0 : index
      %194 = vector.load %arg4[%c0_90, %c0_91, %c0_92] : memref<1x1x32xf32, #tpu.memory_space<vmem>>, vector<1x1x32xf32>
      %195 = vector.shape_cast %194 : vector<1x1x32xf32> to vector<1x32xf32>
      %c0_93 = arith.constant 0 : index
      %c0_94 = arith.constant 0 : index
      %196 = vector.load %arg8[%c0_93, %c0_94] : memref<32x32xf32, #tpu.memory_space<vmem>>, vector<32x32xf32>
      %cst_95 = arith.constant dense<0.000000e+00> : vector<1x32xf32>
      %197 = tpu.matmul %195, %196, %cst_95 {dimension_numbers = #tpu.dot_dimension_numbers<[1], [0], [0], [1], [0, 0, 1, 1], [], []>, precision = #tpu.contract_precision<fp32>} : vector<1x32xf32>, vector<32x32xf32>, vector<1x32xf32> -> vector<1x32xf32>
      %c0_96 = arith.constant 0 : index
      %c0_97 = arith.constant 0 : index
      %198 = vector.load %arg9[%c0_96, %c0_97] : memref<1x32xf32, #tpu.memory_space<vmem>>, vector<1x32xf32>
      %199 = arith.addf %197, %198 : vector<1x32xf32>
      %200 = vector.shape_cast %199 : vector<1x32xf32> to vector<1x1x32xf32>
      %201 = vector.broadcast %200 : vector<1x1x32xf32> to vector<2x8x32xf32>
      %202 = arith.addf %193, %201 : vector<2x8x32xf32>
      %cst_98 = arith.constant 5.65685415 : f32
      %203 = vector.broadcast %cst_98 : f32 to vector<2x8x32xf32>
      %204 = arith.mulf %202, %203 : vector<2x8x32xf32>
      %c0_99 = arith.constant 0 : index
      %c0_100 = arith.constant 0 : index
      %205 = vector.load %arg10[%c0_99, %c0_100] : memref<8x32xf32, #tpu.memory_space<vmem>>, vector<8x32xf32>
      %206 = vector.shape_cast %205 : vector<8x32xf32> to vector<1x8x32xf32>
      %207 = vector.broadcast %206 : vector<1x8x32xf32> to vector<2x8x32xf32>
      %208 = arith.addf %204, %207 : vector<2x8x32xf32>
      %c0_101 = arith.constant 0 : index
      %c0_102 = arith.constant 0 : index
      %c0_103 = arith.constant 0 : index
      %209 = vector.load %arg39[%c0_101, %c0_102, %c0_103] : memref<2x8x32xf32, #tpu.memory_space<vmem>>, vector<2x8x32xf32>
      tpu.vector_store %arg39[%c0_101, %c0_102, %c0_103], %208 {strides = array<i32>} : memref<2x8x32xf32, #tpu.memory_space<vmem>>, vector<2x8x32xf32>,
    } else {
    }
    %c0 = arith.constant 0 : index
    %c0_1 = arith.constant 0 : index
    %c0_2 = arith.constant 0 : index
    %3 = vector.load %arg39[%c0, %c0_1, %c0_2] : memref<2x8x32xf32, #tpu.memory_space<vmem>>, vector<2x8x32xf32>
    %4 = vector.shape_cast %3 : vector<2x8x32xf32> to vector<16x32xf32>
    %c0_3 = arith.constant 0 : index
    %c0_4 = arith.constant 0 : index
    %c0_5 = arith.constant 0 : index
    %5 = vector.load %arg11[%c0_3, %c0_4, %c0_5] : memref<1x32x96xf32, #tpu.memory_space<vmem>>, vector<1x32x96xf32>
    %6 = vector.shape_cast %5 : vector<1x32x96xf32> to vector<32x96xf32>
    %cst = arith.constant dense<0.000000e+00> : vector<16x96xf32>
    %7 = tpu.matmul %4, %6, %cst {dimension_numbers = #tpu.dot_dimension_numbers<[1], [0], [0], [1], [0, 0, 1, 1], [], []>, precision = #tpu.contract_precision<fp32>} : vector<16x32xf32>, vector<32x96xf32>, vector<16x96xf32> -> vector<16x96xf32>
    %c0_6 = arith.constant 0 : index
    %c0_7 = arith.constant 0 : index
    %c0_8 = arith.constant 0 : index
    %8 = vector.load %arg12[%c0_6, %c0_7, %c0_8] : memref<1x1x96xf32, #tpu.memory_space<vmem>>, vector<1x1x96xf32>
    %9 = vector.shape_cast %8 : vector<1x1x96xf32> to vector<1x96xf32>
    %10 = vector.broadcast %9 : vector<1x96xf32> to vector<16x96xf32>
    %11 = arith.addf %7, %10 : vector<16x96xf32>
    %12 = vector.shape_cast %11 : vector<16x96xf32> to vector<2x8x96xf32>
    %13 = tpu.iota {dimensions = array<i32: 0>} : vector<8x8xi32>
    %14 = tpu.iota {dimensions = array<i32: 1>} : vector<8x8xi32>
    %15 = arith.cmpi sge, %13, %14 : vector<8x8xi32>
    %cst_9 = arith.constant 0.000000e+00 : f32
    %cst_10 = arith.constant -1.000000e+30 : f32
    %16 = vector.broadcast %cst_9 : f32 to vector<8x8xf32>
    %17 = vector.broadcast %cst_10 : f32 to vector<8x8xf32>
    %18 = arith.select %15, %16, %17 : vector<8x8xi1>, vector<8x8xf32>
    %19 = vector.extract_strided_slice %12 {offsets = [0, 0, 0], sizes = [2, 8, 8], strides = [1, 1, 1]} : vector<2x8x96xf32> to vector<2x8x8xf32>
    %20 = vector.extract_strided_slice %12 {offsets = [0, 0, 32], sizes = [2, 8, 8], strides = [1, 1, 1]} : vector<2x8x96xf32> to vector<2x8x8xf32>
    %21 = vector.extract_strided_slice %12 {offsets = [0, 0, 64], sizes = [2, 8, 8], strides = [1, 1, 1]} : vector<2x8x96xf32> to vector<2x8x8xf32>
    "tpu.trace_start"() <{level = 10 : i32, message = "bqd,bkd->bqk"}> : () -> ()
    %cst_11 = arith.constant dense<0.000000e+00> : vector<2x8x8xf32>
    %22 = tpu.matmul %19, %20, %cst_11 {dimension_numbers = #tpu.dot_dimension_numbers<[2], [2], [1], [1], [0, 0, 0, 1, 1, 1], [0], [0]>, precision = #tpu.contract_precision<fp32>} : vector<2x8x8xf32>, vector<2x8x8xf32>, vector<2x8x8xf32> -> vector<2x8x8xf32>
    "tpu.trace_stop"() : () -> ()
    %cst_12 = arith.constant 0.353553385 : f32
    %23 = vector.broadcast %cst_12 : f32 to vector<2x8x8xf32>
    %24 = arith.mulf %22, %23 : vector<2x8x8xf32>
    %25 = vector.shape_cast %18 : vector<8x8xf32> to vector<1x8x8xf32>
    %26 = vector.broadcast %25 : vector<1x8x8xf32> to vector<2x8x8xf32>
    %27 = arith.addf %24, %26 : vector<2x8x8xf32>
    %cst_13 = arith.constant dense<0xFF800000> : vector<2x8xf32>
    %28 = vector.multi_reduction <maximumf>, %27, %cst_13 [2] : vector<2x8x8xf32> to vector<2x8xf32>
    %29 = vector.shape_cast %28 : vector<2x8xf32> to vector<2x8x1xf32>
    %30 = vector.broadcast %29 : vector<2x8x1xf32> to vector<2x8x8xf32>
    %31 = arith.subf %27, %30 : vector<2x8x8xf32>
    %32 = math.exp %31 : vector<2x8x8xf32>
    %cst_14 = arith.constant dense<0.000000e+00> : vector<2x8xf32>
    %33 = vector.multi_reduction <add>, %32, %cst_14 [2] : vector<2x8x8xf32> to vector<2x8xf32>
    %34 = vector.shape_cast %33 : vector<2x8xf32> to vector<2x8x1xf32>
    %35 = vector.broadcast %34 : vector<2x8x1xf32> to vector<2x8x8xf32>
    %36 = arith.divf %32, %35 : vector<2x8x8xf32>
    "tpu.trace_start"() <{level = 10 : i32, message = "bqk,bkd->bqd"}> : () -> ()
    %cst_15 = arith.constant dense<0.000000e+00> : vector<2x8x8xf32>
    %37 = tpu.matmul %36, %21, %cst_15 {dimension_numbers = #tpu.dot_dimension_numbers<[2], [1], [1], [2], [0, 0, 0, 1, 1, 2], [0], [0]>, precision = #tpu.contract_precision<fp32>} : vector<2x8x8xf32>, vector<2x8x8xf32>, vector<2x8x8xf32> -> vector<2x8x8xf32>
    "tpu.trace_stop"() : () -> ()
    %38 = vector.extract_strided_slice %12 {offsets = [0, 0, 8], sizes = [2, 8, 8], strides = [1, 1, 1]} : vector<2x8x96xf32> to vector<2x8x8xf32>
    %39 = vector.extract_strided_slice %12 {offsets = [0, 0, 40], sizes = [2, 8, 8], strides = [1, 1, 1]} : vector<2x8x96xf32> to vector<2x8x8xf32>
    %40 = vector.extract_strided_slice %12 {offsets = [0, 0, 72], sizes = [2, 8, 8], strides = [1, 1, 1]} : vector<2x8x96xf32> to vector<2x8x8xf32>
    "tpu.trace_start"() <{level = 10 : i32, message = "bqd,bkd->bqk"}> : () -> ()
    %cst_16 = arith.constant dense<0.000000e+00> : vector<2x8x8xf32>
    %41 = tpu.matmul %38, %39, %cst_16 {dimension_numbers = #tpu.dot_dimension_numbers<[2], [2], [1], [1], [0, 0, 0, 1, 1, 1], [0], [0]>, precision = #tpu.contract_precision<fp32>} : vector<2x8x8xf32>, vector<2x8x8xf32>, vector<2x8x8xf32> -> vector<2x8x8xf32>
    "tpu.trace_stop"() : () -> ()
    %cst_17 = arith.constant 0.353553385 : f32
    %42 = vector.broadcast %cst_17 : f32 to vector<2x8x8xf32>
    %43 = arith.mulf %41, %42 : vector<2x8x8xf32>
    %44 = vector.shape_cast %18 : vector<8x8xf32> to vector<1x8x8xf32>
    %45 = vector.broadcast %44 : vector<1x8x8xf32> to vector<2x8x8xf32>
    %46 = arith.addf %43, %45 : vector<2x8x8xf32>
    %cst_18 = arith.constant dense<0xFF800000> : vector<2x8xf32>
    %47 = vector.multi_reduction <maximumf>, %46, %cst_18 [2] : vector<2x8x8xf32> to vector<2x8xf32>
    %48 = vector.shape_cast %47 : vector<2x8xf32> to vector<2x8x1xf32>
    %49 = vector.broadcast %48 : vector<2x8x1xf32> to vector<2x8x8xf32>
    %50 = arith.subf %46, %49 : vector<2x8x8xf32>
    %51 = math.exp %50 : vector<2x8x8xf32>
    %cst_19 = arith.constant dense<0.000000e+00> : vector<2x8xf32>
    %52 = vector.multi_reduction <add>, %51, %cst_19 [2] : vector<2x8x8xf32> to vector<2x8xf32>
    %53 = vector.shape_cast %52 : vector<2x8xf32> to vector<2x8x1xf32>
    %54 = vector.broadcast %53 : vector<2x8x1xf32> to vector<2x8x8xf32>
    %55 = arith.divf %51, %54 : vector<2x8x8xf32>
    "tpu.trace_start"() <{level = 10 : i32, message = "bqk,bkd->bqd"}> : () -> ()
    %cst_20 = arith.constant dense<0.000000e+00> : vector<2x8x8xf32>
    %56 = tpu.matmul %55, %40, %cst_20 {dimension_numbers = #tpu.dot_dimension_numbers<[2], [1], [1], [2], [0, 0, 0, 1, 1, 2], [0], [0]>, precision = #tpu.contract_precision<fp32>} : vector<2x8x8xf32>, vector<2x8x8xf32>, vector<2x8x8xf32> -> vector<2x8x8xf32>
    "tpu.trace_stop"() : () -> ()
    %57 = vector.extract_strided_slice %12 {offsets = [0, 0, 16], sizes = [2, 8, 8], strides = [1, 1, 1]} : vector<2x8x96xf32> to vector<2x8x8xf32>
    %58 = vector.extract_strided_slice %12 {offsets = [0, 0, 48], sizes = [2, 8, 8], strides = [1, 1, 1]} : vector<2x8x96xf32> to vector<2x8x8xf32>
    %59 = vector.extract_strided_slice %12 {offsets = [0, 0, 80], sizes = [2, 8, 8], strides = [1, 1, 1]} : vector<2x8x96xf32> to vector<2x8x8xf32>
    "tpu.trace_start"() <{level = 10 : i32, message = "bqd,bkd->bqk"}> : () -> ()
    %cst_21 = arith.constant dense<0.000000e+00> : vector<2x8x8xf32>
    %60 = tpu.matmul %57, %58, %cst_21 {dimension_numbers = #tpu.dot_dimension_numbers<[2], [2], [1], [1], [0, 0, 0, 1, 1, 1], [0], [0]>, precision = #tpu.contract_precision<fp32>} : vector<2x8x8xf32>, vector<2x8x8xf32>, vector<2x8x8xf32> -> vector<2x8x8xf32>
    "tpu.trace_stop"() : () -> ()
    %cst_22 = arith.constant 0.353553385 : f32
    %61 = vector.broadcast %cst_22 : f32 to vector<2x8x8xf32>
    %62 = arith.mulf %60, %61 : vector<2x8x8xf32>
    %63 = vector.shape_cast %18 : vector<8x8xf32> to vector<1x8x8xf32>
    %64 = vector.broadcast %63 : vector<1x8x8xf32> to vector<2x8x8xf32>
    %65 = arith.addf %62, %64 : vector<2x8x8xf32>
    %cst_23 = arith.constant dense<0xFF800000> : vector<2x8xf32>
    %66 = vector.multi_reduction <maximumf>, %65, %cst_23 [2] : vector<2x8x8xf32> to vector<2x8xf32>
    %67 = vector.shape_cast %66 : vector<2x8xf32> to vector<2x8x1xf32>
    %68 = vector.broadcast %67 : vector<2x8x1xf32> to vector<2x8x8xf32>
    %69 = arith.subf %65, %68 : vector<2x8x8xf32>
    %70 = math.exp %69 : vector<2x8x8xf32>
    %cst_24 = arith.constant dense<0.000000e+00> : vector<2x8xf32>
    %71 = vector.multi_reduction <add>, %70, %cst_24 [2] : vector<2x8x8xf32> to vector<2x8xf32>
    %72 = vector.shape_cast %71 : vector<2x8xf32> to vector<2x8x1xf32>
    %73 = vector.broadcast %72 : vector<2x8x1xf32> to vector<2x8x8xf32>
    %74 = arith.divf %70, %73 : vector<2x8x8xf32>
    "tpu.trace_start"() <{level = 10 : i32, message = "bqk,bkd->bqd"}> : () -> ()
    %cst_25 = arith.constant dense<0.000000e+00> : vector<2x8x8xf32>
    %75 = tpu.matmul %74, %59, %cst_25 {dimension_numbers = #tpu.dot_dimension_numbers<[2], [1], [1], [2], [0, 0, 0, 1, 1, 2], [0], [0]>, precision = #tpu.contract_precision<fp32>} : vector<2x8x8xf32>, vector<2x8x8xf32>, vector<2x8x8xf32> -> vector<2x8x8xf32>
    "tpu.trace_stop"() : () -> ()
    %76 = vector.extract_strided_slice %12 {offsets = [0, 0, 24], sizes = [2, 8, 8], strides = [1, 1, 1]} : vector<2x8x96xf32> to vector<2x8x8xf32>
    %77 = vector.extract_strided_slice %12 {offsets = [0, 0, 56], sizes = [2, 8, 8], strides = [1, 1, 1]} : vector<2x8x96xf32> to vector<2x8x8xf32>
    %78 = vector.extract_strided_slice %12 {offsets = [0, 0, 88], sizes = [2, 8, 8], strides = [1, 1, 1]} : vector<2x8x96xf32> to vector<2x8x8xf32>
    "tpu.trace_start"() <{level = 10 : i32, message = "bqd,bkd->bqk"}> : () -> ()
    %cst_26 = arith.constant dense<0.000000e+00> : vector<2x8x8xf32>
    %79 = tpu.matmul %76, %77, %cst_26 {dimension_numbers = #tpu.dot_dimension_numbers<[2], [2], [1], [1], [0, 0, 0, 1, 1, 1], [0], [0]>, precision = #tpu.contract_precision<fp32>} : vector<2x8x8xf32>, vector<2x8x8xf32>, vector<2x8x8xf32> -> vector<2x8x8xf32>
    "tpu.trace_stop"() : () -> ()
    %cst_27 = arith.constant 0.353553385 : f32
    %80 = vector.broadcast %cst_27 : f32 to vector<2x8x8xf32>
    %81 = arith.mulf %79, %80 : vector<2x8x8xf32>
    %82 = vector.shape_cast %18 : vector<8x8xf32> to vector<1x8x8xf32>
    %83 = vector.broadcast %82 : vector<1x8x8xf32> to vector<2x8x8xf32>
    %84 = arith.addf %81, %83 : vector<2x8x8xf32>
    %cst_28 = arith.constant dense<0xFF800000> : vector<2x8xf32>
    %85 = vector.multi_reduction <maximumf>, %84, %cst_28 [2] : vector<2x8x8xf32> to vector<2x8xf32>
    %86 = vector.shape_cast %85 : vector<2x8xf32> to vector<2x8x1xf32>
    %87 = vector.broadcast %86 : vector<2x8x1xf32> to vector<2x8x8xf32>
    %88 = arith.subf %84, %87 : vector<2x8x8xf32>
    %89 = math.exp %88 : vector<2x8x8xf32>
    %cst_29 = arith.constant dense<0.000000e+00> : vector<2x8xf32>
    %90 = vector.multi_reduction <add>, %89, %cst_29 [2] : vector<2x8x8xf32> to vector<2x8xf32>
    %91 = vector.shape_cast %90 : vector<2x8xf32> to vector<2x8x1xf32>
    %92 = vector.broadcast %91 : vector<2x8x1xf32> to vector<2x8x8xf32>
    %93 = arith.divf %89, %92 : vector<2x8x8xf32>
    "tpu.trace_start"() <{level = 10 : i32, message = "bqk,bkd->bqd"}> : () -> ()
    %cst_30 = arith.constant dense<0.000000e+00> : vector<2x8x8xf32>
    %94 = tpu.matmul %93, %78, %cst_30 {dimension_numbers = #tpu.dot_dimension_numbers<[2], [1], [1], [2], [0, 0, 0, 1, 1, 2], [0], [0]>, precision = #tpu.contract_precision<fp32>} : vector<2x8x8xf32>, vector<2x8x8xf32>, vector<2x8x8xf32> -> vector<2x8x8xf32>
    "tpu.trace_stop"() : () -> ()
    %95 = tpu.concatenate %37, %56, %75, %94 in 2 : vector<2x8x8xf32>, vector<2x8x8xf32>, vector<2x8x8xf32>, vector<2x8x8xf32> -> vector<2x8x32xf32>
    %96 = vector.shape_cast %95 : vector<2x8x32xf32> to vector<16x32xf32>
    %c0_31 = arith.constant 0 : index
    %c0_32 = arith.constant 0 : index
    %c0_33 = arith.constant 0 : index
    %97 = vector.load %arg13[%c0_31, %c0_32, %c0_33] : memref<1x32x32xf32, #tpu.memory_space<vmem>>, vector<1x32x32xf32>
    %98 = vector.shape_cast %97 : vector<1x32x32xf32> to vector<32x32xf32>
    %cst_34 = arith.constant dense<0.000000e+00> : vector<16x32xf32>
    %99 = tpu.matmul %96, %98, %cst_34 {dimension_numbers = #tpu.dot_dimension_numbers<[1], [0], [0], [1], [0, 0, 1, 1], [], []>, precision = #tpu.contract_precision<fp32>} : vector<16x32xf32>, vector<32x32xf32>, vector<16x32xf32> -> vector<16x32xf32>
    %c0_35 = arith.constant 0 : index
    %c0_36 = arith.constant 0 : index
    %c0_37 = arith.constant 0 : index
    %100 = vector.load %arg14[%c0_35, %c0_36, %c0_37] : memref<1x1x32xf32, #tpu.memory_space<vmem>>, vector<1x1x32xf32>
    %101 = vector.shape_cast %100 : vector<1x1x32xf32> to vector<1x32xf32>
    %102 = vector.broadcast %101 : vector<1x32xf32> to vector<16x32xf32>
    %103 = arith.addf %99, %102 : vector<16x32xf32>
    %104 = arith.addf %4, %103 : vector<16x32xf32>
    %c0_38 = arith.constant 0 : index
    %c0_39 = arith.constant 0 : index
    %c0_40 = arith.constant 0 : index
    %105 = vector.load %arg15[%c0_38, %c0_39, %c0_40] : memref<1x1x32xf32, #tpu.memory_space<vmem>>, vector<1x1x32xf32>
    %106 = vector.shape_cast %105 : vector<1x1x32xf32> to vector<1x32xf32>
    %c0_41 = arith.constant 0 : index
    %c0_42 = arith.constant 0 : index
    %c0_43 = arith.constant 0 : index
    %107 = vector.load %arg16[%c0_41, %c0_42, %c0_43] : memref<1x1x32xf32, #tpu.memory_space<vmem>>, vector<1x1x32xf32>
    %108 = vector.shape_cast %107 : vector<1x1x32xf32> to vector<1x32xf32>
    %cst_44 = arith.constant dense<0.000000e+00> : vector<16xf32>
    %109 = vector.multi_reduction <add>, %104, %cst_44 [1] : vector<16x32xf32> to vector<16xf32>
    %110 = vector.shape_cast %109 : vector<16xf32> to vector<16x1xf32>
    %cst_45 = arith.constant 3.200000e+01 : f32
    %111 = vector.broadcast %cst_45 : f32 to vector<16x1xf32>
    %112 = arith.divf %110, %111 : vector<16x1xf32>
    %113 = vector.broadcast %112 : vector<16x1xf32> to vector<16x32xf32>
    %114 = arith.subf %104, %113 : vector<16x32xf32>
    %115 = arith.mulf %114, %114 : vector<16x32xf32>
    %cst_46 = arith.constant dense<0.000000e+00> : vector<16xf32>
    %116 = vector.multi_reduction <add>, %115, %cst_46 [1] : vector<16x32xf32> to vector<16xf32>
    %117 = vector.shape_cast %116 : vector<16xf32> to vector<16x1xf32>
    %cst_47 = arith.constant 3.200000e+01 : f32
    %118 = vector.broadcast %cst_47 : f32 to vector<16x1xf32>
    %119 = arith.divf %117, %118 : vector<16x1xf32>
    %120 = vector.broadcast %112 : vector<16x1xf32> to vector<16x32xf32>
    %121 = arith.subf %104, %120 : vector<16x32xf32>
    %cst_48 = arith.constant 9.99999974E-6 : f32
    %122 = vector.broadcast %cst_48 : f32 to vector<16x1xf32>
    %123 = arith.addf %119, %122 : vector<16x1xf32>
    %124 = math.rsqrt %123 : vector<16x1xf32>
    %125 = vector.broadcast %124 : vector<16x1xf32> to vector<16x32xf32>
    %126 = arith.mulf %121, %125 : vector<16x32xf32>
    %127 = vector.broadcast %106 : vector<1x32xf32> to vector<16x32xf32>
    %128 = arith.mulf %126, %127 : vector<16x32xf32>
    %129 = vector.broadcast %108 : vector<1x32xf32> to vector<16x32xf32>
    %130 = arith.addf %128, %129 : vector<16x32xf32>
    %c0_49 = arith.constant 0 : index
    %c0_50 = arith.constant 0 : index
    %c0_51 = arith.constant 0 : index
    %131 = vector.load %arg17[%c0_49, %c0_50, %c0_51] : memref<1x32x64xf32, #tpu.memory_space<vmem>>, vector<1x32x64xf32>
    %132 = vector.shape_cast %131 : vector<1x32x64xf32> to vector<32x64xf32>
    %cst_52 = arith.constant dense<0.000000e+00> : vector<16x64xf32>
    %133 = tpu.matmul %130, %132, %cst_52 {dimension_numbers = #tpu.dot_dimension_numbers<[1], [0], [0], [1], [0, 0, 1, 1], [], []>, precision = #tpu.contract_precision<fp32>} : vector<16x32xf32>, vector<32x64xf32>, vector<16x64xf32> -> vector<16x64xf32>
    %c0_53 = arith.constant 0 : index
    %c0_54 = arith.constant 0 : index
    %c0_55 = arith.constant 0 : index
    %134 = vector.load %arg18[%c0_53, %c0_54, %c0_55] : memref<1x1x64xf32, #tpu.memory_space<vmem>>, vector<1x1x64xf32>
    %135 = vector.shape_cast %134 : vector<1x1x64xf32> to vector<1x64xf32>
    %136 = vector.broadcast %135 : vector<1x64xf32> to vector<16x64xf32>
    %137 = arith.addf %133, %136 : vector<16x64xf32>
    %cst_56 = arith.constant 0.000000e+00 : f32
    %138 = vector.broadcast %cst_56 : f32 to vector<16x64xf32>
    %139 = arith.maximumf %137, %138 : vector<16x64xf32>
    %c0_57 = arith.constant 0 : index
    %c0_58 = arith.constant 0 : index
    %c0_59 = arith.constant 0 : index
    %140 = vector.load %arg19[%c0_57, %c0_58, %c0_59] : memref<1x64x32xf32, #tpu.memory_space<vmem>>, vector<1x64x32xf32>
    %141 = vector.shape_cast %140 : vector<1x64x32xf32> to vector<64x32xf32>
    %cst_60 = arith.constant dense<0.000000e+00> : vector<16x32xf32>
    %142 = tpu.matmul %139, %141, %cst_60 {dimension_numbers = #tpu.dot_dimension_numbers<[1], [0], [0], [1], [0, 0, 1, 1], [], []>, precision = #tpu.contract_precision<fp32>} : vector<16x64xf32>, vector<64x32xf32>, vector<16x32xf32> -> vector<16x32xf32>
    %c0_61 = arith.constant 0 : index
    %c0_62 = arith.constant 0 : index
    %c0_63 = arith.constant 0 : index
    %143 = vector.load %arg20[%c0_61, %c0_62, %c0_63] : memref<1x1x32xf32, #tpu.memory_space<vmem>>, vector<1x1x32xf32>
    %144 = vector.shape_cast %143 : vector<1x1x32xf32> to vector<1x32xf32>
    %145 = vector.broadcast %144 : vector<1x32xf32> to vector<16x32xf32>
    %146 = arith.addf %142, %145 : vector<16x32xf32>
    %147 = arith.addf %130, %146 : vector<16x32xf32>
    %c0_64 = arith.constant 0 : index
    %c0_65 = arith.constant 0 : index
    %c0_66 = arith.constant 0 : index
    %148 = vector.load %arg21[%c0_64, %c0_65, %c0_66] : memref<1x1x32xf32, #tpu.memory_space<vmem>>, vector<1x1x32xf32>
    %149 = vector.shape_cast %148 : vector<1x1x32xf32> to vector<1x32xf32>
    %c0_67 = arith.constant 0 : index
    %c0_68 = arith.constant 0 : index
    %c0_69 = arith.constant 0 : index
    %150 = vector.load %arg22[%c0_67, %c0_68, %c0_69] : memref<1x1x32xf32, #tpu.memory_space<vmem>>, vector<1x1x32xf32>
    %151 = vector.shape_cast %150 : vector<1x1x32xf32> to vector<1x32xf32>
    %cst_70 = arith.constant dense<0.000000e+00> : vector<16xf32>
    %152 = vector.multi_reduction <add>, %147, %cst_70 [1] : vector<16x32xf32> to vector<16xf32>
    %153 = vector.shape_cast %152 : vector<16xf32> to vector<16x1xf32>
    %cst_71 = arith.constant 3.200000e+01 : f32
    %154 = vector.broadcast %cst_71 : f32 to vector<16x1xf32>
    %155 = arith.divf %153, %154 : vector<16x1xf32>
    %156 = vector.broadcast %155 : vector<16x1xf32> to vector<16x32xf32>
    %157 = arith.subf %147, %156 : vector<16x32xf32>
    %158 = arith.mulf %157, %157 : vector<16x32xf32>
    %cst_72 = arith.constant dense<0.000000e+00> : vector<16xf32>
    %159 = vector.multi_reduction <add>, %158, %cst_72 [1] : vector<16x32xf32> to vector<16xf32>
    %160 = vector.shape_cast %159 : vector<16xf32> to vector<16x1xf32>
    %cst_73 = arith.constant 3.200000e+01 : f32
    %161 = vector.broadcast %cst_73 : f32 to vector<16x1xf32>
    %162 = arith.divf %160, %161 : vector<16x1xf32>
    %163 = vector.broadcast %155 : vector<16x1xf32> to vector<16x32xf32>
    %164 = arith.subf %147, %163 : vector<16x32xf32>
    %cst_74 = arith.constant 9.99999974E-6 : f32
    %165 = vector.broadcast %cst_74 : f32 to vector<16x1xf32>
    %166 = arith.addf %162, %165 : vector<16x1xf32>
    %167 = math.rsqrt %166 : vector<16x1xf32>
    %168 = vector.broadcast %167 : vector<16x1xf32> to vector<16x32xf32>
    %169 = arith.mulf %164, %168 : vector<16x32xf32>
    %170 = vector.broadcast %149 : vector<1x32xf32> to vector<16x32xf32>
    %171 = arith.mulf %169, %170 : vector<16x32xf32>
    %172 = vector.broadcast %151 : vector<1x32xf32> to vector<16x32xf32>
    %173 = arith.addf %171, %172 : vector<16x32xf32>
    %174 = vector.shape_cast %173 : vector<16x32xf32> to vector<2x8x32xf32>
    %c0_75 = arith.constant 0 : index
    %c0_76 = arith.constant 0 : index
    %c0_77 = arith.constant 0 : index
    %175 = vector.load %arg39[%c0_75, %c0_76, %c0_77] : memref<2x8x32xf32, #tpu.memory_space<vmem>>, vector<2x8x32xf32>
    tpu.vector_store %arg39[%c0_75, %c0_76, %c0_77], %174 {strides = array<i32>} : memref<2x8x32xf32, #tpu.memory_space<vmem>>, vector<2x8x32xf32>,
    %c1_i32 = arith.constant 1 : i32
    %176 = arith.cmpi eq, %arg1, %c1_i32 : i32
    %177 = arith.extui %176 : i1 to i32
    %c0_i32_78 = arith.constant 0 : i32
    %178 = arith.cmpi ne, %177, %c0_i32_78 : i32
    scf.if %178 {
      %179 = arith.index_cast %arg0 : i32 to index
      %180 = memref.load %arg2[%179] : memref<2xi32, #tpu.memory_space<smem>>
      %181 = tpu.iota {dimensions = array<i32: 0>} : vector<8x1xi32>
      %c1_i32_79 = arith.constant 1 : i32
      %182 = arith.subi %180, %c1_i32_79 : i32
      %183 = vector.broadcast %182 : i32 to vector<8x1xi32>
      %184 = arith.cmpi eq, %181, %183 : vector<8x1xi32>
      %185 = arith.extui %184 : vector<8x1xi1> to vector<8x1xi32>
      %186 = arith.sitofp %185 : vector<8x1xi32> to vector<8x1xf32>
      %c0_80 = arith.constant 0 : index
      %c0_81 = arith.constant 0 : index
      %c0_82 = arith.constant 0 : index
      %187 = vector.load %arg39[%c0_80, %c0_81, %c0_82] : memref<2x8x32xf32, #tpu.memory_space<vmem>>, vector<2x8x32xf32>
      %188 = vector.shape_cast %186 : vector<8x1xf32> to vector<1x8x1xf32>
      %189 = vector.broadcast %188 : vector<1x8x1xf32> to vector<2x8x32xf32>
      %190 = arith.mulf %187, %189 : vector<2x8x32xf32>
      %cst_83 = arith.constant dense<0.000000e+00> : vector<2x32xf32>
      %191 = vector.multi_reduction <add>, %190, %cst_83 [1] : vector<2x8x32xf32> to vector<2x32xf32>
      %192 = vector.extract_strided_slice %191 {offsets = [0, 0], sizes = [1, 32], strides = [1, 1]} : vector<2x32xf32> to vector<1x32xf32>
      %193 = vector.extract_strided_slice %191 {offsets = [1, 0], sizes = [1, 32], strides = [1, 1]} : vector<2x32xf32> to vector<1x32xf32>
      %c0_84 = arith.constant 0 : index
      %c0_85 = arith.constant 0 : index
      %c0_86 = arith.constant 0 : index
      %194 = vector.load %arg4[%c0_84, %c0_85, %c0_86] : memref<1x1x32xf32, #tpu.memory_space<vmem>>, vector<1x1x32xf32>
      %195 = vector.shape_cast %194 : vector<1x1x32xf32> to vector<1x32xf32>
      %c0_87 = arith.constant 0 : index
      %c0_88 = arith.constant 0 : index
      %196 = vector.load %arg23[%c0_87, %c0_88] : memref<32x32xf32, #tpu.memory_space<vmem>>, vector<32x32xf32>
      %cst_89 = arith.constant dense<0.000000e+00> : vector<1x32xf32>
      %197 = tpu.matmul %195, %196, %cst_89 {dimension_numbers = #tpu.dot_dimension_numbers<[1], [0], [0], [1], [0, 0, 1, 1], [], []>, precision = #tpu.contract_precision<fp32>} : vector<1x32xf32>, vector<32x32xf32>, vector<1x32xf32> -> vector<1x32xf32>
      %c0_90 = arith.constant 0 : index
      %c0_91 = arith.constant 0 : index
      %198 = vector.load %arg24[%c0_90, %c0_91] : memref<1x32xf32, #tpu.memory_space<vmem>>, vector<1x32xf32>
      %199 = arith.addf %197, %198 : vector<1x32xf32>
      %c0_92 = arith.constant 0 : index
      %c0_93 = arith.constant 0 : index
      %200 = vector.load %arg25[%c0_92, %c0_93] : memref<32x32xf32, #tpu.memory_space<vmem>>, vector<32x32xf32>
      %cst_94 = arith.constant dense<0.000000e+00> : vector<1x32xf32>
      %201 = tpu.matmul %192, %200, %cst_94 {dimension_numbers = #tpu.dot_dimension_numbers<[1], [0], [0], [1], [0, 0, 1, 1], [], []>, precision = #tpu.contract_precision<fp32>} : vector<1x32xf32>, vector<32x32xf32>, vector<1x32xf32> -> vector<1x32xf32>
      %c0_95 = arith.constant 0 : index
      %c0_96 = arith.constant 0 : index
      %202 = vector.load %arg26[%c0_95, %c0_96] : memref<32x32xf32, #tpu.memory_space<vmem>>, vector<32x32xf32>
      %cst_97 = arith.constant dense<0.000000e+00> : vector<1x32xf32>
      %203 = tpu.matmul %193, %202, %cst_97 {dimension_numbers = #tpu.dot_dimension_numbers<[1], [0], [0], [1], [0, 0, 1, 1], [], []>, precision = #tpu.contract_precision<fp32>} : vector<1x32xf32>, vector<32x32xf32>, vector<1x32xf32> -> vector<1x32xf32>
      %204 = arith.addf %201, %203 : vector<1x32xf32>
      %c0_98 = arith.constant 0 : index
      %c0_99 = arith.constant 0 : index
      %205 = vector.load %arg27[%c0_98, %c0_99] : memref<32x32xf32, #tpu.memory_space<vmem>>, vector<32x32xf32>
      %cst_100 = arith.constant dense<0.000000e+00> : vector<1x32xf32>
      %206 = tpu.matmul %199, %205, %cst_100 {dimension_numbers = #tpu.dot_dimension_numbers<[1], [0], [0], [1], [0, 0, 1, 1], [], []>, precision = #tpu.contract_precision<fp32>} : vector<1x32xf32>, vector<32x32xf32>, vector<1x32xf32> -> vector<1x32xf32>
      %207 = arith.addf %204, %206 : vector<1x32xf32>
      %c0_101 = arith.constant 0 : index
      %c0_102 = arith.constant 0 : index
      %208 = vector.load %arg28[%c0_101, %c0_102] : memref<1x32xf32, #tpu.memory_space<vmem>>, vector<1x32xf32>
      %209 = arith.addf %207, %208 : vector<1x32xf32>
      %c0_103 = arith.constant 0 : index
      %c0_104 = arith.constant 0 : index
      %210 = vector.load %arg29[%c0_103, %c0_104] : memref<32x32xf32, #tpu.memory_space<vmem>>, vector<32x32xf32>
      %cst_105 = arith.constant dense<0.000000e+00> : vector<1x32xf32>
      %211 = tpu.matmul %192, %210, %cst_105 {dimension_numbers = #tpu.dot_dimension_numbers<[1], [0], [0], [1], [0, 0, 1, 1], [], []>, precision = #tpu.contract_precision<fp32>} : vector<1x32xf32>, vector<32x32xf32>, vector<1x32xf32> -> vector<1x32xf32>
      %c0_106 = arith.constant 0 : index
      %c0_107 = arith.constant 0 : index
      %212 = vector.load %arg30[%c0_106, %c0_107] : memref<32x32xf32, #tpu.memory_space<vmem>>, vector<32x32xf32>
      %cst_108 = arith.constant dense<0.000000e+00> : vector<1x32xf32>
      %213 = tpu.matmul %209, %212, %cst_108 {dimension_numbers = #tpu.dot_dimension_numbers<[1], [0], [0], [1], [0, 0, 1, 1], [], []>, precision = #tpu.contract_precision<fp32>} : vector<1x32xf32>, vector<32x32xf32>, vector<1x32xf32> -> vector<1x32xf32>
      %214 = arith.addf %211, %213 : vector<1x32xf32>
      %c0_109 = arith.constant 0 : index
      %c0_110 = arith.constant 0 : index
      %215 = vector.load %arg31[%c0_109, %c0_110] : memref<32x32xf32, #tpu.memory_space<vmem>>, vector<32x32xf32>
      %cst_111 = arith.constant dense<0.000000e+00> : vector<1x32xf32>
      %216 = tpu.matmul %193, %215, %cst_111 {dimension_numbers = #tpu.dot_dimension_numbers<[1], [0], [0], [1], [0, 0, 1, 1], [], []>, precision = #tpu.contract_precision<fp32>} : vector<1x32xf32>, vector<32x32xf32>, vector<1x32xf32> -> vector<1x32xf32>
      %c0_112 = arith.constant 0 : index
      %c0_113 = arith.constant 0 : index
      %217 = vector.load %arg32[%c0_112, %c0_113] : memref<32x32xf32, #tpu.memory_space<vmem>>, vector<32x32xf32>
      %cst_114 = arith.constant dense<0.000000e+00> : vector<1x32xf32>
      %218 = tpu.matmul %209, %217, %cst_114 {dimension_numbers = #tpu.dot_dimension_numbers<[1], [0], [0], [1], [0, 0, 1, 1], [], []>, precision = #tpu.contract_precision<fp32>} : vector<1x32xf32>, vector<32x32xf32>, vector<1x32xf32> -> vector<1x32xf32>
      %219 = arith.addf %216, %218 : vector<1x32xf32>
      %c0_115 = arith.constant 0 : index
      %c0_116 = arith.constant 0 : index
      %220 = vector.load %arg33[%c0_115, %c0_116] : memref<32x128xf32, #tpu.memory_space<vmem>>, vector<32x128xf32>
      %cst_117 = arith.constant dense<0.000000e+00> : vector<1x128xf32>
      %221 = tpu.matmul %214, %220, %cst_117 {dimension_numbers = #tpu.dot_dimension_numbers<[1], [0], [0], [1], [0, 0, 1, 1], [], []>, precision = #tpu.contract_precision<fp32>} : vector<1x32xf32>, vector<32x128xf32>, vector<1x128xf32> -> vector<1x128xf32>
      %c0_118 = arith.constant 0 : index
      %c0_119 = arith.constant 0 : index
      %222 = vector.load %arg34[%c0_118, %c0_119] : memref<1x128xf32, #tpu.memory_space<vmem>>, vector<1x128xf32>
      %223 = arith.addf %221, %222 : vector<1x128xf32>
      %c0_120 = arith.constant 0 : index
      %c0_121 = arith.constant 0 : index
      %224 = vector.load %arg35[%c0_120, %c0_121] : memref<32x128xf32, #tpu.memory_space<vmem>>, vector<32x128xf32>
      %cst_122 = arith.constant dense<0.000000e+00> : vector<1x128xf32>
      %225 = tpu.matmul %219, %224, %cst_122 {dimension_numbers = #tpu.dot_dimension_numbers<[1], [0], [0], [1], [0, 0, 1, 1], [], []>, precision = #tpu.contract_precision<fp32>} : vector<1x32xf32>, vector<32x128xf32>, vector<1x128xf32> -> vector<1x128xf32>
      %c0_123 = arith.constant 0 : index
      %c0_124 = arith.constant 0 : index
      %226 = vector.load %arg36[%c0_123, %c0_124] : memref<1x128xf32, #tpu.memory_space<vmem>>, vector<1x128xf32>
      %227 = arith.addf %225, %226 : vector<1x128xf32>
      %cst_125 = arith.constant dense<0xFF800000> : vector<1xf32>
      %228 = vector.multi_reduction <maximumf>, %223, %cst_125 [1] : vector<1x128xf32> to vector<1xf32>
      %229 = vector.shape_cast %228 : vector<1xf32> to vector<1x1xf32>
      %230 = vector.broadcast %229 : vector<1x1xf32> to vector<1x128xf32>
      %231 = arith.subf %223, %230 : vector<1x128xf32>
      %232 = math.exp %231 : vector<1x128xf32>
      %cst_126 = arith.constant dense<0.000000e+00> : vector<1xf32>
      %233 = vector.multi_reduction <add>, %232, %cst_126 [1] : vector<1x128xf32> to vector<1xf32>
      %234 = vector.shape_cast %233 : vector<1xf32> to vector<1x1xf32>
      %235 = math.log %234 : vector<1x1xf32>
      %236 = vector.broadcast %235 : vector<1x1xf32> to vector<1x128xf32>
      %237 = arith.subf %231, %236 : vector<1x128xf32>
      %238 = vector.shape_cast %237 : vector<1x128xf32> to vector<1x1x128xf32>
      %c0_127 = arith.constant 0 : index
      %c0_128 = arith.constant 0 : index
      %c0_129 = arith.constant 0 : index
      %239 = vector.load %arg37[%c0_127, %c0_128, %c0_129] : memref<1x1x128xf32, #tpu.memory_space<vmem>>, vector<1x1x128xf32>
      tpu.vector_store %arg37[%c0_127, %c0_128, %c0_129], %238 {strides = array<i32>} : memref<1x1x128xf32, #tpu.memory_space<vmem>>, vector<1x1x128xf32>,
      %cst_130 = arith.constant dense<0xFF800000> : vector<1xf32>
      %240 = vector.multi_reduction <maximumf>, %227, %cst_130 [1] : vector<1x128xf32> to vector<1xf32>
      %241 = vector.shape_cast %240 : vector<1xf32> to vector<1x1xf32>
      %242 = vector.broadcast %241 : vector<1x1xf32> to vector<1x128xf32>
      %243 = arith.subf %227, %242 : vector<1x128xf32>
      %244 = math.exp %243 : vector<1x128xf32>
      %cst_131 = arith.constant dense<0.000000e+00> : vector<1xf32>
      %245 = vector.multi_reduction <add>, %244, %cst_131 [1] : vector<1x128xf32> to vector<1xf32>
      %246 = vector.shape_cast %245 : vector<1xf32> to vector<1x1xf32>
      %247 = math.log %246 : vector<1x1xf32>
      %248 = vector.broadcast %247 : vector<1x1xf32> to vector<1x128xf32>
      %249 = arith.subf %243, %248 : vector<1x128xf32>
      %250 = vector.shape_cast %249 : vector<1x128xf32> to vector<1x1x128xf32>
      %c0_132 = arith.constant 0 : index
      %c0_133 = arith.constant 0 : index
      %c0_134 = arith.constant 0 : index
      %251 = vector.load %arg38[%c0_132, %c0_133, %c0_134] : memref<1x1x128xf32, #tpu.memory_space<vmem>>, vector<1x1x128xf32>
      tpu.vector_store %arg38[%c0_132, %c0_133, %c0_134], %250 {strides = array<i32>} : memref<1x1x128xf32, #tpu.memory_space<vmem>>, vector<1x1x128xf32>,
    } else {
    }
    return
  }
  func.func @transform_0(%arg0: i32, %arg1: i32, %arg2: memref<2xi32, #tpu.memory_space<smem>>) -> (i32, i32, i32, i32) {
    %c0_i32 = arith.constant 0 : i32
    %c0_i32_0 = arith.constant 0 : i32
    %c0_i32_1 = arith.constant 0 : i32
    %c0_i32_2 = arith.constant 0 : i32
    return %arg0, %c0_i32, %c0_i32_0, %c0_i32_1 : i32, i32, i32, i32
  }
  func.func @transform_1(%arg0: i32, %arg1: i32, %arg2: memref<2xi32, #tpu.memory_space<smem>>) -> (i32, i32, i32) {
    %c0_i32 = arith.constant 0 : i32
    %c0_i32_0 = arith.constant 0 : i32
    %c0_i32_1 = arith.constant 0 : i32
    return %arg0, %c0_i32, %c0_i32_0 : i32, i32, i32
  }
  func.func @transform_2(%arg0: i32, %arg1: i32, %arg2: memref<2xi32, #tpu.memory_space<smem>>) -> (i32, i32) {
    %c0_i32 = arith.constant 0 : i32
    %c0_i32_0 = arith.constant 0 : i32
    %c0_i32_1 = arith.constant 0 : i32
    return %c0_i32, %c0_i32_0 : i32, i32
  }
  func.func @transform_3(%arg0: i32, %arg1: i32, %arg2: memref<2xi32, #tpu.memory_space<smem>>) -> (i32, i32) {
    %c0_i32 = arith.constant 0 : i32
    %c0_i32_0 = arith.constant 0 : i32
    %c0_i32_1 = arith.constant 0 : i32
    return %c0_i32, %c0_i32_0 : i32, i32
  }
  func.func @transform_4(%arg0: i32, %arg1: i32, %arg2: memref<2xi32, #tpu.memory_space<smem>>) -> (i32, i32) {
    %c0_i32 = arith.constant 0 : i32
    %c0_i32_0 = arith.constant 0 : i32
    %c0_i32_1 = arith.constant 0 : i32
    return %c0_i32, %c0_i32_0 : i32, i32
  }
  func.func @transform_5(%arg0: i32, %arg1: i32, %arg2: memref<2xi32, #tpu.memory_space<smem>>) -> (i32, i32) {
    %c0_i32 = arith.constant 0 : i32
    %c0_i32_0 = arith.constant 0 : i32
    %c0_i32_1 = arith.constant 0 : i32
    return %c0_i32, %c0_i32_0 : i32, i32
  }
  func.func @transform_6(%arg0: i32, %arg1: i32, %arg2: memref<2xi32, #tpu.memory_space<smem>>) -> (i32, i32) {
    %c0_i32 = arith.constant 0 : i32
    %c0_i32_0 = arith.constant 0 : i32
    %c0_i32_1 = arith.constant 0 : i32
    return %c0_i32, %c0_i32_0 : i32, i32
  }
  func.func @transform_7(%arg0: i32, %arg1: i32, %arg2: memref<2xi32, #tpu.memory_space<smem>>) -> (i32, i32) {
    %c0_i32 = arith.constant 0 : i32
    %c0_i32_0 = arith.constant 0 : i32
    %c0_i32_1 = arith.constant 0 : i32
    return %c0_i32, %c0_i32_0 : i32, i32
  }
  func.func @transform_8(%arg0: i32, %arg1: i32, %arg2: memref<2xi32, #tpu.memory_space<smem>>) -> (i32, i32, i32) {
    %c0_i32 = arith.constant 0 : i32
    %c0_i32_0 = arith.constant 0 : i32
    %c0_i32_1 = arith.constant 0 : i32
    return %arg1, %c0_i32, %c0_i32_0 : i32, i32, i32
  }
  func.func @transform_9(%arg0: i32, %arg1: i32, %arg2: memref<2xi32, #tpu.memory_space<smem>>) -> (i32, i32, i32) {
    %c0_i32 = arith.constant 0 : i32
    %c0_i32_0 = arith.constant 0 : i32
    %c0_i32_1 = arith.constant 0 : i32
    return %arg1, %c0_i32, %c0_i32_0 : i32, i32, i32
  }
  func.func @transform_10(%arg0: i32, %arg1: i32, %arg2: memref<2xi32, #tpu.memory_space<smem>>) -> (i32, i32, i32) {
    %c0_i32 = arith.constant 0 : i32
    %c0_i32_0 = arith.constant 0 : i32
    %c0_i32_1 = arith.constant 0 : i32
    return %arg1, %c0_i32, %c0_i32_0 : i32, i32, i32
  }
  func.func @transform_11(%arg0: i32, %arg1: i32, %arg2: memref<2xi32, #tpu.memory_space<smem>>) -> (i32, i32, i32) {
    %c0_i32 = arith.constant 0 : i32
    %c0_i32_0 = arith.constant 0 : i32
    %c0_i32_1 = arith.constant 0 : i32
    return %arg1, %c0_i32, %c0_i32_0 : i32, i32, i32
  }
  func.func @transform_12(%arg0: i32, %arg1: i32, %arg2: memref<2xi32, #tpu.memory_space<smem>>) -> (i32, i32, i32) {
    %c0_i32 = arith.constant 0 : i32
    %c0_i32_0 = arith.constant 0 : i32
    %c0_i32_1 = arith.constant 0 : i32
    return %arg1, %c0_i32, %c0_i32_0 : i32, i32, i32
  }
  func.func @transform_13(%arg0: i32, %arg1: i32, %arg2: memref<2xi32, #tpu.memory_space<smem>>) -> (i32, i32, i32) {
    %c0_i32 = arith.constant 0 : i32
    %c0_i32_0 = arith.constant 0 : i32
    %c0_i32_1 = arith.constant 0 : i32
    return %arg1, %c0_i32, %c0_i32_0 : i32, i32, i32
  }
  func.func @transform_14(%arg0: i32, %arg1: i32, %arg2: memref<2xi32, #tpu.memory_space<smem>>) -> (i32, i32, i32) {
    %c0_i32 = arith.constant 0 : i32
    %c0_i32_0 = arith.constant 0 : i32
    %c0_i32_1 = arith.constant 0 : i32
    return %arg1, %c0_i32, %c0_i32_0 : i32, i32, i32
  }
  func.func @transform_15(%arg0: i32, %arg1: i32, %arg2: memref<2xi32, #tpu.memory_space<smem>>) -> (i32, i32, i32) {
    %c0_i32 = arith.constant 0 : i32
    %c0_i32_0 = arith.constant 0 : i32
    %c0_i32_1 = arith.constant 0 : i32
    return %arg1, %c0_i32, %c0_i32_0 : i32, i32, i32
  }
  func.func @transform_16(%arg0: i32, %arg1: i32, %arg2: memref<2xi32, #tpu.memory_space<smem>>) -> (i32, i32, i32) {
    %c0_i32 = arith.constant 0 : i32
    %c0_i32_0 = arith.constant 0 : i32
    %c0_i32_1 = arith.constant 0 : i32
    return %arg1, %c0_i32, %c0_i32_0 : i32, i32, i32
  }
  func.func @transform_17(%arg0: i32, %arg1: i32, %arg2: memref<2xi32, #tpu.memory_space<smem>>) -> (i32, i32, i32) {
    %c0_i32 = arith.constant 0 : i32
    %c0_i32_0 = arith.constant 0 : i32
    %c0_i32_1 = arith.constant 0 : i32
    return %arg1, %c0_i32, %c0_i32_0 : i32, i32, i32
  }
  func.func @transform_18(%arg0: i32, %arg1: i32, %arg2: memref<2xi32, #tpu.memory_space<smem>>) -> (i32, i32, i32) {
    %c0_i32 = arith.constant 0 : i32
    %c0_i32_0 = arith.constant 0 : i32
    %c0_i32_1 = arith.constant 0 : i32
    return %arg1, %c0_i32, %c0_i32_0 : i32, i32, i32
  }
  func.func @transform_19(%arg0: i32, %arg1: i32, %arg2: memref<2xi32, #tpu.memory_space<smem>>) -> (i32, i32, i32) {
    %c0_i32 = arith.constant 0 : i32
    %c0_i32_0 = arith.constant 0 : i32
    %c0_i32_1 = arith.constant 0 : i32
    return %arg1, %c0_i32, %c0_i32_0 : i32, i32, i32
  }
  func.func @transform_20(%arg0: i32, %arg1: i32, %arg2: memref<2xi32, #tpu.memory_space<smem>>) -> (i32, i32) {
    %c0_i32 = arith.constant 0 : i32
    %c0_i32_0 = arith.constant 0 : i32
    %c0_i32_1 = arith.constant 0 : i32
    return %c0_i32, %c0_i32_0 : i32, i32
  }
  func.func @transform_21(%arg0: i32, %arg1: i32, %arg2: memref<2xi32, #tpu.memory_space<smem>>) -> (i32, i32) {
    %c0_i32 = arith.constant 0 : i32
    %c0_i32_0 = arith.constant 0 : i32
    %c0_i32_1 = arith.constant 0 : i32
    return %c0_i32, %c0_i32_0 : i32, i32
  }
  func.func @transform_22(%arg0: i32, %arg1: i32, %arg2: memref<2xi32, #tpu.memory_space<smem>>) -> (i32, i32) {
    %c0_i32 = arith.constant 0 : i32
    %c0_i32_0 = arith.constant 0 : i32
    %c0_i32_1 = arith.constant 0 : i32
    return %c0_i32, %c0_i32_0 : i32, i32
  }
  func.func @transform_23(%arg0: i32, %arg1: i32, %arg2: memref<2xi32, #tpu.memory_space<smem>>) -> (i32, i32) {
    %c0_i32 = arith.constant 0 : i32
    %c0_i32_0 = arith.constant 0 : i32
    %c0_i32_1 = arith.constant 0 : i32
    return %c0_i32, %c0_i32_0 : i32, i32
  }
  func.func @transform_24(%arg0: i32, %arg1: i32, %arg2: memref<2xi32, #tpu.memory_space<smem>>) -> (i32, i32) {
    %c0_i32 = arith.constant 0 : i32
    %c0_i32_0 = arith.constant 0 : i32
    %c0_i32_1 = arith.constant 0 : i32
    return %c0_i32, %c0_i32_0 : i32, i32
  }
  func.func @transform_25(%arg0: i32, %arg1: i32, %arg2: memref<2xi32, #tpu.memory_space<smem>>) -> (i32, i32) {
    %c0_i32 = arith.constant 0 : i32
    %c0_i32_0 = arith.constant 0 : i32
    %c0_i32_1 = arith.constant 0 : i32
    return %c0_i32, %c0_i32_0 : i32, i32
  }
  func.func @transform_26(%arg0: i32, %arg1: i32, %arg2: memref<2xi32, #tpu.memory_space<smem>>) -> (i32, i32) {
    %c0_i32 = arith.constant 0 : i32
    %c0_i32_0 = arith.constant 0 : i32
    %c0_i32_1 = arith.constant 0 : i32
    return %c0_i32, %c0_i32_0 : i32, i32
  }
  func.func @transform_27(%arg0: i32, %arg1: i32, %arg2: memref<2xi32, #tpu.memory_space<smem>>) -> (i32, i32) {
    %c0_i32 = arith.constant 0 : i32
    %c0_i32_0 = arith.constant 0 : i32
    %c0_i32_1 = arith.constant 0 : i32
    return %c0_i32, %c0_i32_0 : i32, i32
  }
  func.func @transform_28(%arg0: i32, %arg1: i32, %arg2: memref<2xi32, #tpu.memory_space<smem>>) -> (i32, i32) {
    %c0_i32 = arith.constant 0 : i32
    %c0_i32_0 = arith.constant 0 : i32
    %c0_i32_1 = arith.constant 0 : i32
    return %c0_i32, %c0_i32_0 : i32, i32
  }
  func.func @transform_29(%arg0: i32, %arg1: i32, %arg2: memref<2xi32, #tpu.memory_space<smem>>) -> (i32, i32) {
    %c0_i32 = arith.constant 0 : i32
    %c0_i32_0 = arith.constant 0 : i32
    %c0_i32_1 = arith.constant 0 : i32
    return %c0_i32, %c0_i32_0 : i32, i32
  }
  func.func @transform_30(%arg0: i32, %arg1: i32, %arg2: memref<2xi32, #tpu.memory_space<smem>>) -> (i32, i32) {
    %c0_i32 = arith.constant 0 : i32
    %c0_i32_0 = arith.constant 0 : i32
    %c0_i32_1 = arith.constant 0 : i32
    return %c0_i32, %c0_i32_0 : i32, i32
  }
  func.func @transform_31(%arg0: i32, %arg1: i32, %arg2: memref<2xi32, #tpu.memory_space<smem>>) -> (i32, i32) {
    %c0_i32 = arith.constant 0 : i32
    %c0_i32_0 = arith.constant 0 : i32
    %c0_i32_1 = arith.constant 0 : i32
    return %c0_i32, %c0_i32_0 : i32, i32
  }
  func.func @transform_32(%arg0: i32, %arg1: i32, %arg2: memref<2xi32, #tpu.memory_space<smem>>) -> (i32, i32) {
    %c0_i32 = arith.constant 0 : i32
    %c0_i32_0 = arith.constant 0 : i32
    %c0_i32_1 = arith.constant 0 : i32
    return %c0_i32, %c0_i32_0 : i32, i32
  }
  func.func @transform_33(%arg0: i32, %arg1: i32, %arg2: memref<2xi32, #tpu.memory_space<smem>>) -> (i32, i32) {
    %c0_i32 = arith.constant 0 : i32
    %c0_i32_0 = arith.constant 0 : i32
    %c0_i32_1 = arith.constant 0 : i32
    return %c0_i32, %c0_i32_0 : i32, i32
  }
  func.func @transform_34(%arg0: i32, %arg1: i32, %arg2: memref<2xi32, #tpu.memory_space<smem>>) -> (i32, i32, i32) {
    %c0_i32 = arith.constant 0 : i32
    %c0_i32_0 = arith.constant 0 : i32
    %c0_i32_1 = arith.constant 0 : i32
    return %arg0, %c0_i32, %c0_i32_0 : i32, i32, i32
  }
  func.func @transform_35(%arg0: i32, %arg1: i32, %arg2: memref<2xi32, #tpu.memory_space<smem>>) -> (i32, i32, i32) {
    %c0_i32 = arith.constant 0 : i32
    %c0_i32_0 = arith.constant 0 : i32
    %c0_i32_1 = arith.constant 0 : i32
    return %arg0, %c0_i32, %c0_i32_0 : i32, i32, i32
  }
}

</mosaic_0001>

<bundles_post_ra>
// kernel: dh_gem_forward.1
= control target key start
LH: loop header
LB: loop body
LE: loop exit
PB: predicated region body
PF: predicated region fallthrough
CT: control target
= control target key end

     0   :  { %s21459_s6 = smov 1   ;;  %s21460_s10 = smov 2   ;;  %s24548_s0 = inlined_call_operand.smem [shape: u32[37], index: -1, kind: input, shape index: {}] }
   0x1   :  { %s21552_s5 = sld [smem:[%s24548_s0]]   ;;  %s21461_s14 = smov 3  }
   0x2   :  { %s21557_s9 = sld [smem:[%s24548_s0 + %s21459_s6]]   ;;  %s21462_s18 = smov 4  }
   0x3   :  { %s21562_s13 = sld [smem:[%s24548_s0 + %s21460_s10]]   ;;  %s21463_s22 = smov 5  }
   0x4   :  { %s21567_s17 = sld [smem:[%s24548_s0 + %s21461_s14]]   ;;  %s21464_s26 = smov 6  }
   0x5   :  { %s21572_s21 = sld [smem:[%s24548_s0 + %s21462_s18]]   ;;  %s21465_s30 = smov 7  }
   0x6   :  { %s21577_s25 = sld [smem:[%s24548_s0 + %s21463_s22]]   ;;  %s21466_s4 = smov 8  }
   0x7   :  { %s21582_s29 = sld [smem:[%s24548_s0 + %s21464_s26]]   ;;  %s21467_s10 = smov 9  }
   0x8   :  { %24592 = sst [smem:[#allocation49_spill]] %s21557_s9  ;;  %s21468_s15 = smov 10  }
   0x9   :  { %24593 = sst [smem:[#allocation50_spill]] %s21562_s13  ;;  %s21469_s20 = smov 11  }
   0xa   :  { %24594 = sst [smem:[#allocation51_spill]] %s21567_s17  ;;  %s21470_s26 = smov 12  }
   0xb   :  { %24595 = sst [smem:[#allocation52_spill]] %s21572_s21  ;;  %s21471_s1 = smov 13  }
   0xc   :  { %24596 = sst [smem:[#allocation53_spill]] %s21577_s25  ;;  %s21472_s7 = smov 14  }
   0xd   :  { %24597 = sst [smem:[#allocation54_spill]] %s21582_s29  ;;  %s21474_s22 = smov 16  }
   0xe   :  { %s21587_s3 = sld [smem:[%s24548_s0 + %s21465_s30]]   ;;  %s21475_s28 = smov 17  }
   0xf   :  { %s21592_s8 = sld [smem:[%s24548_s0 + %s21466_s4]]   ;;  %s21491_s13 = smov 33  }
  0x10   :  { %s21597_s14 = sld [smem:[%s24548_s0 + %s21467_s10]]  }
  0x11   :  { %s21602_s19 = sld [smem:[%s24548_s0 + %s21468_s15]]   ;;  %s21473_s15 = smov 15  }
  0x12   :  { %s21607_s24 = sld [smem:[%s24548_s0 + %s21469_s20]]  }
  0x13   :  { %s21612_s30 = sld [smem:[%s24548_s0 + %s21470_s26]]  }
  0x14   :  { %24598 = sst [smem:[#allocation55_spill]] %s21587_s3 }
  0x15   :  { %24599 = sst [smem:[#allocation56_spill]] %s21592_s8 }
  0x16   :  { %24600 = sst [smem:[#allocation57_spill]] %s21597_s14 }
  0x17   :  { %s21617_s6 = sld [smem:[%s24548_s0 + %s21471_s1]]  }
  0x18   :  { %24601 = sst [smem:[#allocation58_spill]] %s21607_s24 }
  0x19   :  { %s21622_s12 = sld [smem:[%s24548_s0 + %s21472_s7]]   ;;  %s21476_s7 = smov 18  }
  0x1a   :  { %s21627_s20 = sld [smem:[%s24548_s0 + %s21473_s15]]   ;;  %s21477_s15 = smov 19  }
  0x1b   :  { %s21632_s27 = sld [smem:[%s24548_s0 + %s21474_s22]]   ;;  %s21478_s22 = smov 20  }
  0x1c   :  { %s21637_s4 = sld [smem:[%s24548_s0 + %s21475_s28]]   ;;  %s21479_s28 = smov 21  }
  0x1d   :  { %24602 = sst [smem:[#allocation59_spill]] %s21617_s6 }
  0x1e   :  { %s21642_s8 = sld [smem:[%s24548_s0 + %s21476_s7]]   ;;  %s21480_s7 = smov 22  }
  0x1f   :  { %24603 = sst [smem:[#allocation60_spill]] %s21622_s12 }
  0x20   :  { %24604 = sst [smem:[#allocation61_spill]] %s21627_s20 }
  0x21   :  { %s21647_s29 = sld [smem:[%s24548_s0 + %s21477_s15]]   ;;  %s21481_s15 = smov 23  }
  0x22   :  { %24605 = sst [smem:[#allocation62_spill]] %s21637_s4 }
  0x23   :  { %s21652_s17 = sld [smem:[%s24548_s0 + %s21478_s22]]   ;;  %s21482_s22 = smov 24  }
  0x24   :  { %24606 = sst [smem:[#allocation63_spill]] %s21642_s8 }
  0x25   :  { %s21657_s25 = sld [smem:[%s24548_s0 + %s21479_s28]]   ;;  %s21483_s28 = smov 25  }
  0x26   :  { %s21662_s4 = sld [smem:[%s24548_s0 + %s21480_s7]]   ;;  %s21484_s7 = smov 26  }
  0x27   :  { %24607 = sst [smem:[#allocation64_spill]] %s21647_s29 }
  0x28   :  { %s21667_s20 = sld [smem:[%s24548_s0 + %s21481_s15]]   ;;  %s21485_s15 = smov 27  }
  0x29   :  { %24608 = sst [smem:[#allocation65_spill]] %s21652_s17  ;;  %s21492_s17 = smov 34  }
  0x2a   :  { %s21672_s24 = sld [smem:[%s24548_s0 + %s21482_s22]]   ;;  %s21486_s22 = smov 28  }
  0x2b   :  { %24609 = sst [smem:[#allocation66_spill]] %s21657_s25 }
  0x2c   :  { %24610 = sst [smem:[#allocation67_spill]] %s21662_s4 }
  0x2d   :  { %s21677_s14 = sld [smem:[%s24548_s0 + %s21483_s28]]   ;;  %s21487_s28 = smov 29  }
  0x2e   :  { %24611 = sst [smem:[#allocation68_spill]] %s21667_s20  ;;  %s21490_s20 = smov 32  }
  0x2f   :  { %s21682_s9 = sld [smem:[%s24548_s0 + %s21484_s7]]   ;;  %s21488_s7 = smov 30  }
  0x30   :  { %24612 = sst [smem:[#allocation69_spill]] %s21672_s24 }
  0x31   :  { %s21687_s23 = sld [smem:[%s24548_s0 + %s21485_s15]]   ;;  %s21489_s15 = smov 31  }
  0x32   :  { %s21692_s1 = sld [smem:[%s24548_s0 + %s21486_s22]]  }
  0x33   :  { %s21697_s10 = sld [smem:[%s24548_s0 + %s21487_s28]]  }
  0x34   :  { %s21702_s16 = sld [smem:[%s24548_s0 + %s21488_s7]]  }
  0x35   :  { %24613 = sst [smem:[#allocation70_spill]] %s21682_s9  ;;  %s79_s9 = sshll.u32 %s21552_s5, 4  ;;  %s80_s9 = int_to_ptr.vmem [resolvable:$true] %s79_s9 }
  0x36   :  { %s21707_s24 = sld [smem:[%s24548_s0 + %s21489_s15]]   ;;  %s21493_s15 = smov 35  }
  0x37   :  { %s21722_s25 = sld [smem:[%s24548_s0 + %s21492_s17]]   ;;  %s20699_s28 = scalar_lea.vmem %s80_s9, 16 }
  0x38   :  { %24614 = sst [smem:[#allocation71_spill]] %s21692_s1  ;;  %p20700_p0 = scmp.ne.s32.totalorder %s80_s9, %s20699_s28 }
  0x39   :  { %24615 = sst [smem:[#allocation72_spill]] %s21697_s10  ;;  %p20704_p1 = scmp.lt.s32.totalorder %s80_s9, %s80_s9 }
  0x3a   :  { %24616 = sst [smem:[#allocation73_spill]] %s21702_s16  ;;  %p20705_p2 = scmp.lt.s32.totalorder %s20699_s28, %s20699_s28 }
  0x3b   :  { %s21712_s1 = sld [smem:[%s24548_s0 + %s21490_s20]]   ;;  %s21494_s20 = smov 36  }
  0x3c   :  { %24617 = sst [smem:[#allocation74_spill]] %s21707_s24  ;;  %p20706_p3 = por %p20705_p2, %p20704_p1 }
  0x3d   :  { %s21717_s10 = sld [smem:[%s24548_s0 + %s21491_s13]]  }
  0x3e   :  { %24620 = sst [smem:[#allocation77_spill]] %s21722_s25  ;;  %p20707_p4 = pnand %p20706_p3, %p20700_p0 }
  0x3f   :  { %s21728_s22 = sld [smem:[%s24548_s0 + %s21493_s15]]  }
  0x40   :  { %s21733_s13 = sld [smem:[%s24548_s0 + %s21494_s20]]  }
  0x41   :  { %24618 = sst [smem:[#allocation75_spill]] %s21712_s1 }
  0x43   :  { %24619 = sst [smem:[#allocation76_spill]] %s21717_s10 }
  0x45   :  { %24621 = sst [smem:[#allocation78_spill]] %s21728_s22 }
  0x46   :  { %24622 = sst [smem:[#allocation79_spill]] %s21733_s13 }
  0x47   :  { %20710 = shalt.err (!%p20707_p4)  }
  0x48   :  { %s21495_s5 = smov [#allocation4]  }
  0x49   :  { %82 = dma.vmem_to_smem %s80_s9, 16, %s21495_s5, [#allocation3] }
  0x4a   :  { %21369 = dma.done.wait [#allocation3], 16 }
  0x4b   :  { %21370 = vsyncadd [#allocation3], 4294967280 }
  0x4c   :  { %84 = sfence }
  0x4d   :  { %85 = vsyncpa [#allocation6], 0 }
  0x4e   :  { %86 = vsyncpa [#allocation9], 0 }
  0x4f   :  { %87 = vsyncpa [#allocation20], 0 }
  0x50   :  { %88 = vsyncpa [#allocation23], 0 }
  0x51   :  { %89 = vsyncpa [#allocation26], 0 }
  0x52   :  { %90 = vsyncpa [#allocation29], 0 }
  0x53   :  { %91 = vsyncpa [#allocation32], 0 }
  0x54   :  { %92 = vsyncpa [#allocation7], 0 }
  0x55   :  { %94 = vsyncpa [#allocation7 + $0x1], 0 }
  0x56   :  { %95 = vsyncpa [#allocation36], 0 }
  0x57   :  { %97 = vsyncpa [#allocation36 + $0x1], 0  ;;  %s21735_s0 = smov 0   ;;  %s21737_s29 = smov 0  }
  0x58   :  { %s21739_s24 = smov 0   ;;  %s21741_s2 = smov 0  }
  0x59   :  { %s21743_s17 = smov 0   ;;  %s21745_s7 = smov 0  }
  0x5a   :  { %s21747_s11 = smov 0   ;;  %s21749_s9 = smov 0  }
  0x5b   :  { %s21751_s15 = smov 0   ;;  %s21753_s18 = smov 0  }
  0x5c   :  { %s21755_s20 = smov 0  }
  0x5d LB: > { %s24623_s12 = sld [smem:[#allocation60_spill]]  ;;  %s21791_s26 = sadd.s32 4294967295, %s21457_s20   ;;  %s21425_s24 = sphi %s21739_s24, %s24729_s24   ;;  %s21421_s29 = sphi %s21737_s29, %s24737_s29   ;;  %s21417_s0 = sphi %s21735_s0, %s24736_s0   ;;  %s21457_s20 = sphi %s21755_s20, %s103_s20   ;;  %s21453_s18 = sphi %s21753_s18, %s24735_s18   ;;  %s21449_s15 = sphi %s21751_s15, %s24740_s15   ;;  %s21445_s9 = sphi %s21749_s9, %s24733_s9   ;;  %s21441_s11 = sphi %s21747_s11, %s24732_s11   ;;  %s21437_s7 = sphi %s21745_s7, %s24731_s7   ;;  %s21433_s17 = sphi %s21743_s17, %s24739_s17   ;;  %s21429_s2 = sphi %s21741_s2, %s24738_s2  }
  0x5e   : > { %s24624_s8 = sld [smem:[#allocation63_spill]]  ;;  %p17933_p5 = scmp.ge.s32.totalorder %s21457_s20, 1 }
  0x5f   : > { %s24625_s6 = sld [smem:[#allocation59_spill]]  ;;  %p24568_p6 = scmp.eq.s32.totalorder %s21791_s26, 0 }
  0x60   : > { %24626 = sst [smem:[#allocation80_spill]] %s21417_s0  ;;  %p956_p7 = scmp.lt.s32.totalorder %s21457_s20, 5 }
  0x61   : > { %24627 = sst [smem:[#allocation81_spill]] %s21425_s24  ;;  %s21496_s5 = smov [#allocation5]  }
  0x62   : > { %24628 = sst [smem:[#allocation82_spill]] %s21437_s7  ;;  %p21796_p8 = pnand %p17933_p5, %p956_p7 }
  0x63   : > { %24629 = sst [smem:[#allocation83_spill]] %s21441_s11  ;;  %s972_s13 = sshll.u32 %s21496_s5, 4  ;;  %s973_s13 = int_to_ptr.vmem [resolvable:$true] %s972_s13 }
  0x64   : > { %24630 = sst [smem:[#allocation84_spill]] %s21445_s9  ;;  %p20385_p9 = pneg %p21796_p8 }
  0x65   : > { %24631 = sst [smem:[#allocation85_spill]] %s21449_s15  ;;  %s20722_s11 = scalar_lea.vmem %s973_s13, 32 }
  0x66   : > { %24632 = sst [smem:[#allocation86_spill]] %s21453_s18  ;;  %p21804_p10 = pnand %p20385_p9, %p24568_p6 }
  0x67   : > { %24633 = sst [smem:[#allocation87_spill]] %s21457_s20  ;;  %p20723_p12 = scmp.ne.s32.totalorder %s973_s13, %s20722_s11 }
  0x68   : > { %s24634_s28 = scalar_select %p21796_p8, 1, 0 }
  0x69   : > { %s24636_s22 = scalar_select %p21804_p10, 1, 0 }
  0x6a   : > { %24635 = sst [smem:[#allocation88_spill]] %s24634_s28  ;;  %p21810_p11 = pneg %p21804_p10 }
  0x6b   : > { %p20730_p1 = scmp.lt.s32.totalorder %s973_s13, %s973_s13  ;;  %p20731_p2 = scmp.lt.s32.totalorder %s20722_s11, %s20722_s11 }
  0x6c   : > { %s24637_s25 = scalar_select %p21810_p11, 1, 0 }
  0x6d   : > { %p20725_p13 = pnand %p20723_p12, %p21810_p11  ;;  %p20732_p3 = por %p20731_p2, %p20730_p1 }
  0x6f   : > { %p20726_p0 = pneg %p20725_p13 }
  0x71   : > { %p20733_p4 = pnand %p20732_p3, %p20726_p0 }
  0x73   : > { %20736 = shalt.err (!%p20733_p4)
}
  0x74   : > { %s24638_s21 = sld [smem:[#allocation52_spill]]  ;;  %s17932_s11 = sadd.s32 4294967294, %s21457_s20  }
  0x75   : > { %s112_s5 = sadd.s32 1, %s21449_s15  ;;  %s115_s9 = sadd.s32 1, %s21453_s18 }
  0x76   : > { %p113_p5 = scmp.ge.s32.totalorder %s112_s5, 2  ;;  %s326_s28 = sadd.s32 1, %s21437_s7 }
  0x77   : > { %p333_p7 = scmp.ne.s32.totalorder %s21437_s7, %s21433_s17  ;;  %p334_p9 = scmp.eq.s32.totalorder %s21457_s20, 0 }
  0x78   : > { %s24742_s5 = smov (%p113_p5, %s112_s5), 0  ;;  %s24744_s9 = smov (!%p113_p5, %s115_s9), %s21453_s18 }
  0x79   : > { %24639 = sst [smem:[#allocation89_spill]] %s24742_s5  ;;  %p21831_p12 = por %p334_p9, %p333_p7 }
  0x7a   : > { %20388 = dma.hbm_to_vmem [thread:$0]  (!%p21804_p10), %s24638_s21, 32, %s973_s13, [#allocation6]  }
  0x7b   : > { %s323_s13 = ssub.s32 %s21449_s15, %s24742_s5  ;;  %p117_p13 = scmp.ge.s32.totalorder %s24744_s9, 2 }
  0x7c   : > { %p324_p0 = scmp.eq.s32.totalorder %s323_s13, 0  ;;  %p339_p1 = scmp.ne.s32.totalorder %s21433_s17, %s21429_s2 }
  0x7d   : > { %s906_s10 = sadd.s32 1, %s21425_s24  ;;  %s24746_s9 = smov (%p117_p13, %s24744_s9), 0 }
  0x7e   : > { %24641 = sst [smem:[#allocation90_spill]] %s24746_s9  ;;  %p21845_p2 = por %p24568_p6, %p339_p1 }
  0x7f   : > { %s21841_s1 = scalar_select %p324_p0, %s21437_s7, %s326_s28  }
  0x80   : > { %s24643_s5 = scalar_select %p21845_p2, 1, 0 }
  0x81   : > { %24642 = sst [smem:[#allocation91_spill]] %s21841_s1  ;;  %s903_s16 = ssub.s32 %s21453_s18, %s24746_s9 }
  0x82   : > { %p904_p3 = scmp.eq.s32.totalorder %s903_s16, 0  ;;  %p916_p4 = scmp.ne.s32.totalorder %s21425_s24, %s21421_s29 }
  0x83   : > { %p917_p5 = scmp.eq.s32.totalorder %s21791_s26, 3  ;;  %p922_p7 = scmp.ne.s32.totalorder %s21421_s29, %s21417_s0 }
  0x84   : > { %s21857_s2 = scalar_select %p904_p3, %s21425_s24, %s906_s10  }
  0x85   : > { %p21859_p9 = por %p917_p5, %p916_p4  ;;  %p923_p13 = scmp.eq.s32.totalorder %s17932_s11, 3 }
  0x86   : > { %24644 = sst [smem:[#allocation92_spill]] %s21857_s2  ;;  %p20470_p0 = scmp.lt.s32.totalorder %s21457_s20, 4 }
  0x87   : > { %s24645_s13 = scalar_select %p21859_p9, 1, 0 }
  0x88   : > { %s1171_s28 = sand.u32 1, %s21457_s20   ;;  %p21865_p1 = por %p923_p13, %p922_p7 }
  0x89   : > { %s21870_s16 = sand.u32 1, %s21437_s7   ;;  %s21873_s9 = sshll.u32 %s21449_s15, 4 }
  0x8a   : > { %s24646_s1 = scalar_select %p21865_p1, 1, 0 }
  0x8b   : > { %s21877_s10 = scalar_lea.hbm %s21602_s19, %s21873_s9  ;;  %s1174_s11 = scalar_lea.vmem [#allocation10], %s21870_s16 }
  0x8c   : > { %24647 = sst [smem:[#allocation93_spill]] %s24646_s1  ;;  %s1181_s18 = sshll.u32 %s1174_s11, 4  ;;  %s1182_s18 = int_to_ptr.vmem [resolvable:$true] %s1181_s18 }
  0x8d   : > { %p21882_p3 = pnand %p20470_p0, %p21831_p12  ;;  %s21888_s7 = scalar_lea.hbm %s21612_s30, %s21873_s9 }
  0x8e   : > { %s21890_s15 = scalar_lea.sflag [#allocation6], %s1171_s28  ;;  %s20737_s24 = scalar_lea.hbm %s21877_s10, 16 }
  0x8f   : > { %p20738_p4 = scmp.ne.s32.totalorder %s21877_s10, %s20737_s24  ;;  %p21896_p5 = pneg %p21882_p3 }
  0x90   : > { %s20742_s21 = scalar_lea.hbm %s21602_s19, 32  ;;  %p20743_p13 = scmp.lt.s32.totalorder %s21877_s10, %s21602_s19 }
  0x91   : > { %s24649_s1 = scalar_select %p21896_p5, 1, 0 }
  0x92   : > { %p20740_p7 = pnand %p21896_p5, %p20738_p4  ;;  %p20744_p0 = scmp.lt.s32.totalorder %s20742_s21, %s20737_s24 }
  0x94   : > { %p20741_p12 = pneg %p20740_p7  ;;  %p20745_p6 = por %p20744_p0, %p20743_p13 }
  0x96   : > { %p20746_p1 = pnand %p20745_p6, %p20741_p12 }
  0x98   : > { %20749 = shalt.err (!%p20746_p1)
}
  0x99   : > { %s20750_s11 = scalar_lea.vmem %s1182_s18, 16  ;;  %s21497_s28 = smov [#allocation10]  }
  0x9a   : > { %p20751_p9 = scmp.ne.s32.totalorder %s1182_s18, %s20750_s11  ;;  %s20755_s0 = sshll.u32 %s21497_s28, 4  ;;  %s20756_s0 = int_to_ptr.vmem [resolvable:$false] %s20755_s0 }
  0x9b   : > { %s20757_s20 = scalar_lea.vmem %s20756_s0, 32  ;;  %p20758_p10 = scmp.lt.s32.totalorder %s1182_s18, %s20756_s0 }
  0x9c   : > { %p20753_p2 = pnand %p20751_p9, %p21896_p5  ;;  %p20759_p11 = scmp.lt.s32.totalorder %s20757_s20, %s20750_s11 }
  0x9e   : > { %p20754_p8 = pneg %p20753_p2  ;;  %p20760_p4 = por %p20759_p11, %p20758_p10 }
  0xa0   : > { %p20761_p7 = pnand %p20760_p4, %p20754_p8 }
  0xa2   : > { %20764 = shalt.err (!%p20761_p7)
}
  0xa3   : > { %20428 = dma.hbm_to_vmem [thread:$0]  (!%p21882_p3), %s21877_s10, 16, %s1182_s18, %s21890_s15  }
  0xa4   : > { %s1199_s24 = scalar_lea.vmem [#allocation11], %s21870_s16  ;;  %s21914_s20 = scalar_lea.hbm %s24625_s6, %s21873_s9 }
  0xa5   : > { %s1206_s0 = sshll.u32 %s1199_s24, 4  ;;  %s20765_s21 = scalar_lea.hbm %s21888_s7, 16  ;;  %s1207_s0 = int_to_ptr.vmem [resolvable:$true] %s1206_s0 }
  0xa6   : > { %p20766_p6 = scmp.ne.s32.totalorder %s21888_s7, %s20765_s21  ;;  %s20770_s11 = scalar_lea.hbm %s21612_s30, 32 }
  0xa7   : > { %p20771_p11 = scmp.lt.s32.totalorder %s21888_s7, %s21612_s30  ;;  %p20772_p2 = scmp.lt.s32.totalorder %s20770_s11, %s20765_s21 }
  0xa8   : > { %p20768_p8 = pnand %p20766_p6, %p21896_p5 }
  0xa9   : > { %p20773_p9 = por %p20772_p2, %p20771_p11 }
  0xaa   : > { %p20769_p10 = pneg %p20768_p8 }
  0xac   : > { %p20774_p1 = pnand %p20773_p9, %p20769_p10 }
  0xae   : > { %20777 = shalt.err (!%p20774_p1)
}
  0xaf   : > { %s20778_s28 = scalar_lea.vmem %s1207_s0, 16  ;;  %s21498_s18 = smov [#allocation11]  }
  0xb0   : > { %p20779_p12 = scmp.ne.s32.totalorder %s1207_s0, %s20778_s28  ;;  %s20783_s10 = sshll.u32 %s21498_s18, 4  ;;  %s20784_s10 = int_to_ptr.vmem [resolvable:$false] %s20783_s10 }
  0xb1   : > { %s20785_s24 = scalar_lea.vmem %s20784_s10, 32  ;;  %p20786_p4 = scmp.lt.s32.totalorder %s1207_s0, %s20784_s10 }
  0xb2   : > { %p20781_p13 = pnand %p20779_p12, %p21896_p5  ;;  %p20787_p7 = scmp.lt.s32.totalorder %s20785_s24, %s20778_s28 }
  0xb4   : > { %p20782_p0 = pneg %p20781_p13  ;;  %p20788_p6 = por %p20787_p7, %p20786_p4 }
  0xb6   : > { %p20789_p8 = pnand %p20788_p6, %p20782_p0 }
  0xb8   : > { %20792 = shalt.err (!%p20789_p8)
}
  0xb9   : > { %20431 = dma.hbm_to_vmem [thread:$0]  (!%p21882_p3), %s21888_s7, 16, %s1207_s0, %s21890_s15  }
  0xba   : > { %s1216_s21 = scalar_lea.vmem [#allocation12], %s21870_s16  ;;  %s21932_s28 = scalar_lea.hbm %s24623_s12, %s21873_s9 }
  0xbb   : > { %s1223_s11 = sshll.u32 %s1216_s21, 4  ;;  %s20793_s18 = scalar_lea.hbm %s21914_s20, 16  ;;  %s1224_s11 = int_to_ptr.vmem [resolvable:$true] %s1223_s11 }
  0xbc   : > { %p20794_p10 = scmp.ne.s32.totalorder %s21914_s20, %s20793_s18  ;;  %s20798_s10 = scalar_lea.hbm %s24625_s6, 32 }
  0xbd   : > { %p20799_p9 = scmp.lt.s32.totalorder %s21914_s20, %s24625_s6  ;;  %p20800_p1 = scmp.lt.s32.totalorder %s20798_s10, %s20793_s18 }
  0xbe   : > { %p20796_p11 = pnand %p20794_p10, %p21896_p5 }
  0xbf   : > { %p20801_p12 = por %p20800_p1, %p20799_p9 }
  0xc0   : > { %p20797_p2 = pneg %p20796_p11 }
  0xc2   : > { %p20802_p13 = pnand %p20801_p12, %p20797_p2 }
  0xc4   : > { %20805 = shalt.err (!%p20802_p13)
}
  0xc5   : > { %s20806_s24 = scalar_lea.vmem %s1224_s11, 16  ;;  %s21499_s7 = smov [#allocation12]  }
  0xc6   : > { %p20807_p0 = scmp.ne.s32.totalorder %s1224_s11, %s20806_s24  ;;  %s20811_s0 = sshll.u32 %s21499_s7, 4  ;;  %s20812_s0 = int_to_ptr.vmem [resolvable:$false] %s20811_s0 }
  0xc7   : > { %s20813_s21 = scalar_lea.vmem %s20812_s0, 32  ;;  %p20814_p6 = scmp.lt.s32.totalorder %s1224_s11, %s20812_s0 }
  0xc8   : > { %p20809_p4 = pnand %p20807_p0, %p21896_p5  ;;  %p20815_p8 = scmp.lt.s32.totalorder %s20813_s21, %s20806_s24 }
  0xca   : > { %p20810_p7 = pneg %p20809_p4  ;;  %p20816_p10 = por %p20815_p8, %p20814_p6 }
  0xcc   : > { %p20817_p11 = pnand %p20816_p10, %p20810_p7 }
  0xce   : > { %20820 = shalt.err (!%p20817_p11)
}
  0xcf   : > { %20434 = dma.hbm_to_vmem [thread:$0]  (!%p21882_p3), %s21914_s20, 16, %s1224_s11, %s21890_s15  }
  0xd0   : > { %s1233_s18 = scalar_lea.vmem [#allocation13], %s21870_s16  ;;  %s21950_s24 = scalar_lea.hbm %s21632_s27, %s21873_s9 }
  0xd1   : > { %s1240_s10 = sshll.u32 %s1233_s18, 4  ;;  %s20821_s7 = scalar_lea.hbm %s21932_s28, 16  ;;  %s1241_s10 = int_to_ptr.vmem [resolvable:$true] %s1240_s10 }
  0xd2   : > { %p20822_p2 = scmp.ne.s32.totalorder %s21932_s28, %s20821_s7  ;;  %s20826_s0 = scalar_lea.hbm %s24623_s12, 32 }
  0xd3   : > { %p20827_p12 = scmp.lt.s32.totalorder %s21932_s28, %s24623_s12  ;;  %p20828_p13 = scmp.lt.s32.totalorder %s20826_s0, %s20821_s7 }
  0xd4   : > { %p20824_p9 = pnand %p20822_p2, %p21896_p5 }
  0xd5   : > { %p20829_p0 = por %p20828_p13, %p20827_p12 }
  0xd6   : > { %p20825_p1 = pneg %p20824_p9 }
  0xd8   : > { %p20830_p4 = pnand %p20829_p0, %p20825_p1 }
  0xda   : > { %20833 = shalt.err (!%p20830_p4)
}
  0xdb   : > { %s20834_s21 = scalar_lea.vmem %s1241_s10, 16  ;;  %s21500_s20 = smov [#allocation13]  }
  0xdc   : > { %p20835_p7 = scmp.ne.s32.totalorder %s1241_s10, %s20834_s21  ;;  %s20839_s11 = sshll.u32 %s21500_s20, 4  ;;  %s20840_s11 = int_to_ptr.vmem [resolvable:$false] %s20839_s11 }
  0xdd   : > { %s20841_s18 = scalar_lea.vmem %s20840_s11, 32  ;;  %p20842_p10 = scmp.lt.s32.totalorder %s1241_s10, %s20840_s11 }
  0xde   : > { %p20837_p6 = pnand %p20835_p7, %p21896_p5  ;;  %p20843_p11 = scmp.lt.s32.totalorder %s20841_s18, %s20834_s21 }
  0xe0   : > { %p20838_p8 = pneg %p20837_p6  ;;  %p20844_p2 = por %p20843_p11, %p20842_p10 }
  0xe2   : > { %p20845_p9 = pnand %p20844_p2, %p20838_p8 }
  0xe4   : > { %20848 = shalt.err (!%p20845_p9)
}
  0xe5   : > { %20437 = dma.hbm_to_vmem [thread:$0]  (!%p21882_p3), %s21932_s28, 16, %s1241_s10, %s21890_s15  }
  0xe6   : > { %s1258_s7 = scalar_lea.vmem [#allocation14], %s21870_s16  ;;  %s21968_s21 = scalar_lea.hbm %s24624_s8, %s21873_s9 }
  0xe7   : > { %s1265_s0 = sshll.u32 %s1258_s7, 4  ;;  %s20849_s20 = scalar_lea.hbm %s21950_s24, 16  ;;  %s1266_s0 = int_to_ptr.vmem [resolvable:$true] %s1265_s0 }
  0xe8   : > { %p20850_p1 = scmp.ne.s32.totalorder %s21950_s24, %s20849_s20  ;;  %s20854_s11 = scalar_lea.hbm %s21632_s27, 32 }
  0xe9   : > { %p20855_p0 = scmp.lt.s32.totalorder %s21950_s24, %s21632_s27  ;;  %p20856_p4 = scmp.lt.s32.totalorder %s20854_s11, %s20849_s20 }
  0xea   : > { %p20852_p12 = pnand %p20850_p1, %p21896_p5 }
  0xeb   : > { %p20857_p7 = por %p20856_p4, %p20855_p0 }
  0xec   : > { %p20853_p13 = pneg %p20852_p12 }
  0xee   : > { %p20858_p6 = pnand %p20857_p7, %p20853_p13 }
  0xf0   : > { %20861 = shalt.err (!%p20858_p6)
}
  0xf1   : > { %s20862_s18 = scalar_lea.vmem %s1266_s0, 16  ;;  %s21501_s28 = smov [#allocation14]  }
  0xf2   : > { %p20863_p8 = scmp.ne.s32.totalorder %s1266_s0, %s20862_s18  ;;  %s20867_s10 = sshll.u32 %s21501_s28, 4  ;;  %s20868_s10 = int_to_ptr.vmem [resolvable:$false] %s20867_s10 }
  0xf3   : > { %s20869_s7 = scalar_lea.vmem %s20868_s10, 32  ;;  %p20870_p2 = scmp.lt.s32.totalorder %s1266_s0, %s20868_s10 }
  0xf4   : > { %p20865_p10 = pnand %p20863_p8, %p21896_p5  ;;  %p20871_p9 = scmp.lt.s32.totalorder %s20869_s7, %s20862_s18 }
  0xf6   : > { %p20866_p11 = pneg %p20865_p10  ;;  %p20872_p1 = por %p20871_p9, %p20870_p2 }
  0xf8   : > { %p20873_p12 = pnand %p20872_p1, %p20866_p11 }
  0xfa   : > { %20876 = shalt.err (!%p20873_p12)
}
  0xfb   : > { %20440 = dma.hbm_to_vmem [thread:$0]  (!%p21882_p3), %s21950_s24, 16, %s1266_s0, %s21890_s15  }
  0xfc   : > { %s1283_s20 = scalar_lea.vmem [#allocation15], %s21870_s16  ;;  %s21502_s28 = smov [#allocation8]  }
  0xfd   : > { %s1290_s11 = sshll.u32 %s1283_s20, 4  ;;  %s989_s18 = sshll.u32 %s21502_s28, 4  ;;  %s1291_s11 = int_to_ptr.vmem [resolvable:$true] %s1290_s11  ;;  %s990_s18 = int_to_ptr.vmem [resolvable:$true] %s989_s18 }
  0xfe   : > { %s20877_s10 = scalar_lea.hbm %s21968_s21, 16  ;;  %s20882_s7 = scalar_lea.hbm %s24624_s8, 32 }
  0xff   : > { %p20878_p13 = scmp.ne.s32.totalorder %s21968_s21, %s20877_s10  ;;  %p20883_p7 = scmp.lt.s32.totalorder %s21968_s21, %s24624_s8 }
 0x100   : > { %p20884_p6 = scmp.lt.s32.totalorder %s20882_s7, %s20877_s10 }
 0x101   : > { %p20880_p0 = pnand %p20878_p13, %p21896_p5 }
 0x102   : > { %p20885_p8 = por %p20884_p6, %p20883_p7 }
 0x103   : > { %p20881_p4 = pneg %p20880_p0 }
 0x105   : > { %p20886_p10 = pnand %p20885_p8, %p20881_p4 }
 0x107   : > { %20889 = shalt.err (!%p20886_p10)
}
 0x108   : > { %s20890_s6 = scalar_lea.vmem %s1291_s11, 16  ;;  %s21503_s24 = smov [#allocation15]  }
 0x109   : > { %p20891_p11 = scmp.ne.s32.totalorder %s1291_s11, %s20890_s6  ;;  %s20895_s0 = sshll.u32 %s21503_s24, 4  ;;  %s20896_s0 = int_to_ptr.vmem [resolvable:$false] %s20895_s0 }
 0x10a   : > { %s20897_s20 = scalar_lea.vmem %s20896_s0, 32  ;;  %p20898_p1 = scmp.lt.s32.totalorder %s1291_s11, %s20896_s0 }
 0x10b   : > { %p20893_p2 = pnand %p20891_p11, %p21896_p5  ;;  %p20899_p12 = scmp.lt.s32.totalorder %s20897_s20, %s20890_s6 }
 0x10d   : > { %p20894_p9 = pneg %p20893_p2  ;;  %p20900_p13 = por %p20899_p12, %p20898_p1 }
 0x10f   : > { %p20901_p0 = pnand %p20900_p13, %p20894_p9 }
 0x111   : > { %20904 = shalt.err (!%p20901_p0)
}
 0x112   : > { %20443 = dma.hbm_to_vmem [thread:$0]  (!%p21882_p3), %s21968_s21, 16, %s1291_s11, %s21890_s15  }
 0x113   : > { %s20916_s28 = scalar_lea.vmem %s990_s18, 16  ;;  %p24650_p7 = scmp.ne.s32.totalorder %s24637_s25, 0 }
 0x114   : > { %p20917_p4 = scmp.ne.s32.totalorder %s990_s18, %s20916_s28  ;;  %s20923_s10 = scalar_lea.vmem %s990_s18, 32 }
 0x115   : > { %p20924_p10 = scmp.lt.s32.totalorder %s990_s18, %s990_s18  ;;  %p20925_p11 = scmp.lt.s32.totalorder %s20923_s10, %s20916_s28 }
 0x116   : > { %p20919_p6 = pnand %p20917_p4, %p24650_p7 }
 0x117   : > { %p20926_p2 = por %p20925_p11, %p20924_p10 }
 0x118   : > { %p20920_p8 = pneg %p20919_p6 }
 0x11a   : > { %p20927_p5 = pnand %p20926_p2, %p20920_p8 }
 0x11c   : > { %20930 = shalt.err (!%p20927_p5)
}
 0x11d   : > { %p24651_p9 = scmp.ne.s32.totalorder %s24636_s22, 0  ;;  %s24652_s3 = sld [smem:[#allocation55_spill]] }
 0x11e   : > { %s21504_s6 = smov [#allocation19]  }
 0x11f   : > { %s1016_s7 = sshll.u32 %s21504_s6, 4  ;;  %s1017_s7 = int_to_ptr.vmem [resolvable:$true] %s1016_s7 }
 0x120   : > { %s20942_s21 = scalar_lea.vmem %s1017_s7, 16  ;;  %s20949_s11 = scalar_lea.vmem %s1017_s7, 32 }
 0x121   : > { %p20943_p1 = scmp.ne.s32.totalorder %s1017_s7, %s20942_s21  ;;  %p20950_p0 = scmp.lt.s32.totalorder %s1017_s7, %s1017_s7 }
 0x122   : > { %p20951_p4 = scmp.lt.s32.totalorder %s20949_s11, %s20942_s21 }
 0x123   : > { %20391 = dma.hbm_to_vmem [thread:$0]  (!%p24651_p9), %s24652_s3, 16, %s990_s18, [#allocation9]  }
 0x124   : > { %p20945_p12 = pnand %p20943_p1, %p24650_p7  ;;  %p20952_p6 = por %p20951_p4, %p20950_p0 }
 0x126   : > { %p20946_p13 = pneg %p20945_p12 }
 0x128   : > { %p20953_p10 = pnand %p20952_p6, %p20946_p13 }
 0x12a   : > { %20956 = shalt.err (!%p20953_p10)
}
 0x12b   : > { %s24653_s4 = sld [smem:[#allocation67_spill]]  ;;  %s21505_s18 = smov [#allocation22]  }
 0x12c   : > { %s1042_s24 = sshll.u32 %s21505_s18, 4  ;;  %s21506_s0 = smov [#allocation25]   ;;  %s1043_s24 = int_to_ptr.vmem [resolvable:$true] %s1042_s24 }
 0x12d   : > { %s1066_s20 = sshll.u32 %s21506_s0, 4  ;;  %s20968_s28 = scalar_lea.vmem %s1043_s24, 512  ;;  %s1067_s20 = int_to_ptr.vmem [resolvable:$true] %s1066_s20 }
 0x12e   : > { %p20969_p5 = scmp.ne.s32.totalorder %s1043_s24, %s20968_s28  ;;  %p20976_p2 = scmp.lt.s32.totalorder %s1043_s24, %s1043_s24 }
 0x12f   : > { %p20977_p1 = scmp.lt.s32.totalorder %s20968_s28, %s20968_s28 }
 0x130   : > { %p20971_p8 = pnand %p20969_p5, %p24650_p7 }
 0x131   : > { %20397 = dma.hbm_to_vmem [thread:$0]  (!%p24651_p9), %s24653_s4, 16, %s1017_s7, [#allocation20]  }
 0x132   : > { %p20972_p11 = pneg %p20971_p8  ;;  %p20978_p12 = por %p20977_p1, %p20976_p2 }
 0x134   : > { %p20979_p13 = pnand %p20978_p12, %p20972_p11 }
 0x136   : > { %20982 = shalt.err (!%p20979_p13)
}
 0x137   : > { %s24582_s10 = smov 128   ;;  %s24584_s6 = smov 8  }
 0x138   : > { %20403 = dma.hbm_to_vmem [thread:$0]  (!%p24651_p9), %s21677_s14, 512, %s1043_s24, [#allocation23], %s24582_s10, %s24582_s10, %s24584_s6  }
 0x139   : > { %s20994_s7 = scalar_lea.vmem %s1067_s20, 512  ;;  %p21002_p10 = scmp.lt.s32.totalorder %s1067_s20, %s1067_s20 }
 0x13a   : > { %p20995_p0 = scmp.ne.s32.totalorder %s1067_s20, %s20994_s7  ;;  %p21003_p5 = scmp.lt.s32.totalorder %s20994_s7, %s20994_s7 }
 0x13c   : > { %p20997_p4 = pnand %p20995_p0, %p24650_p7  ;;  %p21004_p8 = por %p21003_p5, %p21002_p10 }
 0x13e   : > { %p20998_p6 = pneg %p20997_p4 }
 0x140   : > { %p21005_p11 = pnand %p21004_p8, %p20998_p6 }
 0x142   : > { %21008 = shalt.err (!%p21005_p11)
}
 0x143   : > { %20409 = dma.hbm_to_vmem [thread:$0]  (!%p24651_p9), %s21687_s23, 512, %s1067_s20, [#allocation26], %s24582_s10, %s24582_s10, %s24584_s6  }
 0x144   : > { %s21509_s21 = smov [#allocation28]   ;;  %s21510_s18 = smov [#allocation31]  }
 0x145   : > { %s1095_s11 = sshll.u32 %s21509_s21, 4  ;;  %s1122_s24 = sshll.u32 %s21510_s18, 4  ;;  %s1096_s11 = int_to_ptr.vmem [resolvable:$true] %s1095_s11  ;;  %s1123_s24 = int_to_ptr.vmem [resolvable:$true] %s1122_s24 }
 0x146   : > { %s21020_s0 = scalar_lea.vmem %s1096_s11, 512  ;;  %p21028_p13 = scmp.lt.s32.totalorder %s1096_s11, %s1096_s11 }
 0x147   : > { %p21021_p2 = scmp.ne.s32.totalorder %s1096_s11, %s21020_s0  ;;  %p21029_p0 = scmp.lt.s32.totalorder %s21020_s0, %s21020_s0 }
 0x149   : > { %p21023_p1 = pnand %p21021_p2, %p24650_p7  ;;  %p21030_p4 = por %p21029_p0, %p21028_p13 }
 0x14b   : > { %p21024_p12 = pneg %p21023_p1 }
 0x14d   : > { %p21031_p6 = pnand %p21030_p4, %p21024_p12 }
 0x14f   : > { %21034 = shalt.err (!%p21031_p6)
}
 0x150   : > { %s24654_s20 = sld [smem:[#allocation73_spill]]  ;;  %s21046_s28 = scalar_lea.vmem %s1123_s24, 16 }
 0x151   : > { %p21047_p10 = scmp.ne.s32.totalorder %s1123_s24, %s21046_s28  ;;  %s21053_s7 = scalar_lea.vmem %s1123_s24, 32 }
 0x152   : > { %p21054_p11 = scmp.lt.s32.totalorder %s1123_s24, %s1123_s24  ;;  %p21055_p2 = scmp.lt.s32.totalorder %s21053_s7, %s21046_s28 }
 0x153   : > { %p21049_p5 = pnand %p21047_p10, %p24650_p7 }
 0x154   : > { %p21056_p1 = por %p21055_p2, %p21054_p11 }
 0x155   : > { %p21050_p8 = pneg %p21049_p5 }
 0x156   : > { %20415 = dma.hbm_to_vmem [thread:$0]  (!%p24651_p9), %s24654_s20, 512, %s1096_s11, [#allocation29], %s24582_s10, %s24582_s10, %s24584_s6  }
 0x157   : > { %p21057_p13 = pnand %p21056_p1, %p21050_p8 }
 0x159   : > { %21060 = shalt.err (!%p21057_p13)
}
 0x15a   : > { %s24655_s21 = sld [smem:[#allocation75_spill]]  ;;  %s1300_s0 = scalar_lea.vmem [#allocation16], %s21870_s16 }
 0x15b   : > { %s24656_s18 = sld [smem:[#allocation64_spill]]  ;;  %s1307_s20 = sshll.u32 %s1300_s0, 4  ;;  %s1308_s20 = int_to_ptr.vmem [resolvable:$true] %s1307_s20 }
 0x15c   : > { %s21511_s28 = smov [#allocation18]   ;;  %p24658_p0 = scmp.ne.s32.totalorder %s24649_s1, 0 }
 0x15d   : > { %s1002_s7 = sshll.u32 %s21511_s28, 4  ;;  %s1003_s7 = int_to_ptr.vmem [resolvable:$true] %s1002_s7 }
 0x160   : > { %20421 = dma.hbm_to_vmem [thread:$0]  (!%p24651_p9), %s24655_s21, 16, %s1123_s24, [#allocation32]  }
 0x161   : > { %s24657_s3 = smov %s24656_s18  ;;  %s22038_s11 = scalar_lea.hbm %s24656_s18, %s21873_s9 }
 0x162   : > { %s21061_s10 = scalar_lea.hbm %s22038_s11, 16  ;;  %s21066_s6 = scalar_lea.hbm %s24657_s3, 32 }
 0x163   : > { %p21062_p12 = scmp.ne.s32.totalorder %s22038_s11, %s21061_s10  ;;  %p21067_p10 = scmp.lt.s32.totalorder %s22038_s11, %s24657_s3 }
 0x164   : > { %p21068_p5 = scmp.lt.s32.totalorder %s21066_s6, %s21061_s10 }
 0x165   : > { %p21064_p4 = pnand %p21062_p12, %p24658_p0 }
 0x166   : > { %p21069_p8 = por %p21068_p5, %p21067_p10 }
 0x167   : > { %p21065_p6 = pneg %p21064_p4 }
 0x169   : > { %p21070_p11 = pnand %p21069_p8, %p21065_p6 }
 0x16b   : > { %21073 = shalt.err (!%p21070_p11)
}
 0x16c   : > { %s21074_s24 = scalar_lea.vmem %s1308_s20, 16  ;;  %s21512_s21 = smov [#allocation16]  }
 0x16d   : > { %p21075_p2 = scmp.ne.s32.totalorder %s1308_s20, %s21074_s24  ;;  %s21079_s18 = sshll.u32 %s21512_s21, 4  ;;  %s21080_s18 = int_to_ptr.vmem [resolvable:$false] %s21079_s18 }
 0x16e   : > { %s21081_s0 = scalar_lea.vmem %s21080_s18, 32  ;;  %p21082_p9 = scmp.lt.s32.totalorder %s1308_s20, %s21080_s18 }
 0x16f   : > { %p21077_p1 = pnand %p21075_p2, %p24658_p0  ;;  %p21083_p7 = scmp.lt.s32.totalorder %s21081_s0, %s21074_s24 }
 0x171   : > { %p21078_p13 = pneg %p21077_p1  ;;  %p21084_p12 = por %p21083_p7, %p21082_p9 }
 0x173   : > { %p21085_p4 = pnand %p21084_p12, %p21078_p13 }
 0x175   : > { %21088 = shalt.err (!%p21085_p4)
}
 0x176   : > { %20446 = dma.hbm_to_vmem [thread:$0]  (!%p21882_p3), %s22038_s11, 16, %s1308_s20, %s21890_s15  }
 0x177   : > { %s21100_s10 = scalar_lea.vmem %s1003_s7, 512  ;;  %p24659_p10 = scmp.ne.s32.totalorder %s24637_s25, 0 }
 0x178   : > { %p21101_p6 = scmp.ne.s32.totalorder %s1003_s7, %s21100_s10  ;;  %p21108_p11 = scmp.lt.s32.totalorder %s1003_s7, %s1003_s7 }
 0x179   : > { %p21109_p2 = scmp.lt.s32.totalorder %s21100_s10, %s21100_s10 }
 0x17a   : > { %p21103_p5 = pnand %p21101_p6, %p24659_p10 }
 0x17b   : > { %p21110_p1 = por %p21109_p2, %p21108_p11 }
 0x17c   : > { %p21104_p8 = pneg %p21103_p5 }
 0x17e   : > { %p21111_p0 = pnand %p21110_p1, %p21104_p8 }
 0x180   : > { %21114 = shalt.err (!%p21111_p0)
}
 0x181   : > { %p24660_p7 = scmp.ne.s32.totalorder %s24636_s22, 0  ;;  %s24661_s6 = smov 8  }
 0x182   : > { %s24662_s28 = smov 128   ;;  %s24663_s24 = sld [smem:[#allocation66_spill]] }
 0x183   : > { %s21513_s11 = smov [#allocation21]   ;;  %s21514_s21 = smov [#allocation24]  }
 0x184   : > { %s1029_s20 = sshll.u32 %s21513_s11, 4  ;;  %s1056_s18 = sshll.u32 %s21514_s21, 4  ;;  %s1030_s20 = int_to_ptr.vmem [resolvable:$true] %s1029_s20  ;;  %s1057_s18 = int_to_ptr.vmem [resolvable:$true] %s1056_s18 }
 0x185   : > { %s21126_s0 = scalar_lea.vmem %s1030_s20, 512  ;;  %p21134_p4 = scmp.lt.s32.totalorder %s1030_s20, %s1030_s20 }
 0x186   : > { %p21127_p9 = scmp.ne.s32.totalorder %s1030_s20, %s21126_s0  ;;  %p21135_p0 = scmp.lt.s32.totalorder %s21126_s0, %s21126_s0 }
 0x188   : > { %20394 = dma.hbm_to_vmem [thread:$0]  (!%p24660_p7), %s24663_s24, 512, %s1003_s7, [#allocation9], %s24662_s28, %s24662_s28, %s24661_s6  }
 0x189   : > { %p21129_p13 = pnand %p21127_p9, %p24659_p10  ;;  %p21136_p6 = por %p21135_p0, %p21134_p4 }
 0x18b   : > { %p21130_p12 = pneg %p21129_p13 }
 0x18d   : > { %p21137_p5 = pnand %p21136_p6, %p21130_p12 }
 0x18f   : > { %21140 = shalt.err (!%p21137_p5)
}
 0x190   : > { %s24664_s7 = sld [smem:[#allocation69_spill]]  ;;  %s21152_s10 = scalar_lea.vmem %s1057_s18, 16 }
 0x191   : > { %p21153_p8 = scmp.ne.s32.totalorder %s1057_s18, %s21152_s10  ;;  %s21159_s24 = scalar_lea.vmem %s1057_s18, 32 }
 0x192   : > { %p21160_p1 = scmp.lt.s32.totalorder %s1057_s18, %s1057_s18  ;;  %p21161_p9 = scmp.lt.s32.totalorder %s21159_s24, %s21152_s10 }
 0x193   : > { %p21155_p11 = pnand %p21153_p8, %p24659_p10 }
 0x194   : > { %p21162_p13 = por %p21161_p9, %p21160_p1 }
 0x195   : > { %p21156_p2 = pneg %p21155_p11 }
 0x196   : > { %20400 = dma.hbm_to_vmem [thread:$0]  (!%p24660_p7), %s24664_s7, 512, %s1030_s20, [#allocation20], %s24662_s28, %s24662_s28, %s24661_s6  }
 0x197   : > { %p21163_p12 = pnand %p21162_p13, %p21156_p2 }
 0x199   : > { %21166 = shalt.err (!%p21163_p12)
}
 0x19a   : > { %s24665_s11 = sld [smem:[#allocation70_spill]]  ;;  %s21515_s21 = smov [#allocation27]  }
 0x19b   : > { %s1079_s0 = sshll.u32 %s21515_s21, 4  ;;  %s21516_s20 = smov [#allocation30]   ;;  %s1080_s0 = int_to_ptr.vmem [resolvable:$true] %s1079_s0 }
 0x19c   : > { %s1108_s7 = sshll.u32 %s21516_s20, 4  ;;  %s21178_s3 = scalar_lea.vmem %s1080_s0, 512  ;;  %s1109_s7 = int_to_ptr.vmem [resolvable:$true] %s1108_s7 }
 0x19d   : > { %p21179_p4 = scmp.ne.s32.totalorder %s1080_s0, %s21178_s3  ;;  %p21186_p5 = scmp.lt.s32.totalorder %s1080_s0, %s1080_s0 }
 0x19e   : > { %p21187_p8 = scmp.lt.s32.totalorder %s21178_s3, %s21178_s3 }
 0x19f   : > { %p21181_p0 = pnand %p21179_p4, %p24659_p10 }
 0x1a0   : > { %20406 = dma.hbm_to_vmem [thread:$0]  (!%p24660_p7), %s24665_s11, 16, %s1057_s18, [#allocation23]  }
 0x1a1   : > { %p21182_p6 = pneg %p21181_p0  ;;  %p21188_p11 = por %p21187_p8, %p21186_p5 }
 0x1a3   : > { %p21189_p2 = pnand %p21188_p11, %p21182_p6 }
 0x1a5   : > { %21192 = shalt.err (!%p21189_p2)
}
 0x1a6   : > { %s24666_s18 = sld [smem:[#allocation71_spill]]  ;;  %s21204_s10 = scalar_lea.vmem %s1109_s7, 512 }
 0x1a7   : > { %p21205_p1 = scmp.ne.s32.totalorder %s1109_s7, %s21204_s10  ;;  %p21212_p12 = scmp.lt.s32.totalorder %s1109_s7, %s1109_s7 }
 0x1a8   : > { %p21213_p4 = scmp.lt.s32.totalorder %s21204_s10, %s21204_s10 }
 0x1a9   : > { %p21207_p9 = pnand %p21205_p1, %p24659_p10 }
 0x1aa   : > { %p21214_p0 = por %p21213_p4, %p21212_p12 }
 0x1ab   : > { %p21208_p13 = pneg %p21207_p9 }
 0x1ac   : > { %20412 = dma.hbm_to_vmem [thread:$0]  (!%p24660_p7), %s24666_s18, 512, %s1080_s0, [#allocation26], %s24662_s28, %s24662_s28, %s24661_s6  }
 0x1ad   : > { %p21215_p5 = pnand %p21214_p0, %p21208_p13 }
 0x1af   : > { %21218 = shalt.err (!%p21215_p5)
}
 0x1b0   : > { %s24667_s3 = sld [smem:[#allocation74_spill]]  ;;  %s21517_s11 = smov [#allocation33]  }
 0x1b1   : > { %s24668_s24 = sld [smem:[#allocation65_spill]]  ;;  %s1132_s0 = sshll.u32 %s21517_s11, 4  ;;  %s1133_s0 = int_to_ptr.vmem [resolvable:$true] %s1132_s0 }
 0x1b2   : > { %s21230_s18 = scalar_lea.vmem %s1133_s0, 512  ;;  %p21238_p2 = scmp.lt.s32.totalorder %s1133_s0, %s1133_s0 }
 0x1b3   : > { %p21231_p6 = scmp.ne.s32.totalorder %s1133_s0, %s21230_s18  ;;  %p21239_p1 = scmp.lt.s32.totalorder %s21230_s18, %s21230_s18 }
 0x1b5   : > { %p21233_p8 = pnand %p21231_p6, %p24659_p10  ;;  %p21240_p9 = por %p21239_p1, %p21238_p2 }
 0x1b6   : > { %20418 = dma.hbm_to_vmem [thread:$0]  (!%p24660_p7), %s24667_s3, 512, %s1109_s7, [#allocation29], %s24662_s28, %s24662_s28, %s24661_s6  }
 0x1b7   : > { %s24669_s21 = smov %s24668_s24  ;;  %s22093_s20 = scalar_lea.hbm %s24668_s24, %s21873_s9 }
 0x1b8   : > { %p21234_p11 = pneg %p21233_p8 }
 0x1ba   : > { %p21241_p13 = pnand %p21240_p9, %p21234_p11 }
 0x1bc   : > { %21244 = shalt.err (!%p21241_p13)
}
 0x1bd   : > { %s24670_s7 = sld [smem:[#allocation76_spill]]  ;;  %s1317_s25 = scalar_lea.vmem [#allocation17], %s21870_s16 }
 0x1be   : > { %s1324_s9 = sshll.u32 %s1317_s25, 4  ;;  %s21245_s10 = scalar_lea.hbm %s22093_s20, 16  ;;  %s1325_s9 = int_to_ptr.vmem [resolvable:$true] %s1324_s9 }
 0x1bf   : > { %p21246_p10 = scmp.ne.s32.totalorder %s22093_s20, %s21245_s10  ;;  %p24671_p12 = scmp.ne.s32.totalorder %s24649_s1, 0 }
 0x1c0   : > { %s21250_s22 = scalar_lea.hbm %s24669_s21, 32  ;;  %p21251_p5 = scmp.lt.s32.totalorder %s22093_s20, %s24669_s21 }
 0x1c1   : > { %p21248_p4 = pnand %p21246_p10, %p24671_p12  ;;  %p21252_p6 = scmp.lt.s32.totalorder %s21250_s22, %s21245_s10 }
 0x1c3   : > { %20424 = dma.hbm_to_vmem [thread:$0]  (!%p24660_p7), %s24670_s7, 512, %s1133_s0, [#allocation32], %s24662_s28, %s24662_s28, %s24661_s6  }
 0x1c4   : > { %p21249_p0 = pneg %p21248_p4  ;;  %p21253_p8 = por %p21252_p6, %p21251_p5 }
 0x1c6   : > { %p21254_p11 = pnand %p21253_p8, %p21249_p0 }
 0x1c8   : > { %21257 = shalt.err (!%p21254_p11)
}
 0x1c9   : > { %s21258_s3 = scalar_lea.vmem %s1325_s9, 16  ;;  %s21518_s16 = smov [#allocation17]  }
 0x1ca   : > { %p21259_p2 = scmp.ne.s32.totalorder %s1325_s9, %s21258_s3  ;;  %s21263_s6 = sshll.u32 %s21518_s16, 4  ;;  %s21264_s6 = int_to_ptr.vmem [resolvable:$false] %s21263_s6 }
 0x1cb   : > { %s21265_s28 = scalar_lea.vmem %s21264_s6, 32  ;;  %p21266_p9 = scmp.lt.s32.totalorder %s1325_s9, %s21264_s6 }
 0x1cc   : > { %p21261_p1 = pnand %p21259_p2, %p24671_p12  ;;  %p21267_p13 = scmp.lt.s32.totalorder %s21265_s28, %s21258_s3 }
 0x1ce   : > { %p21262_p7 = pneg %p21261_p1  ;;  %p21268_p10 = por %p21267_p13, %p21266_p9 }
 0x1d0   : > { %p21269_p4 = pnand %p21268_p10, %p21262_p7 }
 0x1d2   : > { %21272 = shalt.err (!%p21269_p4)
}
 0x1d3   : > { %20449 = dma.hbm_to_vmem [thread:$0]  (!%p21882_p3), %s22093_s20, 16, %s1325_s9, %s21890_s15  }
 0x1d4   : > { %s24672_s24 = sld [smem:[#allocation88_spill]] }
 0x1da   : > { %p24673_p0 = scmp.ne.s32.totalorder %s24672_s24, 0 }
 0x1db   : > { %p24674_p12 = scmp.eq.s32.totalorder (!%p24673_p0), %s21791_s26, 0 }
 0x1dc   : > { %1333 = sbr.rel (%p24673_p0) target bundleno = 6554 (0x199a), region = 156 }
 0x1e1   : > { %21372 = dma.done.wait (%p24674_p12), [#allocation6], 32   ;;  %p24675_p5 = pmov %p24674_p12 }
 0x1e3   : > { %21374 = vsyncadd (%p24675_p5), [#allocation6], 4294967264  ;;  %p24676_p6 = pmov %p24675_p5 }
 0x1e4   : > { %p24677_p8 = pmov %p24675_p5 }
 0x1e5   : > { %21376 = dma.done.wait (%p24676_p6), [#allocation9], 16  }
 0x1e6   : > { %21378 = vsyncadd (%p24677_p8), [#allocation9], 4294967280  ;;  %s1343_s1 = sand.u32 1, %s21791_s26   ;;  %s22129_s15 = sand.u32 1, %s21433_s17  }
 0x1e7   : > { %s1344_s2 = scalar_lea.sflag [#allocation6], %s1343_s1  ;;  %p24678_p3 = scmp.ne.s32.totalorder %s24643_s5, 0 }
 0x1e9   : > { %21380 = dma.done.wait (%p24678_p3), %s1344_s2, 128  }
 0x1ea   : > { %21382 = vsyncadd (%p24678_p3), %s1344_s2, 4294967168  ;;  %p24679_p11 = pmov %p24675_p5 }
 0x1eb   : > { %p24680_p2 = pmov %p24675_p5 }
 0x1ec   : > { %21384 = dma.done.wait (%p24679_p11), [#allocation9], 512  }
 0x1ed   : > { %21386 = vsyncadd (%p24680_p2), [#allocation9], 4294966784  ;;  %p24681_p1 = pmov %p24680_p2 }
 0x1ef   : > { %21388 = dma.done.wait (%p24681_p1), [#allocation20], 528   ;;  %p24682_p7 = pmov %p24681_p1 }
 0x1f0   : > { %p24683_p9 = pmov %p24681_p1 }
 0x1f1   : > { %21390 = vsyncadd (%p24682_p7), [#allocation20], 4294966768 }
 0x1f2   : > { %21392 = dma.done.wait (%p24683_p9), [#allocation23], 528   ;;  %p24684_p13 = pmov %p24681_p1 }
 0x1f3   : > { %p24685_p10 = pmov %p24681_p1 }
 0x1f4   : > { %21394 = vsyncadd (%p24684_p13), [#allocation23], 4294966768 }
 0x1f5   : > { %21396 = dma.done.wait (%p24685_p10), [#allocation26], 1024   ;;  %p24686_p4 = pmov %p24681_p1 }
 0x1f6   : > { %p24687_p0 = pmov %p24681_p1 }
 0x1f7   : > { %21398 = vsyncadd (%p24686_p4), [#allocation26], 4294966272 }
 0x1f8   : > { %21400 = dma.done.wait (%p24687_p0), [#allocation29], 1024   ;;  %p24688_p12 = pmov %p24687_p0 }
 0x1f9   : > { %p24689_p5 = pmov %p24687_p0 }
 0x1fa   : > { %21402 = vsyncadd (%p24688_p12), [#allocation29], 4294966272 }
 0x1fb   : > { %21404 = dma.done.wait (%p24689_p5), [#allocation32], 528   ;;  %p24690_p6 = pmov %p24687_p0 }
 0x1fc   : > { %s24691_s5 = sld [smem:[#allocation84_spill]]  ;;  %s22168_s2 = sand.u32 1, %s21421_s29  }
 0x1fd   : > { %21406 = vsyncadd (%p24690_p6), [#allocation32], 4294966768  ;;  %s24692_s22 = sld [smem:[#allocation83_spill]]  ;;  %s1584_s8 = scalar_lea.vmem [#allocation34], %s22168_s2 }
 0x1fe   : > { %s24693_s3 = sld [smem:[#allocation50_spill]]  ;;  %s1590_s12 = scalar_lea.vmem [#allocation35], %s22168_s2 }
 0x1ff   : > { %s24694_s16 = sld [smem:[#allocation49_spill]] }
 0x200   : > { %s24695_s6 = sld [smem:[#allocation57_spill]] }
 0x201   : > { %s24696_s28 = sld [smem:[#allocation58_spill]] }
 0x202   : > { %s24697_s24 = sld [smem:[#allocation61_spill]]  ;;  %p1591_p8 = scmp.lt.s32.totalorder %s24691_s5, 1 }
 0x203   : > { %s24698_s1 = sld [smem:[#allocation62_spill]]  ;;  %p1599_p3 = scmp.lt.s32.totalorder %s24692_s22, 1 }
 0x204   : > { %s24748_s5 = smov (!%p1591_p8, %s24691_s5), 1  ;;  %p17980_p11 = scmp.ne.s32.totalorder %s24692_s22, 0 }
 0x205   : > { %s17998_s26 = sshll.u32 %s24748_s5, 4  ;;  %s22174_s10 = scalar_lea.vmem %s24693_s3, %s24748_s5 }
 0x206   : > { %s1595_s9 = scalar_lea.vmem %s24694_s16, %s17998_s26  ;;  %s24699_s5 = sld [smem:[#allocation53_spill]] (!%p17980_p11) }
 0x207   : > { %s1600_s25 = scalar_select %p1599_p3, %s24692_s22, 1 }
 0x208   : > { %1622 = sbr.rel (%p17980_p11) target bundleno = 920 (0x398), region = 244 }
 0x209   : > { %s17999_s7 = sshll.u32 %s1600_s25, 5  ;;  %s18002_s18 = sshll.u32 %s1600_s25, 6 }
 0x20a   : > { %s22179_s20 = scalar_lea.vmem %s24695_s6, %s17999_s7  ;;  %s22182_s0 = scalar_lea.vmem %s24696_s28, %s17999_s7 }
 0x20b   : > { %s22185_s11 = scalar_lea.vmem %s24697_s24, %s17999_s7  ;;  %s22188_s4 = scalar_lea.vmem %s24698_s1, %s18002_s18 }
 0x20c   : > { %s24700_s18 = sld [smem:[#allocation51_spill]] (!%p17980_p11) }
 0x20d   : > { %v1623_v0 = vld [vmem:[%s1595_s9] sm:$0xff]  ;;  %v21519_v1 = vmov 0   ;;  %v1710_v2 = vld [vmem:[%s24699_s5 + $0x18] sm:$0xff]  ;;  %v1709_v3 = vld [vmem:[%s24699_s5 + $0x10] sm:$0xff]  ;;  %v21520_v27 = vmov 1966171168   ;;  %v1638_v29 = vlaneseq }
 0x20e   : > { %20648 = vset.pattern.permute.xlu0 %v21519_v1  ;;  %v22195_v4 = vand.u32 4294901760, %v1710_v2  ;;  %v1624_v5 = vld [vmem:[%s1595_s9 + $0x8] sm:$0xff]  ;;  %v22197_v6 = vand.u32 4294901760, %v1709_v3  ;;  %v1707_v8 = vld [vmem:[%s24699_s5] sm:$0xff]  ;;  %v1636_v28 = vunpack.c.l.s4 %v21520_v27  ;;  %s24701_s7 = sld [smem:[#allocation54_spill]]  ;;  %vm1711_vm0 = vcmask 261120  }
 0x20f   : > { %1651 = vperm.xlu0 %20648, %v1623_v0   ;;  %v1708_v7 = vld [vmem:[%s24699_s5 + $0x8] sm:$0xff]  ;;  %v22206_v11 = vand.u32 4294901760, %v1707_v8  ;;  %v1639_v31 = vshrl.u32 %v1638_v29, 7  ;;  %vm21522_vm1 = vmmov 0   ;;  %s24703_s9 = sld [smem:[#allocation56_spill]] }
 0x210   : > { %v22202_v9 = vsub.f32 %v1710_v2, %v22195_v4  ;;  %v22204_v10 = vand.u32 4294901760, %v1708_v7  ;;  %18729 = vmatprep.subr.mxu0 %v22195_v4  ;;  %v22210_v12 = vsub.f32 %v1709_v3, %v22197_v6  ;;  %v1637_v30 = vunpack.c.0.s8 %v1636_v28  ;;  %v17982_v34 = vld.sshfl [vmem:[#allocation5] sm:$0x11 pattern:$0x75316420] }
 0x211   : > { %18730 = vmatpush3.msra.mxu0 %v22195_v4  ;;  %v22220_v15 = vsub.f32 %v1707_v8, %v22206_v11  ;;  %v22248_v36 = vsub.s32 0, %v1639_v31  ;;  %v1680_v39 = vcombine.high %v17982_v34, %v17982_v34 }
 0x212   : > { %v22214_v13 = vand.u32 4294901760, %v22202_v9  ;;  %v22217_v14 = vsub.f32 %v1708_v7, %v22204_v10  ;;  %18731 = vmatprep.subr.mxu0 %v22197_v6  ;;  %v22227_v17 = vand.u32 4294901760, %v22210_v12  ;;  %v1640_v32 = vsub.s32 %v1637_v30, %v1639_v31  ;;  %v17981_v33 = vld.sshfl [vmem:[%s24700_s18] sm:$0x11 pattern:$0x75316420] }
 0x213   : > { %1656 = vperm.xlu0 %20648, %v1624_v5   ;;  %18732 = vmatpush3.msra.mxu0 %v22197_v6  ;;  %v22233_v19 = vand.u32 4294901760, %v22220_v15  ;;  %v1634_v37 = vcombine.high %v17981_v33, %v17981_v33 }
 0x214   : > { %v1835_v16 = vsub.f32 %v22202_v9, %v22214_v13  ;;  %v22230_v18 = vand.u32 4294901760, %v22217_v14  ;;  %18733 = vmatprep.subr.mxu0 %v22204_v10  ;;  %v1842_v21 = vsub.f32 %v22210_v12, %v22227_v17  ;;  %v1641_v35 = vrot.slane %v17981_v33, %v1640_v32  ;;  %s24702_s25 = smov %s24701_s7  ;;  %v2250_v58 = vld [vmem:[%s24701_s7 + $0x18] sm:$0xff] }
 0x215   : > { %18734 = vmatpush3.msra.mxu0 %v22204_v10  ;;  %v1856_v23 = vsub.f32 %v22220_v15, %v22233_v19  ;;  %v1687_v38 = vrot.slane %v17982_v34, %v1640_v32  ;;  %v1648_v41 = vrot.slane %v1634_v37, %v1640_v32  ;;  %v1694_v43 = vrot.slane %v1680_v39, %v1640_v32  ;;  %v2249_v61 = vld [vmem:[%s24702_s25 + $0x10] sm:$0xff]  ;;  %v2248_v1 = vld [vmem:[%s24702_s25 + $0x8] sm:$0xff] }
 0x216   : > { %v1836_v20 = vand.u32 4294901760, %v1835_v16  ;;  %v1849_v22 = vsub.f32 %v22217_v14, %v22230_v18  ;;  %18735 = vmatprep.subr.mxu0 %v22206_v11  ;;  %v1843_v24 = vand.u32 4294901760, %v1842_v21  ;;  %v1662_v40 = vrot.slane %v1641_v35, %v22248_v36  ;;  %v2247_v16 = vld [vmem:[%s24702_s25] sm:$0xff] }
 0x217   : > { %18736 = vmatpush3.msra.mxu0 %v22206_v11  ;;  %v1857_v26 = vand.u32 4294901760, %v1856_v23  ;;  %v1698_v42 = vrot.slane %v1687_v38, %v22248_v36  ;;  %v1666_v46 = vrot.slane %v1648_v41, %v22248_v36  ;;  %v1702_v48 = vrot.slane %v1694_v43, %v22248_v36  ;;  %v2246_v21 = vld [vmem:[%s22174_s10] sm:$0x1] }
 0x218   : > { %18740 = vmatprep.subr.mxu1 %v1836_v20  ;;  %v1850_v25 = vand.u32 4294901760, %v1849_v22  ;;  %18751 = vmatprep.subr.mxu0 %v22202_v9  ;;  %v22267_v62 = vand.u32 4294901760, %v2250_v58  ;;  %v22272_v2 = vand.u32 4294901760, %v2249_v61  ;;  %v22279_v7 = vand.u32 4294901760, %v2248_v1 }
 0x219   : > { %18741 = vmatpush3.msra.mxu1 %v1836_v20 }
 0x21a   : > { %18742 = vmatprep.subr.mxu1 %v1843_v24  ;;  %v22277_v5 = vsub.f32 %v2250_v58, %v22267_v62  ;;  %v22285_v20 = vsub.f32 %v2249_v61, %v22272_v2  ;;  %v22292_v23 = vsub.f32 %v2248_v1, %v22279_v7 }
 0x21b   : > { %18743 = vmatpush3.msra.mxu1 %v1843_v24  ;;  %v22294_v24 = vand.u32 4294901760, %v2247_v16 }
 0x21c   : > { %18744 = vmatprep.subr.mxu1 %v1850_v25  ;;  %v2361_v22 = vand.u32 4294901760, %v22277_v5 }
 0x21d   : > { %18745 = vmatpush3.msra.mxu1 %v1850_v25  ;;  %v2368_v25 = vand.u32 4294901760, %v22285_v20  ;;  %v22310_v27 = vsub.f32 %v2247_v16, %v22294_v24 }
 0x21e   : > { %18746 = vmatprep.subr.mxu1 %v1857_v26 }
 0x21f   : > { %18747 = vmatpush3.msra.mxu1 %v1857_v26  ;;  %v2253_v26 = vsel %vm1711_vm0, %v2246_v21, 0 }
 0x220   : > { %18762 = vmatprep.subr.mxu1 %v22195_v4  ;;  %v22314_v28 = vand.u32 4294901760, %v2253_v26 }
 0x222   : > { %v2325_v29 = vsub.f32 %v2253_v26, %v22314_v28 }
 0x28a   : > { %v1652_v44 = vpop.permute.xlu0 %1651 }
 0x28b   : > { %v1669_v45 = vmul.f32 %v1662_v40, %v1652_v44 }
 0x28d   : > { %v1705_v47 = vadd.f32 %v1698_v42, %v1669_v45 }
 0x28e   : > { %v1657_v49 = vpop.permute.xlu0 %1656 }
 0x28f   : > { %v1713_v50 = vsel %vm1711_vm0, %v1705_v47, 0  ;;  %v1670_v51 = vmul.f32 %v1666_v46, %v1657_v49  ;;  %v2251_v49 = vld [vmem:[#allocation8] sm:$0x1] }
 0x290   : > { %v22255_v52 = vand.u32 4294901760, %v1713_v50 }
 0x291   : > { %v1706_v53 = vadd.f32 %v1702_v48, %v1670_v51 }
 0x292   : > { %v1788_v54 = vsub.f32 %v1713_v50, %v22255_v52  ;;  %18748 = vmatprep.mubr.f32.mxu1 %v22255_v52 }
 0x293   : > { %v1716_v55 = vsel %vm1711_vm0, %v1706_v53, 0 }
 0x294   : > { %v22260_v56 = vand.u32 4294901760, %v1716_v55  ;;  %v1789_v57 = vand.u32 4294901760, %v1788_v54 }
 0x296   : > { %v1798_v59 = vsub.f32 %v1716_v55, %v22260_v56  ;;  %18749 = vmatmul.mubr.f32.vlgmr.msra.gmra.mxu1 %v22260_v56  ;;  %v1790_v60 = vsub.f32 %v1788_v54, %v1789_v57 }
 0x297   : > { %18763 = vmatpush3.msra.mxu1 %v22195_v4  ;;  %18770 = vmatprep.mubr.f32.mxu1 %v1789_v57 }
 0x298   : > { %18764 = vmatprep.subr.mxu1 %v22197_v6  ;;  %v1791_v63 = vand.u32 4294901760, %v1790_v60  ;;  %v1799_v0 = vand.u32 4294901760, %v1798_v59 }
 0x299   : > { %18765 = vmatpush3.msra.mxu1 %v22197_v6 }
 0x29a   : > { %18766 = vmatprep.subr.mxu1 %v22204_v10  ;;  %18737 = vmatprep.mubr.f32.mxu0 %v1791_v63  ;;  %v1800_v3 = vsub.f32 %v1798_v59, %v1799_v0 }
 0x29b   : > { %18767 = vmatpush3.msra.mxu1 %v22204_v10 }
 0x29c   : > { %18768 = vmatprep.subr.mxu1 %v22206_v11  ;;  %v1801_v8 = vand.u32 4294901760, %v1800_v3 }
 0x29d   : > { %18769 = vmatpush3.msra.mxu1 %v22206_v11 }
 0x29e   : > { %18771 = vmatmul.mubr.f32.vlgmr.msra.gmra.mxu1 %v1799_v0  ;;  %18784 = vmatprep.subr.mxu1 %v22195_v4 }
 0x29f   : > { %18738 = vmatmul.mubr.f32.vlgmr.msra.gmra.mxu0 %v1801_v8  ;;  %18785 = vmatpush3.msra.mxu1 %v22195_v4  ;;  %v2362_v4 = vsub.f32 %v22277_v5, %v2361_v22 }
 0x2a0   : > { %18752 = vmatpush3.msra.mxu0 %v22202_v9  ;;  %18792 = vmatprep.mubr.f32.mxu1 %v22255_v52  ;;  %v2375_v9 = vand.u32 4294901760, %v22292_v23 }
 0x2a1   : > { %18753 = vmatprep.subr.mxu0 %v22210_v12  ;;  %18759 = vmatprep.mubr.f32.mxu0 %v1788_v54 }
 0x2a2   : > { %18786 = vmatprep.subr.mxu1 %v22197_v6  ;;  %18754 = vmatpush3.msra.mxu0 %v22210_v12  ;;  %v2363_v12 = vand.u32 4294901760, %v2362_v4 }
 0x2a3   : > { %18787 = vmatpush3.msra.mxu1 %v22197_v6  ;;  %18755 = vmatprep.subr.mxu0 %v22217_v14  ;;  %v2369_v6 = vsub.f32 %v22285_v20, %v2368_v25 }
 0x2a4   : > { %18788 = vmatprep.subr.mxu1 %v22204_v10  ;;  %18756 = vmatpush3.msra.mxu0 %v22217_v14  ;;  %v2376_v14 = vsub.f32 %v22292_v23, %v2375_v9 }
 0x2a5   : > { %18789 = vmatpush3.msra.mxu1 %v22204_v10  ;;  %18757 = vmatprep.subr.mxu0 %v22220_v15  ;;  %v2382_v10 = vand.u32 4294901760, %v22310_v27 }
 0x2a6   : > { %18790 = vmatprep.subr.mxu1 %v22206_v11  ;;  %18758 = vmatpush3.msra.mxu0 %v22220_v15  ;;  %v2370_v15 = vand.u32 4294901760, %v2369_v6  ;;  %v2377_v30 = vand.u32 4294901760, %v2376_v14 }
 0x2a7   : > { %18791 = vmatpush3.msra.mxu1 %v22206_v11  ;;  %18760 = vmatmul.mubr.f32.vlgmr.msra.gmra.mxu0 %v1798_v59  ;;  %v21521_v11 = vmov 0.0   ;;  %v2383_v31 = vsub.f32 %v22310_v27, %v2382_v10 }
 0x2a8   : > { %18773 = vmatprep.subr.mxu0 %v22214_v13  ;;  %18793 = vmatmul.mubr.f32.vlgmr.msra.gmra.mxu1 %v22260_v56 }
 0x2a9   : > { %18774 = vmatpush3.msra.mxu0 %v22214_v13  ;;  %18781 = vmatprep.mubr.f32.mxu0 %v22255_v52  ;;  %v2326_v13 = vand.u32 4294901760, %v2325_v29 }
 0x2aa   : > { %18775 = vmatprep.subr.mxu0 %v22227_v17  ;;  %18806 = vmatprep.subr.mxu1 %v21521_v11 }
 0x2ab   : > { %18776 = vmatpush3.msra.mxu0 %v22227_v17  ;;  %18807 = vmatpush3.msra.mxu1 %v2363_v12  ;;  %v2384_v17 = vand.u32 4294901760, %v2383_v31  ;;  %v2327_v32 = vsub.f32 %v2325_v29, %v2326_v13 }
 0x2ac   : > { %18777 = vmatprep.subr.mxu0 %v22230_v18  ;;  %18808 = vmatprep.subr.mxu1 %v21521_v11 }
 0x2ad   : > { %18778 = vmatpush3.msra.mxu0 %v22230_v18  ;;  %18809 = vmatpush3.msra.mxu1 %v2370_v15  ;;  %v2328_v18 = vand.u32 4294901760, %v2327_v32 }
 0x2ae   : > { %18779 = vmatprep.subr.mxu0 %v22233_v19  ;;  %18810 = vmatprep.subr.mxu1 %v21521_v11 }
 0x2af   : > { %18780 = vmatpush3.msra.mxu0 %v22233_v19  ;;  %18811 = vmatpush3.msra.mxu1 %v2377_v30 }
 0x2b0   : > { %18782 = vmatmul.mubr.f32.vlgmr.msra.gmra.mxu0 %v22260_v56  ;;  %18795 = vmatprep.subr.mxu0 %v21521_v11 }
 0x2b1   : > { %18796 = vmatpush3.msra.mxu0 %v22267_v62  ;;  %18812 = vmatprep.subr.mxu1 %v21521_v11 }
 0x2b2   : > { %18797 = vmatprep.subr.mxu0 %v21521_v11  ;;  %18803 = vmatprep.mubr.msk.f32.mxu0 %vm21522_vm1, %v21521_v11 }
 0x2b3   : > { %18798 = vmatpush3.msra.mxu0 %v22272_v2  ;;  %18813 = vmatpush3.msra.mxu1 %v2384_v17 }
 0x2b4   : > { %18799 = vmatprep.subr.mxu0 %v21521_v11  ;;  %18814 = vmatprep.mubr.msk.f32.mxu1 %vm21522_vm1, %v21521_v11 }
 0x2b5   : > { %18800 = vmatpush3.msra.mxu0 %v22279_v7  ;;  %18828 = vmatprep.subr.mxu1 %v21521_v11 }
 0x2b6   : > { %18801 = vmatprep.subr.mxu0 %v21521_v11  ;;  %18815 = vmatmul.mubr.f32.vlgmr.msra.gmra.mxu1 %v22314_v28 }
 0x2b7   : > { %18802 = vmatpush3.msra.mxu0 %v22294_v24  ;;  %18829 = vmatpush3.msra.mxu1 %v22267_v62 }
 0x2b8   : > { %18804 = vmatmul.mubr.f32.vlgmr.msra.gmra.mxu0 %v2328_v18  ;;  %18817 = vmatprep.subr.mxu0 %v21521_v11 }
 0x2b9   : > { %18818 = vmatpush3.msra.mxu0 %v22277_v5  ;;  %18830 = vmatprep.subr.mxu1 %v21521_v11 }
 0x2ba   : > { %18819 = vmatprep.subr.mxu0 %v21521_v11  ;;  %18831 = vmatpush3.msra.mxu1 %v22272_v2 }
 0x2bb   : > { %18820 = vmatpush3.msra.mxu0 %v22285_v20  ;;  %18832 = vmatprep.subr.mxu1 %v21521_v11 }
 0x2bc   : > { %18821 = vmatprep.subr.mxu0 %v21521_v11  ;;  %18833 = vmatpush3.msra.mxu1 %v22279_v7 }
 0x2bd   : > { %18822 = vmatpush3.msra.mxu0 %v22292_v23  ;;  %18834 = vmatprep.subr.mxu1 %v21521_v11 }
 0x2be   : > { %18823 = vmatprep.subr.mxu0 %v21521_v11  ;;  %18825 = vmatprep.mubr.msk.f32.mxu0 %vm21522_vm1, %v21521_v11 }
 0x2bf   : > { %18824 = vmatpush3.msra.mxu0 %v22310_v27  ;;  %18835 = vmatpush3.msra.mxu1 %v22294_v24 }
 0x2c0   : > { %18826 = vmatmul.mubr.f32.vlgmr.msra.gmra.mxu0 %v2325_v29  ;;  %18836 = vmatprep.mubr.msk.f32.mxu1 %vm21522_vm1, %v21521_v11 }
 0x2c1   : > { %18839 = vmatprep.subr.mxu0 %v21521_v11  ;;  %18850 = vmatprep.subr.mxu1 %v21521_v11 }
 0x2c2   : > { %18837 = vmatmul.mubr.f32.vlgmr.msra.gmra.mxu1 %v2326_v13  ;;  %18840 = vmatpush3.msra.mxu0 %v2361_v22 }
 0x2c3   : > { %18851 = vmatpush3.msra.mxu1 %v22267_v62  ;;  %18841 = vmatprep.subr.mxu0 %v21521_v11 }
 0x2c4   : > { %18852 = vmatprep.subr.mxu1 %v21521_v11  ;;  %18842 = vmatpush3.msra.mxu0 %v2368_v25  ;;  %v2748_v25 = vld [vmem:[%s24703_s9] sm:$0xff] }
 0x2c5   : > { %18853 = vmatpush3.msra.mxu1 %v22272_v2  ;;  %18843 = vmatprep.subr.mxu0 %v21521_v11 }
 0x2c6   : > { %18854 = vmatprep.subr.mxu1 %v21521_v11  ;;  %18844 = vmatpush3.msra.mxu0 %v2375_v9 }
 0x2c7   : > { %18855 = vmatpush3.msra.mxu1 %v22279_v7  ;;  %18845 = vmatprep.subr.mxu0 %v21521_v11 }
 0x2c8   : > { %18856 = vmatprep.subr.mxu1 %v21521_v11  ;;  %18846 = vmatpush3.msra.mxu0 %v2382_v10 }
 0x2c9   : > { %18847 = vmatprep.mubr.msk.f32.mxu0 %vm21522_vm1, %v21521_v11  ;;  %18857 = vmatpush3.msra.mxu1 %v22294_v24 }
 0x2ca   : > { %18858 = vmatprep.mubr.msk.f32.mxu1 %vm21522_vm1, %v21521_v11  ;;  %18848 = vmatmul.mubr.f32.vlgmr.msra.gmra.mxu0 %v22314_v28 }
 0x2cb   : > { %18859 = vmatmul.mubr.f32.vlgmr.msra.gmra.mxu1 %v22314_v28 }
 0x356   : > { %v18750_v19 = vpop.f32.mrf.mxu1 }
 0x358   : > { %v1894_v34 = vpop.f32.mrf.mxu1 }
 0x35e   : > { %v18772_v35 = vpop.f32.mrf.mxu1 }
 0x35f   : > { %v18739_v33 = vpop.f32.mrf.mxu0 }
 0x360   : > { %v2064_v39 = vpop.f32.mrf.mxu1  ;;  %v1901_v54 = vadd.f32 %v18750_v19, %v18739_v33 }
 0x361   : > { %v1793_v37 = vpop.f32.mrf.mxu0 }
 0x362   : > { %v1895_v55 = vadd.f32 %v1894_v34, %v1793_v37 }
 0x367   : > { %v18761_v38 = vpop.f32.mrf.mxu0 }
 0x368   : > { %v18794_v40 = vpop.f32.mrf.mxu1  ;;  %v1988_v58 = vadd.f32 %v18761_v38, %v1901_v54 }
 0x369   : > { %v1980_v41 = vpop.f32.mrf.mxu0 }
 0x36a   : > { %v2236_v43 = vpop.f32.mrf.mxu1  ;;  %v1981_v59 = vadd.f32 %v1980_v41, %v1895_v55  ;;  %v2073_v61 = vadd.f32 %v18772_v35, %v1988_v58 }
 0x36c   : > { %v2065_v62 = vadd.f32 %v2064_v39, %v1981_v59 }
 0x370   : > { %v18783_v42 = vpop.f32.mrf.mxu0 }
 0x371   : > { %v2162_v1 = vadd.f32 %v18783_v42, %v2073_v61 }
 0x372   : > { %v2155_v44 = vpop.f32.mrf.mxu0 }
 0x373   : > { %v2156_v2 = vadd.f32 %v2155_v44, %v2065_v62  ;;  %v2243_v20 = vadd.f32 %v18794_v40, %v2162_v1 }
 0x375   : > { %v2237_v21 = vadd.f32 %v2236_v43, %v2156_v2 }
 0x376   : > { %v2421_v45 = vpop.f32.mrf.mxu1 }
 0x378   : > { %v2330_v46 = vpop.f32.mrf.mxu0  ;;  %v18816_v47 = vpop.f32.mrf.mxu1 }
 0x379   : > { %v2331_v50 = vadd.f32 %v2330_v46, %v2251_v49 }
 0x37a   : > { %v18805_v48 = vpop.f32.mrf.mxu0 }
 0x37b   : > { %v2422_v56 = vadd.f32 %v2421_v45, %v2331_v50 }
 0x380   : > { %v2501_v51 = vpop.f32.mrf.mxu0 }
 0x381   : > { %v2502_v60 = vadd.f32 %v2501_v51, %v2422_v56 }
 0x382   : > { %v2578_v52 = vpop.f32.mrf.mxu1  ;;  %v18827_v53 = vpop.f32.mrf.mxu0 }
 0x383   : > { %v2579_v63 = vadd.f32 %v2578_v52, %v2502_v60 }
 0x384   : > { %v18838_v57 = vpop.f32.mrf.mxu1 }
 0x38a   : > { %v2661_v0 = vpop.f32.mrf.mxu0 }
 0x38b   : > { %v2662_v3 = vadd.f32 %v2661_v0, %v2579_v63  ;;  %v2736_v5 = vpop.f32.mrf.mxu1 }
 0x38c   : > { %v18849_v7 = vpop.f32.mrf.mxu0 }
 0x38d   : > { %v2737_v8 = vadd.f32 %v2736_v5, %v2662_v3  ;;  %v18860_v16 = vpop.f32.mrf.mxu1 }
 0x38f   : > { %v2743_v22 = vrot.slane %v2737_v8, %v22248_v36 }
 0x391   : > { %v2744_v23 = vadd.f32 %v2743_v22, %v2237_v21  ;;  %v2745_v24 = vadd.f32 %v2743_v22, %v2243_v20 }
 0x393   : > { %v2746_v26 = vmul.f32 5.656854, %v2744_v23  ;;  %v2747_v4 = vmul.f32 5.656854, %v2745_v24 }
 0x395   : > { %v2749_v9 = vadd.f32 %v2748_v25, %v2746_v26  ;;  %v2750_v27 = vadd.f32 %v2748_v25, %v2747_v4 }
 0x397   : > { %2751 = vst.msk [vmem:[#allocation2] sm:$0xff] %vm1711_vm0, %v2749_v9  ;;  %2752 = vst.msk [vmem:[#allocation2 + $0x8] sm:$0xff] %vm1711_vm0, %v2750_v27 }
 0x398 PF: > { %v2758_v28 = vld [vmem:[%s22179_s20 + $0x18] sm:$0xff]  ;;  %v2757_v6 = vld [vmem:[%s22179_s20 + $0x10] sm:$0xff]  ;;  %v2756_v12 = vld [vmem:[%s22179_s20 + $0x8] sm:$0xff]  ;;  %vm2766_vm2 = vcmask 261120   ;;  %v21523_v7 = vmov 0.0   ;;  %vm21524_vm3 = vmmov 0  }
 0x399   : > { %v22413_v36 = vand.u32 4294901760, %v2758_v28  ;;  %v22415_v14 = vand.u32 4294901760, %v2757_v6  ;;  %v22417_v10 = vand.u32 4294901760, %v2756_v12  ;;  %v2755_v29 = vld [vmem:[%s22179_s20] sm:$0xff]  ;;  %s24704_s20 = scalar_lea.vmem [#allocation10], %s22129_s15  ;;  %s21525_s22 = smov 96  }
 0x39a   : > { %v22420_v30 = vand.u32 4294901760, %v2755_v29  ;;  %v17983_v57 = vld [vmem:[%s24704_s20] ss:$0 sm:$0xff]  ;;  %vm3310_vm4 = vcmask 64512   ;;  %s21527_s3 = smov 64   ;;  %s21528_s16 = smov 88  }
 0x39b   : > { %18861 = vmatprep.subr.mxu0 %v22413_v36  ;;  %v2888_v17 = vsub.f32 %v2758_v28, %v22413_v36  ;;  %v2895_v18 = vsub.f32 %v2757_v6, %v22415_v14  ;;  %v2902_v33 = vsub.f32 %v2756_v12, %v22417_v10  ;;  %s21529_s6 = smov 120   ;;  %s21530_s28 = smov 56   ;;  %vm10687_vm6 = vcmask 195584  }
 0x39c   : > { %18862 = vmatpush3.msra.mxu0 %v22413_v36  ;;  %v2909_v34 = vsub.f32 %v2755_v29, %v22420_v30  ;;  %s21531_s24 = smov 80   ;;  %s21532_s1 = smov 112   ;;  %vm10684_vm7 = vcmask 130048   ;;  %vm11844_vm8 = vcmask 523264  }
 0x39d   : > { %18863 = vmatprep.subr.mxu0 %v22415_v14  ;;  %v2889_v35 = vand.u32 4294901760, %v2888_v17  ;;  %v2896_v38 = vand.u32 4294901760, %v2895_v18  ;;  %v2903_v40 = vand.u32 4294901760, %v2902_v33  ;;  %s21533_s26 = smov 48   ;;  %s21534_s18 = smov 72  }
 0x39e   : > { %v2753_v15 = vld [vmem:[#allocation2] sm:$0xff]  ;;  %v2754_v11 = vld [vmem:[#allocation2 + $0x8] sm:$0xff]  ;;  %18864 = vmatpush3.msra.mxu0 %v22415_v14  ;;  %v2910_v41 = vand.u32 4294901760, %v2909_v34  ;;  %s21535_s7 = smov 104   ;;  %s21536_s9 = smov 40  }
 0x39f   : > { %v2768_v31 = vsel %vm2766_vm2, %v2753_v15, 0  ;;  %v2771_v13 = vsel %vm2766_vm2, %v2754_v11, 0  ;;  %18865 = vmatprep.subr.mxu0 %v22417_v10  ;;  %v2890_v42 = vsub.f32 %v2888_v17, %v2889_v35  ;;  %v2897_v44 = vsub.f32 %v2895_v18, %v2896_v38  ;;  %s21537_s20 = smov 8  }
 0x3a0   : > { %v22426_v32 = vand.u32 4294901760, %v2768_v31  ;;  %v22429_v19 = vand.u32 4294901760, %v2771_v13  ;;  %18866 = vmatpush3.msra.mxu0 %v22417_v10  ;;  %v2904_v46 = vsub.f32 %v2902_v33, %v2903_v40  ;;  %v2911_v47 = vsub.f32 %v2909_v34, %v2910_v41 }
 0x3a1   : > { %18867 = vmatprep.subr.mxu0 %v22420_v30  ;;  %v2891_v48 = vand.u32 4294901760, %v2890_v42  ;;  %v2898_v50 = vand.u32 4294901760, %v2897_v44 }
 0x3a2   : > { %v2843_v37 = vsub.f32 %v2768_v31, %v22426_v32  ;;  %v2853_v39 = vsub.f32 %v2771_v13, %v22429_v19  ;;  %18880 = vmatprep.mubr.f32.mxu1 %v22426_v32  ;;  %18868 = vmatpush3.msra.mxu0 %v22420_v30  ;;  %v2905_v54 = vand.u32 4294901760, %v2904_v46  ;;  %v2912_v55 = vand.u32 4294901760, %v2911_v47 }
 0x3a3   : > { %18872 = vmatprep.subr.mxu1 %v2891_v48  ;;  %18883 = vmatprep.subr.mxu0 %v2888_v17 }
 0x3a4   : > { %v2844_v43 = vand.u32 4294901760, %v2843_v37  ;;  %v2854_v45 = vand.u32 4294901760, %v2853_v39  ;;  %18873 = vmatpush3.msra.mxu1 %v2891_v48  ;;  %v3301_v48 = vlaneseq }
 0x3a5   : > { %18874 = vmatprep.subr.mxu1 %v2898_v50 }
 0x3a6   : > { %v2845_v49 = vsub.f32 %v2843_v37, %v2844_v43  ;;  %v2855_v51 = vsub.f32 %v2853_v39, %v2854_v45  ;;  %18875 = vmatpush3.msra.mxu1 %v2898_v50 }
 0x3a7   : > { %18876 = vmatprep.subr.mxu1 %v2905_v54 }
 0x3a8   : > { %v2846_v52 = vand.u32 4294901760, %v2845_v49  ;;  %v2856_v53 = vand.u32 4294901760, %v2855_v51  ;;  %18877 = vmatpush3.msra.mxu1 %v2905_v54 }
 0x3a9   : > { %18878 = vmatprep.subr.mxu1 %v2912_v55 }
 0x3aa   : > { %18869 = vmatprep.mubr.f32.mxu0 %v2846_v52  ;;  %18879 = vmatpush3.msra.mxu1 %v2912_v55  ;;  %v22526_v55 = vshrl.u32 %v3301_v48, 7 }
 0x3ab   : > { %18870 = vmatmul.mubr.f32.vlgmr.msra.gmra.mxu0 %v2856_v53  ;;  %18881 = vmatmul.mubr.f32.vlgmr.msra.gmra.mxu1 %v22429_v19 }
 0x3ac   : > { %18884 = vmatpush3.msra.mxu0 %v2888_v17  ;;  %18894 = vmatprep.subr.mxu1 %v22413_v36 }
 0x3ad   : > { %18885 = vmatprep.subr.mxu0 %v2895_v18  ;;  %18891 = vmatprep.mubr.f32.mxu0 %v2843_v37 }
 0x3ae   : > { %18886 = vmatpush3.msra.mxu0 %v2895_v18  ;;  %18895 = vmatpush3.msra.mxu1 %v22413_v36 }
 0x3af   : > { %18887 = vmatprep.subr.mxu0 %v2902_v33  ;;  %18896 = vmatprep.subr.mxu1 %v22415_v14 }
 0x3b0   : > { %18888 = vmatpush3.msra.mxu0 %v2902_v33  ;;  %18897 = vmatpush3.msra.mxu1 %v22415_v14 }
 0x3b1   : > { %18889 = vmatprep.subr.mxu0 %v2909_v34  ;;  %18898 = vmatprep.subr.mxu1 %v22417_v10 }
 0x3b2   : > { %18890 = vmatpush3.msra.mxu0 %v2909_v34  ;;  %18899 = vmatpush3.msra.mxu1 %v22417_v10 }
 0x3b3   : > { %18892 = vmatmul.mubr.f32.vlgmr.msra.gmra.mxu0 %v2853_v39  ;;  %18905 = vmatprep.subr.mxu0 %v2889_v35 }
 0x3b4   : > { %18906 = vmatpush3.msra.mxu0 %v2889_v35  ;;  %18900 = vmatprep.subr.mxu1 %v22420_v30 }
 0x3b5   : > { %18907 = vmatprep.subr.mxu0 %v2896_v38  ;;  %18901 = vmatpush3.msra.mxu1 %v22420_v30 }
 0x3b6   : > { %18908 = vmatpush3.msra.mxu0 %v2896_v38  ;;  %18902 = vmatprep.mubr.f32.mxu1 %v2844_v43 }
 0x3b7   : > { %18909 = vmatprep.subr.mxu0 %v2903_v40  ;;  %18903 = vmatmul.mubr.f32.vlgmr.msra.gmra.mxu1 %v2854_v45 }
 0x3b8   : > { %18910 = vmatpush3.msra.mxu0 %v2903_v40  ;;  %18916 = vmatprep.subr.mxu1 %v22413_v36 }
 0x3b9   : > { %18911 = vmatprep.subr.mxu0 %v2910_v41  ;;  %18913 = vmatprep.mubr.f32.mxu0 %v22426_v32 }
 0x3ba   : > { %18912 = vmatpush3.msra.mxu0 %v2910_v41  ;;  %18917 = vmatpush3.msra.mxu1 %v22413_v36 }
 0x3bb   : > { %18914 = vmatmul.mubr.f32.vlgmr.msra.gmra.mxu0 %v22429_v19  ;;  %18918 = vmatprep.subr.mxu1 %v22415_v14 }
 0x3bc   : > { %18924 = vmatprep.mubr.f32.mxu1 %v22426_v32  ;;  %18919 = vmatpush3.msra.mxu1 %v22415_v14 }
 0x3bd   : > { %18920 = vmatprep.subr.mxu1 %v22417_v10  ;;  %18927 = vmatprep.subr.mxu0 %v21523_v7 }
 0x3be   : > { %18921 = vmatpush3.msra.mxu1 %v22417_v10  ;;  %18929 = vmatprep.mubr.msk.f32.mxu0 %vm21524_vm3, %v21523_v7 }
 0x3bf   : > { %18922 = vmatprep.subr.mxu1 %v22420_v30 }
 0x3c0   : > { %18923 = vmatpush3.msra.mxu1 %v22420_v30 }
 0x3c1   : > { %18925 = vmatmul.mubr.f32.vlgmr.msra.gmra.mxu1 %v22429_v19  ;;  %18932 = vmatprep.subr.mxu1 %v21523_v7 }
 0x3c2   : > { %18934 = vmatprep.mubr.msk.f32.mxu1 %vm21524_vm3, %v21523_v7 }
 0x46b   : > { %v18871_v56 = vpop.f32.mrf.mxu0  ;;  %v18882_v59 = vpop.f32.mrf.mxu1 }
 0x46c   : > { %v2859_v0 = vadd.f32 %v18871_v56, %v17983_v57  ;;  %v3304_v56 = vand.u32 127, %v3301_v48 }
 0x46d   : > { %v2848_v58 = vpop.f32.mrf.mxu0  ;;  %v2949_v61 = vpop.f32.mrf.mxu1 }
 0x46e   : > { %v2849_v60 = vadd.f32 %v17983_v57, %v2848_v58  ;;  %v2956_v8 = vadd.f32 %v18882_v59, %v2859_v0  ;;  %vm3305_vm5 = vcmp.ge.s32.totalorder %v22526_v55, %v3304_v56 }
 0x470   : > { %v2950_v1 = vadd.f32 %v2949_v61, %v2849_v60 }
 0x473   : > { %v18893_v62 = vpop.f32.mrf.mxu0 }
 0x474   : > { %v3043_v22 = vadd.f32 %v18893_v62, %v2956_v8 }
 0x475   : > { %v3035_v2 = vpop.f32.mrf.mxu0 }
 0x476   : > { %v3036_v16 = vadd.f32 %v3035_v2, %v2950_v1 }
 0x477   : > { %v18904_v63 = vpop.f32.mrf.mxu1 }
 0x478   : > { %v3128_v24 = vadd.f32 %v18904_v63, %v3043_v22 }
 0x479   : > { %v3119_v3 = vpop.f32.mrf.mxu1 }
 0x47a   : > { %v3120_v20 = vadd.f32 %v3119_v3, %v3036_v16 }
 0x47b   : > { %v18915_v5 = vpop.f32.mrf.mxu0 }
 0x47c   : > { %v3217_v9 = vadd.f32 %v18915_v5, %v3128_v24  ;;  %v21526_v5 = vmov -1e+30  }
 0x47d   : > { %v3210_v21 = vpop.f32.mrf.mxu0  ;;  %v22529_v8 = vsel %vm3305_vm5, 0.0, %v21526_v5 }
 0x47e   : > { %v3211_v25 = vadd.f32 %v3210_v21, %v3120_v20 }
 0x481   : > { %v18926_v23 = vpop.f32.mrf.mxu1 }
 0x482   : > { %v22475_v27 = vadd.f32 %v18926_v23, %v3217_v9 }
 0x483   : > { %v3291_v26 = vpop.f32.mrf.mxu1 }
 0x484   : > { %v22472_v4 = vadd.f32 %v3291_v26, %v3211_v25  ;;  %v3764_v14 = vsel %vm3310_vm4, %v22475_v27, 0 }
 0x485   : > { %v22483_v11 = vand.u32 4294901760, %v3764_v14 }
 0x486   : > { %3308 = vrot.lane.b32.xlu0 %v22472_v4, %s21525_s22  ;;  %v3311_v28 = vsel %vm3310_vm4, %v22472_v4, 0 }
 0x487   : > { %v3381_v6 = vand.u32 4294901760, %v3311_v28  ;;  %v3835_v18 = vsub.f32 %v3764_v14, %v22483_v11 }
 0x489   : > { %v3382_v12 = vsub.f32 %v3311_v28, %v3381_v6  ;;  %v3836_v35 = vand.u32 4294901760, %v3835_v18 }
 0x48a   : > { %3762 = vrot.lane.b32.xlu0 %v22475_v27, %s21525_s22  ;;  %s21538_s22 = smov 16  }
 0x48b   : > { %v3383_v36 = vand.u32 4294901760, %v3382_v12  ;;  %v3837_v39 = vsub.f32 %v3835_v18, %v3836_v35 }
 0x48d   : > { %v3384_v15 = vsub.f32 %v3382_v12, %v3383_v36  ;;  %v3838_v41 = vand.u32 4294901760, %v3837_v39 }
 0x48f   : > { %v3385_v32 = vand.u32 4294901760, %v3384_v15 }
 0x4f8   : > { %v3309_v10 = vpop.permute.xlu0 %3308 }
 0x4f9   : > { %v3313_v29 = vsel %vm3310_vm4, %v3309_v10, 0 }
 0x4fa   : > { %v3346_v30 = vand.u32 4294901760, %v3313_v29 }
 0x4fc   : > { %v3423_v31 = vsub.f32 %v3313_v29, %v3346_v30  ;;  %18928 = vmatpush3.xpose.msra.mxu0 %v3346_v30  ;;  %v3763_v13 = vpop.permute.xlu0 %3762 }
 0x4fd   : > { %v3766_v17 = vsel %vm3310_vm4, %v3763_v13, 0  ;;  %18937 = vmatprep.subr.mxu0 %v21523_v7 }
 0x4fe   : > { %v3424_v19 = vand.u32 4294901760, %v3423_v31  ;;  %v3799_v33 = vand.u32 4294901760, %v3766_v17 }
 0x4ff   : > { %18930 = vmatmul.mubr.f32.vlgmr.msra.gmra.mxu0 %v3385_v32 }
 0x500   : > { %v3425_v34 = vsub.f32 %v3423_v31, %v3424_v19  ;;  %18938 = vmatpush3.xpose.msra.mxu0 %v3423_v31  ;;  %18939 = vmatprep.mubr.msk.f32.mxu0 %vm21524_vm3, %v21523_v7  ;;  %v3876_v38 = vsub.f32 %v3766_v17, %v3799_v33 }
 0x501   : > { %18947 = vmatprep.subr.mxu0 %v21523_v7 }
 0x502   : > { %v3426_v37 = vand.u32 4294901760, %v3425_v34  ;;  %v3877_v40 = vand.u32 4294901760, %v3876_v38 }
 0x503   : > { %18940 = vmatmul.mubr.f32.vlgmr.msra.gmra.mxu0 %v3382_v12 }
 0x504   : > { %18933 = vmatpush3.xpose.msra.mxu1 %v3426_v37  ;;  %18948 = vmatpush3.xpose.msra.mxu0 %v3424_v19  ;;  %v3878_v42 = vsub.f32 %v3876_v38, %v3877_v40 }
 0x505   : > { %18949 = vmatprep.mubr.msk.f32.mxu0 %vm21524_vm3, %v21523_v7  ;;  %18942 = vmatprep.subr.mxu1 %v21523_v7 }
 0x506   : > { %18957 = vmatprep.subr.mxu0 %v21523_v7  ;;  %v3879_v43 = vand.u32 4294901760, %v3878_v42 }
 0x507   : > { %18935 = vmatmul.mubr.f32.vlgmr.msra.gmra.mxu1 %v3381_v6  ;;  %18950 = vmatmul.mubr.f32.vlgmr.msra.gmra.mxu0 %v3381_v6 }
 0x508   : > { %18943 = vmatpush3.xpose.msra.mxu1 %v3346_v30  ;;  %18958 = vmatpush3.xpose.msra.mxu0 %v3799_v33 }
 0x509   : > { %18944 = vmatprep.mubr.msk.f32.mxu1 %vm21524_vm3, %v21523_v7  ;;  %18959 = vmatprep.mubr.msk.f32.mxu0 %vm21524_vm3, %v21523_v7 }
 0x50a   : > { %18952 = vmatprep.subr.mxu1 %v21523_v7  ;;  %18967 = vmatprep.subr.mxu0 %v21523_v7 }
 0x50b   : > { %18945 = vmatmul.mubr.f32.vlgmr.msra.gmra.mxu1 %v3383_v36  ;;  %18960 = vmatmul.mubr.f32.vlgmr.msra.gmra.mxu0 %v3838_v41 }
 0x50c   : > { %18953 = vmatpush3.xpose.msra.mxu1 %v3346_v30  ;;  %18968 = vmatpush3.xpose.msra.mxu0 %v3876_v38 }
 0x50d   : > { %18954 = vmatprep.mubr.msk.f32.mxu1 %vm21524_vm3, %v21523_v7  ;;  %18969 = vmatprep.mubr.msk.f32.mxu0 %vm21524_vm3, %v21523_v7 }
 0x50e   : > { %18962 = vmatprep.subr.mxu1 %v21523_v7  ;;  %18977 = vmatprep.subr.mxu0 %v21523_v7 }
 0x50f   : > { %18955 = vmatmul.mubr.f32.vlgmr.msra.gmra.mxu1 %v3381_v6  ;;  %18970 = vmatmul.mubr.f32.vlgmr.msra.gmra.mxu0 %v3835_v18 }
 0x510   : > { %18963 = vmatpush3.xpose.msra.mxu1 %v3879_v43  ;;  %18978 = vmatpush3.xpose.msra.mxu0 %v3877_v40 }
 0x511   : > { %18964 = vmatprep.mubr.msk.f32.mxu1 %vm21524_vm3, %v21523_v7  ;;  %18979 = vmatprep.mubr.msk.f32.mxu0 %vm21524_vm3, %v21523_v7 }
 0x512   : > { %18972 = vmatprep.subr.mxu1 %v21523_v7  ;;  %18987 = vmatprep.subr.mxu0 %v21523_v7 }
 0x513   : > { %18965 = vmatmul.mubr.f32.vlgmr.msra.gmra.mxu1 %v22483_v11  ;;  %18980 = vmatmul.mubr.f32.vlgmr.msra.gmra.mxu0 %v22483_v11 }
 0x514   : > { %18973 = vmatpush3.xpose.msra.mxu1 %v3799_v33  ;;  %18974 = vmatprep.mubr.msk.f32.mxu1 %vm21524_vm3, %v21523_v7 }
 0x515   : > { %18982 = vmatprep.subr.mxu1 %v21523_v7  ;;  %18989 = vmatprep.mubr.msk.f32.mxu0 %vm21524_vm3, %v21523_v7 }
 0x517   : > { %18975 = vmatmul.mubr.f32.vlgmr.msra.gmra.mxu1 %v3836_v35 }
 0x518   : > { %18983 = vmatpush3.xpose.msra.mxu1 %v3799_v33  ;;  %18984 = vmatprep.mubr.msk.f32.mxu1 %vm21524_vm3, %v21523_v7 }
 0x519   : > { %18992 = vmatprep.subr.mxu1 %v21523_v7 }
 0x51b   : > { %18985 = vmatmul.mubr.f32.vlgmr.msra.gmra.mxu1 %v22483_v11 }
 0x51c   : > { %18994 = vmatprep.mubr.msk.f32.mxu1 %vm21524_vm3, %v21523_v7 }
 0x5bf   : > { %v3387_v44 = vpop.f32.mrf.mxu0 }
 0x5c1   : > { %v18931_v45 = vpop.f32.mrf.mxu0 }
 0x5c3   : > { %v3537_v46 = vpop.f32.mrf.mxu0 }
 0x5c5   : > { %v18941_v47 = vpop.f32.mrf.mxu0 }
 0x5c7   : > { %v3463_v49 = vpop.f32.mrf.mxu1  ;;  %v3685_v50 = vpop.f32.mrf.mxu0 }
 0x5c8   : > { %v3464_v51 = vadd.f32 %v3463_v49, %v3387_v44 }
 0x5c9   : > { %v18936_v52 = vpop.f32.mrf.mxu1  ;;  %v18951_v53 = vpop.f32.mrf.mxu0 }
 0x5ca   : > { %v3538_v54 = vadd.f32 %v3537_v46, %v3464_v51 }
 0x5cb   : > { %v3611_v57 = vpop.f32.mrf.mxu1  ;;  %v3840_v58 = vpop.f32.mrf.mxu0 }
 0x5cc   : > { %v3612_v59 = vadd.f32 %v3611_v57, %v3538_v54 }
 0x5cd   : > { %v18946_v60 = vpop.f32.mrf.mxu1  ;;  %v18961_v61 = vpop.f32.mrf.mxu0 }
 0x5ce   : > { %v3686_v62 = vadd.f32 %v3685_v50, %v3612_v59 }
 0x5cf   : > { %v3757_v63 = vpop.f32.mrf.mxu1  ;;  %v3990_v0 = vpop.f32.mrf.mxu0 }
 0x5d0   : > { %v3758_v1 = vadd.f32 %v3757_v63, %v3686_v62 }
 0x5d1   : > { %v18956_v2 = vpop.f32.mrf.mxu1  ;;  %v18971_v3 = vpop.f32.mrf.mxu0 }
 0x5d2   : > { %v4214_v16 = vmul.f32 0.35355338, %v3758_v1 }
 0x5d3   : > { %v3916_v20 = vpop.f32.mrf.mxu1  ;;  %v4138_v21 = vpop.f32.mrf.mxu0 }
 0x5d4   : > { %v3917_v22 = vadd.f32 %v3916_v20, %v3840_v58  ;;  %v4216_v23 = vadd.f32 %v4214_v16, %v22529_v8 }
 0x5d5   : > { %v18966_v24 = vpop.f32.mrf.mxu1  ;;  %v18981_v25 = vpop.f32.mrf.mxu0 }
 0x5d6   : > { %v3991_v26 = vadd.f32 %v3990_v0, %v3917_v22  ;;  %v4218_v9 = vsel %vm3310_vm4, %v4216_v23, -inf }
 0x5d7   : > { %v4064_v28 = vpop.f32.mrf.mxu1  ;;  %4219 = vmax.xlane.f32.xlu1 %v4218_v9 }
 0x5d8   : > { %v4065_v6 = vadd.f32 %v4064_v28, %v3991_v26 }
 0x5d9   : > { %v18976_v12 = vpop.f32.mrf.mxu1 }
 0x5da   : > { %v4139_v36 = vadd.f32 %v4138_v21, %v4065_v6 }
 0x5db   : > { %v4210_v14 = vpop.f32.mrf.mxu1 }
 0x5dc   : > { %v4211_v10 = vadd.f32 %v4210_v14, %v4139_v36 }
 0x5dd   : > { %v18986_v29 = vpop.f32.mrf.mxu1 }
 0x5de   : > { %v4215_v15 = vmul.f32 0.35355338, %v4211_v10 }
 0x5e0   : > { %v4217_v11 = vadd.f32 %v4215_v15, %v22529_v8 }
 0x5e2   : > { %v4221_v30 = vsel %vm3310_vm4, %v4217_v11, -inf }
 0x5e3   : > { %4222 = vmax.xlane.f32.xlu1 %v4221_v30 }
 0x5f4   : > { %4240 = vrot.lane.b32.xlu1 %v22472_v4, %s21527_s3 }
 0x5f8   : > { %4692 = vrot.lane.b32.xlu1 %v22475_v27, %s21527_s3  ;;  %s24705_s3 = scalar_lea.vmem [#allocation11], %s22129_s15 }
 0x660   : > { %v4220_v31 = vpop.xlane.xlu1 %4219 }
 0x661   : > { %v4224_v13 = vsub.f32 %v4216_v23, %v4220_v31 }
 0x663   : > { %v4226_v17 = vmul.f32 1.442695, %v4224_v13 }
 0x665   : > { %20649 = vpow2.f32 %v4226_v17 }
 0x66c   : > { %v4223_v32 = vpop.xlane.xlu1 %4222 }
 0x66d   : > { %v4225_v18 = vsub.f32 %v4217_v11, %v4223_v32 }
 0x66f   : > { %v4228_v19 = vmul.f32 1.442695, %v4225_v18 }
 0x670   : > { %v4241_v33 = vpop.permute.xlu1 %4240 }
 0x671   : > { %20651 = vpow2.f32 %v4228_v19  ;;  %v4277_v34 = vand.u32 4294901760, %v4241_v33 }
 0x672   : > { %v20650_v35 = vpop.eup %20649 }
 0x673   : > { %v22537_v37 = vsub.f32 %v4241_v33, %v4277_v34  ;;  %18988 = vmatpush3.msra.mxu0 %v4277_v34  ;;  %v4230_v38 = vsel %vm3310_vm4, %v20650_v35, 0.0 }
 0x674   : > { %4231 = vadd.xlane.f32.xlu0 %v4230_v38  ;;  %18997 = vmatprep.subr.mxu0 %v21523_v7  ;;  %v4693_v45 = vpop.permute.xlu1 %4692 }
 0x675   : > { %v4355_v39 = vand.u32 4294901760, %v22537_v37  ;;  %v4729_v46 = vand.u32 4294901760, %v4693_v45 }
 0x677   : > { %v4356_v40 = vsub.f32 %v22537_v37, %v4355_v39  ;;  %v22551_v49 = vsub.f32 %v4693_v45, %v4729_v46 }
 0x679   : > { %v4357_v41 = vand.u32 4294901760, %v4356_v40  ;;  %v4807_v54 = vand.u32 4294901760, %v22551_v49 }
 0x67b   : > { %18993 = vmatpush3.msra.mxu1 %v4357_v41  ;;  %v4808_v59 = vsub.f32 %v22551_v49, %v4807_v54 }
 0x67c   : > { %19002 = vmatprep.subr.mxu1 %v21523_v7 }
 0x67d   : > { %v4809_v0 = vand.u32 4294901760, %v4808_v59 }
 0x67e   : > { %v20652_v42 = vpop.eup %20651 }
 0x67f   : > { %v4233_v43 = vsel %vm3310_vm4, %v20652_v42, 0.0 }
 0x680   : > { %4234 = vadd.xlane.f32.xlu1 %v4233_v43 }
 0x68a   : > { %5600 = vrot.lane.b32.xlu0 %v22475_v27, %s21528_s16 }
 0x691   : > { %5146 = vrot.lane.b32.xlu1 %v22472_v4, %s21528_s16  ;;  %s24707_s16 = scalar_lea.vmem [#allocation13], %s22129_s15 }
 0x695   : > { %5144 = vrot.lane.b32.xlu1 %v22472_v4, %s21529_s6 }
 0x699   : > { %5598 = vrot.lane.b32.xlu1 %v22475_v27, %s21529_s6  ;;  %s24709_s6 = scalar_lea.vmem [#allocation15], %s22129_s15 }
 0x6fd   : > { %v4232_v44 = vpop.xlane.xlu0 %4231 }
 0x6fe   : > { %20653 = vrcp.f32 %v4232_v44 }
 0x701   : > { %v5601_v5 = vpop.permute.xlu0 %5600 }
 0x702   : > { %v5604_v23 = vsel %vm3310_vm4, %v5601_v5, 0 }
 0x703   : > { %v22588_v9 = vand.u32 4294901760, %v5604_v23 }
 0x705   : > { %v22601_v14 = vsub.f32 %v5604_v23, %v22588_v9 }
 0x707   : > { %v5715_v11 = vand.u32 4294901760, %v22601_v14 }
 0x709   : > { %v4235_v47 = vpop.xlane.xlu1 %4234  ;;  %v5716_v17 = vsub.f32 %v22601_v14, %v5715_v11 }
 0x70a   : > { %20655 = vrcp.f32 %v4235_v47 }
 0x70b   : > { %v20654_v48 = vpop.eup %20653  ;;  %v5717_v19 = vand.u32 4294901760, %v5716_v17 }
 0x70c   : > { %v4237_v50 = vmul.f32 %v20654_v48, %v20650_v35 }
 0x70d   : > { %v5147_v51 = vpop.permute.xlu1 %5146 }
 0x70e   : > { %v4244_v52 = vsel %vm3310_vm4, %v4237_v50, 0  ;;  %v5150_v56 = vsel %vm3310_vm4, %v5147_v51, 0 }
 0x70f   : > { %v4312_v53 = vand.u32 4294901760, %v4244_v52  ;;  %v22562_v60 = vand.u32 4294901760, %v5150_v56 }
 0x711   : > { %v4313_v57 = vsub.f32 %v4244_v52, %v4312_v53  ;;  %18995 = vmatmul.mubr.f32.vlgmr.msra.gmra.mxu1 %v4312_v53  ;;  %v22568_v1 = vsub.f32 %v5150_v56, %v22562_v60  ;;  %v5145_v3 = vpop.permute.xlu1 %5144 }
 0x712   : > { %19003 = vmatpush3.msra.mxu1 %v4277_v34  ;;  %19004 = vmatprep.mubr.msk.f32.mxu1 %vm21524_vm3, %v21523_v7  ;;  %v5148_v22 = vsel %vm3310_vm4, %v5145_v3, 0 }
 0x713   : > { %19012 = vmatprep.subr.mxu1 %v21523_v7  ;;  %v4314_v58 = vand.u32 4294901760, %v4313_v57  ;;  %v5261_v21 = vand.u32 4294901760, %v22568_v1  ;;  %v22583_v25 = vand.u32 4294901760, %v5148_v22 }
 0x715   : > { %19005 = vmatmul.mubr.f32.vlgmr.msra.gmra.mxu1 %v4314_v58  ;;  %v4315_v61 = vsub.f32 %v4313_v57, %v4314_v58  ;;  %v5262_v28 = vsub.f32 %v22568_v1, %v5261_v21  ;;  %v5219_v12 = vsub.f32 %v5148_v22, %v22583_v25  ;;  %v5599_v29 = vpop.permute.xlu1 %5598 }
 0x716   : > { %19013 = vmatpush3.msra.mxu1 %v4277_v34  ;;  %19014 = vmatprep.mubr.msk.f32.mxu1 %vm21524_vm3, %v21523_v7  ;;  %v5602_v30 = vsel %vm3310_vm4, %v5599_v29, 0 }
 0x717   : > { %v20656_v62 = vpop.eup %20655  ;;  %19022 = vmatprep.subr.mxu1 %v21523_v7  ;;  %v4316_v63 = vand.u32 4294901760, %v4315_v61  ;;  %v5263_v10 = vand.u32 4294901760, %v5262_v28  ;;  %v5220_v15 = vand.u32 4294901760, %v5219_v12  ;;  %v5672_v13 = vand.u32 4294901760, %v5602_v30 }
 0x718   : > { %v4239_v2 = vmul.f32 %v20656_v62, %v20652_v42 }
 0x719   : > { %18990 = vmatmul.mubr.f32.vlgmr.msra.gmra.mxu0 %v4316_v63  ;;  %19015 = vmatmul.mubr.f32.vlgmr.msra.gmra.mxu1 %v4312_v53  ;;  %v5221_v31 = vsub.f32 %v5219_v12, %v5220_v15  ;;  %v5673_v18 = vsub.f32 %v5602_v30, %v5672_v13 }
 0x71a   : > { %18998 = vmatpush3.msra.mxu0 %v22537_v37  ;;  %19023 = vmatpush3.msra.mxu1 %v4809_v0  ;;  %v4696_v16 = vsel %vm3310_vm4, %v4239_v2, 0 }
 0x71b   : > { %18999 = vmatprep.mubr.msk.f32.mxu0 %vm21524_vm3, %v21523_v7  ;;  %19007 = vmatprep.subr.mxu0 %v21523_v7  ;;  %v4764_v20 = vand.u32 4294901760, %v4696_v16  ;;  %v5222_v32 = vand.u32 4294901760, %v5221_v31  ;;  %v5674_v33 = vand.u32 4294901760, %v5673_v18 }
 0x71c   : > { %19024 = vmatprep.mubr.msk.f32.mxu1 %vm21524_vm3, %v21523_v7  ;;  %19032 = vmatprep.subr.mxu1 %v21523_v7 }
 0x71d   : > { %19000 = vmatmul.mubr.f32.vlgmr.msra.gmra.mxu0 %v4313_v57  ;;  %v4765_v24 = vsub.f32 %v4696_v16, %v4764_v20  ;;  %19025 = vmatmul.mubr.f32.vlgmr.msra.gmra.mxu1 %v4764_v20  ;;  %v5675_v34 = vsub.f32 %v5673_v18, %v5674_v33 }
 0x71e   : > { %19008 = vmatpush3.msra.mxu0 %v4355_v39  ;;  %19033 = vmatpush3.msra.mxu1 %v4729_v46 }
 0x71f   : > { %19009 = vmatprep.mubr.msk.f32.mxu0 %vm21524_vm3, %v21523_v7  ;;  %19017 = vmatprep.subr.mxu0 %v21523_v7  ;;  %v4766_v26 = vand.u32 4294901760, %v4765_v24  ;;  %v5676_v35 = vand.u32 4294901760, %v5675_v34 }
 0x720   : > { %19034 = vmatprep.mubr.msk.f32.mxu1 %vm21524_vm3, %v21523_v7  ;;  %19042 = vmatprep.subr.mxu1 %v21523_v7 }
 0x721   : > { %19010 = vmatmul.mubr.f32.vlgmr.msra.gmra.mxu0 %v4312_v53  ;;  %19035 = vmatmul.mubr.f32.vlgmr.msra.gmra.mxu1 %v4766_v26  ;;  %v4767_v6 = vsub.f32 %v4765_v24, %v4766_v26 }
 0x722   : > { %19018 = vmatpush3.msra.mxu0 %v4729_v46  ;;  %19043 = vmatpush3.msra.mxu1 %v4729_v46 }
 0x723   : > { %19019 = vmatprep.mubr.msk.f32.mxu0 %vm21524_vm3, %v21523_v7  ;;  %19027 = vmatprep.subr.mxu0 %v21523_v7  ;;  %v4768_v36 = vand.u32 4294901760, %v4767_v6 }
 0x724   : > { %19044 = vmatprep.mubr.msk.f32.mxu1 %vm21524_vm3, %v21523_v7  ;;  %19052 = vmatprep.subr.mxu1 %v21523_v7 }
 0x725   : > { %19020 = vmatmul.mubr.f32.vlgmr.msra.gmra.mxu0 %v4768_v36  ;;  %19045 = vmatmul.mubr.f32.vlgmr.msra.gmra.mxu1 %v4764_v20 }
 0x726   : > { %19028 = vmatpush3.msra.mxu0 %v22551_v49  ;;  %19053 = vmatpush3.xpose.msra.mxu1 %v5263_v10 }
 0x727   : > { %19029 = vmatprep.mubr.msk.f32.mxu0 %vm21524_vm3, %v21523_v7  ;;  %19037 = vmatprep.subr.mxu0 %v21523_v7 }
 0x728   : > { %19054 = vmatprep.mubr.msk.f32.mxu1 %vm21524_vm3, %v21523_v7  ;;  %19062 = vmatprep.subr.mxu1 %v21523_v7 }
 0x729   : > { %19030 = vmatmul.mubr.f32.vlgmr.msra.gmra.mxu0 %v4765_v24  ;;  %19055 = vmatmul.mubr.f32.vlgmr.msra.gmra.mxu1 %v22583_v25 }
 0x72a   : > { %19038 = vmatpush3.msra.mxu0 %v4807_v54  ;;  %19063 = vmatpush3.xpose.msra.mxu1 %v22562_v60 }
 0x72b   : > { %19039 = vmatprep.mubr.msk.f32.mxu0 %vm21524_vm3, %v21523_v7  ;;  %19047 = vmatprep.subr.mxu0 %v21523_v7 }
 0x72c   : > { %19064 = vmatprep.mubr.msk.f32.mxu1 %vm21524_vm3, %v21523_v7  ;;  %19072 = vmatprep.subr.mxu1 %v21523_v7 }
 0x72d   : > { %19040 = vmatmul.mubr.f32.vlgmr.msra.gmra.mxu0 %v4764_v20  ;;  %19065 = vmatmul.mubr.f32.vlgmr.msra.gmra.mxu1 %v5220_v15 }
 0x72e   : > { %19048 = vmatpush3.xpose.msra.mxu0 %v22562_v60  ;;  %19073 = vmatpush3.xpose.msra.mxu1 %v22562_v60 }
 0x72f   : > { %19049 = vmatprep.mubr.msk.f32.mxu0 %vm21524_vm3, %v21523_v7  ;;  %19057 = vmatprep.subr.mxu0 %v21523_v7 }
 0x730   : > { %19074 = vmatprep.mubr.msk.f32.mxu1 %vm21524_vm3, %v21523_v7  ;;  %19082 = vmatprep.subr.mxu1 %v21523_v7 }
 0x731   : > { %19050 = vmatmul.mubr.f32.vlgmr.msra.gmra.mxu0 %v5222_v32  ;;  %19075 = vmatmul.mubr.f32.vlgmr.msra.gmra.mxu1 %v22583_v25 }
 0x732   : > { %19058 = vmatpush3.xpose.msra.mxu0 %v22568_v1  ;;  %19083 = vmatpush3.xpose.msra.mxu1 %v5717_v19 }
 0x733   : > { %19059 = vmatprep.mubr.msk.f32.mxu0 %vm21524_vm3, %v21523_v7  ;;  %19067 = vmatprep.subr.mxu0 %v21523_v7 }
 0x734   : > { %19084 = vmatprep.mubr.msk.f32.mxu1 %vm21524_vm3, %v21523_v7  ;;  %19092 = vmatprep.subr.mxu1 %v21523_v7 }
 0x735   : > { %19060 = vmatmul.mubr.f32.vlgmr.msra.gmra.mxu0 %v5219_v12  ;;  %19085 = vmatmul.mubr.f32.vlgmr.msra.gmra.mxu1 %v5672_v13 }
 0x736   : > { %19068 = vmatpush3.xpose.msra.mxu0 %v5261_v21  ;;  %19093 = vmatpush3.xpose.msra.mxu1 %v22588_v9 }
 0x737   : > { %19069 = vmatprep.mubr.msk.f32.mxu0 %vm21524_vm3, %v21523_v7  ;;  %19077 = vmatprep.subr.mxu0 %v21523_v7 }
 0x738   : > { %19094 = vmatprep.mubr.msk.f32.mxu1 %vm21524_vm3, %v21523_v7  ;;  %19102 = vmatprep.subr.mxu1 %v21523_v7 }
 0x739   : > { %19070 = vmatmul.mubr.f32.vlgmr.msra.gmra.mxu0 %v22583_v25  ;;  %19095 = vmatmul.mubr.f32.vlgmr.msra.gmra.mxu1 %v5674_v33 }
 0x73a   : > { %19078 = vmatpush3.xpose.msra.mxu0 %v22588_v9  ;;  %19103 = vmatpush3.xpose.msra.mxu1 %v22588_v9 }
 0x73b   : > { %19079 = vmatprep.mubr.msk.f32.mxu0 %vm21524_vm3, %v21523_v7  ;;  %19087 = vmatprep.subr.mxu0 %v21523_v7 }
 0x73c   : > { %19104 = vmatprep.mubr.msk.f32.mxu1 %vm21524_vm3, %v21523_v7  ;;  %19112 = vmatprep.subr.mxu1 %v21523_v7 }
 0x73d   : > { %19080 = vmatmul.mubr.f32.vlgmr.msra.gmra.mxu0 %v5676_v35  ;;  %19105 = vmatmul.mubr.f32.vlgmr.msra.gmra.mxu1 %v5672_v13 }
 0x73e   : > { %19088 = vmatpush3.xpose.msra.mxu0 %v22601_v14  ;;  %19089 = vmatprep.mubr.msk.f32.mxu0 %vm21524_vm3, %v21523_v7 }
 0x73f   : > { %19097 = vmatprep.subr.mxu0 %v21523_v7  ;;  %19114 = vmatprep.mubr.msk.f32.mxu1 %vm21524_vm3, %v21523_v7 }
 0x741   : > { %19090 = vmatmul.mubr.f32.vlgmr.msra.gmra.mxu0 %v5673_v18 }
 0x742   : > { %19098 = vmatpush3.xpose.msra.mxu0 %v5715_v11  ;;  %19099 = vmatprep.mubr.msk.f32.mxu0 %vm21524_vm3, %v21523_v7 }
 0x743   : > { %19107 = vmatprep.subr.mxu0 %v21523_v7 }
 0x745   : > { %19100 = vmatmul.mubr.f32.vlgmr.msra.gmra.mxu0 %v5672_v13 }
 0x746   : > { %19109 = vmatprep.mubr.msk.f32.mxu0 %vm21524_vm3, %v21523_v7 }
 0x7d1   : > { %v4394_v37 = vpop.f32.mrf.mxu1 }
 0x7d3   : > { %v18996_v38 = vpop.f32.mrf.mxu1 }
 0x7d5   : > { %v4542_v39 = vpop.f32.mrf.mxu1 }
 0x7d7   : > { %v19006_v40 = vpop.f32.mrf.mxu1 }
 0x7d9   : > { %v4318_v41 = vpop.f32.mrf.mxu0  ;;  %v4688_v42 = vpop.f32.mrf.mxu1 }
 0x7da   : > { %v4395_v43 = vadd.f32 %v4394_v37, %v4318_v41 }
 0x7db   : > { %v18991_v44 = vpop.f32.mrf.mxu0  ;;  %v19016_v45 = vpop.f32.mrf.mxu1 }
 0x7dd   : > { %v4468_v46 = vpop.f32.mrf.mxu0  ;;  %v4846_v47 = vpop.f32.mrf.mxu1 }
 0x7de   : > { %v4469_v48 = vadd.f32 %v4468_v46, %v4395_v43 }
 0x7df   : > { %v19001_v49 = vpop.f32.mrf.mxu0  ;;  %v19026_v50 = vpop.f32.mrf.mxu1 }
 0x7e0   : > { %v4543_v51 = vadd.f32 %v4542_v39, %v4469_v48 }
 0x7e1   : > { %v4616_v52 = vpop.f32.mrf.mxu0  ;;  %v4994_v53 = vpop.f32.mrf.mxu1 }
 0x7e2   : > { %v4617_v54 = vadd.f32 %v4616_v52, %v4543_v51 }
 0x7e3   : > { %v19011_v56 = vpop.f32.mrf.mxu0  ;;  %v19036_v57 = vpop.f32.mrf.mxu1 }
 0x7e4   : > { %v22671_v58 = vadd.f32 %v4688_v42, %v4617_v54 }
 0x7e5   : > { %v4770_v59 = vpop.f32.mrf.mxu0  ;;  %v5140_v60 = vpop.f32.mrf.mxu1 }
 0x7e6   : > { %v4847_v61 = vadd.f32 %v4846_v47, %v4770_v59 }
 0x7e7   : > { %v19021_v62 = vpop.f32.mrf.mxu0  ;;  %v19046_v63 = vpop.f32.mrf.mxu1 }
 0x7e9   : > { %v4920_v0 = vpop.f32.mrf.mxu0  ;;  %v5300_v1 = vpop.f32.mrf.mxu1 }
 0x7ea   : > { %v4921_v2 = vadd.f32 %v4920_v0, %v4847_v61 }
 0x7eb   : > { %v19031_v3 = vpop.f32.mrf.mxu0  ;;  %v19056_v5 = vpop.f32.mrf.mxu1 }
 0x7ec   : > { %v4995_v16 = vadd.f32 %v4994_v53, %v4921_v2 }
 0x7ed   : > { %v5068_v20 = vpop.f32.mrf.mxu0  ;;  %v5448_v21 = vpop.f32.mrf.mxu1 }
 0x7ee   : > { %v5069_v22 = vadd.f32 %v5068_v20, %v4995_v16 }
 0x7ef   : > { %v19041_v23 = vpop.f32.mrf.mxu0  ;;  %v19066_v24 = vpop.f32.mrf.mxu1 }
 0x7f0   : > { %v22673_v25 = vadd.f32 %v5140_v60, %v5069_v22 }
 0x7f1   : > { %v5224_v26 = vpop.f32.mrf.mxu0  ;;  %v5594_v9 = vpop.f32.mrf.mxu1 }
 0x7f2   : > { %v5301_v12 = vadd.f32 %v5300_v1, %v5224_v26 }
 0x7f3   : > { %v19051_v28 = vpop.f32.mrf.mxu0  ;;  %v19076_v6 = vpop.f32.mrf.mxu1 }
 0x7f5   : > { %v5374_v36 = vpop.f32.mrf.mxu0  ;;  %v5754_v14 = vpop.f32.mrf.mxu1 }
 0x7f6   : > { %v5375_v10 = vadd.f32 %v5374_v36, %v5301_v12 }
 0x7f7   : > { %v19061_v29 = vpop.f32.mrf.mxu0  ;;  %v19086_v15 = vpop.f32.mrf.mxu1 }
 0x7f8   : > { %v5449_v11 = vadd.f32 %v5448_v21, %v5375_v10 }
 0x7f9   : > { %v5522_v30 = vpop.f32.mrf.mxu0  ;;  %v5902_v31 = vpop.f32.mrf.mxu1 }
 0x7fa   : > { %v5523_v13 = vadd.f32 %v5522_v30, %v5449_v11 }
 0x7fb   : > { %v19071_v17 = vpop.f32.mrf.mxu0  ;;  %v19096_v32 = vpop.f32.mrf.mxu1 }
 0x7fc   : > { %v5595_v18 = vadd.f32 %v5594_v9, %v5523_v13 }
 0x7fd   : > { %v5678_v19 = vpop.f32.mrf.mxu0  ;;  %v6048_v33 = vpop.f32.mrf.mxu1 }
 0x7fe   : > { %v6052_v34 = vmul.f32 0.35355338, %v5595_v18  ;;  %v5755_v38 = vadd.f32 %v5754_v14, %v5678_v19 }
 0x7ff   : > { %v19081_v35 = vpop.f32.mrf.mxu0  ;;  %v19106_v37 = vpop.f32.mrf.mxu1 }
 0x800   : > { %v6054_v39 = vadd.f32 %v6052_v34, %v22529_v8 }
 0x801   : > { %v5828_v40 = vpop.f32.mrf.mxu0 }
 0x802   : > { %v5829_v41 = vadd.f32 %v5828_v40, %v5755_v38  ;;  %v6056_v42 = vsel %vm3310_vm4, %v6054_v39, -inf }
 0x803   : > { %6057 = vmax.xlane.f32.xlu1 %v6056_v42  ;;  %v19091_v43 = vpop.f32.mrf.mxu0 }
 0x804   : > { %v5903_v44 = vadd.f32 %v5902_v31, %v5829_v41 }
 0x805   : > { %v5976_v45 = vpop.f32.mrf.mxu0 }
 0x806   : > { %v5977_v46 = vadd.f32 %v5976_v45, %v5903_v44 }
 0x807   : > { %v19101_v47 = vpop.f32.mrf.mxu0 }
 0x808   : > { %v6049_v48 = vadd.f32 %v6048_v33, %v5977_v46 }
 0x80a   : > { %v6053_v49 = vmul.f32 0.35355338, %v6049_v48 }
 0x80c   : > { %v6055_v50 = vadd.f32 %v6053_v49, %v22529_v8 }
 0x80e   : > { %v6059_v51 = vsel %vm3310_vm4, %v6055_v50, -inf }
 0x80f   : > { %6060 = vmax.xlane.f32.xlu0 %v6059_v51 }
 0x825   : > { %6530 = vrot.lane.b32.xlu0 %v22475_v27, %s21530_s28 }
 0x829   : > { %7438 = vrot.lane.b32.xlu0 %v22475_v27, %s21531_s24 }
 0x88c   : > { %v6058_v52 = vpop.xlane.xlu1 %6057 }
 0x88d   : > { %v6062_v53 = vsub.f32 %v6054_v39, %v6058_v52 }
 0x88f   : > { %v6064_v54 = vmul.f32 1.442695, %v6062_v53 }
 0x891   : > { %20657 = vpow2.f32 %v6064_v54 }
 0x898   : > { %v6061_v59 = vpop.xlane.xlu0 %6060 }
 0x899   : > { %v6063_v60 = vsub.f32 %v6055_v50, %v6061_v59 }
 0x89b   : > { %v6066_v61 = vmul.f32 1.442695, %v6063_v60 }
 0x89c   : > { %v6531_v5 = vpop.permute.xlu0 %6530 }
 0x89d   : > { %20659 = vpow2.f32 %v6066_v61  ;;  %v22691_v20 = vand.u32 4294901760, %v6531_v5 }
 0x89e   : > { %v20658_v56 = vpop.eup %20657 }
 0x89f   : > { %v6068_v57 = vsel %vm3310_vm4, %v20658_v56, 0.0  ;;  %v22694_v24 = vsub.f32 %v6531_v5, %v22691_v20 }
 0x8a0   : > { %6069 = vadd.xlane.f32.xlu1 %v6068_v57  ;;  %v7439_v33 = vpop.permute.xlu0 %7438 }
 0x8a1   : > { %v6645_v6 = vand.u32 4294901760, %v22694_v24  ;;  %v7442_v39 = vsel %vm3310_vm4, %v7439_v33, 0 }
 0x8a2   : > { %v22735_v43 = vand.u32 4294901760, %v7442_v39 }
 0x8a3   : > { %v6646_v14 = vsub.f32 %v22694_v24, %v6645_v6 }
 0x8a4   : > { %v22746_v48 = vsub.f32 %v7442_v39, %v22735_v43 }
 0x8a5   : > { %v6647_v15 = vand.u32 4294901760, %v6646_v14 }
 0x8a6   : > { %v7553_v52 = vand.u32 4294901760, %v22746_v48 }
 0x8a8   : > { %v7554_v57 = vsub.f32 %v22746_v48, %v7553_v52 }
 0x8aa   : > { %v22683_v62 = vpop.eup %20659  ;;  %v7555_v61 = vand.u32 4294901760, %v7554_v57 }
 0x8ab   : > { %v6071_v63 = vsel %vm3310_vm4, %v22683_v62, 0.0 }
 0x8b1   : > { %6078 = vrot.lane.b32.xlu1 %v22472_v4, %s21530_s28  ;;  %s24710_s28 = scalar_lea.vmem [#allocation16], %s22129_s15 }
 0x8d5   : > { %6072 = vadd.xlane.f32.xlu1 %v6071_v63 }
 0x8e6   : > { %6984 = vrot.lane.b32.xlu1 %v22472_v4, %s21531_s24  ;;  %s24711_s24 = scalar_lea.vmem [#allocation17], %s22129_s15 }
 0x8ea   : > { %6982 = vrot.lane.b32.xlu1 %v22472_v4, %s21532_s1 }
 0x8ee   : > { %7436 = vrot.lane.b32.xlu1 %v22475_v27, %s21532_s1  ;;  %s24712_s1 = sld [smem:[#allocation83_spill]] }
 0x8f4   : > { %p17991_p2 = scmp.ne.s32.totalorder %s24712_s1, 1 }
 0x929   : > { %v6070_v0 = vpop.xlane.xlu1 %6069 }
 0x92a   : > { %20661 = vrcp.f32 %v6070_v0 }
 0x92d   : > { %v6079_v1 = vpop.permute.xlu1 %6078 }
 0x92e   : > { %v6115_v2 = vand.u32 4294901760, %v6079_v1 }
 0x930   : > { %v6192_v3 = vsub.f32 %v6079_v1, %v6115_v2  ;;  %19108 = vmatpush3.msra.mxu0 %v6115_v2 }
 0x931   : > { %19117 = vmatprep.subr.mxu0 %v21523_v7 }
 0x932   : > { %v6193_v16 = vand.u32 4294901760, %v6192_v3 }
 0x934   : > { %v6194_v21 = vsub.f32 %v6192_v3, %v6193_v16 }
 0x936   : > { %v6195_v22 = vand.u32 4294901760, %v6194_v21 }
 0x937   : > { %v20662_v23 = vpop.eup %20661 }
 0x938   : > { %19113 = vmatpush3.msra.mxu1 %v6195_v22  ;;  %v6075_v26 = vmul.f32 %v20662_v23, %v20658_v56 }
 0x939   : > { %19122 = vmatprep.subr.mxu1 %v21523_v7 }
 0x93a   : > { %v6082_v9 = vsel %vm3310_vm4, %v6075_v26, 0 }
 0x93b   : > { %v6150_v28 = vand.u32 4294901760, %v6082_v9 }
 0x93d   : > { %v6151_v12 = vsub.f32 %v6082_v9, %v6150_v28  ;;  %19115 = vmatmul.mubr.f32.vlgmr.msra.gmra.mxu1 %v6150_v28 }
 0x93e   : > { %19123 = vmatpush3.msra.mxu1 %v6115_v2  ;;  %19124 = vmatprep.mubr.msk.f32.mxu1 %vm21524_vm3, %v21523_v7 }
 0x93f   : > { %19132 = vmatprep.subr.mxu1 %v21523_v7  ;;  %v6152_v36 = vand.u32 4294901760, %v6151_v12 }
 0x941   : > { %19125 = vmatmul.mubr.f32.vlgmr.msra.gmra.mxu1 %v6152_v36  ;;  %v6153_v10 = vsub.f32 %v6151_v12, %v6152_v36 }
 0x942   : > { %19133 = vmatpush3.msra.mxu1 %v6115_v2  ;;  %19134 = vmatprep.mubr.msk.f32.mxu1 %vm21524_vm3, %v21523_v7 }
 0x943   : > { %19142 = vmatprep.subr.mxu1 %v21523_v7  ;;  %v6154_v29 = vand.u32 4294901760, %v6153_v10 }
 0x945   : > { %19110 = vmatmul.mubr.f32.vlgmr.msra.gmra.mxu0 %v6154_v29  ;;  %19135 = vmatmul.mubr.f32.vlgmr.msra.gmra.mxu1 %v6150_v28 }
 0x946   : > { %19118 = vmatpush3.msra.mxu0 %v6192_v3  ;;  %19143 = vmatpush3.msra.mxu1 %v6647_v15 }
 0x947   : > { %19119 = vmatprep.mubr.msk.f32.mxu0 %vm21524_vm3, %v21523_v7  ;;  %19127 = vmatprep.subr.mxu0 %v21523_v7 }
 0x948   : > { %19144 = vmatprep.mubr.msk.f32.mxu1 %vm21524_vm3, %v21523_v7  ;;  %19152 = vmatprep.subr.mxu1 %v21523_v7 }
 0x949   : > { %19120 = vmatmul.mubr.f32.vlgmr.msra.gmra.mxu0 %v6151_v12 }
 0x94a   : > { %19128 = vmatpush3.msra.mxu0 %v6193_v16  ;;  %19129 = vmatprep.mubr.msk.f32.mxu0 %vm21524_vm3, %v21523_v7 }
 0x94b   : > { %19137 = vmatprep.subr.mxu0 %v21523_v7 }
 0x94d   : > { %19130 = vmatmul.mubr.f32.vlgmr.msra.gmra.mxu0 %v6150_v28 }
 0x94e   : > { %19138 = vmatpush3.msra.mxu0 %v22691_v20  ;;  %19139 = vmatprep.mubr.msk.f32.mxu0 %vm21524_vm3, %v21523_v7 }
 0x94f   : > { %19147 = vmatprep.subr.mxu0 %v21523_v7 }
 0x95e   : > { %v6073_v11 = vpop.xlane.xlu1 %6072 }
 0x95f   : > { %20663 = vrcp.f32 %v6073_v11 }
 0x962   : > { %v6985_v30 = vpop.permute.xlu1 %6984 }
 0x963   : > { %v6988_v31 = vsel %vm3310_vm4, %v6985_v30, 0 }
 0x964   : > { %v7021_v13 = vand.u32 4294901760, %v6988_v31 }
 0x966   : > { %v22722_v32 = vsub.f32 %v6988_v31, %v7021_v13  ;;  %v6983_v19 = vpop.permute.xlu1 %6982 }
 0x967   : > { %v6986_v38 = vsel %vm3310_vm4, %v6983_v19, 0 }
 0x968   : > { %v7099_v37 = vand.u32 4294901760, %v22722_v32  ;;  %v22732_v41 = vand.u32 4294901760, %v6986_v38 }
 0x96a   : > { %v7100_v44 = vsub.f32 %v22722_v32, %v7099_v37  ;;  %v7057_v46 = vsub.f32 %v6986_v38, %v22732_v41  ;;  %v7437_v50 = vpop.permute.xlu1 %7436 }
 0x96b   : > { %v7440_v53 = vsel %vm3310_vm4, %v7437_v50, 0 }
 0x96c   : > { %v20664_v17 = vpop.eup %20663  ;;  %v7101_v49 = vand.u32 4294901760, %v7100_v44  ;;  %v7058_v51 = vand.u32 4294901760, %v7057_v46  ;;  %v7510_v56 = vand.u32 4294901760, %v7440_v53 }
 0x96d   : > { %v6077_v18 = vmul.f32 %v20664_v17, %v22683_v62 }
 0x96e   : > { %v7059_v54 = vsub.f32 %v7057_v46, %v7058_v51  ;;  %v7511_v60 = vsub.f32 %v7440_v53, %v7510_v56 }
 0x96f   : > { %v6534_v34 = vsel %vm3310_vm4, %v6077_v18, 0 }
 0x970   : > { %v6602_v35 = vand.u32 4294901760, %v6534_v34  ;;  %v7060_v59 = vand.u32 4294901760, %v7059_v54  ;;  %v7512_v62 = vand.u32 4294901760, %v7511_v60 }
 0x972   : > { %v6603_v40 = vsub.f32 %v6534_v34, %v6602_v35  ;;  %19145 = vmatmul.mubr.f32.vlgmr.msra.gmra.mxu1 %v6602_v35  ;;  %v7513_v63 = vsub.f32 %v7511_v60, %v7512_v62 }
 0x973   : > { %19153 = vmatpush3.msra.mxu1 %v22691_v20  ;;  %19154 = vmatprep.mubr.msk.f32.mxu1 %vm21524_vm3, %v21523_v7 }
 0x974   : > { %19162 = vmatprep.subr.mxu1 %v21523_v7  ;;  %v6604_v42 = vand.u32 4294901760, %v6603_v40  ;;  %v7514_v0 = vand.u32 4294901760, %v7513_v63 }
 0x976   : > { %19155 = vmatmul.mubr.f32.vlgmr.msra.gmra.mxu1 %v6604_v42  ;;  %v6605_v45 = vsub.f32 %v6603_v40, %v6604_v42 }
 0x977   : > { %19163 = vmatpush3.msra.mxu1 %v22691_v20  ;;  %19164 = vmatprep.mubr.msk.f32.mxu1 %vm21524_vm3, %v21523_v7 }
 0x978   : > { %19172 = vmatprep.subr.mxu1 %v21523_v7  ;;  %v6606_v47 = vand.u32 4294901760, %v6605_v45 }
 0x97a   : > { %19140 = vmatmul.mubr.f32.vlgmr.msra.gmra.mxu0 %v6606_v47  ;;  %19165 = vmatmul.mubr.f32.vlgmr.msra.gmra.mxu1 %v6602_v35 }
 0x97b   : > { %19148 = vmatpush3.msra.mxu0 %v22694_v24  ;;  %19173 = vmatpush3.xpose.msra.mxu1 %v7101_v49 }
 0x97c   : > { %19149 = vmatprep.mubr.msk.f32.mxu0 %vm21524_vm3, %v21523_v7  ;;  %19157 = vmatprep.subr.mxu0 %v21523_v7 }
 0x97d   : > { %19174 = vmatprep.mubr.msk.f32.mxu1 %vm21524_vm3, %v21523_v7  ;;  %19182 = vmatprep.subr.mxu1 %v21523_v7 }
 0x97e   : > { %19150 = vmatmul.mubr.f32.vlgmr.msra.gmra.mxu0 %v6603_v40  ;;  %19175 = vmatmul.mubr.f32.vlgmr.msra.gmra.mxu1 %v22732_v41 }
 0x97f   : > { %19158 = vmatpush3.msra.mxu0 %v6645_v6  ;;  %19183 = vmatpush3.xpose.msra.mxu1 %v7021_v13 }
 0x980   : > { %19159 = vmatprep.mubr.msk.f32.mxu0 %vm21524_vm3, %v21523_v7  ;;  %19167 = vmatprep.subr.mxu0 %v21523_v7 }
 0x981   : > { %19184 = vmatprep.mubr.msk.f32.mxu1 %vm21524_vm3, %v21523_v7  ;;  %19192 = vmatprep.subr.mxu1 %v21523_v7 }
 0x982   : > { %19160 = vmatmul.mubr.f32.vlgmr.msra.gmra.mxu0 %v6602_v35  ;;  %19185 = vmatmul.mubr.f32.vlgmr.msra.gmra.mxu1 %v7058_v51 }
 0x983   : > { %19168 = vmatpush3.xpose.msra.mxu0 %v7021_v13  ;;  %19193 = vmatpush3.xpose.msra.mxu1 %v7021_v13 }
 0x984   : > { %19169 = vmatprep.mubr.msk.f32.mxu0 %vm21524_vm3, %v21523_v7  ;;  %19177 = vmatprep.subr.mxu0 %v21523_v7 }
 0x985   : > { %19194 = vmatprep.mubr.msk.f32.mxu1 %vm21524_vm3, %v21523_v7  ;;  %19202 = vmatprep.subr.mxu1 %v21523_v7 }
 0x986   : > { %19170 = vmatmul.mubr.f32.vlgmr.msra.gmra.mxu0 %v7060_v59  ;;  %19195 = vmatmul.mubr.f32.vlgmr.msra.gmra.mxu1 %v22732_v41 }
 0x987   : > { %19178 = vmatpush3.xpose.msra.mxu0 %v22722_v32  ;;  %19203 = vmatpush3.xpose.msra.mxu1 %v7555_v61 }
 0x988   : > { %19179 = vmatprep.mubr.msk.f32.mxu0 %vm21524_vm3, %v21523_v7  ;;  %19187 = vmatprep.subr.mxu0 %v21523_v7 }
 0x989   : > { %19204 = vmatprep.mubr.msk.f32.mxu1 %vm21524_vm3, %v21523_v7  ;;  %19212 = vmatprep.subr.mxu1 %v21523_v7 }
 0x98a   : > { %19180 = vmatmul.mubr.f32.vlgmr.msra.gmra.mxu0 %v7057_v46  ;;  %19205 = vmatmul.mubr.f32.vlgmr.msra.gmra.mxu1 %v7510_v56 }
 0x98b   : > { %19188 = vmatpush3.xpose.msra.mxu0 %v7099_v37  ;;  %19213 = vmatpush3.xpose.msra.mxu1 %v22735_v43 }
 0x98c   : > { %19189 = vmatprep.mubr.msk.f32.mxu0 %vm21524_vm3, %v21523_v7  ;;  %19197 = vmatprep.subr.mxu0 %v21523_v7 }
 0x98d   : > { %19214 = vmatprep.mubr.msk.f32.mxu1 %vm21524_vm3, %v21523_v7  ;;  %19222 = vmatprep.subr.mxu1 %v21523_v7 }
 0x98e   : > { %19190 = vmatmul.mubr.f32.vlgmr.msra.gmra.mxu0 %v22732_v41  ;;  %19215 = vmatmul.mubr.f32.vlgmr.msra.gmra.mxu1 %v7512_v62 }
 0x98f   : > { %19198 = vmatpush3.xpose.msra.mxu0 %v22735_v43  ;;  %19223 = vmatpush3.xpose.msra.mxu1 %v22735_v43 }
 0x990   : > { %19199 = vmatprep.mubr.msk.f32.mxu0 %vm21524_vm3, %v21523_v7  ;;  %19207 = vmatprep.subr.mxu0 %v21523_v7 }
 0x991   : > { %19224 = vmatprep.mubr.msk.f32.mxu1 %vm21524_vm3, %v21523_v7  ;;  %19232 = vmatprep.subr.mxu1 %v21523_v7 }
 0x992   : > { %19200 = vmatmul.mubr.f32.vlgmr.msra.gmra.mxu0 %v7514_v0  ;;  %19225 = vmatmul.mubr.f32.vlgmr.msra.gmra.mxu1 %v7510_v56 }
 0x993   : > { %19208 = vmatpush3.xpose.msra.mxu0 %v22746_v48  ;;  %19209 = vmatprep.mubr.msk.f32.mxu0 %vm21524_vm3, %v21523_v7 }
 0x994   : > { %19217 = vmatprep.subr.mxu0 %v21523_v7  ;;  %19234 = vmatprep.mubr.msk.f32.mxu1 %vm21524_vm3, %v21523_v7 }
 0x996   : > { %19210 = vmatmul.mubr.f32.vlgmr.msra.gmra.mxu0 %v7511_v60 }
 0x997   : > { %19218 = vmatpush3.xpose.msra.mxu0 %v7553_v52  ;;  %19219 = vmatprep.mubr.msk.f32.mxu0 %vm21524_vm3, %v21523_v7 }
 0x998   : > { %19227 = vmatprep.subr.mxu0 %v21523_v7 }
 0x99a   : > { %19220 = vmatmul.mubr.f32.vlgmr.msra.gmra.mxu0 %v7510_v56 }
 0x99b   : > { %19229 = vmatprep.mubr.msk.f32.mxu0 %vm21524_vm3, %v21523_v7 }
 0x9fd   : > { %v6232_v1 = vpop.f32.mrf.mxu1 }
 0x9ff   : > { %v19116_v2 = vpop.f32.mrf.mxu1 }
 0xa01   : > { %v6380_v3 = vpop.f32.mrf.mxu1 }
 0xa03   : > { %v19126_v5 = vpop.f32.mrf.mxu1 }
 0xa05   : > { %v6156_v16 = vpop.f32.mrf.mxu0  ;;  %v6526_v20 = vpop.f32.mrf.mxu1 }
 0xa06   : > { %v6233_v21 = vadd.f32 %v6232_v1, %v6156_v16 }
 0xa07   : > { %v19111_v22 = vpop.f32.mrf.mxu0  ;;  %v19136_v23 = vpop.f32.mrf.mxu1 }
 0xa09   : > { %v6306_v24 = vpop.f32.mrf.mxu0 }
 0xa0a   : > { %v6307_v26 = vadd.f32 %v6306_v24, %v6233_v21 }
 0xa0b   : > { %v19121_v9 = vpop.f32.mrf.mxu0 }
 0xa0c   : > { %v6381_v28 = vadd.f32 %v6380_v3, %v6307_v26 }
 0xa0d   : > { %v6454_v6 = vpop.f32.mrf.mxu0 }
 0xa0e   : > { %v6455_v12 = vadd.f32 %v6454_v6, %v6381_v28 }
 0xa0f   : > { %v19131_v36 = vpop.f32.mrf.mxu0 }
 0xa10   : > { %v22810_v14 = vadd.f32 %v6526_v20, %v6455_v12 }
 0xa32   : > { %v6684_v10 = vpop.f32.mrf.mxu1 }
 0xa34   : > { %v19146_v29 = vpop.f32.mrf.mxu1 }
 0xa36   : > { %v6832_v15 = vpop.f32.mrf.mxu1 }
 0xa38   : > { %v19156_v11 = vpop.f32.mrf.mxu1 }
 0xa3a   : > { %v6608_v30 = vpop.f32.mrf.mxu0  ;;  %v6978_v31 = vpop.f32.mrf.mxu1 }
 0xa3b   : > { %v6685_v13 = vadd.f32 %v6684_v10, %v6608_v30 }
 0xa3c   : > { %v19141_v17 = vpop.f32.mrf.mxu0  ;;  %v19166_v32 = vpop.f32.mrf.mxu1 }
 0xa3e   : > { %v6758_v18 = vpop.f32.mrf.mxu0  ;;  %v7138_v19 = vpop.f32.mrf.mxu1 }
 0xa3f   : > { %v6759_v33 = vadd.f32 %v6758_v18, %v6685_v13 }
 0xa40   : > { %v19151_v34 = vpop.f32.mrf.mxu0  ;;  %v19176_v35 = vpop.f32.mrf.mxu1 }
 0xa41   : > { %v6833_v37 = vadd.f32 %v6832_v15, %v6759_v33 }
 0xa42   : > { %v6906_v38 = vpop.f32.mrf.mxu0  ;;  %v7286_v39 = vpop.f32.mrf.mxu1 }
 0xa43   : > { %v6907_v40 = vadd.f32 %v6906_v38, %v6833_v37 }
 0xa44   : > { %v19161_v41 = vpop.f32.mrf.mxu0  ;;  %v19186_v42 = vpop.f32.mrf.mxu1 }
 0xa45   : > { %v22812_v43 = vadd.f32 %v6978_v31, %v6907_v40 }
 0xa46   : > { %v7062_v44 = vpop.f32.mrf.mxu0  ;;  %v7432_v45 = vpop.f32.mrf.mxu1 }
 0xa47   : > { %v7139_v48 = vadd.f32 %v7138_v19, %v7062_v44 }
 0xa48   : > { %v19171_v46 = vpop.f32.mrf.mxu0  ;;  %v19196_v47 = vpop.f32.mrf.mxu1 }
 0xa4a   : > { %v7212_v49 = vpop.f32.mrf.mxu0  ;;  %v7592_v50 = vpop.f32.mrf.mxu1 }
 0xa4b   : > { %v7213_v51 = vadd.f32 %v7212_v49, %v7139_v48 }
 0xa4c   : > { %v19181_v52 = vpop.f32.mrf.mxu0  ;;  %v19206_v53 = vpop.f32.mrf.mxu1 }
 0xa4d   : > { %v7287_v54 = vadd.f32 %v7286_v39, %v7213_v51 }
 0xa4e   : > { %v7360_v56 = vpop.f32.mrf.mxu0  ;;  %v7740_v57 = vpop.f32.mrf.mxu1 }
 0xa4f   : > { %v7361_v59 = vadd.f32 %v7360_v56, %v7287_v54 }
 0xa50   : > { %v19191_v60 = vpop.f32.mrf.mxu0  ;;  %v19216_v61 = vpop.f32.mrf.mxu1 }
 0xa51   : > { %v7433_v62 = vadd.f32 %v7432_v45, %v7361_v59 }
 0xa52   : > { %v7516_v63 = vpop.f32.mrf.mxu0  ;;  %v7886_v0 = vpop.f32.mrf.mxu1 }
 0xa53   : > { %v7890_v1 = vmul.f32 0.35355338, %v7433_v62  ;;  %v7593_v5 = vadd.f32 %v7592_v50, %v7516_v63 }
 0xa54   : > { %v19201_v2 = vpop.f32.mrf.mxu0  ;;  %v19226_v3 = vpop.f32.mrf.mxu1 }
 0xa55   : > { %v7892_v16 = vadd.f32 %v7890_v1, %v22529_v8 }
 0xa56   : > { %v7666_v20 = vpop.f32.mrf.mxu0 }
 0xa57   : > { %v7667_v21 = vadd.f32 %v7666_v20, %v7593_v5  ;;  %v7894_v22 = vsel %vm3310_vm4, %v7892_v16, -inf }
 0xa58   : > { %7895 = vmax.xlane.f32.xlu0 %v7894_v22  ;;  %v19211_v23 = vpop.f32.mrf.mxu0 }
 0xa59   : > { %v7741_v24 = vadd.f32 %v7740_v57, %v7667_v21 }
 0xa5a   : > { %v7814_v26 = vpop.f32.mrf.mxu0 }
 0xa5b   : > { %v7815_v9 = vadd.f32 %v7814_v26, %v7741_v24 }
 0xa5c   : > { %v19221_v28 = vpop.f32.mrf.mxu0 }
 0xa5d   : > { %v7887_v6 = vadd.f32 %v7886_v0, %v7815_v9 }
 0xa5f   : > { %v7891_v12 = vmul.f32 0.35355338, %v7887_v6 }
 0xa61   : > { %v7893_v36 = vadd.f32 %v7891_v12, %v22529_v8 }
 0xa63   : > { %v7897_v10 = vsel %vm3310_vm4, %v7893_v36, -inf }
 0xa64   : > { %7898 = vmax.xlane.f32.xlu1 %v7897_v10 }
 0xa75   : > { %7916 = vrot.lane.b32.xlu1 %v22472_v4, %s21533_s26 }
 0xa79   : > { %8822 = vrot.lane.b32.xlu1 %v22472_v4, %s21534_s18 }
 0xa7d   : > { %8820 = vrot.lane.b32.xlu1 %v22472_v4, %s21535_s7 }
 0xa81   : > { %9274 = vrot.lane.b32.xlu1 %v22475_v27, %s21535_s7  ;;  %s24715_s7 = sld [smem:[#allocation72_spill]] (!%p17991_p2) }
 0xae1   : > { %v7896_v29 = vpop.xlane.xlu0 %7895 }
 0xae2   : > { %v7900_v15 = vsub.f32 %v7892_v16, %v7896_v29 }
 0xae4   : > { %v7902_v11 = vmul.f32 1.442695, %v7900_v15 }
 0xae6   : > { %20665 = vpow2.f32 %v7902_v11 }
 0xaed   : > { %v7899_v30 = vpop.xlane.xlu1 %7898 }
 0xaee   : > { %v7901_v31 = vsub.f32 %v7893_v36, %v7899_v30 }
 0xaf0   : > { %v7904_v13 = vmul.f32 1.442695, %v7901_v31 }
 0xaf1   : > { %v7917_v17 = vpop.permute.xlu1 %7916 }
 0xaf2   : > { %20667 = vpow2.f32 %v7904_v13  ;;  %v7953_v32 = vand.u32 4294901760, %v7917_v17 }
 0xaf3   : > { %v20666_v18 = vpop.eup %20665 }
 0xaf4   : > { %v22824_v19 = vsub.f32 %v7917_v17, %v7953_v32  ;;  %19228 = vmatpush3.msra.mxu0 %v7953_v32  ;;  %v7906_v33 = vsel %vm3310_vm4, %v20666_v18, 0.0 }
 0xaf5   : > { %7907 = vadd.xlane.f32.xlu0 %v7906_v33  ;;  %19237 = vmatprep.subr.mxu0 %v21523_v7  ;;  %v8823_v46 = vpop.permute.xlu1 %8822 }
 0xaf6   : > { %v8031_v34 = vand.u32 4294901760, %v22824_v19  ;;  %v8826_v51 = vsel %vm3310_vm4, %v8823_v46, 0 }
 0xaf7   : > { %v22844_v56 = vand.u32 4294901760, %v8826_v51 }
 0xaf8   : > { %v8032_v35 = vsub.f32 %v22824_v19, %v8031_v34 }
 0xaf9   : > { %v22853_v63 = vsub.f32 %v8826_v51, %v22844_v56  ;;  %v8821_v1 = vpop.permute.xlu1 %8820 }
 0xafa   : > { %v8033_v37 = vand.u32 4294901760, %v8032_v35  ;;  %v8824_v20 = vsel %vm3310_vm4, %v8821_v1, 0 }
 0xafb   : > { %v8937_v16 = vand.u32 4294901760, %v22853_v63  ;;  %v22866_v23 = vand.u32 4294901760, %v8824_v20 }
 0xafc   : > { %19233 = vmatpush3.msra.mxu1 %v8033_v37 }
 0xafd   : > { %19242 = vmatprep.subr.mxu1 %v21523_v7  ;;  %v8938_v26 = vsub.f32 %v22853_v63, %v8937_v16  ;;  %v8895_v6 = vsub.f32 %v8824_v20, %v22866_v23  ;;  %v9275_v29 = vpop.permute.xlu1 %9274 }
 0xafe   : > { %v9278_v11 = vsel %vm3310_vm4, %v9275_v29, 0 }
 0xaff   : > { %v20668_v38 = vpop.eup %20667  ;;  %v8939_v36 = vand.u32 4294901760, %v8938_v26  ;;  %v8896_v15 = vand.u32 4294901760, %v8895_v6  ;;  %v9348_v13 = vand.u32 4294901760, %v9278_v11 }
 0xb00   : > { %v7909_v39 = vsel %vm3310_vm4, %v20668_v38, 0.0 }
 0xb01   : > { %7910 = vadd.xlane.f32.xlu0 %v7909_v39  ;;  %v8897_v31 = vsub.f32 %v8895_v6, %v8896_v15 }
 0xb17   : > { %8368 = vrot.lane.b32.xlu0 %v22475_v27, %s21533_s26  ;;  %s24713_s26 = sld [smem:[#allocation84_spill]] (!%p17991_p2) }
 0xb1b   : > { %9276 = vrot.lane.b32.xlu0 %v22475_v27, %s21534_s18 }
 0xb1d   : > { %s23392_s18 = sld [smem:[#allocation4 + %s24713_s26]] (!%p17991_p2) }
 0xb7e   : > { %v7908_v40 = vpop.xlane.xlu0 %7907 }
 0xb7f   : > { %20669 = vrcp.f32 %v7908_v40 }
 0xb8a   : > { %v7911_v41 = vpop.xlane.xlu0 %7910 }
 0xb8b   : > { %20671 = vrcp.f32 %v7911_v41 }
 0xb8c   : > { %v20670_v42 = vpop.eup %20669 }
 0xb8d   : > { %v7913_v44 = vmul.f32 %v20670_v42, %v20666_v18  ;;  %v9349_v18 = vsub.f32 %v9278_v11, %v9348_v13 }
 0xb8e   : > { %v8369_v45 = vpop.permute.xlu0 %8368 }
 0xb8f   : > { %v8405_v47 = vand.u32 4294901760, %v8369_v45  ;;  %v7920_v48 = vsel %vm3310_vm4, %v7913_v44, 0  ;;  %v9350_v33 = vand.u32 4294901760, %v9349_v18 }
 0xb90   : > { %v7988_v49 = vand.u32 4294901760, %v7920_v48 }
 0xb91   : > { %v22837_v50 = vsub.f32 %v8369_v45, %v8405_v47 }
 0xb92   : > { %v7989_v52 = vsub.f32 %v7920_v48, %v7988_v49  ;;  %19235 = vmatmul.mubr.f32.vlgmr.msra.gmra.mxu1 %v7988_v49  ;;  %v9277_v2 = vpop.permute.xlu0 %9276 }
 0xb93   : > { %v8483_v53 = vand.u32 4294901760, %v22837_v50  ;;  %19243 = vmatpush3.msra.mxu1 %v7953_v32  ;;  %19244 = vmatprep.mubr.msk.f32.mxu1 %vm21524_vm3, %v21523_v7  ;;  %v9280_v21 = vsel %vm3310_vm4, %v9277_v2, 0 }
 0xb94   : > { %19252 = vmatprep.subr.mxu1 %v21523_v7  ;;  %v7990_v54 = vand.u32 4294901760, %v7989_v52  ;;  %v22874_v9 = vand.u32 4294901760, %v9280_v21 }
 0xb95   : > { %v8484_v57 = vsub.f32 %v22837_v50, %v8483_v53 }
 0xb96   : > { %19245 = vmatmul.mubr.f32.vlgmr.msra.gmra.mxu1 %v7990_v54  ;;  %v7991_v59 = vsub.f32 %v7989_v52, %v7990_v54  ;;  %v22884_v10 = vsub.f32 %v9280_v21, %v22874_v9 }
 0xb97   : > { %v8485_v60 = vand.u32 4294901760, %v8484_v57  ;;  %19253 = vmatpush3.msra.mxu1 %v7953_v32  ;;  %19254 = vmatprep.mubr.msk.f32.mxu1 %vm21524_vm3, %v21523_v7  ;;  %v8898_v32 = vand.u32 4294901760, %v8897_v31 }
 0xb98   : > { %v20672_v61 = vpop.eup %20671  ;;  %19262 = vmatprep.subr.mxu1 %v21523_v7  ;;  %v7992_v62 = vand.u32 4294901760, %v7991_v59  ;;  %v9391_v30 = vand.u32 4294901760, %v22884_v10 }
 0xb99   : > { %v7915_v0 = vmul.f32 %v20672_v61, %v20668_v38 }
 0xb9a   : > { %19230 = vmatmul.mubr.f32.vlgmr.msra.gmra.mxu0 %v7992_v62  ;;  %19255 = vmatmul.mubr.f32.vlgmr.msra.gmra.mxu1 %v7988_v49  ;;  %v9392_v17 = vsub.f32 %v22884_v10, %v9391_v30 }
 0xb9b   : > { %19238 = vmatpush3.msra.mxu0 %v22824_v19  ;;  %19263 = vmatpush3.msra.mxu1 %v8485_v60  ;;  %v8372_v3 = vsel %vm3310_vm4, %v7915_v0, 0 }
 0xb9c   : > { %19239 = vmatprep.mubr.msk.f32.mxu0 %vm21524_vm3, %v21523_v7  ;;  %19247 = vmatprep.subr.mxu0 %v21523_v7  ;;  %v8440_v5 = vand.u32 4294901760, %v8372_v3  ;;  %v9393_v19 = vand.u32 4294901760, %v9392_v17 }
 0xb9d   : > { %19264 = vmatprep.mubr.msk.f32.mxu1 %vm21524_vm3, %v21523_v7  ;;  %19272 = vmatprep.subr.mxu1 %v21523_v7 }
 0xb9e   : > { %19240 = vmatmul.mubr.f32.vlgmr.msra.gmra.mxu0 %v7989_v52  ;;  %v8441_v22 = vsub.f32 %v8372_v3, %v8440_v5  ;;  %19265 = vmatmul.mubr.f32.vlgmr.msra.gmra.mxu1 %v8440_v5 }
 0xb9f   : > { %19248 = vmatpush3.msra.mxu0 %v8031_v34  ;;  %19273 = vmatpush3.msra.mxu1 %v8405_v47  ;;  %v9351_v34 = vsub.f32 %v9349_v18, %v9350_v33 }
 0xba0   : > { %19249 = vmatprep.mubr.msk.f32.mxu0 %vm21524_vm3, %v21523_v7  ;;  %19257 = vmatprep.subr.mxu0 %v21523_v7  ;;  %v8442_v24 = vand.u32 4294901760, %v8441_v22 }
 0xba1   : > { %19274 = vmatprep.mubr.msk.f32.mxu1 %vm21524_vm3, %v21523_v7  ;;  %19282 = vmatprep.subr.mxu1 %v21523_v7  ;;  %v9352_v35 = vand.u32 4294901760, %v9351_v34 }
 0xba2   : > { %19250 = vmatmul.mubr.f32.vlgmr.msra.gmra.mxu0 %v7988_v49  ;;  %19275 = vmatmul.mubr.f32.vlgmr.msra.gmra.mxu1 %v8442_v24  ;;  %v8443_v28 = vsub.f32 %v8441_v22, %v8442_v24 }
 0xba3   : > { %19258 = vmatpush3.msra.mxu0 %v8405_v47  ;;  %19283 = vmatpush3.msra.mxu1 %v8405_v47 }
 0xba4   : > { %19259 = vmatprep.mubr.msk.f32.mxu0 %vm21524_vm3, %v21523_v7  ;;  %19267 = vmatprep.subr.mxu0 %v21523_v7  ;;  %v8444_v12 = vand.u32 4294901760, %v8443_v28 }
 0xba5   : > { %19284 = vmatprep.mubr.msk.f32.mxu1 %vm21524_vm3, %v21523_v7  ;;  %19292 = vmatprep.subr.mxu1 %v21523_v7 }
 0xba6   : > { %19260 = vmatmul.mubr.f32.vlgmr.msra.gmra.mxu0 %v8444_v12  ;;  %19285 = vmatmul.mubr.f32.vlgmr.msra.gmra.mxu1 %v8440_v5 }
 0xba7   : > { %19268 = vmatpush3.msra.mxu0 %v22837_v50  ;;  %19293 = vmatpush3.xpose.msra.mxu1 %v8939_v36 }
 0xba8   : > { %19269 = vmatprep.mubr.msk.f32.mxu0 %vm21524_vm3, %v21523_v7  ;;  %19277 = vmatprep.subr.mxu0 %v21523_v7 }
 0xba9   : > { %19294 = vmatprep.mubr.msk.f32.mxu1 %vm21524_vm3, %v21523_v7  ;;  %19302 = vmatprep.subr.mxu1 %v21523_v7 }
 0xbaa   : > { %19270 = vmatmul.mubr.f32.vlgmr.msra.gmra.mxu0 %v8441_v22  ;;  %19295 = vmatmul.mubr.f32.vlgmr.msra.gmra.mxu1 %v22866_v23 }
 0xbab   : > { %19278 = vmatpush3.msra.mxu0 %v8483_v53  ;;  %19303 = vmatpush3.xpose.msra.mxu1 %v22844_v56 }
 0xbac   : > { %19279 = vmatprep.mubr.msk.f32.mxu0 %vm21524_vm3, %v21523_v7  ;;  %19287 = vmatprep.subr.mxu0 %v21523_v7 }
 0xbad   : > { %19304 = vmatprep.mubr.msk.f32.mxu1 %vm21524_vm3, %v21523_v7  ;;  %19312 = vmatprep.subr.mxu1 %v21523_v7 }
 0xbae   : > { %19280 = vmatmul.mubr.f32.vlgmr.msra.gmra.mxu0 %v8440_v5  ;;  %19305 = vmatmul.mubr.f32.vlgmr.msra.gmra.mxu1 %v8896_v15 }
 0xbaf   : > { %19288 = vmatpush3.xpose.msra.mxu0 %v22844_v56  ;;  %19313 = vmatpush3.xpose.msra.mxu1 %v22844_v56 }
 0xbb0   : > { %19289 = vmatprep.mubr.msk.f32.mxu0 %vm21524_vm3, %v21523_v7  ;;  %19297 = vmatprep.subr.mxu0 %v21523_v7 }
 0xbb1   : > { %19314 = vmatprep.mubr.msk.f32.mxu1 %vm21524_vm3, %v21523_v7  ;;  %19322 = vmatprep.subr.mxu1 %v21523_v7 }
 0xbb2   : > { %19290 = vmatmul.mubr.f32.vlgmr.msra.gmra.mxu0 %v8898_v32  ;;  %19315 = vmatmul.mubr.f32.vlgmr.msra.gmra.mxu1 %v22866_v23 }
 0xbb3   : > { %19298 = vmatpush3.xpose.msra.mxu0 %v22853_v63  ;;  %19323 = vmatpush3.xpose.msra.mxu1 %v9393_v19 }
 0xbb4   : > { %19299 = vmatprep.mubr.msk.f32.mxu0 %vm21524_vm3, %v21523_v7  ;;  %19307 = vmatprep.subr.mxu0 %v21523_v7 }
 0xbb5   : > { %19324 = vmatprep.mubr.msk.f32.mxu1 %vm21524_vm3, %v21523_v7  ;;  %19332 = vmatprep.subr.mxu1 %v21523_v7 }
 0xbb6   : > { %19300 = vmatmul.mubr.f32.vlgmr.msra.gmra.mxu0 %v8895_v6  ;;  %19325 = vmatmul.mubr.f32.vlgmr.msra.gmra.mxu1 %v9348_v13 }
 0xbb7   : > { %19308 = vmatpush3.xpose.msra.mxu0 %v8937_v16  ;;  %19333 = vmatpush3.xpose.msra.mxu1 %v22874_v9 }
 0xbb8   : > { %19309 = vmatprep.mubr.msk.f32.mxu0 %vm21524_vm3, %v21523_v7  ;;  %19317 = vmatprep.subr.mxu0 %v21523_v7 }
 0xbb9   : > { %19334 = vmatprep.mubr.msk.f32.mxu1 %vm21524_vm3, %v21523_v7  ;;  %19342 = vmatprep.subr.mxu1 %v21523_v7 }
 0xbba   : > { %19310 = vmatmul.mubr.f32.vlgmr.msra.gmra.mxu0 %v22866_v23  ;;  %19335 = vmatmul.mubr.f32.vlgmr.msra.gmra.mxu1 %v9350_v33 }
 0xbbb   : > { %19318 = vmatpush3.xpose.msra.mxu0 %v22874_v9  ;;  %19343 = vmatpush3.xpose.msra.mxu1 %v22874_v9 }
 0xbbc   : > { %19319 = vmatprep.mubr.msk.f32.mxu0 %vm21524_vm3, %v21523_v7  ;;  %19327 = vmatprep.subr.mxu0 %v21523_v7 }
 0xbbd   : > { %19344 = vmatprep.mubr.msk.f32.mxu1 %vm21524_vm3, %v21523_v7  ;;  %19352 = vmatprep.subr.mxu1 %v21523_v7 }
 0xbbe   : > { %19320 = vmatmul.mubr.f32.vlgmr.msra.gmra.mxu0 %v9352_v35  ;;  %19345 = vmatmul.mubr.f32.vlgmr.msra.gmra.mxu1 %v9348_v13 }
 0xbbf   : > { %19328 = vmatpush3.xpose.msra.mxu0 %v22884_v10  ;;  %19329 = vmatprep.mubr.msk.f32.mxu0 %vm21524_vm3, %v21523_v7 }
 0xbc0   : > { %19337 = vmatprep.subr.mxu0 %v21523_v7  ;;  %19354 = vmatprep.mubr.msk.f32.mxu1 %vm21524_vm3, %v21523_v7 }
 0xbc2   : > { %19330 = vmatmul.mubr.f32.vlgmr.msra.gmra.mxu0 %v9349_v18 }
 0xbc3   : > { %19338 = vmatpush3.xpose.msra.mxu0 %v9391_v30  ;;  %19339 = vmatprep.mubr.msk.f32.mxu0 %vm21524_vm3, %v21523_v7 }
 0xbc4   : > { %19347 = vmatprep.subr.mxu0 %v21523_v7 }
 0xbc6   : > { %19340 = vmatmul.mubr.f32.vlgmr.msra.gmra.mxu0 %v9348_v13 }
 0xbc7   : > { %19349 = vmatprep.mubr.msk.f32.mxu0 %vm21524_vm3, %v21523_v7 }
 0xc52   : > { %v8070_v37 = vpop.f32.mrf.mxu1 }
 0xc54   : > { %v19236_v38 = vpop.f32.mrf.mxu1 }
 0xc56   : > { %v8218_v39 = vpop.f32.mrf.mxu1 }
 0xc58   : > { %v19246_v40 = vpop.f32.mrf.mxu1 }
 0xc5a   : > { %v7994_v41 = vpop.f32.mrf.mxu0  ;;  %v8364_v42 = vpop.f32.mrf.mxu1 }
 0xc5b   : > { %v8071_v44 = vadd.f32 %v8070_v37, %v7994_v41 }
 0xc5c   : > { %v19231_v45 = vpop.f32.mrf.mxu0  ;;  %v19256_v46 = vpop.f32.mrf.mxu1 }
 0xc5e   : > { %v8144_v47 = vpop.f32.mrf.mxu0  ;;  %v8522_v48 = vpop.f32.mrf.mxu1 }
 0xc5f   : > { %v8145_v49 = vadd.f32 %v8144_v47, %v8071_v44 }
 0xc60   : > { %v19241_v50 = vpop.f32.mrf.mxu0  ;;  %v19266_v51 = vpop.f32.mrf.mxu1 }
 0xc61   : > { %v8219_v52 = vadd.f32 %v8218_v39, %v8145_v49 }
 0xc62   : > { %v8292_v53 = vpop.f32.mrf.mxu0  ;;  %v8670_v54 = vpop.f32.mrf.mxu1 }
 0xc63   : > { %v8293_v56 = vadd.f32 %v8292_v53, %v8219_v52 }
 0xc64   : > { %v19251_v57 = vpop.f32.mrf.mxu0  ;;  %v19276_v59 = vpop.f32.mrf.mxu1 }
 0xc65   : > { %v22954_v60 = vadd.f32 %v8364_v42, %v8293_v56 }
 0xc66   : > { %v8446_v61 = vpop.f32.mrf.mxu0  ;;  %v8816_v62 = vpop.f32.mrf.mxu1 }
 0xc67   : > { %v8523_v1 = vadd.f32 %v8522_v48, %v8446_v61 }
 0xc68   : > { %v19261_v63 = vpop.f32.mrf.mxu0  ;;  %v19286_v0 = vpop.f32.mrf.mxu1 }
 0xc6a   : > { %v8596_v2 = vpop.f32.mrf.mxu0  ;;  %v8976_v3 = vpop.f32.mrf.mxu1 }
 0xc6b   : > { %v8597_v5 = vadd.f32 %v8596_v2, %v8523_v1 }
 0xc6c   : > { %v19271_v16 = vpop.f32.mrf.mxu0  ;;  %v19296_v20 = vpop.f32.mrf.mxu1 }
 0xc6d   : > { %v8671_v21 = vadd.f32 %v8670_v54, %v8597_v5 }
 0xc6e   : > { %v8744_v22 = vpop.f32.mrf.mxu0  ;;  %v9124_v23 = vpop.f32.mrf.mxu1 }
 0xc6f   : > { %v8745_v24 = vadd.f32 %v8744_v22, %v8671_v21 }
 0xc70   : > { %v19281_v26 = vpop.f32.mrf.mxu0  ;;  %v19306_v9 = vpop.f32.mrf.mxu1 }
 0xc71   : > { %v8817_v28 = vadd.f32 %v8816_v62, %v8745_v24 }
 0xc72   : > { %v8900_v6 = vpop.f32.mrf.mxu0  ;;  %v9270_v12 = vpop.f32.mrf.mxu1 }
 0xc73   : > { %v8977_v29 = vadd.f32 %v8976_v3, %v8900_v6 }
 0xc74   : > { %v19291_v36 = vpop.f32.mrf.mxu0  ;;  %v19316_v10 = vpop.f32.mrf.mxu1 }
 0xc76   : > { %v9050_v15 = vpop.f32.mrf.mxu0  ;;  %v9430_v11 = vpop.f32.mrf.mxu1 }
 0xc77   : > { %v9051_v30 = vadd.f32 %v9050_v15, %v8977_v29 }
 0xc78   : > { %v19301_v31 = vpop.f32.mrf.mxu0  ;;  %v19326_v13 = vpop.f32.mrf.mxu1 }
 0xc79   : > { %v9125_v17 = vadd.f32 %v9124_v23, %v9051_v30 }
 0xc7a   : > { %v9198_v32 = vpop.f32.mrf.mxu0  ;;  %v9578_v18 = vpop.f32.mrf.mxu1 }
 0xc7b   : > { %v9199_v19 = vadd.f32 %v9198_v32, %v9125_v17 }
 0xc7c   : > { %v19311_v33 = vpop.f32.mrf.mxu0  ;;  %v19336_v34 = vpop.f32.mrf.mxu1 }
 0xc7d   : > { %v9271_v35 = vadd.f32 %v9270_v12, %v9199_v19 }
 0xc7e   : > { %v9354_v37 = vpop.f32.mrf.mxu0  ;;  %v9724_v38 = vpop.f32.mrf.mxu1 }
 0xc7f   : > { %v9728_v39 = vmul.f32 0.35355338, %v9271_v35  ;;  %v9431_v42 = vadd.f32 %v9430_v11, %v9354_v37 }
 0xc80   : > { %v19321_v40 = vpop.f32.mrf.mxu0  ;;  %v19346_v41 = vpop.f32.mrf.mxu1 }
 0xc81   : > { %v9730_v44 = vadd.f32 %v9728_v39, %v22529_v8  ;;  %v10693_v39 = vld [vmem:[%s22182_s0 + $0x18] sm:$0xff] }
 0xc82   : > { %v9504_v45 = vpop.f32.mrf.mxu0  ;;  %v23002_v41 = vand.u32 4294901760, %v10693_v39 }
 0xc83   : > { %v9505_v46 = vadd.f32 %v9504_v45, %v9431_v42  ;;  %v9732_v47 = vsel %vm3310_vm4, %v9730_v44, -inf  ;;  %v10692_v42 = vld [vmem:[%s22182_s0 + $0x10] sm:$0xff] }
 0xc84   : > { %9733 = vmax.xlane.f32.xlu0 %v9732_v47  ;;  %v19331_v48 = vpop.f32.mrf.mxu0  ;;  %v23008_v47 = vand.u32 4294901760, %v10692_v42 }
 0xc85   : > { %v9579_v49 = vadd.f32 %v9578_v18, %v9505_v46  ;;  %v23006_v46 = vsub.f32 %v10693_v39, %v23002_v41 }
 0xc86   : > { %v9652_v50 = vpop.f32.mrf.mxu0 }
 0xc87   : > { %v9653_v51 = vadd.f32 %v9652_v50, %v9579_v49  ;;  %v23014_v50 = vand.u32 4294901760, %v23006_v46 }
 0xc88   : > { %v19341_v52 = vpop.f32.mrf.mxu0 }
 0xc89   : > { %v9725_v53 = vadd.f32 %v9724_v38, %v9653_v51  ;;  %v23017_v51 = vsub.f32 %v10692_v42, %v23008_v47 }
 0xc8b   : > { %v9729_v54 = vmul.f32 0.35355338, %v9725_v53 }
 0xc8d   : > { %v9731_v56 = vadd.f32 %v9729_v54, %v22529_v8  ;;  %v10690_v54 = vld [vmem:[%s22182_s0] sm:$0xff] }
 0xc8f   : > { %v9735_v57 = vsel %vm3310_vm4, %v9731_v56, -inf }
 0xc90   : > { %9736 = vmax.xlane.f32.xlu1 %v9735_v57 }
 0xca1   : > { %9754 = vrot.lane.b32.xlu1 %v22472_v4, %s21536_s9 }
 0xca5   : > { %10660 = vrot.lane.b32.xlu1 %v22810_v14, %s21537_s20 }
 0xca9   : > { %10662 = vrot.lane.b32.xlu1 %v22812_v43, %s21537_s20 }
 0xcad   : > { %10670 = vrot.lane.b32.xlu1 %v8817_v28, %s21538_s22 }
 0xd0d   : > { %v9734_v59 = vpop.xlane.xlu0 %9733 }
 0xd0e   : > { %v9738_v61 = vsub.f32 %v9730_v44, %v9734_v59  ;;  %v10824_v59 = vsub.f32 %v23006_v46, %v23014_v50 }
 0xd10   : > { %v9740_v62 = vmul.f32 1.442695, %v9738_v61  ;;  %v23027_v61 = vand.u32 4294901760, %v23017_v51 }
 0xd12   : > { %20673 = vpow2.f32 %v9740_v62 }
 0xd19   : > { %v9737_v63 = vpop.xlane.xlu1 %9736 }
 0xd1a   : > { %v9739_v8 = vsub.f32 %v9731_v56, %v9737_v63  ;;  %v23032_v63 = vand.u32 4294901760, %v10690_v54 }
 0xd1c   : > { %v9742_v0 = vmul.f32 1.442695, %v9739_v8 }
 0xd1d   : > { %v9755_v1 = vpop.permute.xlu1 %9754 }
 0xd1e   : > { %20675 = vpow2.f32 %v9742_v0  ;;  %v9791_v2 = vand.u32 4294901760, %v9755_v1 }
 0xd1f   : > { %v20674_v3 = vpop.eup %20673 }
 0xd20   : > { %v9868_v5 = vsub.f32 %v9755_v1, %v9791_v2  ;;  %19348 = vmatpush3.msra.mxu0 %v9791_v2  ;;  %v9744_v4 = vsel %vm3310_vm4, %v20674_v3, 0.0 }
 0xd21   : > { %9745 = vadd.xlane.f32.xlu0 %v9744_v4  ;;  %19357 = vmatprep.subr.mxu0 %v21523_v7  ;;  %v23042_v4 = vsub.f32 %v10690_v54, %v23032_v63 }
 0xd22   : > { %v9869_v14 = vand.u32 4294901760, %v9868_v5 }
 0xd24   : > { %v9870_v43 = vsub.f32 %v9868_v5, %v9869_v14 }
 0xd26   : > { %v9871_v16 = vand.u32 4294901760, %v9870_v43 }
 0xd28   : > { %19353 = vmatpush3.msra.mxu1 %v9871_v16 }
 0xd29   : > { %19362 = vmatprep.subr.mxu1 %v21523_v7 }
 0xd2b   : > { %v20676_v20 = vpop.eup %20675 }
 0xd2c   : > { %v9747_v21 = vsel %vm3310_vm4, %v20676_v20, 0.0 }
 0xd2d   : > { %9748 = vadd.xlane.f32.xlu0 %v9747_v21 }
 0xd43   : > { %10206 = vrot.lane.b32.xlu0 %v22475_v27, %s21536_s9  ;;  %s24717_s9 = sld [smem:[#allocation77_spill]] (!%p17991_p2) }
 0xd47   : > { %10668 = vrot.lane.b32.xlu0 %v22954_v60, %s21538_s22  ;;  %s24716_s22 = smov (!%p17991_p2), %s24715_s7 }
 0xdaa   : > { %v9746_v22 = vpop.xlane.xlu0 %9745 }
 0xdab   : > { %20677 = vrcp.f32 %v9746_v22  ;;  %v23049_v22 = vand.u32 4294901760, %v23042_v4 }
 0xdb6   : > { %v9749_v23 = vpop.xlane.xlu0 %9748 }
 0xdb7   : > { %20679 = vrcp.f32 %v9749_v23 }
 0xdb8   : > { %v20678_v24 = vpop.eup %20677 }
 0xdb9   : > { %v9751_v26 = vmul.f32 %v20678_v24, %v20674_v3  ;;  %v10831_v3 = vsub.f32 %v23017_v51, %v23027_v61 }
 0xdba   : > { %v10207_v9 = vpop.permute.xlu0 %10206 }
 0xdbb   : > { %v10243_v28 = vand.u32 4294901760, %v10207_v9  ;;  %v9758_v6 = vsel %vm3310_vm4, %v9751_v26, 0 }
 0xdbc   : > { %v9826_v12 = vand.u32 4294901760, %v9758_v6 }
 0xdbd   : > { %v10320_v36 = vsub.f32 %v10207_v9, %v10243_v28 }
 0xdbe   : > { %v9827_v10 = vsub.f32 %v9758_v6, %v9826_v12  ;;  %19355 = vmatmul.mubr.f32.vlgmr.msra.gmra.mxu1 %v9826_v12 }
 0xdbf   : > { %v10321_v29 = vand.u32 4294901760, %v10320_v36  ;;  %19363 = vmatpush3.msra.mxu1 %v9791_v2  ;;  %19364 = vmatprep.mubr.msk.f32.mxu1 %vm21524_vm3, %v21523_v7 }
 0xdc0   : > { %19372 = vmatprep.subr.mxu1 %v21523_v7  ;;  %v9828_v27 = vand.u32 4294901760, %v9827_v10 }
 0xdc1   : > { %v10322_v60 = vsub.f32 %v10320_v36, %v10321_v29 }
 0xdc2   : > { %19365 = vmatmul.mubr.f32.vlgmr.msra.gmra.mxu1 %v9828_v27  ;;  %v9829_v15 = vsub.f32 %v9827_v10, %v9828_v27 }
 0xdc3   : > { %v10323_v11 = vand.u32 4294901760, %v10322_v60  ;;  %19373 = vmatpush3.msra.mxu1 %v9791_v2  ;;  %19374 = vmatprep.mubr.msk.f32.mxu1 %vm21524_vm3, %v21523_v7  ;;  %v10825_v2 = vand.u32 4294901760, %v10824_v59 }
 0xdc4   : > { %v20680_v30 = vpop.eup %20679  ;;  %19382 = vmatprep.subr.mxu1 %v21523_v7  ;;  %v9830_v31 = vand.u32 4294901760, %v9829_v15 }
 0xdc5   : > { %v9753_v13 = vmul.f32 %v20680_v30, %v20676_v20  ;;  %v10832_v20 = vand.u32 4294901760, %v10831_v3 }
 0xdc6   : > { %19350 = vmatmul.mubr.f32.vlgmr.msra.gmra.mxu0 %v9830_v31  ;;  %19375 = vmatmul.mubr.f32.vlgmr.msra.gmra.mxu1 %v9826_v12 }
 0xdc7   : > { %19358 = vmatpush3.msra.mxu0 %v9868_v5  ;;  %19383 = vmatpush3.msra.mxu1 %v10323_v11  ;;  %v10210_v17 = vsel %vm3310_vm4, %v9753_v13, 0 }
 0xdc8   : > { %19359 = vmatprep.mubr.msk.f32.mxu0 %vm21524_vm3, %v21523_v7  ;;  %19367 = vmatprep.subr.mxu0 %v21523_v7  ;;  %v10278_v32 = vand.u32 4294901760, %v10210_v17 }
 0xdc9   : > { %19384 = vmatprep.mubr.msk.f32.mxu1 %vm21524_vm3, %v21523_v7  ;;  %19392 = vmatprep.subr.mxu1 %v21523_v7 }
 0xdca   : > { %19360 = vmatmul.mubr.f32.vlgmr.msra.gmra.mxu0 %v9827_v10  ;;  %v10279_v18 = vsub.f32 %v10210_v17, %v10278_v32  ;;  %19385 = vmatmul.mubr.f32.vlgmr.msra.gmra.mxu1 %v10278_v32 }
 0xdcb   : > { %19368 = vmatpush3.msra.mxu0 %v9869_v14  ;;  %19393 = vmatpush3.msra.mxu1 %v10243_v28 }
 0xdcc   : > { %19369 = vmatprep.mubr.msk.f32.mxu0 %vm21524_vm3, %v21523_v7  ;;  %19377 = vmatprep.subr.mxu0 %v21523_v7  ;;  %v10280_v19 = vand.u32 4294901760, %v10279_v18 }
 0xdcd   : > { %19394 = vmatprep.mubr.msk.f32.mxu1 %vm21524_vm3, %v21523_v7  ;;  %19402 = vmatprep.subr.mxu1 %v21523_v7 }
 0xdce   : > { %19370 = vmatmul.mubr.f32.vlgmr.msra.gmra.mxu0 %v9826_v12  ;;  %19395 = vmatmul.mubr.f32.vlgmr.msra.gmra.mxu1 %v10280_v19  ;;  %v10281_v33 = vsub.f32 %v10279_v18, %v10280_v19  ;;  %v10661_v19 = vpop.permute.xlu1 %10660 }
 0xdcf   : > { %19378 = vmatpush3.msra.mxu0 %v10243_v28  ;;  %19403 = vmatpush3.msra.mxu1 %v10243_v28  ;;  %v10845_v28 = vsub.f32 %v23042_v4, %v23049_v22 }
 0xdd0   : > { %19379 = vmatprep.mubr.msk.f32.mxu0 %vm21524_vm3, %v21523_v7  ;;  %19387 = vmatprep.subr.mxu0 %v21523_v7  ;;  %v10282_v34 = vand.u32 4294901760, %v10281_v33  ;;  %v10669_v33 = vpop.permute.xlu0 %10668 }
 0xdd1   : > { %19404 = vmatprep.mubr.msk.f32.mxu1 %vm21524_vm3, %v21523_v7  ;;  %19418 = vmatprep.subr.mxu1 %v10825_v2  ;;  %v10846_v10 = vand.u32 4294901760, %v10845_v28 }
 0xdd2   : > { %19380 = vmatmul.mubr.f32.vlgmr.msra.gmra.mxu0 %v10282_v34  ;;  %19405 = vmatmul.mubr.f32.vlgmr.msra.gmra.mxu1 %v10278_v32  ;;  %v10682_v34 = vsel %vm3310_vm4, %v22671_v58, %v10661_v19  ;;  %v10663_v39 = vpop.permute.xlu1 %10662 }
 0xdd3   : > { %19388 = vmatpush3.msra.mxu0 %v10320_v36  ;;  %19389 = vmatprep.mubr.msk.f32.mxu0 %vm21524_vm3, %v21523_v7 }
 0xdd4   : > { %19397 = vmatprep.subr.mxu0 %v21523_v7  ;;  %19419 = vmatpush3.msra.mxu1 %v10825_v2 }
 0xdd5   : > { %19420 = vmatprep.subr.mxu1 %v10832_v20 }
 0xdd6   : > { %19390 = vmatmul.mubr.f32.vlgmr.msra.gmra.mxu0 %v10279_v18  ;;  %19421 = vmatpush3.msra.mxu1 %v10832_v20 }
 0xdd7   : > { %19398 = vmatpush3.msra.mxu0 %v10321_v29  ;;  %19399 = vmatprep.mubr.msk.f32.mxu0 %vm21524_vm3, %v21523_v7  ;;  %v10691_v7 = vld [vmem:[%s22182_s0 + $0x8] sm:$0xff]  ;;  %s21539_s0 = smov 24  }
 0xdd8   : > { %19407 = vmatprep.subr.mxu0 %v23002_v41  ;;  %v23019_v52 = vand.u32 4294901760, %v10691_v7 }
 0xdda   : > { %19400 = vmatmul.mubr.f32.vlgmr.msra.gmra.mxu0 %v10278_v32  ;;  %v23030_v62 = vsub.f32 %v10691_v7, %v23019_v52  ;;  %v10671_v7 = vpop.permute.xlu1 %10670 }
 0xddb   : > { %19408 = vmatpush3.msra.mxu0 %v23002_v41 }
 0xddc   : > { %19409 = vmatprep.subr.mxu0 %v23008_v47  ;;  %v23039_v5 = vand.u32 4294901760, %v23030_v62 }
 0xddd   : > { %19410 = vmatpush3.msra.mxu0 %v23008_v47 }
 0xdde   : > { %19411 = vmatprep.subr.mxu0 %v23019_v52  ;;  %v10838_v21 = vsub.f32 %v23030_v62, %v23039_v5 }
 0xddf   : > { %19412 = vmatpush3.msra.mxu0 %v23019_v52 }
 0xde0   : > { %19413 = vmatprep.subr.mxu0 %v23032_v63  ;;  %v10839_v9 = vand.u32 4294901760, %v10838_v21 }
 0xde1   : > { %19414 = vmatpush3.msra.mxu0 %v23032_v63 }
 0xde2   : > { %19429 = vmatprep.subr.mxu0 %v23006_v46  ;;  %19422 = vmatprep.subr.mxu1 %v10839_v9 }
 0xde3   : > { %19423 = vmatpush3.msra.mxu1 %v10839_v9 }
 0xde4   : > { %19424 = vmatprep.subr.mxu1 %v10846_v10 }
 0xde5   : > { %19425 = vmatpush3.msra.mxu1 %v10846_v10 }
 0xde6   : > { %19440 = vmatprep.subr.mxu1 %v23002_v41 }
 0xe7e   : > { %v9908_v35 = vpop.f32.mrf.mxu1 }
 0xe80   : > { %v19356_v37 = vpop.f32.mrf.mxu1 }
 0xe82   : > { %v10056_v38 = vpop.f32.mrf.mxu1 }
 0xe84   : > { %v19366_v40 = vpop.f32.mrf.mxu1 }
 0xe86   : > { %v9832_v44 = vpop.f32.mrf.mxu0  ;;  %v10202_v45 = vpop.f32.mrf.mxu1 }
 0xe87   : > { %v9909_v53 = vadd.f32 %v9908_v35, %v9832_v44  ;;  %v10685_v35 = vsel %vm10684_vm7, %v10682_v34, %v10669_v33  ;;  %v11285_v34 = vld [vmem:[%s22185_s11 + $0x18] sm:$0xff] }
 0xe88   : > { %v19351_v48 = vpop.f32.mrf.mxu0  ;;  %v19376_v49 = vpop.f32.mrf.mxu1 }
 0xe89   : > { %v10683_v49 = vsel %vm3310_vm4, %v22673_v25, %v10663_v39 }
 0xe8a   : > { %v9982_v56 = vpop.f32.mrf.mxu0  ;;  %v10360_v57 = vpop.f32.mrf.mxu1  ;;  %v10686_v54 = vsel %vm10684_vm7, %v10683_v49, %v10671_v7 }
 0xe8b   : > { %v9983_v8 = vadd.f32 %v9982_v56, %v9909_v53 }
 0xe8c   : > { %v19361_v0 = vpop.f32.mrf.mxu0  ;;  %v19386_v1 = vpop.f32.mrf.mxu1 }
 0xe8d   : > { %v10057_v14 = vadd.f32 %v10056_v38, %v9983_v8 }
 0xe8e   : > { %v10130_v43 = vpop.f32.mrf.mxu0  ;;  %v10508_v16 = vpop.f32.mrf.mxu1 }
 0xe8f   : > { %v10131_v23 = vadd.f32 %v10130_v43, %v10057_v14 }
 0xe90   : > { %v19371_v24 = vpop.f32.mrf.mxu0  ;;  %v19396_v26 = vpop.f32.mrf.mxu1 }
 0xe91   : > { %v10203_v6 = vadd.f32 %v10202_v45, %v10131_v23 }
 0xe92   : > { %v10284_v12 = vpop.f32.mrf.mxu0  ;;  %v10654_v36 = vpop.f32.mrf.mxu1 }
 0xe93   : > { %10676 = vrot.lane.b32.xlu0 %v10203_v6, %s21539_s0  ;;  %v10361_v60 = vadd.f32 %v10360_v57, %v10284_v12  ;;  %v20689_v12 = vld [vmem:[#allocation2 + $0x8] sm:$0xff] }
 0xe94   : > { %v19381_v29 = vpop.f32.mrf.mxu0  ;;  %v19406_v27 = vpop.f32.mrf.mxu1 }
 0xe95   : > { %v20690_v29 = vld [vmem:[#allocation2] sm:$0xff] }
 0xe96   : > { %v10434_v15 = vpop.f32.mrf.mxu0 }
 0xe97   : > { %v10435_v11 = vadd.f32 %v10434_v15, %v10361_v60 }
 0xe98   : > { %v19391_v30 = vpop.f32.mrf.mxu0 }
 0xe99   : > { %v10509_v31 = vadd.f32 %v10508_v16, %v10435_v11 }
 0xe9a   : > { %v10582_v13 = vpop.f32.mrf.mxu0 }
 0xe9b   : > { %v10583_v17 = vadd.f32 %v10582_v13, %v10509_v31 }
 0xe9c   : > { %v19401_v32 = vpop.f32.mrf.mxu0 }
 0xe9d   : > { %v10655_v18 = vadd.f32 %v10654_v36, %v10583_v17 }
 0xe9f   : > { %10678 = vrot.lane.b32.xlu1 %v10655_v18, %s21539_s0 }
 0xf05   : > { %v10677_v37 = vpop.permute.xlu0 %10676 }
 0xf06   : > { %v10688_v38 = vsel %vm10687_vm6, %v10685_v35, %v10677_v37  ;;  %v11284_v35 = vld [vmem:[%s22185_s11 + $0x10] sm:$0xff]  ;;  %v11283_v37 = vld [vmem:[%s22185_s11 + $0x8] sm:$0xff] }
 0xf07   : > { %v10702_v40 = vsel %vm2766_vm2, %v10688_v38, 0  ;;  %v23106_v38 = vand.u32 4294901760, %v11285_v34  ;;  %v23108_v39 = vand.u32 4294901760, %v11284_v35 }
 0xf08   : > { %v10776_v42 = vand.u32 4294901760, %v10702_v40 }
 0xf0a   : > { %v10777_v44 = vsub.f32 %v10702_v40, %v10776_v42  ;;  %19426 = vmatprep.mubr.f32.mxu1 %v10776_v42  ;;  %v23110_v40 = vand.u32 4294901760, %v11283_v37 }
 0xf0c   : > { %v10778_v45 = vand.u32 4294901760, %v10777_v44 }
 0xf0e   : > { %v10779_v48 = vsub.f32 %v10777_v44, %v10778_v45 }
 0xf10   : > { %v10780_v53 = vand.u32 4294901760, %v10779_v48 }
 0xf11   : > { %v10679_v58 = vpop.permute.xlu1 %10678 }
 0xf12   : > { %v10689_v56 = vsel %vm10687_vm6, %v10686_v54, %v10679_v58  ;;  %19415 = vmatprep.mubr.f32.mxu0 %v10780_v53 }
 0xf13   : > { %v10705_v57 = vsel %vm2766_vm2, %v10689_v56, 0 }
 0xf14   : > { %v10786_v59 = vand.u32 4294901760, %v10705_v57 }
 0xf16   : > { %v10787_v8 = vsub.f32 %v10705_v57, %v10786_v59  ;;  %19427 = vmatmul.mubr.f32.vlgmr.msra.gmra.mxu1 %v10786_v59 }
 0xf17   : > { %19441 = vmatpush3.msra.mxu1 %v23002_v41  ;;  %19448 = vmatprep.mubr.f32.mxu1 %v10778_v45  ;;  %v23119_v45 = vsub.f32 %v11283_v37, %v23110_v40 }
 0xf18   : > { %19442 = vmatprep.subr.mxu1 %v23008_v47  ;;  %v10788_v0 = vand.u32 4294901760, %v10787_v8 }
 0xf19   : > { %19443 = vmatpush3.msra.mxu1 %v23008_v47  ;;  %v23130_v49 = vand.u32 4294901760, %v23119_v45 }
 0xf1a   : > { %19444 = vmatprep.subr.mxu1 %v23019_v52  ;;  %v10789_v25 = vsub.f32 %v10787_v8, %v10788_v0 }
 0xf1b   : > { %19445 = vmatpush3.msra.mxu1 %v23019_v52  ;;  %v11430_v58 = vsub.f32 %v23119_v45, %v23130_v49 }
 0xf1c   : > { %19446 = vmatprep.subr.mxu1 %v23032_v63  ;;  %v10790_v1 = vand.u32 4294901760, %v10789_v25 }
 0xf1d   : > { %19447 = vmatpush3.msra.mxu1 %v23032_v63 }
 0xf1e   : > { %19449 = vmatmul.mubr.f32.vlgmr.msra.gmra.mxu1 %v10788_v0  ;;  %19462 = vmatprep.subr.mxu1 %v23002_v41  ;;  %v11431_v0 = vand.u32 4294901760, %v11430_v58 }
 0xf1f   : > { %19416 = vmatmul.mubr.f32.vlgmr.msra.gmra.mxu0 %v10790_v1  ;;  %19463 = vmatpush3.msra.mxu1 %v23002_v41 }
 0xf20   : > { %19430 = vmatpush3.msra.mxu0 %v23006_v46  ;;  %19470 = vmatprep.mubr.f32.mxu1 %v10776_v42  ;;  %v17984_v46 = vld [vmem:[%s24705_s3] ss:$0 sm:$0xff] }
 0xf21   : > { %19431 = vmatprep.subr.mxu0 %v23017_v51  ;;  %19437 = vmatprep.mubr.f32.mxu0 %v10777_v44  ;;  %v23116_v44 = vsub.f32 %v11284_v35, %v23108_v39 }
 0xf22   : > { %19464 = vmatprep.subr.mxu1 %v23008_v47  ;;  %19432 = vmatpush3.msra.mxu0 %v23017_v51 }
 0xf23   : > { %19465 = vmatpush3.msra.mxu1 %v23008_v47  ;;  %19433 = vmatprep.subr.mxu0 %v23030_v62  ;;  %v23127_v48 = vand.u32 4294901760, %v23116_v44 }
 0xf24   : > { %19466 = vmatprep.subr.mxu1 %v23019_v52  ;;  %19434 = vmatpush3.msra.mxu0 %v23030_v62 }
 0xf25   : > { %19467 = vmatpush3.msra.mxu1 %v23019_v52  ;;  %19435 = vmatprep.subr.mxu0 %v23042_v4  ;;  %v11423_v54 = vsub.f32 %v23116_v44, %v23127_v48 }
 0xf26   : > { %19468 = vmatprep.subr.mxu1 %v23032_v63  ;;  %19436 = vmatpush3.msra.mxu0 %v23042_v4 }
 0xf27   : > { %19469 = vmatpush3.msra.mxu1 %v23032_v63  ;;  %19438 = vmatmul.mubr.f32.vlgmr.msra.gmra.mxu0 %v10787_v8  ;;  %v11424_v57 = vand.u32 4294901760, %v11423_v54 }
 0xf28   : > { %19451 = vmatprep.subr.mxu0 %v23014_v50  ;;  %19471 = vmatmul.mubr.f32.vlgmr.msra.gmra.mxu1 %v10786_v59 }
 0xf29   : > { %19452 = vmatpush3.msra.mxu0 %v23014_v50  ;;  %19459 = vmatprep.mubr.f32.mxu0 %v10776_v42  ;;  %v23113_v42 = vsub.f32 %v11285_v34, %v23106_v38 }
 0xf2a   : > { %19453 = vmatprep.subr.mxu0 %v23027_v61 }
 0xf2b   : > { %19454 = vmatpush3.msra.mxu0 %v23027_v61  ;;  %v23124_v7 = vand.u32 4294901760, %v23113_v42 }
 0xf2c   : > { %19455 = vmatprep.subr.mxu0 %v23039_v5 }
 0xf2d   : > { %19456 = vmatpush3.msra.mxu0 %v23039_v5  ;;  %v11416_v53 = vsub.f32 %v23113_v42, %v23124_v7 }
 0xf2e   : > { %19457 = vmatprep.subr.mxu0 %v23049_v22 }
 0xf2f   : > { %19458 = vmatpush3.msra.mxu0 %v23049_v22  ;;  %v11417_v56 = vand.u32 4294901760, %v11416_v53 }
 0xf30   : > { %19460 = vmatmul.mubr.f32.vlgmr.msra.gmra.mxu0 %v10786_v59  ;;  %19473 = vmatprep.subr.mxu0 %v23106_v38  ;;  %v11282_v59 = vld [vmem:[%s22185_s11] sm:$0xff]  ;;  %s24706_s11 = scalar_lea.vmem [#allocation12], %s22129_s15 }
 0xf31   : > { %19474 = vmatpush3.msra.mxu0 %v23106_v38  ;;  %v23143_v8 = vand.u32 4294901760, %v11282_v59  ;;  %19484 = vmatprep.subr.mxu1 %v11417_v56 }
 0xf32   : > { %19475 = vmatprep.subr.mxu0 %v23108_v39  ;;  %19485 = vmatpush3.msra.mxu1 %v11417_v56  ;;  %v11830_v56 = vld [vmem:[%s22188_s4 + $0x8] sm:$0xff] }
 0xf33   : > { %19476 = vmatpush3.msra.mxu0 %v23108_v39  ;;  %v23146_v25 = vsub.f32 %v11282_v59, %v23143_v8  ;;  %19486 = vmatprep.subr.mxu1 %v11424_v57 }
 0xf34   : > { %19477 = vmatprep.subr.mxu0 %v23110_v40  ;;  %19487 = vmatpush3.msra.mxu1 %v11424_v57 }
 0xf35   : > { %19478 = vmatpush3.msra.mxu0 %v23110_v40  ;;  %v23151_v1 = vand.u32 4294901760, %v23146_v25  ;;  %19488 = vmatprep.subr.mxu1 %v11431_v0 }
 0xf36   : > { %19479 = vmatprep.subr.mxu0 %v23143_v8  ;;  %19489 = vmatpush3.msra.mxu1 %v11431_v0  ;;  %v23266_v0 = vand.u32 4294901760, %v11830_v56 }
 0xf37   : > { %19480 = vmatpush3.msra.mxu0 %v23143_v8 }
 0xf38   : > { %19495 = vmatprep.subr.mxu0 %v23113_v42 }
 0xfd6   : > { %v19428_v47 = vpop.f32.mrf.mxu1 }
 0xfd8   : > { %v10883_v63 = vpop.f32.mrf.mxu1 }
 0xfde   : > { %v19450_v61 = vpop.f32.mrf.mxu1 }
 0xfdf   : > { %v19417_v41 = vpop.f32.mrf.mxu0 }
 0xfe0   : > { %v10793_v50 = vadd.f32 %v19417_v41, %v17984_v46  ;;  %v11053_v43 = vpop.f32.mrf.mxu1  ;;  %v11437_v41 = vsub.f32 %v23146_v25, %v23151_v1 }
 0xfe1   : > { %v10782_v51 = vpop.f32.mrf.mxu0 }
 0xfe2   : > { %v10783_v52 = vadd.f32 %v17984_v46, %v10782_v51  ;;  %v10890_v2 = vadd.f32 %v19428_v47, %v10793_v50  ;;  %v11438_v46 = vand.u32 4294901760, %v11437_v41 }
 0xfe4   : > { %v10884_v14 = vadd.f32 %v10883_v63, %v10783_v52  ;;  %19490 = vmatprep.subr.mxu1 %v11438_v46 }
 0xfe5   : > { %19491 = vmatpush3.msra.mxu1 %v11438_v46 }
 0xfe6   : > { %19506 = vmatprep.subr.mxu1 %v23106_v38 }
 0xfe7   : > { %v19439_v62 = vpop.f32.mrf.mxu0 }
 0xfe8   : > { %v10977_v4 = vadd.f32 %v19439_v62, %v10890_v2  ;;  %v19472_v20 = vpop.f32.mrf.mxu1 }
 0xfe9   : > { %v10969_v3 = vpop.f32.mrf.mxu0 }
 0xfea   : > { %v10970_v5 = vadd.f32 %v10969_v3, %v10884_v14  ;;  %v11062_v16 = vadd.f32 %v19450_v61, %v10977_v4  ;;  %v11225_v28 = vpop.f32.mrf.mxu1  ;;  %v17985_v61 = vld [vmem:[%s24706_s11] ss:$0 sm:$0xff] }
 0xfeb   : > { %v17986_v4 = vld [vmem:[%s24707_s16] ss:$0 sm:$0xff] }
 0xfec   : > { %v11054_v23 = vadd.f32 %v11053_v43, %v10970_v5 }
 0xff0   : > { %v19461_v21 = vpop.f32.mrf.mxu0 }
 0xff1   : > { %v11151_v22 = vadd.f32 %v19461_v21, %v11062_v16 }
 0xff2   : > { %v11144_v24 = vpop.f32.mrf.mxu0 }
 0xff3   : > { %v11232_v26 = vadd.f32 %v19472_v20, %v11151_v22  ;;  %v11145_v9 = vadd.f32 %v11144_v24, %v11054_v23 }
 0xff5   : > { %v11226_v6 = vadd.f32 %v11225_v28, %v11145_v9  ;;  %v11236_v36 = vadd.f32 %v20689_v12, %v11232_v26 }
 0xff7   : > { %v11242_v10 = vsel %vm2766_vm2, %v11236_v36, 0.0  ;;  %v11235_v27 = vadd.f32 %v20690_v29, %v11226_v6 }
 0xff8   : > { %11243 = vadd.xlane.f32.xlu1 %v11242_v10 }
 0xff9   : > { %v11239_v60 = vsel %vm2766_vm2, %v11235_v27, 0.0 }
 0xffa   : > { %11240 = vadd.xlane.f32.xlu0 %v11239_v60  ;;  %v11836_v60 = vld [vmem:[%s22188_s4 + $0x38] sm:$0xff] }
0x1081   : > { %v11244_v15 = vpop.xlane.xlu1 %11243 }
0x1082   : > { %v11247_v11 = vmul.f32 0.03125, %v11244_v15  ;;  %v23201_v15 = vand.u32 4294901760, %v11836_v60 }
0x1083   : > { %v11241_v30 = vpop.xlane.xlu0 %11240 }
0x1084   : > { %v11246_v31 = vmul.f32 0.03125, %v11241_v30  ;;  %v23097_v13 = vsub.f32 %v11236_v36, %v11247_v11  ;;  %v11835_v11 = vld [vmem:[%s22188_s4 + $0x30] sm:$0xff]  ;;  %v23205_v30 = vsub.f32 %v11836_v60, %v23201_v15 }
0x1086   : > { %v11248_v17 = vsub.f32 %v11235_v27, %v11246_v31  ;;  %v11251_v19 = vmul.f32 %v23097_v13, %v23097_v13  ;;  %v23207_v31 = vand.u32 4294901760, %v11835_v11 }
0x1088   : > { %v11250_v32 = vmul.f32 %v11248_v17, %v11248_v17  ;;  %v11255_v33 = vsel %vm2766_vm2, %v11251_v19, 0.0  ;;  %v11833_v19 = vld [vmem:[%s22188_s4 + $0x20] sm:$0xff] }
0x1089   : > { %v23231_v37 = vand.u32 4294901760, %v11833_v19 }
0x108a   : > { %v11252_v18 = vsel %vm2766_vm2, %v11250_v32, 0.0  ;;  %v23216_v32 = vsub.f32 %v11835_v11, %v23207_v31 }
0x108b   : > { %11253 = vadd.xlane.f32.xlu0 %v11252_v18 }
0x108c   : > { %v23226_v34 = vand.u32 4294901760, %v23216_v32 }
0x108f   : > { %11256 = vadd.xlane.f32.xlu0 %v11255_v33 }
0x1114   : > { %v11254_v47 = vpop.xlane.xlu0 %11253 }
0x1115   : > { %v11258_v51 = vmul.f32 0.03125, %v11254_v47  ;;  %v23278_v47 = vsub.f32 %v11830_v56, %v23266_v0 }
0x1117   : > { %v11260_v50 = vadd.f32 1e-05, %v11258_v51 }
0x1118   : > { %v11257_v52 = vpop.xlane.xlu0 %11256 }
0x1119   : > { %20681 = vrsqrt.f32 %v11260_v50  ;;  %v11259_v62 = vmul.f32 0.03125, %v11257_v52 }
0x111b   : > { %v11261_v63 = vadd.f32 1e-05, %v11259_v62  ;;  %v23289_v62 = vand.u32 4294901760, %v23278_v47 }
0x111d   : > { %20683 = vrsqrt.f32 %v11261_v63 }
0x1126   : > { %v20682_v2 = vpop.eup %20681 }
0x1127   : > { %v11264_v3 = vmul.f32 %v20682_v2, %v11248_v17  ;;  %v23213_v17 = vand.u32 4294901760, %v23205_v30 }
0x1129   : > { %v11272_v14 = vmul.f32 %v17985_v61, %v11264_v3  ;;  %v11964_v33 = vsub.f32 %v23205_v30, %v23213_v17  ;;  %v12006_v3 = vsub.f32 %v23278_v47, %v23289_v62 }
0x112a   : > { %v20684_v5 = vpop.eup %20683 }
0x112b   : > { %v23161_v43 = vadd.f32 %v17986_v4, %v11272_v14  ;;  %v11265_v16 = vmul.f32 %v20684_v5, %v23097_v13  ;;  %v11834_v13 = vld [vmem:[%s22188_s4 + $0x28] sm:$0xff]  ;;  %v12007_v14 = vand.u32 4294901760, %v12006_v3 }
0x112c   : > { %v23218_v18 = vand.u32 4294901760, %v11834_v13 }
0x112d   : > { %v11294_v20 = vsel %vm2766_vm2, %v23161_v43, 0  ;;  %v11273_v21 = vmul.f32 %v17985_v61, %v11265_v16 }
0x112e   : > { %v11368_v22 = vand.u32 4294901760, %v11294_v20  ;;  %v23229_v35 = vsub.f32 %v11834_v13, %v23218_v18 }
0x112f   : > { %v23166_v23 = vadd.f32 %v17986_v4, %v11273_v21 }
0x1130   : > { %19492 = vmatprep.mubr.f32.mxu1 %v11368_v22  ;;  %v11369_v24 = vsub.f32 %v11294_v20, %v11368_v22 }
0x1131   : > { %v11297_v26 = vsel %vm2766_vm2, %v23166_v23, 0 }
0x1132   : > { %v11378_v9 = vand.u32 4294901760, %v11297_v26  ;;  %v11370_v28 = vand.u32 4294901760, %v11369_v24 }
0x1134   : > { %v11379_v6 = vsub.f32 %v11297_v26, %v11378_v9  ;;  %19493 = vmatmul.mubr.f32.vlgmr.msra.gmra.mxu1 %v11378_v9  ;;  %v11371_v12 = vsub.f32 %v11369_v24, %v11370_v28 }
0x1135   : > { %19507 = vmatpush3.msra.mxu1 %v23106_v38  ;;  %19514 = vmatprep.mubr.f32.mxu1 %v11370_v28 }
0x1136   : > { %19508 = vmatprep.subr.mxu1 %v23108_v39  ;;  %v11372_v36 = vand.u32 4294901760, %v11371_v12  ;;  %v11380_v10 = vand.u32 4294901760, %v11379_v6 }
0x1137   : > { %19509 = vmatpush3.msra.mxu1 %v23108_v39 }
0x1138   : > { %19510 = vmatprep.subr.mxu1 %v23110_v40  ;;  %19481 = vmatprep.mubr.f32.mxu0 %v11372_v36  ;;  %v11381_v29 = vsub.f32 %v11379_v6, %v11380_v10 }
0x1139   : > { %19511 = vmatpush3.msra.mxu1 %v23110_v40 }
0x113a   : > { %19512 = vmatprep.subr.mxu1 %v23143_v8  ;;  %v11382_v27 = vand.u32 4294901760, %v11381_v29 }
0x113b   : > { %19513 = vmatpush3.msra.mxu1 %v23143_v8 }
0x113c   : > { %19515 = vmatmul.mubr.f32.vlgmr.msra.gmra.mxu1 %v11380_v10  ;;  %19528 = vmatprep.subr.mxu1 %v23106_v38 }
0x113d   : > { %19482 = vmatmul.mubr.f32.vlgmr.msra.gmra.mxu0 %v11382_v27  ;;  %19529 = vmatpush3.msra.mxu1 %v23106_v38  ;;  %v11832_v38 = vld [vmem:[%s22188_s4 + $0x18] sm:$0xff] }
0x113e   : > { %19496 = vmatpush3.msra.mxu0 %v23113_v42  ;;  %19536 = vmatprep.mubr.f32.mxu1 %v11368_v22  ;;  %v23239_v42 = vand.u32 4294901760, %v23229_v35 }
0x113f   : > { %19497 = vmatprep.subr.mxu0 %v23116_v44  ;;  %19503 = vmatprep.mubr.f32.mxu0 %v11369_v24 }
0x1140   : > { %19530 = vmatprep.subr.mxu1 %v23108_v39  ;;  %19498 = vmatpush3.msra.mxu0 %v23116_v44  ;;  %v23242_v44 = vsub.f32 %v11833_v19, %v23231_v37 }
0x1141   : > { %19531 = vmatpush3.msra.mxu1 %v23108_v39  ;;  %19499 = vmatprep.subr.mxu0 %v23119_v45  ;;  %v11965_v39 = vand.u32 4294901760, %v11964_v33 }
0x1142   : > { %19532 = vmatprep.subr.mxu1 %v23110_v40  ;;  %19500 = vmatpush3.msra.mxu0 %v23119_v45  ;;  %v23245_v45 = vand.u32 4294901760, %v11832_v38  ;;  %v23252_v53 = vand.u32 4294901760, %v23242_v44 }
0x1143   : > { %19533 = vmatpush3.msra.mxu1 %v23110_v40  ;;  %19501 = vmatprep.subr.mxu0 %v23146_v25  ;;  %v11971_v40 = vsub.f32 %v23216_v32, %v23226_v34 }
0x1144   : > { %19534 = vmatprep.subr.mxu1 %v23143_v8  ;;  %19502 = vmatpush3.msra.mxu0 %v23146_v25  ;;  %v23257_v58 = vsub.f32 %v11832_v38, %v23245_v45  ;;  %v11985_v59 = vsub.f32 %v23242_v44, %v23252_v53 }
0x1145   : > { %19535 = vmatpush3.msra.mxu1 %v23143_v8  ;;  %19504 = vmatmul.mubr.f32.vlgmr.msra.gmra.mxu0 %v11379_v6 }
0x1146   : > { %19517 = vmatprep.subr.mxu0 %v23124_v7  ;;  %19537 = vmatmul.mubr.f32.vlgmr.msra.gmra.mxu1 %v11378_v9  ;;  %v23270_v25 = vand.u32 4294901760, %v23257_v58  ;;  %v11986_v41 = vand.u32 4294901760, %v11985_v59 }
0x1147   : > { %19518 = vmatpush3.msra.mxu0 %v23124_v7  ;;  %19525 = vmatprep.mubr.f32.mxu0 %v11368_v22  ;;  %v11831_v7 = vld [vmem:[%s22188_s4 + $0x10] sm:$0xff] }
0x1148   : > { %19519 = vmatprep.subr.mxu0 %v23127_v48  ;;  %19558 = vmatprep.subr.mxu1 %v11965_v39  ;;  %v23254_v54 = vand.u32 4294901760, %v11831_v7  ;;  %v11992_v50 = vsub.f32 %v23257_v58, %v23270_v25 }
0x1149   : > { %19520 = vmatpush3.msra.mxu0 %v23127_v48  ;;  %v11972_v48 = vand.u32 4294901760, %v11971_v40  ;;  %19559 = vmatpush3.msra.mxu1 %v11965_v39 }
0x114a   : > { %19521 = vmatprep.subr.mxu0 %v23130_v49  ;;  %v23264_v8 = vsub.f32 %v11831_v7, %v23254_v54  ;;  %v11993_v2 = vand.u32 4294901760, %v11992_v50 }
0x114b   : > { %19522 = vmatpush3.msra.mxu0 %v23130_v49  ;;  %v11978_v49 = vsub.f32 %v23229_v35, %v23239_v42  ;;  %19560 = vmatprep.subr.mxu1 %v11972_v48 }
0x114c   : > { %19523 = vmatprep.subr.mxu0 %v23151_v1  ;;  %19561 = vmatpush3.msra.mxu1 %v11972_v48  ;;  %v23275_v46 = vand.u32 4294901760, %v23264_v8 }
0x114d   : > { %19524 = vmatpush3.msra.mxu0 %v23151_v1  ;;  %v11979_v57 = vand.u32 4294901760, %v11978_v49  ;;  %v11829_v1 = vld [vmem:[%s22188_s4] sm:$0xff]  ;;  %s24708_s4 = scalar_lea.vmem [#allocation14], %s22129_s15  ;;  %s17992_s15 = sadd.s32 (!%p17991_p2), 4294967295, %s23392_s18 }
0x114e   : > { %19526 = vmatmul.mubr.f32.vlgmr.msra.gmra.mxu0 %v11378_v9  ;;  %19539 = vmatprep.subr.mxu0 %v23201_v15  ;;  %v23280_v51 = vand.u32 4294901760, %v11829_v1  ;;  %v11999_v52 = vsub.f32 %v23264_v8, %v23275_v46  ;;  %v17987_v21 = vld [vmem:[%s24708_s4] ss:$0 sm:$0xff] }
0x114f   : > { %19540 = vmatpush3.msra.mxu0 %v23201_v15  ;;  %19562 = vmatprep.subr.mxu1 %v11979_v57 }
0x1150   : > { %19541 = vmatprep.subr.mxu0 %v23207_v31  ;;  %19563 = vmatpush3.msra.mxu1 %v11979_v57  ;;  %v23292_v63 = vsub.f32 %v11829_v1, %v23280_v51  ;;  %v12000_v61 = vand.u32 4294901760, %v11999_v52 }
0x1151   : > { %19542 = vmatpush3.msra.mxu0 %v23207_v31  ;;  %19564 = vmatprep.subr.mxu1 %v11986_v41 }
0x1152   : > { %19543 = vmatprep.subr.mxu0 %v23218_v18  ;;  %19565 = vmatpush3.msra.mxu1 %v11986_v41  ;;  %v23299_v4 = vand.u32 4294901760, %v23292_v63 }
0x1153   : > { %19544 = vmatpush3.msra.mxu0 %v23218_v18  ;;  %19566 = vmatprep.subr.mxu1 %v11993_v2 }
0x1154   : > { %19545 = vmatprep.subr.mxu0 %v23231_v37  ;;  %19567 = vmatpush3.msra.mxu1 %v11993_v2  ;;  %v12013_v5 = vsub.f32 %v23292_v63, %v23299_v4 }
0x1155   : > { %19546 = vmatpush3.msra.mxu0 %v23231_v37  ;;  %19568 = vmatprep.subr.mxu1 %v12000_v61 }
0x1156   : > { %19547 = vmatprep.subr.mxu0 %v23245_v45  ;;  %19569 = vmatpush3.msra.mxu1 %v12000_v61  ;;  %v12014_v16 = vand.u32 4294901760, %v12013_v5 }
0x1157   : > { %19548 = vmatpush3.msra.mxu0 %v23245_v45  ;;  %19570 = vmatprep.subr.mxu1 %v12007_v14 }
0x1158   : > { %19549 = vmatprep.subr.mxu0 %v23254_v54  ;;  %19571 = vmatpush3.msra.mxu1 %v12007_v14 }
0x1159   : > { %19550 = vmatpush3.msra.mxu0 %v23254_v54  ;;  %19572 = vmatprep.subr.mxu1 %v12014_v16 }
0x115a   : > { %19551 = vmatprep.subr.mxu0 %v23266_v0  ;;  %19573 = vmatpush3.msra.mxu1 %v12014_v16 }
0x115b   : > { %19552 = vmatpush3.msra.mxu0 %v23266_v0  ;;  %19596 = vmatprep.subr.mxu1 %v23201_v15 }
0x115c   : > { %19553 = vmatprep.subr.mxu0 %v23280_v51 }
0x115d   : > { %19554 = vmatpush3.msra.mxu0 %v23280_v51 }
0x115e   : > { %19577 = vmatprep.subr.mxu0 %v23205_v30 }
0x11f4   : > { %v19494_v22 = vpop.f32.mrf.mxu1 }
0x11f6   : > { %v11475_v6 = vpop.f32.mrf.mxu1 }
0x11fc   : > { %v19516_v36 = vpop.f32.mrf.mxu1 }
0x11fd   : > { %v19483_v20 = vpop.f32.mrf.mxu0 }
0x11fe   : > { %v11385_v26 = vadd.f32 %v19483_v20, %v17987_v21  ;;  %v11645_v11 = vpop.f32.mrf.mxu1 }
0x11ff   : > { %v11374_v24 = vpop.f32.mrf.mxu0 }
0x1200   : > { %v11375_v9 = vadd.f32 %v17987_v21, %v11374_v24  ;;  %v11482_v12 = vadd.f32 %v19494_v22, %v11385_v26 }
0x1202   : > { %v11476_v27 = vadd.f32 %v11475_v6, %v11375_v9 }
0x1205   : > { %v19505_v28 = vpop.f32.mrf.mxu0 }
0x1206   : > { %v11569_v29 = vadd.f32 %v19505_v28, %v11482_v12  ;;  %v19538_v19 = vpop.f32.mrf.mxu1 }
0x1207   : > { %v11561_v10 = vpop.f32.mrf.mxu0 }
0x1208   : > { %v11562_v60 = vadd.f32 %v11561_v10, %v11476_v27  ;;  %v11654_v13 = vadd.f32 %v19516_v36, %v11569_v29  ;;  %v11817_v49 = vpop.f32.mrf.mxu1 }
0x120a   : > { %v11646_v39 = vadd.f32 %v11645_v11, %v11562_v60 }
0x120e   : > { %v19527_v33 = vpop.f32.mrf.mxu0 }
0x120f   : > { %v11743_v38 = vadd.f32 %v19527_v33, %v11654_v13 }
0x1210   : > { %v11736_v40 = vpop.f32.mrf.mxu0 }
0x1211   : > { %v11824_v7 = vadd.f32 %v19538_v19, %v11743_v38  ;;  %v11737_v48 = vadd.f32 %v11736_v40, %v11646_v39 }
0x1213   : > { %v11828_v56 = vmax.f32 %v11824_v7, 0.0  ;;  %v11818_v57 = vadd.f32 %v11817_v49, %v11737_v48  ;;  %v17989_v48 = vld [vmem:[%s24710_s28] ss:$0 sm:$0xff] }
0x1215   : > { %v11849_v59 = vsel %vm11844_vm8, %v11828_v56, 0  ;;  %v11827_v1 = vmax.f32 %v11818_v57, 0.0  ;;  %v17990_v57 = vld [vmem:[%s24711_s24] ss:$0 sm:$0xff] }
0x1216   : > { %v23308_v41 = vand.u32 4294901760, %v11849_v59 }
0x1217   : > { %v11846_v50 = vsel %vm11844_vm8, %v11827_v1, 0 }
0x1218   : > { %v11935_v52 = vsub.f32 %v11849_v59, %v23308_v41  ;;  %v11924_v2 = vand.u32 4294901760, %v11846_v50 }
0x121a   : > { %v11936_v61 = vand.u32 4294901760, %v11935_v52  ;;  %v11925_v3 = vsub.f32 %v11846_v50, %v11924_v2  ;;  %19574 = vmatprep.mubr.f32.mxu1 %v11924_v2 }
0x121b   : > { %19575 = vmatmul.mubr.f32.vlgmr.msra.gmra.mxu1 %v23308_v41 }
0x121c   : > { %19597 = vmatpush3.msra.mxu1 %v23201_v15  ;;  %v11926_v14 = vand.u32 4294901760, %v11925_v3  ;;  %v11937_v5 = vsub.f32 %v11935_v52, %v11936_v61 }
0x121d   : > { %19598 = vmatprep.subr.mxu1 %v23207_v31 }
0x121e   : > { %19599 = vmatpush3.msra.mxu1 %v23207_v31  ;;  %19612 = vmatprep.mubr.f32.mxu1 %v11926_v14  ;;  %v11927_v16 = vsub.f32 %v11925_v3, %v11926_v14  ;;  %v11938_v21 = vand.u32 4294901760, %v11937_v5 }
0x121f   : > { %19600 = vmatprep.subr.mxu1 %v23218_v18 }
0x1220   : > { %19601 = vmatpush3.msra.mxu1 %v23218_v18  ;;  %v11928_v20 = vand.u32 4294901760, %v11927_v16 }
0x1221   : > { %19602 = vmatprep.subr.mxu1 %v23231_v37 }
0x1222   : > { %19603 = vmatpush3.msra.mxu1 %v23231_v37  ;;  %19555 = vmatprep.mubr.f32.mxu0 %v11928_v20 }
0x1223   : > { %19604 = vmatprep.subr.mxu1 %v23245_v45  ;;  %19556 = vmatmul.mubr.f32.vlgmr.msra.gmra.mxu0 %v11938_v21 }
0x1224   : > { %19578 = vmatpush3.msra.mxu0 %v23205_v30  ;;  %19605 = vmatpush3.msra.mxu1 %v23245_v45  ;;  %v17988_v30 = vld [vmem:[%s24709_s6] ss:$0 sm:$0xff] }
0x1225   : > { %19579 = vmatprep.subr.mxu0 %v23216_v32  ;;  %19593 = vmatprep.mubr.f32.mxu0 %v11925_v3 }
0x1226   : > { %19606 = vmatprep.subr.mxu1 %v23254_v54  ;;  %19580 = vmatpush3.msra.mxu0 %v23216_v32 }
0x1227   : > { %19607 = vmatpush3.msra.mxu1 %v23254_v54  ;;  %19581 = vmatprep.subr.mxu0 %v23229_v35 }
0x1228   : > { %19608 = vmatprep.subr.mxu1 %v23266_v0  ;;  %19582 = vmatpush3.msra.mxu0 %v23229_v35 }
0x1229   : > { %19609 = vmatpush3.msra.mxu1 %v23266_v0  ;;  %19583 = vmatprep.subr.mxu0 %v23242_v44 }
0x122a   : > { %19610 = vmatprep.subr.mxu1 %v23280_v51  ;;  %19584 = vmatpush3.msra.mxu0 %v23242_v44 }
0x122b   : > { %19611 = vmatpush3.msra.mxu1 %v23280_v51  ;;  %19585 = vmatprep.subr.mxu0 %v23257_v58 }
0x122c   : > { %19613 = vmatmul.mubr.f32.vlgmr.msra.gmra.mxu1 %v11936_v61  ;;  %19634 = vmatprep.subr.mxu1 %v23201_v15 }
0x122d   : > { %19586 = vmatpush3.msra.mxu0 %v23257_v58  ;;  %19635 = vmatpush3.msra.mxu1 %v23201_v15 }
0x122e   : > { %19650 = vmatprep.mubr.f32.mxu1 %v11924_v2  ;;  %19587 = vmatprep.subr.mxu0 %v23264_v8 }
0x122f   : > { %19636 = vmatprep.subr.mxu1 %v23207_v31  ;;  %19588 = vmatpush3.msra.mxu0 %v23264_v8 }
0x1230   : > { %19637 = vmatpush3.msra.mxu1 %v23207_v31  ;;  %19589 = vmatprep.subr.mxu0 %v23278_v47 }
0x1231   : > { %19638 = vmatprep.subr.mxu1 %v23218_v18  ;;  %19590 = vmatpush3.msra.mxu0 %v23278_v47 }
0x1232   : > { %19639 = vmatpush3.msra.mxu1 %v23218_v18  ;;  %19591 = vmatprep.subr.mxu0 %v23292_v63 }
0x1233   : > { %19640 = vmatprep.subr.mxu1 %v23231_v37  ;;  %19592 = vmatpush3.msra.mxu0 %v23292_v63 }
0x1234   : > { %19641 = vmatpush3.msra.mxu1 %v23231_v37  ;;  %19594 = vmatmul.mubr.f32.vlgmr.msra.gmra.mxu0 %v11935_v52 }
0x1235   : > { %19615 = vmatprep.subr.mxu0 %v23213_v17  ;;  %19642 = vmatprep.subr.mxu1 %v23245_v45 }
0x1236   : > { %19616 = vmatpush3.msra.mxu0 %v23213_v17  ;;  %19631 = vmatprep.mubr.f32.mxu0 %v11924_v2 }
0x1237   : > { %19643 = vmatpush3.msra.mxu1 %v23245_v45  ;;  %19617 = vmatprep.subr.mxu0 %v23226_v34 }
0x1238   : > { %19644 = vmatprep.subr.mxu1 %v23254_v54  ;;  %19618 = vmatpush3.msra.mxu0 %v23226_v34 }
0x1239   : > { %19645 = vmatpush3.msra.mxu1 %v23254_v54  ;;  %19619 = vmatprep.subr.mxu0 %v23239_v42 }
0x123a   : > { %19646 = vmatprep.subr.mxu1 %v23266_v0  ;;  %19620 = vmatpush3.msra.mxu0 %v23239_v42 }
0x123b   : > { %19647 = vmatpush3.msra.mxu1 %v23266_v0  ;;  %19621 = vmatprep.subr.mxu0 %v23252_v53 }
0x123c   : > { %19648 = vmatprep.subr.mxu1 %v23280_v51  ;;  %19622 = vmatpush3.msra.mxu0 %v23252_v53 }
0x123d   : > { %19649 = vmatpush3.msra.mxu1 %v23280_v51  ;;  %19623 = vmatprep.subr.mxu0 %v23270_v25 }
0x123e   : > { %19651 = vmatmul.mubr.f32.vlgmr.msra.gmra.mxu1 %v23308_v41  ;;  %19624 = vmatpush3.msra.mxu0 %v23270_v25 }
0x123f   : > { %19625 = vmatprep.subr.mxu0 %v23275_v46 }
0x1240   : > { %19626 = vmatpush3.msra.mxu0 %v23275_v46 }
0x1241   : > { %19627 = vmatprep.subr.mxu0 %v23289_v62 }
0x1242   : > { %19628 = vmatpush3.msra.mxu0 %v23289_v62 }
0x1243   : > { %19629 = vmatprep.subr.mxu0 %v23299_v4 }
0x1244   : > { %19630 = vmatpush3.msra.mxu0 %v23299_v4 }
0x1245   : > { %19632 = vmatmul.mubr.f32.vlgmr.msra.gmra.mxu0 %v23308_v41 }
0x12db   : > { %v19576_v31 = vpop.f32.mrf.mxu1 }
0x12dd   : > { %v12051_v35 = vpop.f32.mrf.mxu1 }
0x12e3   : > { %v19557_v15 = vpop.f32.mrf.mxu0 }
0x12e4   : > { %v11941_v32 = vadd.f32 %v19557_v15, %v17988_v30 }
0x12e5   : > { %v11930_v17 = vpop.f32.mrf.mxu0 }
0x12e6   : > { %v11931_v34 = vadd.f32 %v17988_v30, %v11930_v17  ;;  %v12058_v37 = vadd.f32 %v19576_v31, %v11941_v32 }
0x12e8   : > { %v12052_v53 = vadd.f32 %v12051_v35, %v11931_v34 }
0x12ec   : > { %v19614_v42 = vpop.f32.mrf.mxu1 }
0x12ee   : > { %v12233_v58 = vpop.f32.mrf.mxu1 }
0x12f4   : > { %v19595_v18 = vpop.f32.mrf.mxu0 }
0x12f5   : > { %v12153_v45 = vadd.f32 %v19595_v18, %v12058_v37 }
0x12f6   : > { %v12145_v44 = vpop.f32.mrf.mxu0 }
0x12f7   : > { %v12146_v54 = vadd.f32 %v12145_v44, %v12052_v53  ;;  %v12242_v8 = vadd.f32 %v19614_v42, %v12153_v45 }
0x12f9   : > { %v12234_v47 = vadd.f32 %v12233_v58, %v12146_v54 }
0x12fe   : > { %v19652_v0 = vpop.f32.mrf.mxu1 }
0x1300   : > { %v12421_v4 = vpop.f32.mrf.mxu1 }
0x1305   : > { %v19633_v25 = vpop.f32.mrf.mxu0 }
0x1306   : > { %v12343_v46 = vadd.f32 %v19633_v25, %v12242_v8 }
0x1307   : > { %v12336_v51 = vpop.f32.mrf.mxu0 }
0x1308   : > { %v12428_v62 = vadd.f32 %v19652_v0, %v12343_v46  ;;  %v12337_v63 = vadd.f32 %v12336_v51, %v12234_v47 }
0x130a   : > { %v12422_v22 = vadd.f32 %v12421_v4, %v12337_v63  ;;  %v12432_v24 = vadd.f32 %v12428_v62, %v23166_v23 }
0x130c   : > { %v12438_v26 = vsel %vm2766_vm2, %v12432_v24, 0.0  ;;  %v12431_v9 = vadd.f32 %v12422_v22, %v23161_v43 }
0x130d   : > { %12439 = vadd.xlane.f32.xlu0 %v12438_v26 }
0x130e   : > { %v12435_v28 = vsel %vm2766_vm2, %v12431_v9, 0.0 }
0x130f   : > { %12436 = vadd.xlane.f32.xlu1 %v12435_v28 }
0x1396   : > { %v12440_v6 = vpop.xlane.xlu0 %12439 }
0x1397   : > { %v12442_v12 = vmul.f32 0.03125, %v12440_v6 }
0x1398   : > { %v12437_v36 = vpop.xlane.xlu1 %12436 }
0x1399   : > { %v12444_v10 = vsub.f32 %v12432_v24, %v12442_v12  ;;  %v12441_v29 = vmul.f32 0.03125, %v12437_v36 }
0x139b   : > { %v12443_v27 = vsub.f32 %v12431_v9, %v12441_v29  ;;  %v12446_v60 = vmul.f32 %v12444_v10, %v12444_v10 }
0x139d   : > { %v12450_v11 = vsel %vm2766_vm2, %v12446_v60, 0.0  ;;  %v12445_v13 = vmul.f32 %v12443_v27, %v12443_v27 }
0x139e   : > { %12451 = vadd.xlane.f32.xlu0 %v12450_v11 }
0x139f   : > { %v12447_v23 = vsel %vm2766_vm2, %v12445_v13, 0.0 }
0x13a0   : > { %12448 = vadd.xlane.f32.xlu1 %v12447_v23 }
0x1427   : > { %v12452_v43 = vpop.xlane.xlu0 %12451 }
0x1428   : > { %v12454_v19 = vmul.f32 0.03125, %v12452_v43 }
0x1429   : > { %v12449_v33 = vpop.xlane.xlu1 %12448 }
0x142a   : > { %v12456_v38 = vadd.f32 1e-05, %v12454_v19  ;;  %v12453_v39 = vmul.f32 0.03125, %v12449_v33 }
0x142c   : > { %20685 = vrsqrt.f32 %v12456_v38  ;;  %v12455_v40 = vadd.f32 1e-05, %v12453_v39 }
0x142e   : > { %20687 = vrsqrt.f32 %v12455_v40 }
0x1439   : > { %v20686_v7 = vpop.eup %20685 }
0x143a   : > { %v12460_v49 = vmul.f32 %v20686_v7, %v12444_v10 }
0x143b   : > { %v20688_v56 = vpop.eup %20687 }
0x143c   : > { %v12468_v59 = vmul.f32 %v17989_v48, %v12460_v49  ;;  %v12459_v1 = vmul.f32 %v20688_v56, %v12443_v27 }
0x143e   : > { %v12476_v41 = vadd.f32 %v17990_v57, %v12468_v59  ;;  %v12467_v50 = vmul.f32 %v17989_v48, %v12459_v1  ;;  %12482 = sbr.rel (%p17991_p2) target bundleno = 6503 (0x1967), region = 248 }
0x1440   : > { %12478 = vst.msk [vmem:[#allocation2 + $0x8] sm:$0xff] %vm2766_vm2, %v12476_v41  ;;  %v12475_v52 = vadd.f32 %v17990_v57, %v12467_v50 }
0x1442   : > { %12477 = vst.msk [vmem:[#allocation2] sm:$0xff] %vm2766_vm2, %v12475_v52 }
0x1443   : > { %v12511_v2 = vld [vmem:[#allocation18 + $0x18] sm:$0xff]  ;;  %v12510_v61 = vld [vmem:[#allocation18 + $0x10] sm:$0xff]  ;;  %v12509_v3 = vld [vmem:[#allocation18 + $0x8] sm:$0xff]  ;;  %v21540_v14 = vmov 0.0   ;;  %vm21541_vm9 = vmmov 0   ;;  %v12485_v4 = vstv %s17992_s15  ;;  %vm17425_vm11 = vcmask 1040384  }
0x1444   : > { %19653 = vmatprep.subr.mxu0 %v21540_v14  ;;  %v23395_v5 = vand.u32 4294901760, %v12511_v2  ;;  %v23397_v16 = vand.u32 4294901760, %v12510_v61  ;;  %v23399_v20 = vand.u32 4294901760, %v12509_v3  ;;  %19664 = vmatprep.subr.mxu1 %v21540_v14  ;;  %v12508_v21 = vld [vmem:[#allocation18] sm:$0xff]  ;;  %v12507_v15 = vld [vmem:[%s22174_s10] sm:$0x1]  ;;  %vm12486_vm10 = vcmp.eq.s32.totalorder %v22526_v55, %v12485_v4 }
0x1445   : > { %v23403_v30 = vand.u32 4294901760, %v12508_v21  ;;  %19661 = vmatprep.mubr.msk.f32.mxu0 %vm21541_vm9, %v21540_v14  ;;  %v12514_v31 = vsel %vm2766_vm2, %v12507_v15, 0  ;;  %19672 = vmatprep.mubr.msk.f32.mxu1 %vm21541_vm9, %v21540_v14  ;;  %v17993_v26 = vsel %vm12486_vm10, 1.0, %v21540_v14  ;;  %v13008_v28 = vld [vmem:[#allocation21 + $0x18] sm:$0xff]  ;;  %v13007_v36 = vld [vmem:[#allocation21 + $0x10] sm:$0xff]  ;;  %v13006_v27 = vld [vmem:[#allocation21 + $0x8] sm:$0xff] }
0x1446   : > { %19654 = vmatpush3.msra.mxu0 %v23395_v5  ;;  %v23412_v17 = vsub.f32 %v12511_v2, %v23395_v5  ;;  %v23414_v32 = vand.u32 4294901760, %v12514_v31  ;;  %v23417_v18 = vsub.f32 %v12510_v61, %v23397_v16  ;;  %v23420_v34 = vsub.f32 %v12509_v3, %v23399_v20  ;;  %v13005_v23 = vld [vmem:[#allocation21] sm:$0xff]  ;;  %s24714_s10 = sld [smem:[#allocation68_spill]] }
0x1447   : > { %19655 = vmatprep.subr.mxu0 %v21540_v14  ;;  %v23424_v35 = vsub.f32 %v12508_v21, %v23403_v30  ;;  %v12490_v22 = vld [vmem:[#allocation2 + $0x8] sm:$0xff]  ;;  %v23468_v10 = vand.u32 4294901760, %v13008_v28  ;;  %v23475_v11 = vand.u32 4294901760, %v13007_v36  ;;  %v23483_v19 = vand.u32 4294901760, %v13006_v27 }
0x1448   : > { %19656 = vmatpush3.msra.mxu0 %v23397_v16  ;;  %v12622_v37 = vand.u32 4294901760, %v23412_v17  ;;  %v23429_v42 = vsub.f32 %v12514_v31, %v23414_v32  ;;  %v12629_v44 = vand.u32 4294901760, %v23417_v18  ;;  %v12636_v45 = vand.u32 4294901760, %v23420_v34 }
0x1449   : > { %19657 = vmatprep.subr.mxu0 %v21540_v14  ;;  %v12643_v53 = vand.u32 4294901760, %v23424_v35  ;;  %v12492_v9 = vmul.f32 %v17993_v26, %v12490_v22  ;;  %v12489_v12 = vld [vmem:[#allocation2] sm:$0xff]  ;;  %v23481_v43 = vsub.f32 %v13008_v28, %v23468_v10  ;;  %v23492_v39 = vsub.f32 %v13007_v36, %v23475_v11 }
0x144a   : > { %19658 = vmatpush3.msra.mxu0 %v23399_v20  ;;  %v12623_v54 = vsub.f32 %v23412_v17, %v12622_v37  ;;  %v12587_v58 = vand.u32 4294901760, %v23429_v42  ;;  %v12630_v8 = vsub.f32 %v23417_v18, %v12629_v44  ;;  %v12637_v0 = vsub.f32 %v23420_v34, %v12636_v45 }
0x144b   : > { %19659 = vmatprep.subr.mxu0 %v21540_v14  ;;  %v12644_v51 = vsub.f32 %v23424_v35, %v12643_v53  ;;  %v12500_v55 = vsel %vm2766_vm2, %v12492_v9, 0.0  ;;  %v12491_v60 = vmul.f32 %v17993_v26, %v12489_v12  ;;  %v23494_v40 = vand.u32 4294901760, %v13005_v23 }
0x144c   : > { %19660 = vmatpush3.msra.mxu0 %v23403_v30  ;;  %v12624_v25 = vand.u32 4294901760, %v12623_v54  ;;  %v12588_v46 = vsub.f32 %v23429_v42, %v12587_v58  ;;  %v12631_v47 = vand.u32 4294901760, %v12630_v8  ;;  %v12638_v63 = vand.u32 4294901760, %v12637_v0 }
0x144d   : > { %19675 = vmatprep.subr.mxu0 %v21540_v14  ;;  %v12645_v24 = vand.u32 4294901760, %v12644_v51  ;;  %v12501_v6 = vrot.slane %v12500_v55, 4  ;;  %v12493_v38 = vsel %vm2766_vm2, %v12491_v60, 0.0  ;;  %v13118_v48 = vand.u32 4294901760, %v23481_v43 }
0x144e   : > { %19665 = vmatpush3.msra.mxu1 %v12624_v25  ;;  %v12589_v62 = vand.u32 4294901760, %v12588_v46  ;;  %v23503_v49 = vsub.f32 %v13006_v27, %v23483_v19  ;;  %v12494_v57 = vrot.slane %v12493_v38, 4  ;;  %v13125_v59 = vand.u32 4294901760, %v23492_v39 }
0x144f   : > { %19666 = vmatprep.subr.mxu1 %v21540_v14  ;;  %v12502_v29 = vadd.f32 %v12501_v6, %v12500_v55  ;;  %v23513_v1 = vsub.f32 %v13005_v23, %v23494_v40  ;;  %v13119_v52 = vsub.f32 %v23481_v43, %v13118_v48 }
0x1450   : > { %19662 = vmatmul.mubr.f32.vlgmr.msra.gmra.mxu0 %v12589_v62  ;;  %19667 = vmatpush3.msra.mxu1 %v12631_v47  ;;  %v13132_v2 = vand.u32 4294901760, %v23503_v49  ;;  %v12495_v61 = vadd.f32 %v12494_v57, %v12493_v38  ;;  %v13001_v47 = vld [vmem:[%s24714_s10] sm:$0xff]  ;;  %v13987_v38 = vld [vmem:[#allocation22 + $0x10] sm:$0xff] }
0x1451   : > { %19676 = vmatpush3.msra.mxu0 %v23412_v17  ;;  %19668 = vmatprep.subr.mxu1 %v21540_v14  ;;  %v12503_v13 = vrot.slane %v12502_v29, 2  ;;  %v13139_v21 = vand.u32 4294901760, %v23513_v1  ;;  %v13985_v57 = vld [vmem:[#allocation22] sm:$0xff] }
0x1452   : > { %19677 = vmatprep.subr.mxu0 %v21540_v14  ;;  %19669 = vmatpush3.msra.mxu1 %v12638_v63  ;;  %v13133_v31 = vsub.f32 %v23503_v49, %v13132_v2  ;;  %v12496_v17 = vrot.slane %v12495_v61, 2  ;;  %v23616_v63 = vand.u32 4294901760, %v13001_v47 }
0x1453   : > { %19678 = vmatpush3.msra.mxu0 %v23417_v18  ;;  %19670 = vmatprep.subr.mxu1 %v21540_v14  ;;  %v12504_v33 = vadd.f32 %v12503_v13, %v12502_v29 }
0x1454   : > { %19679 = vmatprep.subr.mxu0 %v21540_v14  ;;  %19671 = vmatpush3.msra.mxu1 %v12645_v24  ;;  %v23637_v9 = vsub.f32 %v13001_v47, %v23616_v63 }
0x1455   : > { %19680 = vmatpush3.msra.mxu0 %v23420_v34  ;;  %19673 = vmatmul.mubr.f32.vlgmr.msra.gmra.mxu1 %v23414_v32  ;;  %v12505_v7 = vrot.slane %v12504_v33, 1  ;;  %v13140_v34 = vsub.f32 %v23513_v1, %v13139_v21 }
0x1456   : > { %19681 = vmatprep.subr.mxu0 %v21540_v14  ;;  %19686 = vmatprep.subr.mxu1 %v21540_v14  ;;  %v13627_v36 = vand.u32 4294901760, %v23637_v9 }
0x1457   : > { %19682 = vmatpush3.msra.mxu0 %v23424_v35  ;;  %19687 = vmatpush3.msra.mxu1 %v23395_v5  ;;  %v12506_v56 = vadd.f32 %v12505_v7, %v12504_v33  ;;  %v13134_v35 = vand.u32 4294901760, %v13133_v31  ;;  %v13986_v7 = vld [vmem:[#allocation22 + $0x8] sm:$0xff] }
0x1458   : > { %19683 = vmatprep.mubr.msk.f32.mxu0 %vm21541_vm9, %v21540_v14  ;;  %19688 = vmatprep.subr.mxu1 %v21540_v14 }
0x1459   : > { %19697 = vmatprep.subr.mxu0 %v21540_v14  ;;  %19684 = vmatmul.mubr.f32.vlgmr.msra.gmra.mxu0 %v23429_v42  ;;  %v13010_v41 = vsel %vm2766_vm2, %v12506_v56, 0  ;;  %v13141_v42 = vand.u32 4294901760, %v13140_v34  ;;  %v23751_v56 = vand.u32 4294901760, %v13986_v7 }
0x145a   : > { %19689 = vmatpush3.msra.mxu1 %v23397_v16  ;;  %19698 = vmatpush3.msra.mxu0 %v12622_v37  ;;  %v23520_v50 = vand.u32 4294901760, %v13010_v41  ;;  %v12497_v37 = vadd.f32 %v12496_v17, %v12495_v61 }
0x145b   : > { %19690 = vmatprep.subr.mxu1 %v21540_v14  ;;  %19699 = vmatprep.subr.mxu0 %v21540_v14 }
0x145c   : > { %19691 = vmatpush3.msra.mxu1 %v23399_v20  ;;  %19700 = vmatpush3.msra.mxu0 %v12629_v44  ;;  %v23532_v3 = vsub.f32 %v13010_v41, %v23520_v50  ;;  %v13004_v44 = vld [vmem:[%s24714_s10 + $0x18] sm:$0xff]  ;;  %v23762_v41 = vsub.f32 %v13986_v7, %v23751_v56 }
0x145d   : > { %19692 = vmatprep.subr.mxu1 %v21540_v14  ;;  %19701 = vmatprep.subr.mxu0 %v21540_v14  ;;  %v23583_v54 = vand.u32 4294901760, %v13004_v44 }
0x145e   : > { %19693 = vmatpush3.msra.mxu1 %v23403_v30  ;;  %19694 = vmatprep.mubr.msk.f32.mxu1 %vm21541_vm9, %v21540_v14  ;;  %v23543_v15 = vand.u32 4294901760, %v23532_v3 }
0x145f   : > { %19702 = vmatpush3.msra.mxu0 %v12636_v45  ;;  %19695 = vmatmul.mubr.f32.vlgmr.msra.gmra.mxu1 %v12587_v58  ;;  %v13003_v45 = vld [vmem:[%s24714_s10 + $0x10] sm:$0xff]  ;;  %v13002_v58 = vld [vmem:[%s24714_s10 + $0x8] sm:$0xff]  ;;  %v23598_v25 = vsub.f32 %v13004_v44, %v23583_v54 }
0x1460   : > { %19703 = vmatprep.subr.mxu0 %v21540_v14  ;;  %19708 = vmatprep.subr.mxu1 %v21540_v14  ;;  %v13084_v18 = vsub.f32 %v23532_v3, %v23543_v15  ;;  %v23590_v8 = vand.u32 4294901760, %v13003_v45  ;;  %v23600_v46 = vand.u32 4294901760, %v13002_v58 }
0x1461   : > { %19704 = vmatpush3.msra.mxu0 %v12643_v53  ;;  %19705 = vmatprep.mubr.msk.f32.mxu0 %vm21541_vm9, %v21540_v14  ;;  %v13606_v4 = vand.u32 4294901760, %v23598_v25 }
0x1462   : > { %19709 = vmatpush3.msra.mxu1 %v23395_v5  ;;  %19706 = vmatmul.mubr.f32.vlgmr.msra.gmra.mxu0 %v23414_v32  ;;  %v13126_v5 = vsub.f32 %v23492_v39, %v13125_v59  ;;  %v23609_v51 = vsub.f32 %v13003_v45, %v23590_v8  ;;  %v23623_v22 = vsub.f32 %v13002_v58, %v23600_v46 }
0x1463   : > { %19710 = vmatprep.subr.mxu1 %v21540_v14  ;;  %19716 = vmatprep.mubr.msk.f32.mxu1 %vm21541_vm9, %v21540_v14  ;;  %v13607_v28 = vsub.f32 %v23598_v25, %v13606_v4 }
0x1464   : > { %19711 = vmatpush3.msra.mxu1 %v23397_v16  ;;  %19719 = vmatprep.subr.mxu0 %v21540_v14  ;;  %v13120_v16 = vand.u32 4294901760, %v13119_v52  ;;  %v13613_v24 = vand.u32 4294901760, %v23609_v51  ;;  %v13620_v55 = vand.u32 4294901760, %v23623_v22  ;;  %v23764_v52 = vand.u32 4294901760, %v13985_v57 }
0x1465   : > { %19712 = vmatprep.subr.mxu1 %v21540_v14  ;;  %19720 = vmatpush3.msra.mxu0 %v23468_v10 }
0x1466   : > { %19713 = vmatpush3.msra.mxu1 %v23399_v20  ;;  %19721 = vmatprep.subr.mxu0 %v21540_v14  ;;  %v13127_v20 = vand.u32 4294901760, %v13126_v5  ;;  %v13614_v6 = vsub.f32 %v23609_v51, %v13613_v24  ;;  %v13621_v29 = vsub.f32 %v23623_v22, %v13620_v55  ;;  %v14112_v5 = vand.u32 4294901760, %v23762_v41 }
0x1467   : > { %19714 = vmatprep.subr.mxu1 %v21540_v14  ;;  %19722 = vmatpush3.msra.mxu0 %v23475_v11 }
0x1468   : > { %19715 = vmatpush3.msra.mxu1 %v23403_v30  ;;  %19723 = vmatprep.subr.mxu0 %v21540_v14  ;;  %v23564_v30 = vand.u32 4294901760, %v13084_v18  ;;  %v13615_v27 = vand.u32 4294901760, %v13614_v6  ;;  %v13622_v13 = vand.u32 4294901760, %v13621_v29  ;;  %v14113_v31 = vsub.f32 %v23762_v41, %v14112_v5 }
0x1469   : > { %19717 = vmatmul.mubr.f32.vlgmr.msra.gmra.mxu1 %v23414_v32  ;;  %19730 = vmatprep.subr.mxu1 %v21540_v14  ;;  %v12498_v32 = vrot.slane %v12497_v37, 1 }
0x146a   : > { %19731 = vmatpush3.msra.mxu1 %v13120_v16  ;;  %19724 = vmatpush3.msra.mxu0 %v23483_v19  ;;  %v14114_v18 = vand.u32 4294901760, %v14113_v31 }
0x146b   : > { %19732 = vmatprep.subr.mxu1 %v21540_v14  ;;  %19725 = vmatprep.subr.mxu0 %v21540_v14  ;;  %v12499_v53 = vadd.f32 %v12498_v32, %v12497_v37  ;;  %v12512_v32 = vld [vmem:[#allocation19] sm:$0x1] }
0x146c   : > { %19733 = vmatpush3.msra.mxu1 %v13127_v20  ;;  %19726 = vmatpush3.msra.mxu0 %v23494_v40 }
0x146d   : > { %19734 = vmatprep.subr.mxu1 %v21540_v14  ;;  %19727 = vmatprep.mubr.msk.f32.mxu0 %vm21541_vm9, %v21540_v14  ;;  %v13498_v0 = vsel %vm2766_vm2, %v12499_v53, 0 }
0x146e   : > { %19735 = vmatpush3.msra.mxu1 %v13134_v35  ;;  %19741 = vmatprep.subr.mxu0 %v21540_v14  ;;  %v23611_v62 = vand.u32 4294901760, %v13498_v0 }
0x146f   : > { %19736 = vmatprep.subr.mxu1 %v21540_v14  ;;  %19728 = vmatmul.mubr.f32.vlgmr.msra.gmra.mxu0 %v23564_v30 }
0x1470   : > { %19737 = vmatpush3.msra.mxu1 %v13141_v42  ;;  %19742 = vmatpush3.msra.mxu0 %v23481_v43  ;;  %v23632_v26 = vsub.f32 %v13498_v0, %v23611_v62 }
0x1471   : > { %19738 = vmatprep.mubr.msk.f32.mxu1 %vm21541_vm9, %v21540_v14  ;;  %19743 = vmatprep.subr.mxu0 %v21540_v14 }
0x1472   : > { %19752 = vmatprep.subr.mxu1 %v21540_v14  ;;  %19739 = vmatmul.mubr.f32.vlgmr.msra.gmra.mxu1 %v23520_v50  ;;  %v23655_v12 = vand.u32 4294901760, %v23632_v26 }
0x1473   : > { %19744 = vmatpush3.msra.mxu0 %v23492_v39  ;;  %19753 = vmatpush3.msra.mxu1 %v23468_v10 }
0x1474   : > { %19745 = vmatprep.subr.mxu0 %v21540_v14  ;;  %19754 = vmatprep.subr.mxu1 %v21540_v14  ;;  %v13572_v60 = vsub.f32 %v23632_v26, %v23655_v12 }
0x1475   : > { %19746 = vmatpush3.msra.mxu0 %v23503_v49  ;;  %19755 = vmatpush3.msra.mxu1 %v23475_v11 }
0x1476   : > { %19747 = vmatprep.subr.mxu0 %v21540_v14  ;;  %19756 = vmatprep.subr.mxu1 %v21540_v14  ;;  %v23682_v23 = vand.u32 4294901760, %v13572_v60 }
0x1477   : > { %19748 = vmatpush3.msra.mxu0 %v23513_v1  ;;  %19757 = vmatpush3.msra.mxu1 %v23483_v19 }
0x1478   : > { %19749 = vmatprep.mubr.msk.f32.mxu0 %vm21541_vm9, %v21540_v14  ;;  %19758 = vmatprep.subr.mxu1 %v21540_v14 }
0x1479   : > { %19763 = vmatprep.subr.mxu0 %v21540_v14  ;;  %19750 = vmatmul.mubr.f32.vlgmr.msra.gmra.mxu0 %v23532_v3 }
0x147a   : > { %19759 = vmatpush3.msra.mxu1 %v23494_v40  ;;  %19764 = vmatpush3.msra.mxu0 %v13118_v48 }
0x147b   : > { %19760 = vmatprep.mubr.msk.f32.mxu1 %vm21541_vm9, %v21540_v14  ;;  %19765 = vmatprep.subr.mxu0 %v21540_v14 }
0x147c   : > { %19774 = vmatprep.subr.mxu1 %v21540_v14  ;;  %19761 = vmatmul.mubr.f32.vlgmr.msra.gmra.mxu1 %v23543_v15 }
0x147d   : > { %19766 = vmatpush3.msra.mxu0 %v13125_v59  ;;  %19775 = vmatpush3.msra.mxu1 %v23468_v10  ;;  %v13608_v10 = vand.u32 4294901760, %v13607_v28 }
0x147e   : > { %19767 = vmatprep.subr.mxu0 %v21540_v14  ;;  %19776 = vmatprep.subr.mxu1 %v21540_v14 }
0x147f   : > { %19768 = vmatpush3.msra.mxu0 %v13132_v2  ;;  %19777 = vmatpush3.msra.mxu1 %v23475_v11  ;;  %v13628_v11 = vsub.f32 %v23637_v9, %v13627_v36 }
0x1480   : > { %19769 = vmatprep.subr.mxu0 %v21540_v14  ;;  %19778 = vmatprep.subr.mxu1 %v21540_v14 }
0x1481   : > { %19770 = vmatpush3.msra.mxu0 %v13139_v21  ;;  %19779 = vmatpush3.msra.mxu1 %v23483_v19  ;;  %v13629_v43 = vand.u32 4294901760, %v13628_v11  ;;  %v13988_v19 = vld [vmem:[#allocation22 + $0x18] sm:$0xff]  ;;  %v23774_v21 = vsub.f32 %v13985_v57, %v23764_v52 }
0x1482   : > { %19771 = vmatprep.mubr.msk.f32.mxu0 %vm21541_vm9, %v21540_v14  ;;  %19780 = vmatprep.subr.mxu1 %v21540_v14  ;;  %v23729_v33 = vand.u32 4294901760, %v13988_v19 }
0x1483   : > { %19785 = vmatprep.subr.mxu0 %v21540_v14  ;;  %19772 = vmatmul.mubr.f32.vlgmr.msra.gmra.mxu0 %v23520_v50  ;;  %v14119_v17 = vand.u32 4294901760, %v23774_v21 }
0x1484   : > { %19781 = vmatpush3.msra.mxu1 %v23494_v40  ;;  %19786 = vmatpush3.msra.mxu0 %v23583_v54  ;;  %v23738_v39 = vsub.f32 %v13988_v19, %v23729_v33  ;;  %v23740_v40 = vand.u32 4294901760, %v13987_v38 }
0x1485   : > { %19782 = vmatprep.mubr.msk.f32.mxu1 %vm21541_vm9, %v21540_v14  ;;  %19787 = vmatprep.subr.mxu0 %v21540_v14  ;;  %v14120_v20 = vsub.f32 %v23774_v21, %v14119_v17 }
0x1486   : > { %19796 = vmatprep.subr.mxu1 %v21540_v14  ;;  %19783 = vmatmul.mubr.f32.vlgmr.msra.gmra.mxu1 %v23520_v50  ;;  %v14098_v48 = vand.u32 4294901760, %v23738_v39  ;;  %v23749_v49 = vsub.f32 %v13987_v38, %v23740_v40 }
0x1487   : > { %19788 = vmatpush3.msra.mxu0 %v23590_v8  ;;  %19797 = vmatpush3.msra.mxu1 %v13608_v10  ;;  %v14121_v34 = vand.u32 4294901760, %v14120_v20 }
0x1488   : > { %19789 = vmatprep.subr.mxu0 %v21540_v14  ;;  %19798 = vmatprep.subr.mxu1 %v21540_v14  ;;  %v14099_v59 = vsub.f32 %v23738_v39, %v14098_v48  ;;  %v14105_v1 = vand.u32 4294901760, %v23749_v49 }
0x1489   : > { %19790 = vmatpush3.msra.mxu0 %v23600_v46  ;;  %19799 = vmatpush3.msra.mxu1 %v13615_v27 }
0x148a   : > { %19791 = vmatprep.subr.mxu0 %v21540_v14  ;;  %19800 = vmatprep.subr.mxu1 %v21540_v14  ;;  %v14100_v2 = vand.u32 4294901760, %v14099_v59  ;;  %v14106_v61 = vsub.f32 %v23749_v49, %v14105_v1 }
0x148b   : > { %19792 = vmatpush3.msra.mxu0 %v23616_v63  ;;  %19801 = vmatpush3.msra.mxu1 %v13622_v13 }
0x148c   : > { %19793 = vmatprep.mubr.msk.f32.mxu0 %vm21541_vm9, %v21540_v14  ;;  %19802 = vmatprep.subr.mxu1 %v21540_v14  ;;  %v14107_v16 = vand.u32 4294901760, %v14106_v61 }
0x148d   : > { %19807 = vmatprep.subr.mxu0 %v21540_v14  ;;  %19794 = vmatmul.mubr.f32.vlgmr.msra.gmra.mxu0 %v23682_v23 }
0x148e   : > { %19803 = vmatpush3.msra.mxu1 %v13629_v43  ;;  %19808 = vmatpush3.msra.mxu0 %v23598_v25 }
0x148f   : > { %19804 = vmatprep.mubr.msk.f32.mxu1 %vm21541_vm9, %v21540_v14  ;;  %19809 = vmatprep.subr.mxu0 %v21540_v14 }
0x1490   : > { %19818 = vmatprep.subr.mxu1 %v21540_v14  ;;  %19805 = vmatmul.mubr.f32.vlgmr.msra.gmra.mxu1 %v23611_v62 }
0x1491   : > { %19810 = vmatpush3.msra.mxu0 %v23609_v51  ;;  %19819 = vmatpush3.msra.mxu1 %v23583_v54 }
0x1492   : > { %19811 = vmatprep.subr.mxu0 %v21540_v14  ;;  %19820 = vmatprep.subr.mxu1 %v21540_v14 }
0x1493   : > { %19812 = vmatpush3.msra.mxu0 %v23623_v22  ;;  %19821 = vmatpush3.msra.mxu1 %v23590_v8 }
0x1494   : > { %19813 = vmatprep.subr.mxu0 %v21540_v14  ;;  %19822 = vmatprep.subr.mxu1 %v21540_v14 }
0x1495   : > { %19814 = vmatpush3.msra.mxu0 %v23637_v9  ;;  %19823 = vmatpush3.msra.mxu1 %v23600_v46 }
0x1496   : > { %19815 = vmatprep.mubr.msk.f32.mxu0 %vm21541_vm9, %v21540_v14  ;;  %19824 = vmatprep.subr.mxu1 %v21540_v14 }
0x1497   : > { %19829 = vmatprep.subr.mxu0 %v21540_v14  ;;  %19816 = vmatmul.mubr.f32.vlgmr.msra.gmra.mxu0 %v23632_v26 }
0x1498   : > { %19825 = vmatpush3.msra.mxu1 %v23616_v63  ;;  %19830 = vmatpush3.msra.mxu0 %v13606_v4 }
0x1499   : > { %19826 = vmatprep.mubr.msk.f32.mxu1 %vm21541_vm9, %v21540_v14  ;;  %19831 = vmatprep.subr.mxu0 %v21540_v14 }
0x149a   : > { %19840 = vmatprep.subr.mxu1 %v21540_v14  ;;  %19827 = vmatmul.mubr.f32.vlgmr.msra.gmra.mxu1 %v23655_v12 }
0x149b   : > { %19832 = vmatpush3.msra.mxu0 %v13613_v24  ;;  %19841 = vmatpush3.msra.mxu1 %v23583_v54 }
0x149c   : > { %19833 = vmatprep.subr.mxu0 %v21540_v14  ;;  %19842 = vmatprep.subr.mxu1 %v21540_v14 }
0x149d   : > { %19834 = vmatpush3.msra.mxu0 %v13620_v55  ;;  %19843 = vmatpush3.msra.mxu1 %v23590_v8 }
0x149e   : > { %19835 = vmatprep.subr.mxu0 %v21540_v14  ;;  %19844 = vmatprep.subr.mxu1 %v21540_v14 }
0x149f   : > { %19836 = vmatpush3.msra.mxu0 %v13627_v36  ;;  %19837 = vmatprep.mubr.msk.f32.mxu0 %vm21541_vm9, %v21540_v14 }
0x14a0   : > { %19845 = vmatpush3.msra.mxu1 %v23600_v46  ;;  %19838 = vmatmul.mubr.f32.vlgmr.msra.gmra.mxu0 %v23611_v62 }
0x14a1   : > { %19846 = vmatprep.subr.mxu1 %v21540_v14  ;;  %19848 = vmatprep.mubr.msk.f32.mxu1 %vm21541_vm9, %v21540_v14 }
0x14a2   : > { %19847 = vmatpush3.msra.mxu1 %v23616_v63  ;;  %19851 = vmatprep.subr.mxu0 %v21540_v14 }
0x14a3   : > { %19849 = vmatmul.mubr.f32.vlgmr.msra.gmra.mxu1 %v23611_v62  ;;  %19862 = vmatprep.subr.mxu1 %v21540_v14 }
0x14a4   : > { %19870 = vmatprep.mubr.msk.f32.mxu1 %vm21541_vm9, %v21540_v14  ;;  %19852 = vmatpush3.msra.mxu0 %v23729_v33 }
0x14a5   : > { %19853 = vmatprep.subr.mxu0 %v21540_v14  ;;  %19859 = vmatprep.mubr.msk.f32.mxu0 %vm21541_vm9, %v21540_v14 }
0x14a6   : > { %19854 = vmatpush3.msra.mxu0 %v23740_v40  ;;  %19863 = vmatpush3.msra.mxu1 %v14100_v2 }
0x14a7   : > { %19855 = vmatprep.subr.mxu0 %v21540_v14  ;;  %19864 = vmatprep.subr.mxu1 %v21540_v14 }
0x14a8   : > { %19856 = vmatpush3.msra.mxu0 %v23751_v56  ;;  %19865 = vmatpush3.msra.mxu1 %v14107_v16 }
0x14a9   : > { %19857 = vmatprep.subr.mxu0 %v21540_v14  ;;  %19866 = vmatprep.subr.mxu1 %v21540_v14 }
0x14aa   : > { %19858 = vmatpush3.msra.mxu0 %v23764_v52  ;;  %19867 = vmatpush3.msra.mxu1 %v14114_v18 }
0x14ab   : > { %19873 = vmatprep.subr.mxu0 %v21540_v14  ;;  %19868 = vmatprep.subr.mxu1 %v21540_v14 }
0x14ac   : > { %19869 = vmatpush3.msra.mxu1 %v14121_v34 }
0x14ad   : > { %19884 = vmatprep.subr.mxu1 %v21540_v14 }
0x1510   : > { %v12591_v35 = vpop.f32.mrf.mxu0 }
0x1511   : > { %v12592_v53 = vadd.f32 %v12591_v35, %v12512_v32 }
0x1512   : > { %v19663_v37 = vpop.f32.mrf.mxu0 }
0x1515   : > { %v12682_v42 = vpop.f32.mrf.mxu1 }
0x1516   : > { %v12683_v58 = vadd.f32 %v12682_v42, %v12592_v53 }
0x1517   : > { %v19674_v44 = vpop.f32.mrf.mxu1 }
0x1519   : > { %v12762_v45 = vpop.f32.mrf.mxu0 }
0x151a   : > { %v12763_v25 = vadd.f32 %v12762_v45, %v12683_v58  ;;  %v14487_v45 = vld [vmem:[#allocation27 + $0x18] sm:$0xff] }
0x151b   : > { %v19685_v54 = vpop.f32.mrf.mxu0  ;;  %v23845_v53 = vand.u32 4294901760, %v14487_v45 }
0x151c   : > { %v14486_v54 = vld [vmem:[#allocation27 + $0x10] sm:$0xff] }
0x151d   : > { %v23848_v58 = vsub.f32 %v14487_v45, %v23845_v53 }
0x151f   : > { %v12839_v8 = vpop.f32.mrf.mxu1 }
0x1520   : > { %v12840_v47 = vadd.f32 %v12839_v8, %v12763_v25  ;;  %v23850_v8 = vand.u32 4294901760, %v14486_v54  ;;  %v14597_v25 = vand.u32 4294901760, %v23848_v58 }
0x1521   : > { %v19696_v0 = vpop.f32.mrf.mxu1 }
0x1522   : > { %v12922_v46 = vpop.f32.mrf.mxu0  ;;  %v14485_v0 = vld [vmem:[#allocation27 + $0x8] sm:$0xff] }
0x1523   : > { %v12923_v63 = vadd.f32 %v12922_v46, %v12840_v47  ;;  %v23856_v46 = vsub.f32 %v14486_v54, %v23850_v8  ;;  %v23858_v47 = vand.u32 4294901760, %v14485_v0 }
0x1524   : > { %v19707_v51 = vpop.f32.mrf.mxu0 }
0x1525   : > { %v14484_v51 = vld [vmem:[#allocation27] sm:$0xff] }
0x1529   : > { %v12997_v4 = vpop.f32.mrf.mxu1 }
0x152a   : > { %v12998_v22 = vadd.f32 %v12997_v4, %v12923_v63  ;;  %v14598_v63 = vsub.f32 %v23848_v58, %v14597_v25  ;;  %v14604_v4 = vand.u32 4294901760, %v23856_v46 }
0x152b   : > { %v19718_v24 = vpop.f32.mrf.mxu1 }
0x152c   : > { %v13990_v9 = vsel %vm2766_vm2, %v12998_v22, 0  ;;  %v23867_v22 = vsub.f32 %v14485_v0, %v23858_v47  ;;  %v23869_v24 = vand.u32 4294901760, %v14484_v51 }
0x152d   : > { %v14061_v28 = vand.u32 4294901760, %v13990_v9 }
0x152f   : > { %v14062_v55 = vsub.f32 %v13990_v9, %v14061_v28  ;;  %19871 = vmatmul.mubr.f32.vlgmr.msra.gmra.mxu1 %v14061_v28  ;;  %v13087_v6 = vpop.f32.mrf.mxu0  ;;  %v14599_v9 = vand.u32 4294901760, %v14598_v63 }
0x1530   : > { %19885 = vmatpush3.msra.mxu1 %v23729_v33  ;;  %19892 = vmatprep.mubr.msk.f32.mxu1 %vm21541_vm9, %v21540_v14 }
0x1531   : > { %v14063_v36 = vand.u32 4294901760, %v14062_v55  ;;  %19886 = vmatprep.subr.mxu1 %v21540_v14  ;;  %v19729_v10 = vpop.f32.mrf.mxu0 }
0x1532   : > { %19887 = vmatpush3.msra.mxu1 %v23740_v40  ;;  %v13178_v29 = vpop.f32.mrf.mxu1 }
0x1533   : > { %v14064_v27 = vsub.f32 %v14062_v55, %v14063_v36  ;;  %19888 = vmatprep.subr.mxu1 %v21540_v14  ;;  %v13179_v60 = vadd.f32 %v13178_v29, %v13087_v6  ;;  %v23878_v6 = vsub.f32 %v14484_v51, %v23869_v24 }
0x1534   : > { %19889 = vmatpush3.msra.mxu1 %v23751_v56  ;;  %v19740_v11 = vpop.f32.mrf.mxu1 }
0x1535   : > { %v14065_v13 = vand.u32 4294901760, %v14064_v27  ;;  %19890 = vmatprep.subr.mxu1 %v21540_v14  ;;  %v14618_v29 = vand.u32 4294901760, %v23878_v6 }
0x1536   : > { %19891 = vmatpush3.msra.mxu1 %v23764_v52 }
0x1537   : > { %19893 = vmatmul.mubr.f32.vlgmr.msra.gmra.mxu1 %v14063_v36  ;;  %19906 = vmatprep.subr.mxu1 %v21540_v14 }
0x1538   : > { %19860 = vmatmul.mubr.f32.vlgmr.msra.gmra.mxu0 %v14065_v13  ;;  %19907 = vmatpush3.msra.mxu1 %v23729_v33 }
0x1539   : > { %19874 = vmatpush3.msra.mxu0 %v23738_v39  ;;  %19908 = vmatprep.subr.mxu1 %v21540_v14  ;;  %v13258_v43 = vpop.f32.mrf.mxu0 }
0x153a   : > { %19875 = vmatprep.subr.mxu0 %v21540_v14  ;;  %19909 = vmatpush3.msra.mxu1 %v23740_v40  ;;  %v13259_v19 = vadd.f32 %v13258_v43, %v13179_v60  ;;  %v14619_v60 = vsub.f32 %v23878_v6, %v14618_v29 }
0x153b   : > { %19876 = vmatpush3.msra.mxu0 %v23749_v49  ;;  %19910 = vmatprep.subr.mxu1 %v21540_v14  ;;  %v19751_v38 = vpop.f32.mrf.mxu0 }
0x153c   : > { %19877 = vmatprep.subr.mxu0 %v21540_v14  ;;  %19911 = vmatpush3.msra.mxu1 %v23751_v56  ;;  %v13335_v33 = vpop.f32.mrf.mxu1  ;;  %v14620_v11 = vand.u32 4294901760, %v14619_v60 }
0x153d   : > { %19878 = vmatpush3.msra.mxu0 %v23762_v41  ;;  %19912 = vmatprep.subr.mxu1 %v21540_v14  ;;  %v13336_v7 = vadd.f32 %v13335_v33, %v13259_v19 }
0x153e   : > { %19879 = vmatprep.subr.mxu0 %v21540_v14  ;;  %19881 = vmatprep.mubr.msk.f32.mxu0 %vm21541_vm9, %v21540_v14  ;;  %v19762_v40 = vpop.f32.mrf.mxu1 }
0x153f   : > { %19880 = vmatpush3.msra.mxu0 %v23774_v21  ;;  %19913 = vmatpush3.msra.mxu1 %v23764_v52 }
0x1540   : > { %19914 = vmatprep.mubr.msk.f32.mxu1 %vm21541_vm9, %v21540_v14  ;;  %19882 = vmatmul.mubr.f32.vlgmr.msra.gmra.mxu0 %v14062_v55  ;;  %v14611_v55 = vand.u32 4294901760, %v23867_v22 }
0x1541   : > { %19895 = vmatprep.subr.mxu0 %v21540_v14  ;;  %19915 = vmatmul.mubr.f32.vlgmr.msra.gmra.mxu1 %v14061_v28 }
0x1542   : > { %19896 = vmatpush3.msra.mxu0 %v14098_v48  ;;  %19903 = vmatprep.mubr.msk.f32.mxu0 %vm21541_vm9, %v21540_v14  ;;  %v14612_v10 = vsub.f32 %v23867_v22, %v14611_v55 }
0x1543   : > { %19897 = vmatprep.subr.mxu0 %v21540_v14  ;;  %v13418_v56 = vpop.f32.mrf.mxu0  ;;  %19928 = vmatprep.subr.mxu1 %v21540_v14 }
0x1544   : > { %19898 = vmatpush3.msra.mxu0 %v14105_v1  ;;  %v13419_v57 = vadd.f32 %v13418_v56, %v13336_v7  ;;  %19936 = vmatprep.mubr.msk.f32.mxu1 %vm21541_vm9, %v21540_v14  ;;  %v14613_v27 = vand.u32 4294901760, %v14612_v10 }
0x1545   : > { %19899 = vmatprep.subr.mxu0 %v21540_v14  ;;  %v19773_v59 = vpop.f32.mrf.mxu0  ;;  %19929 = vmatpush3.msra.mxu1 %v14599_v9 }
0x1546   : > { %19900 = vmatpush3.msra.mxu0 %v14112_v5  ;;  %v13493_v39 = vpop.f32.mrf.mxu1  ;;  %19930 = vmatprep.subr.mxu1 %v21540_v14 }
0x1547   : > { %19901 = vmatprep.subr.mxu0 %v21540_v14  ;;  %v13494_v48 = vadd.f32 %v13493_v39, %v13419_v57 }
0x1548   : > { %19902 = vmatpush3.msra.mxu0 %v14119_v17  ;;  %v19784_v52 = vpop.f32.mrf.mxu1 }
0x1549   : > { %19904 = vmatmul.mubr.f32.vlgmr.msra.gmra.mxu0 %v14061_v28  ;;  %19917 = vmatprep.subr.mxu0 %v21540_v14  ;;  %v14605_v28 = vsub.f32 %v23856_v46, %v14604_v4 }
0x154a   : > { %19925 = vmatprep.mubr.msk.f32.mxu0 %vm21541_vm9, %v21540_v14  ;;  %19918 = vmatpush3.msra.mxu0 %v23845_v53 }
0x154b   : > { %19919 = vmatprep.subr.mxu0 %v21540_v14  ;;  %v14606_v36 = vand.u32 4294901760, %v14605_v28 }
0x154c   : > { %19920 = vmatpush3.msra.mxu0 %v23850_v8 }
0x154d   : > { %v13575_v49 = vpop.f32.mrf.mxu0  ;;  %19921 = vmatprep.subr.mxu0 %v21540_v14  ;;  %19931 = vmatpush3.msra.mxu1 %v14606_v36 }
0x154e   : > { %v13576_v1 = vadd.f32 %v13575_v49, %v13494_v48  ;;  %19922 = vmatpush3.msra.mxu0 %v23858_v47  ;;  %19932 = vmatprep.subr.mxu1 %v21540_v14 }
0x154f   : > { %v19795_v2 = vpop.f32.mrf.mxu0  ;;  %19923 = vmatprep.subr.mxu0 %v21540_v14  ;;  %19933 = vmatpush3.msra.mxu1 %v14613_v27 }
0x1550   : > { %v13666_v61 = vpop.f32.mrf.mxu1  ;;  %19924 = vmatpush3.msra.mxu0 %v23869_v24  ;;  %19934 = vmatprep.subr.mxu1 %v21540_v14 }
0x1551   : > { %v13667_v41 = vadd.f32 %v13666_v61, %v13576_v1  ;;  %19939 = vmatprep.subr.mxu0 %v21540_v14  ;;  %19935 = vmatpush3.msra.mxu1 %v14620_v11 }
0x1552   : > { %v19806_v5 = vpop.f32.mrf.mxu1  ;;  %19950 = vmatprep.subr.mxu1 %v21540_v14 }
0x1557   : > { %v13746_v16 = vpop.f32.mrf.mxu0 }
0x1558   : > { %v13747_v31 = vadd.f32 %v13746_v16, %v13667_v41  ;;  %v14478_v41 = vld [vmem:[#allocation24] sm:$0x1] }
0x1559   : > { %v19817_v18 = vpop.f32.mrf.mxu0 }
0x155a   : > { %v13823_v20 = vpop.f32.mrf.mxu1  ;;  %v14483_v18 = vld [vmem:[#allocation25 + $0x18] sm:$0xff] }
0x155b   : > { %v13824_v34 = vadd.f32 %v13823_v20, %v13747_v31 }
0x155c   : > { %v19828_v21 = vpop.f32.mrf.mxu1 }
0x1560   : > { %v13906_v17 = vpop.f32.mrf.mxu0 }
0x1561   : > { %v13907_v35 = vadd.f32 %v13906_v17, %v13824_v34  ;;  %v14482_v34 = vld [vmem:[#allocation25 + $0x10] sm:$0xff]  ;;  %v23900_v17 = vand.u32 4294901760, %v14483_v18 }
0x1562   : > { %v19839_v37 = vpop.f32.mrf.mxu0 }
0x1563   : > { %v13981_v42 = vpop.f32.mrf.mxu1  ;;  %v23916_v45 = vsub.f32 %v14483_v18, %v23900_v17 }
0x1564   : > { %v13982_v32 = vadd.f32 %v13981_v42, %v13907_v35  ;;  %v14481_v35 = vld [vmem:[#allocation25 + $0x8] sm:$0xff]  ;;  %v23909_v42 = vand.u32 4294901760, %v14482_v34 }
0x1565   : > { %v19850_v44 = vpop.f32.mrf.mxu1  ;;  %v23918_v54 = vand.u32 4294901760, %v14481_v35  ;;  %v15082_v9 = vand.u32 4294901760, %v23916_v45 }
0x1566   : > { %v23925_v51 = vsub.f32 %v14482_v34, %v23909_v42  ;;  %v15461_v34 = vld [vmem:[%s24716_s22] sm:$0xff] }
0x1567   : > { %v23934_v28 = vsub.f32 %v14481_v35, %v23918_v54 }
0x1568   : > { %v15089_v36 = vand.u32 4294901760, %v23925_v51 }
0x1569   : > { %v15096_v27 = vand.u32 4294901760, %v23934_v28 }
0x156b   : > { %v15097_v11 = vsub.f32 %v23934_v28, %v15096_v27 }
0x15ef   : > { %v14158_v13 = vpop.f32.mrf.mxu1 }
0x15f1   : > { %v19872_v43 = vpop.f32.mrf.mxu1 }
0x15f7   : > { %v14315_v19 = vpop.f32.mrf.mxu1 }
0x15f8   : > { %v14067_v38 = vpop.f32.mrf.mxu0 }
0x15f9   : > { %v19894_v33 = vpop.f32.mrf.mxu1  ;;  %v14159_v57 = vadd.f32 %v14158_v13, %v14067_v38 }
0x15fa   : > { %v19861_v7 = vpop.f32.mrf.mxu0 }
0x1600   : > { %v14238_v40 = vpop.f32.mrf.mxu0 }
0x1601   : > { %v14473_v56 = vpop.f32.mrf.mxu1  ;;  %v14239_v48 = vadd.f32 %v14238_v40, %v14159_v57 }
0x1602   : > { %v19883_v59 = vpop.f32.mrf.mxu0 }
0x1603   : > { %v19916_v39 = vpop.f32.mrf.mxu1  ;;  %v14316_v52 = vadd.f32 %v14315_v19, %v14239_v48 }
0x1609   : > { %v14398_v49 = vpop.f32.mrf.mxu0 }
0x160a   : > { %v14399_v1 = vadd.f32 %v14398_v49, %v14316_v52 }
0x160b   : > { %v19905_v2 = vpop.f32.mrf.mxu0 }
0x160c   : > { %v14474_v61 = vadd.f32 %v14473_v56, %v14399_v1 }
0x160e   : > { %v14477_v5 = vadd.f32 %v14474_v61, %v13982_v32  ;;  %v14480_v32 = vld [vmem:[#allocation25] sm:$0xff]  ;;  %v15464_v61 = vld [vmem:[%s24715_s7 + $0x18] sm:$0xff] }
0x160f   : > { %v23927_v63 = vand.u32 4294901760, %v14480_v32 }
0x1610   : > { %v14479_v16 = vadd.f32 %v14478_v41, %v14477_v5  ;;  %v15463_v41 = vld [vmem:[%s24716_s22 + $0x10] sm:$0xff]  ;;  %v15462_v5 = vld [vmem:[%s24716_s22 + $0x8] sm:$0xff] }
0x1611   : > { %v23942_v10 = vsub.f32 %v14480_v32, %v23927_v63  ;;  %v24124_v18 = vand.u32 4294901760, %v15462_v5  ;;  %v24144_v32 = vand.u32 4294901760, %v15461_v34 }
0x1612   : > { %v14489_v31 = vsel %vm2766_vm2, %v14479_v16, 0  ;;  %v24115_v16 = vand.u32 4294901760, %v15463_v41 }
0x1613   : > { %v23894_v20 = vand.u32 4294901760, %v14489_v31  ;;  %v15103_v60 = vand.u32 4294901760, %v23942_v10 }
0x1615   : > { %v23897_v21 = vsub.f32 %v14489_v31, %v23894_v20  ;;  %19937 = vmatmul.mubr.f32.vlgmr.msra.gmra.mxu1 %v23894_v20  ;;  %v15104_v43 = vsub.f32 %v23942_v10, %v15103_v60 }
0x1616   : > { %19951 = vmatpush3.msra.mxu1 %v23845_v53  ;;  %19958 = vmatprep.mubr.msk.f32.mxu1 %vm21541_vm9, %v21540_v14 }
0x1617   : > { %19952 = vmatprep.subr.mxu1 %v21540_v14  ;;  %v23907_v37 = vand.u32 4294901760, %v23897_v21  ;;  %v15105_v19 = vand.u32 4294901760, %v15104_v43 }
0x1618   : > { %19953 = vmatpush3.msra.mxu1 %v23850_v8 }
0x1619   : > { %19954 = vmatprep.subr.mxu1 %v21540_v14  ;;  %v14563_v44 = vsub.f32 %v23897_v21, %v23907_v37 }
0x161a   : > { %19955 = vmatpush3.msra.mxu1 %v23858_v47 }
0x161b   : > { %19956 = vmatprep.subr.mxu1 %v21540_v14  ;;  %v23922_v0 = vand.u32 4294901760, %v14563_v44 }
0x161c   : > { %19957 = vmatpush3.msra.mxu1 %v23869_v24 }
0x161d   : > { %19959 = vmatmul.mubr.f32.vlgmr.msra.gmra.mxu1 %v23907_v37  ;;  %19972 = vmatprep.subr.mxu1 %v21540_v14 }
0x161e   : > { %19926 = vmatmul.mubr.f32.vlgmr.msra.gmra.mxu0 %v23922_v0  ;;  %19973 = vmatpush3.msra.mxu1 %v23845_v53  ;;  %v15083_v53 = vsub.f32 %v23916_v45, %v15082_v9 }
0x161f   : > { %19940 = vmatpush3.msra.mxu0 %v23848_v58  ;;  %19974 = vmatprep.subr.mxu1 %v21540_v14  ;;  %v15468_v58 = vld [vmem:[#allocation28 + $0x18] sm:$0xff] }
0x1620   : > { %19941 = vmatprep.subr.mxu0 %v21540_v14  ;;  %19975 = vmatpush3.msra.mxu1 %v23850_v8  ;;  %v15090_v8 = vsub.f32 %v23925_v51, %v15089_v36 }
0x1621   : > { %19942 = vmatpush3.msra.mxu0 %v23856_v46  ;;  %19976 = vmatprep.subr.mxu1 %v21540_v14  ;;  %v24002_v46 = vand.u32 4294901760, %v15468_v58 }
0x1622   : > { %19943 = vmatprep.subr.mxu0 %v21540_v14  ;;  %19977 = vmatpush3.msra.mxu1 %v23858_v47  ;;  %v15084_v47 = vand.u32 4294901760, %v15083_v53  ;;  %v15091_v13 = vand.u32 4294901760, %v15090_v8 }
0x1623   : > { %19944 = vmatpush3.msra.mxu0 %v23867_v22  ;;  %19978 = vmatprep.subr.mxu1 %v21540_v14 }
0x1624   : > { %19945 = vmatprep.subr.mxu0 %v21540_v14  ;;  %19947 = vmatprep.mubr.msk.f32.mxu0 %vm21541_vm9, %v21540_v14 }
0x1625   : > { %19946 = vmatpush3.msra.mxu0 %v23878_v6  ;;  %19979 = vmatpush3.msra.mxu1 %v23869_v24  ;;  %v15098_v24 = vand.u32 4294901760, %v15097_v11  ;;  %v24015_v6 = vsub.f32 %v15468_v58, %v24002_v46 }
0x1626   : > { %19980 = vmatprep.mubr.msk.f32.mxu1 %vm21541_vm9, %v21540_v14  ;;  %19948 = vmatmul.mubr.f32.vlgmr.msra.gmra.mxu0 %v23897_v21 }
0x1627   : > { %19961 = vmatprep.subr.mxu0 %v21540_v14  ;;  %19981 = vmatmul.mubr.f32.vlgmr.msra.gmra.mxu1 %v23894_v20  ;;  %v15575_v7 = vand.u32 4294901760, %v24015_v6 }
0x1628   : > { %19994 = vmatprep.subr.mxu1 %v21540_v14  ;;  %19962 = vmatpush3.msra.mxu0 %v14597_v25  ;;  %v15467_v25 = vld [vmem:[#allocation28 + $0x10] sm:$0xff] }
0x1629   : > { %19995 = vmatpush3.msra.mxu1 %v15084_v47  ;;  %19963 = vmatprep.subr.mxu0 %v21540_v14  ;;  %v24008_v22 = vand.u32 4294901760, %v15467_v25  ;;  %v16439_v47 = vld [vmem:[#allocation30] sm:$0xff] }
0x162a   : > { %19996 = vmatprep.subr.mxu1 %v21540_v14  ;;  %19964 = vmatpush3.msra.mxu0 %v14604_v4  ;;  %v15466_v4 = vld [vmem:[#allocation28 + $0x8] sm:$0xff] }
0x162b   : > { %19997 = vmatpush3.msra.mxu1 %v15091_v13  ;;  %19965 = vmatprep.subr.mxu0 %v21540_v14  ;;  %v24025_v38 = vsub.f32 %v15467_v25, %v24008_v22 }
0x162c   : > { %19998 = vmatprep.subr.mxu1 %v21540_v14  ;;  %19966 = vmatpush3.msra.mxu0 %v14611_v55  ;;  %v15465_v55 = vld [vmem:[#allocation28] sm:$0xff] }
0x162d   : > { %19999 = vmatpush3.msra.mxu1 %v15098_v24  ;;  %19967 = vmatprep.subr.mxu0 %v21540_v14  ;;  %v24027_v33 = vand.u32 4294901760, %v15465_v55  ;;  %v24294_v24 = vand.u32 4294901760, %v16439_v47 }
0x162e   : > { %20000 = vmatprep.subr.mxu1 %v21540_v14  ;;  %19968 = vmatpush3.msra.mxu0 %v14618_v29  ;;  %v24017_v29 = vand.u32 4294901760, %v15466_v4 }
0x162f   : > { %19969 = vmatprep.mubr.msk.f32.mxu0 %vm21541_vm9, %v21540_v14  ;;  %20001 = vmatpush3.msra.mxu1 %v15105_v19  ;;  %v24044_v56 = vsub.f32 %v15465_v55, %v24027_v33 }
0x1630   : > { %19970 = vmatmul.mubr.f32.vlgmr.msra.gmra.mxu0 %v23894_v20  ;;  %19983 = vmatprep.subr.mxu0 %v21540_v14  ;;  %v24036_v40 = vsub.f32 %v15466_v4, %v24017_v29 }
0x1631   : > { %20002 = vmatprep.mubr.msk.f32.mxu1 %vm21541_vm9, %v21540_v14  ;;  %20016 = vmatprep.subr.mxu1 %v21540_v14  ;;  %v15596_v39 = vand.u32 4294901760, %v24044_v56 }
0x1632   : > { %19984 = vmatpush3.msra.mxu0 %v23900_v17  ;;  %20003 = vmatmul.mubr.f32.vlgmr.msra.gmra.mxu1 %v23611_v62  ;;  %v15589_v57 = vand.u32 4294901760, %v24036_v40 }
0x1633   : > { %20017 = vmatpush3.msra.mxu1 %v23900_v17  ;;  %19985 = vmatprep.subr.mxu0 %v21540_v14  ;;  %v15597_v1 = vsub.f32 %v24044_v56, %v15596_v39 }
0x1634   : > { %20018 = vmatprep.subr.mxu1 %v21540_v14  ;;  %19986 = vmatpush3.msra.mxu0 %v23909_v42  ;;  %v15590_v52 = vsub.f32 %v24036_v40, %v15589_v57 }
0x1635   : > { %20019 = vmatpush3.msra.mxu1 %v23909_v42  ;;  %19987 = vmatprep.subr.mxu0 %v21540_v14  ;;  %v15598_v2 = vand.u32 4294901760, %v15597_v1 }
0x1636   : > { %20020 = vmatprep.subr.mxu1 %v21540_v14  ;;  %19988 = vmatpush3.msra.mxu0 %v23918_v54 }
0x1637   : > { %20021 = vmatpush3.msra.mxu1 %v23918_v54  ;;  %19989 = vmatprep.subr.mxu0 %v21540_v14 }
0x1638   : > { %20022 = vmatprep.subr.mxu1 %v21540_v14  ;;  %19990 = vmatpush3.msra.mxu0 %v23927_v63 }
0x1639   : > { %19991 = vmatprep.mubr.msk.f32.mxu0 %vm21541_vm9, %v21540_v14  ;;  %20023 = vmatpush3.msra.mxu1 %v23927_v63 }
0x163a   : > { %19992 = vmatmul.mubr.f32.vlgmr.msra.gmra.mxu0 %v23682_v23  ;;  %20005 = vmatprep.subr.mxu0 %v21540_v14  ;;  %v15582_v23 = vand.u32 4294901760, %v24025_v38 }
0x163b   : > { %20024 = vmatprep.mubr.msk.f32.mxu1 %vm21541_vm9, %v21540_v14  ;;  %20038 = vmatprep.subr.mxu1 %v21540_v14 }
0x163c   : > { %20006 = vmatpush3.msra.mxu0 %v23916_v45  ;;  %20025 = vmatmul.mubr.f32.vlgmr.msra.gmra.mxu1 %v23655_v12  ;;  %v15576_v12 = vsub.f32 %v24015_v6, %v15575_v7  ;;  %v15583_v59 = vsub.f32 %v24025_v38, %v15582_v23 }
0x163d   : > { %20039 = vmatpush3.msra.mxu1 %v23900_v17  ;;  %20007 = vmatprep.subr.mxu0 %v21540_v14  ;;  %v24134_v17 = vsub.f32 %v15463_v41, %v24115_v16 }
0x163e   : > { %20040 = vmatprep.subr.mxu1 %v21540_v14  ;;  %20008 = vmatpush3.msra.mxu0 %v23925_v51  ;;  %v15577_v48 = vand.u32 4294901760, %v15576_v12  ;;  %v15584_v49 = vand.u32 4294901760, %v15583_v59 }
0x163f   : > { %20041 = vmatpush3.msra.mxu1 %v23909_v42  ;;  %20009 = vmatprep.subr.mxu0 %v21540_v14  ;;  %v24142_v42 = vsub.f32 %v15462_v5, %v24124_v18 }
0x1640   : > { %20042 = vmatprep.subr.mxu1 %v21540_v14  ;;  %20010 = vmatpush3.msra.mxu0 %v23934_v28 }
0x1641   : > { %20043 = vmatpush3.msra.mxu1 %v23918_v54  ;;  %20011 = vmatprep.subr.mxu0 %v21540_v14  ;;  %v16074_v45 = vand.u32 4294901760, %v24142_v42  ;;  %v24160_v54 = vsub.f32 %v15461_v34, %v24144_v32 }
0x1642   : > { %20044 = vmatprep.subr.mxu1 %v21540_v14  ;;  %20012 = vmatpush3.msra.mxu0 %v23942_v10 }
0x1643   : > { %20013 = vmatprep.mubr.msk.f32.mxu0 %vm21541_vm9, %v21540_v14  ;;  %20045 = vmatpush3.msra.mxu1 %v23927_v63  ;;  %v16075_v63 = vsub.f32 %v24142_v42, %v16074_v45 }
0x1644   : > { %20014 = vmatmul.mubr.f32.vlgmr.msra.gmra.mxu0 %v23632_v26  ;;  %20027 = vmatprep.subr.mxu0 %v21540_v14  ;;  %v15591_v26 = vand.u32 4294901760, %v15590_v52 }
0x1645   : > { %20046 = vmatprep.mubr.msk.f32.mxu1 %vm21541_vm9, %v21540_v14  ;;  %20060 = vmatprep.subr.mxu1 %v21540_v14 }
0x1646   : > { %20028 = vmatpush3.msra.mxu0 %v15082_v9  ;;  %20047 = vmatmul.mubr.f32.vlgmr.msra.gmra.mxu1 %v23611_v62  ;;  %v16081_v9 = vand.u32 4294901760, %v24160_v54 }
0x1647   : > { %20061 = vmatpush3.msra.mxu1 %v15577_v48  ;;  %20029 = vmatprep.subr.mxu0 %v21540_v14 }
0x1648   : > { %20062 = vmatprep.subr.mxu1 %v21540_v14  ;;  %20030 = vmatpush3.msra.mxu0 %v15089_v36  ;;  %v16082_v36 = vsub.f32 %v24160_v54, %v16081_v9 }
0x1649   : > { %20063 = vmatpush3.msra.mxu1 %v15584_v49  ;;  %20031 = vmatprep.subr.mxu0 %v21540_v14 }
0x164a   : > { %20064 = vmatprep.subr.mxu1 %v21540_v14  ;;  %20032 = vmatpush3.msra.mxu0 %v15096_v27  ;;  %v16083_v10 = vand.u32 4294901760, %v16082_v36 }
0x164b   : > { %20065 = vmatpush3.msra.mxu1 %v15591_v26  ;;  %20033 = vmatprep.subr.mxu0 %v21540_v14 }
0x164c   : > { %20066 = vmatprep.subr.mxu1 %v21540_v14  ;;  %20034 = vmatpush3.msra.mxu0 %v15103_v60 }
0x164d   : > { %20035 = vmatprep.mubr.msk.f32.mxu0 %vm21541_vm9, %v21540_v14  ;;  %20067 = vmatpush3.msra.mxu1 %v15598_v2 }
0x164e   : > { %20068 = vmatprep.mubr.msk.f32.mxu1 %vm21541_vm9, %v21540_v14  ;;  %20036 = vmatmul.mubr.f32.vlgmr.msra.gmra.mxu0 %v23611_v62  ;;  %v24108_v62 = vand.u32 4294901760, %v15464_v61 }
0x164f   : > { %20049 = vmatprep.subr.mxu0 %v21540_v14  ;;  %20069 = vmatmul.mubr.f32.vlgmr.msra.gmra.mxu1 %v23894_v20 }
0x1650   : > { %20082 = vmatprep.subr.mxu1 %v21540_v14  ;;  %20050 = vmatpush3.msra.mxu0 %v24002_v46  ;;  %v24122_v31 = vsub.f32 %v15464_v61, %v24108_v62 }
0x1651   : > { %20083 = vmatpush3.msra.mxu1 %v24002_v46  ;;  %20051 = vmatprep.subr.mxu0 %v21540_v14 }
0x1652   : > { %20084 = vmatprep.subr.mxu1 %v21540_v14  ;;  %20052 = vmatpush3.msra.mxu0 %v24008_v22  ;;  %v16060_v35 = vand.u32 4294901760, %v24122_v31 }
0x1653   : > { %20085 = vmatpush3.msra.mxu1 %v24008_v22  ;;  %20053 = vmatprep.subr.mxu0 %v21540_v14 }
0x1654   : > { %20086 = vmatprep.subr.mxu1 %v21540_v14  ;;  %20054 = vmatpush3.msra.mxu0 %v24017_v29  ;;  %v16061_v44 = vsub.f32 %v24122_v31, %v16060_v35 }
0x1655   : > { %20087 = vmatpush3.msra.mxu1 %v24017_v29  ;;  %20055 = vmatprep.subr.mxu0 %v21540_v14 }
0x1656   : > { %20088 = vmatprep.subr.mxu1 %v21540_v14  ;;  %20056 = vmatpush3.msra.mxu0 %v24027_v33  ;;  %v16062_v51 = vand.u32 4294901760, %v16061_v44 }
0x1657   : > { %20057 = vmatprep.mubr.msk.f32.mxu0 %vm21541_vm9, %v21540_v14  ;;  %20089 = vmatpush3.msra.mxu1 %v24027_v33 }
0x1658   : > { %20090 = vmatprep.mubr.msk.f32.mxu1 %vm21541_vm9, %v21540_v14  ;;  %20058 = vmatmul.mubr.f32.vlgmr.msra.gmra.mxu0 %v23922_v0 }
0x1659   : > { %20071 = vmatprep.subr.mxu0 %v21540_v14  ;;  %20091 = vmatmul.mubr.f32.vlgmr.msra.gmra.mxu1 %v23907_v37  ;;  %v16067_v37 = vand.u32 4294901760, %v24134_v17 }
0x165a   : > { %20104 = vmatprep.subr.mxu1 %v21540_v14  ;;  %20072 = vmatpush3.msra.mxu0 %v24015_v6 }
0x165b   : > { %20105 = vmatpush3.msra.mxu1 %v24002_v46  ;;  %20073 = vmatprep.subr.mxu0 %v21540_v14  ;;  %v16068_v0 = vsub.f32 %v24134_v17, %v16067_v37  ;;  %v24303_v46 = vsub.f32 %v16439_v47, %v24294_v24 }
0x165c   : > { %20106 = vmatprep.subr.mxu1 %v21540_v14  ;;  %20074 = vmatpush3.msra.mxu0 %v24025_v38 }
0x165d   : > { %20107 = vmatpush3.msra.mxu1 %v24008_v22  ;;  %20075 = vmatprep.subr.mxu0 %v21540_v14  ;;  %v16069_v28 = vand.u32 4294901760, %v16068_v0  ;;  %v16574_v55 = vand.u32 4294901760, %v24303_v46 }
0x165e   : > { %20108 = vmatprep.subr.mxu1 %v21540_v14  ;;  %20076 = vmatpush3.msra.mxu0 %v24036_v40 }
0x165f   : > { %20109 = vmatpush3.msra.mxu1 %v24017_v29  ;;  %20077 = vmatprep.subr.mxu0 %v21540_v14  ;;  %v16575_v29 = vsub.f32 %v24303_v46, %v16574_v55 }
0x1660   : > { %20110 = vmatprep.subr.mxu1 %v21540_v14  ;;  %20078 = vmatpush3.msra.mxu0 %v24044_v56 }
0x1661   : > { %20079 = vmatprep.mubr.msk.f32.mxu0 %vm21541_vm9, %v21540_v14  ;;  %20111 = vmatpush3.msra.mxu1 %v24027_v33  ;;  %v16576_v38 = vand.u32 4294901760, %v16575_v29 }
0x1662   : > { %20112 = vmatprep.mubr.msk.f32.mxu1 %vm21541_vm9, %v21540_v14  ;;  %20080 = vmatmul.mubr.f32.vlgmr.msra.gmra.mxu0 %v23897_v21  ;;  %v16076_v21 = vand.u32 4294901760, %v16075_v63 }
0x1663   : > { %20093 = vmatprep.subr.mxu0 %v21540_v14  ;;  %20113 = vmatmul.mubr.f32.vlgmr.msra.gmra.mxu1 %v23894_v20 }
0x1664   : > { %20094 = vmatpush3.msra.mxu0 %v15575_v7  ;;  %20101 = vmatprep.mubr.msk.f32.mxu0 %vm21541_vm9, %v21540_v14 }
0x1665   : > { %20095 = vmatprep.subr.mxu0 %v21540_v14  ;;  %20126 = vmatprep.subr.mxu1 %v21540_v14 }
0x1666   : > { %20096 = vmatpush3.msra.mxu0 %v15582_v23  ;;  %20127 = vmatpush3.msra.mxu1 %v16062_v51 }
0x1667   : > { %20097 = vmatprep.subr.mxu0 %v21540_v14  ;;  %20128 = vmatprep.subr.mxu1 %v21540_v14 }
0x1668   : > { %20098 = vmatpush3.msra.mxu0 %v15589_v57  ;;  %20129 = vmatpush3.msra.mxu1 %v16069_v28 }
0x1669   : > { %20099 = vmatprep.subr.mxu0 %v21540_v14  ;;  %20130 = vmatprep.subr.mxu1 %v21540_v14 }
0x166a   : > { %20100 = vmatpush3.msra.mxu0 %v15596_v39  ;;  %20131 = vmatpush3.msra.mxu1 %v16076_v21 }
0x166b   : > { %20102 = vmatmul.mubr.f32.vlgmr.msra.gmra.mxu0 %v23894_v20  ;;  %20115 = vmatprep.subr.mxu0 %v21540_v14 }
0x166c   : > { %20116 = vmatpush3.msra.mxu0 %v24108_v62  ;;  %20132 = vmatprep.subr.mxu1 %v21540_v14 }
0x166d   : > { %20117 = vmatprep.subr.mxu0 %v21540_v14  ;;  %20123 = vmatprep.mubr.msk.f32.mxu0 %vm21541_vm9, %v21540_v14 }
0x166e   : > { %20118 = vmatpush3.msra.mxu0 %v24115_v16  ;;  %20133 = vmatpush3.msra.mxu1 %v16083_v10 }
0x166f   : > { %20119 = vmatprep.subr.mxu0 %v21540_v14  ;;  %20134 = vmatprep.mubr.msk.f32.mxu1 %vm21541_vm9, %v21540_v14 }
0x1670   : > { %20120 = vmatpush3.msra.mxu0 %v24124_v18  ;;  %20148 = vmatprep.subr.mxu1 %v21540_v14 }
0x1671   : > { %20121 = vmatprep.subr.mxu0 %v21540_v14  ;;  %20135 = vmatmul.mubr.f32.vlgmr.msra.gmra.mxu1 %v23520_v50 }
0x1672   : > { %20122 = vmatpush3.msra.mxu0 %v24144_v32  ;;  %20149 = vmatpush3.msra.mxu1 %v24108_v62 }
0x1673   : > { %20124 = vmatmul.mubr.f32.vlgmr.msra.gmra.mxu0 %v23564_v30  ;;  %20137 = vmatprep.subr.mxu0 %v21540_v14  ;;  %v16441_v30 = vld [vmem:[#allocation30 + $0x10] sm:$0xff] }
0x1674   : > { %20138 = vmatpush3.msra.mxu0 %v24122_v31  ;;  %20150 = vmatprep.subr.mxu1 %v21540_v14  ;;  %v24275_v53 = vand.u32 4294901760, %v16441_v30 }
0x1675   : > { %20139 = vmatprep.subr.mxu0 %v21540_v14  ;;  %20151 = vmatpush3.msra.mxu1 %v24115_v16 }
0x1676   : > { %20140 = vmatpush3.msra.mxu0 %v24134_v17  ;;  %20152 = vmatprep.subr.mxu1 %v21540_v14  ;;  %v24281_v8 = vsub.f32 %v16441_v30, %v24275_v53 }
0x1677   : > { %20141 = vmatprep.subr.mxu0 %v21540_v14  ;;  %20153 = vmatpush3.msra.mxu1 %v24124_v18 }
0x1678   : > { %20142 = vmatpush3.msra.mxu0 %v24142_v42  ;;  %20154 = vmatprep.subr.mxu1 %v21540_v14  ;;  %v16560_v13 = vand.u32 4294901760, %v24281_v8 }
0x1679   : > { %20143 = vmatprep.subr.mxu0 %v21540_v14  ;;  %20145 = vmatprep.mubr.msk.f32.mxu0 %vm21541_vm9, %v21540_v14 }
0x167a   : > { %20144 = vmatpush3.msra.mxu0 %v24160_v54  ;;  %20155 = vmatpush3.msra.mxu1 %v24144_v32  ;;  %v16561_v58 = vsub.f32 %v24281_v8, %v16560_v13 }
0x167b   : > { %20146 = vmatmul.mubr.f32.vlgmr.msra.gmra.mxu0 %v23532_v3  ;;  %20156 = vmatprep.mubr.msk.f32.mxu1 %vm21541_vm9, %v21540_v14  ;;  %v16442_v3 = vld [vmem:[#allocation30 + $0x18] sm:$0xff] }
0x167c   : > { %20159 = vmatprep.subr.mxu0 %v21540_v14  ;;  %20170 = vmatprep.subr.mxu1 %v21540_v14  ;;  %v16562_v4 = vand.u32 4294901760, %v16561_v58  ;;  %v16933_v58 = vld [vmem:[#allocation33 + $0x8] sm:$0xff] }
0x167d   : > { %20157 = vmatmul.mubr.f32.vlgmr.msra.gmra.mxu1 %v23543_v15  ;;  %20160 = vmatpush3.msra.mxu0 %v16060_v35  ;;  %v24270_v15 = vand.u32 4294901760, %v16442_v3 }
0x167e   : > { %20171 = vmatpush3.msra.mxu1 %v24108_v62  ;;  %20161 = vmatprep.subr.mxu0 %v21540_v14 }
0x167f   : > { %20172 = vmatprep.subr.mxu1 %v21540_v14  ;;  %20162 = vmatpush3.msra.mxu0 %v16067_v37  ;;  %v24273_v20 = vsub.f32 %v16442_v3, %v24270_v15  ;;  %v16935_v3 = vld [vmem:[#allocation33 + $0x18] sm:$0xff] }
0x1680   : > { %20173 = vmatpush3.msra.mxu1 %v24115_v16  ;;  %20163 = vmatprep.subr.mxu0 %v21540_v14  ;;  %v24328_v47 = vand.u32 4294901760, %v16935_v3 }
0x1681   : > { %20174 = vmatprep.subr.mxu1 %v21540_v14  ;;  %20164 = vmatpush3.msra.mxu0 %v16074_v45  ;;  %v16553_v27 = vand.u32 4294901760, %v24273_v20 }
0x1682   : > { %20175 = vmatpush3.msra.mxu1 %v24124_v18  ;;  %20165 = vmatprep.subr.mxu0 %v21540_v14 }
0x1683   : > { %20176 = vmatprep.subr.mxu1 %v21540_v14  ;;  %20166 = vmatpush3.msra.mxu0 %v16081_v9  ;;  %v16554_v11 = vsub.f32 %v24273_v20, %v16553_v27 }
0x1684   : > { %20167 = vmatprep.mubr.msk.f32.mxu0 %vm21541_vm9, %v21540_v14  ;;  %20177 = vmatpush3.msra.mxu1 %v24144_v32 }
0x1685   : > { %20178 = vmatprep.mubr.msk.f32.mxu1 %vm21541_vm9, %v21540_v14  ;;  %20168 = vmatmul.mubr.f32.vlgmr.msra.gmra.mxu0 %v23520_v50  ;;  %v16555_v19 = vand.u32 4294901760, %v16554_v11 }
0x1686   : > { %20179 = vmatmul.mubr.f32.vlgmr.msra.gmra.mxu1 %v23520_v50  ;;  %20192 = vmatprep.subr.mxu1 %v21540_v14  ;;  %v16440_v50 = vld [vmem:[#allocation30 + $0x8] sm:$0xff] }
0x1687   : > { %20181 = vmatprep.subr.mxu0 %v21540_v14  ;;  %20200 = vmatprep.mubr.msk.f32.mxu1 %vm21541_vm9, %v21540_v14  ;;  %v24283_v60 = vand.u32 4294901760, %v16440_v50 }
0x1688   : > { %20189 = vmatprep.mubr.msk.f32.mxu0 %vm21541_vm9, %v21540_v14  ;;  %20182 = vmatpush3.msra.mxu0 %v24270_v15 }
0x1689   : > { %20183 = vmatprep.subr.mxu0 %v21540_v14  ;;  %v24292_v43 = vsub.f32 %v16440_v50, %v24283_v60  ;;  %20193 = vmatpush3.msra.mxu1 %v16555_v19  ;;  %v16934_v50 = vld [vmem:[#allocation33 + $0x10] sm:$0xff] }
0x168a   : > { %20184 = vmatpush3.msra.mxu0 %v24275_v53  ;;  %20194 = vmatprep.subr.mxu1 %v21540_v14 }
0x168b   : > { %20185 = vmatprep.subr.mxu0 %v21540_v14  ;;  %v16567_v25 = vand.u32 4294901760, %v24292_v43  ;;  %20195 = vmatpush3.msra.mxu1 %v16562_v4 }
0x168c   : > { %20186 = vmatpush3.msra.mxu0 %v24283_v60  ;;  %20196 = vmatprep.subr.mxu1 %v21540_v14 }
0x168d   : > { %20187 = vmatprep.subr.mxu0 %v21540_v14  ;;  %v16568_v22 = vsub.f32 %v24292_v43, %v16567_v25 }
0x168e   : > { %20188 = vmatpush3.msra.mxu0 %v24294_v24 }
0x168f   : > { %20203 = vmatprep.subr.mxu0 %v21540_v14  ;;  %v16569_v6 = vand.u32 4294901760, %v16568_v22  ;;  %v24336_v22 = vand.u32 4294901760, %v16934_v50 }
0x1691   : > { %20197 = vmatpush3.msra.mxu1 %v16569_v6 }
0x1692   : > { %20198 = vmatprep.subr.mxu1 %v21540_v14 }
0x1693   : > { %20199 = vmatpush3.msra.mxu1 %v16576_v38  ;;  %v16932_v38 = vld [vmem:[#allocation33] sm:$0xff] }
0x1694   : > { %20214 = vmatprep.subr.mxu1 %v21540_v14 }
0x16d5   : > { %v14657_v33 = vpop.f32.mrf.mxu1 }
0x16d7   : > { %v19938_v7 = vpop.f32.mrf.mxu1 }
0x16d8   : > { %v24341_v7 = vsub.f32 %v16935_v3, %v24328_v47 }
0x16dd   : > { %v14814_v40 = vpop.f32.mrf.mxu1 }
0x16de   : > { %v14566_v23 = vpop.f32.mrf.mxu0 }
0x16df   : > { %v19960_v56 = vpop.f32.mrf.mxu1  ;;  %v14658_v2 = vadd.f32 %v14657_v33, %v14566_v23 }
0x16e0   : > { %v19927_v12 = vpop.f32.mrf.mxu0  ;;  %v24348_v56 = vsub.f32 %v16934_v50, %v24336_v22 }
0x16e1   : > { %v24350_v12 = vand.u32 4294901760, %v16932_v38 }
0x16e6   : > { %v14737_v57 = vpop.f32.mrf.mxu0 }
0x16e7   : > { %v14972_v59 = vpop.f32.mrf.mxu1  ;;  %v14738_v61 = vadd.f32 %v14737_v57, %v14658_v2  ;;  %v17046_v57 = vand.u32 4294901760, %v24341_v7 }
0x16e8   : > { %v19949_v39 = vpop.f32.mrf.mxu0 }
0x16e9   : > { %v19982_v48 = vpop.f32.mrf.mxu1  ;;  %v14815_v62 = vadd.f32 %v14814_v40, %v14738_v61  ;;  %v24343_v40 = vand.u32 4294901760, %v16933_v58  ;;  %v17053_v39 = vand.u32 4294901760, %v24348_v56 }
0x16ea   : > { %v24364_v48 = vsub.f32 %v16932_v38, %v24350_v12 }
0x16ec   : > { %v17067_v2 = vand.u32 4294901760, %v24364_v48 }
0x16f0   : > { %v14897_v52 = vpop.f32.mrf.mxu0 }
0x16f1   : > { %v14898_v31 = vadd.f32 %v14897_v52, %v14815_v62  ;;  %v17068_v62 = vsub.f32 %v24364_v48, %v17067_v2 }
0x16f2   : > { %v19971_v49 = vpop.f32.mrf.mxu0  ;;  %v15142_v1 = vpop.f32.mrf.mxu1 }
0x16f3   : > { %v14973_v34 = vadd.f32 %v14972_v59, %v14898_v31  ;;  %v24356_v59 = vsub.f32 %v16933_v58, %v24343_v40  ;;  %v17047_v49 = vsub.f32 %v24341_v7, %v17046_v57  ;;  %v17069_v31 = vand.u32 4294901760, %v17068_v62 }
0x16f4   : > { %v20004_v26 = vpop.f32.mrf.mxu1 }
0x16f5   : > { %v17048_v61 = vand.u32 4294901760, %v17047_v49 }
0x16fa   : > { %v15051_v41 = vpop.f32.mrf.mxu0 }
0x16fb   : > { %v15052_v17 = vadd.f32 %v15051_v41, %v14973_v34 }
0x16fc   : > { %v19993_v5 = vpop.f32.mrf.mxu0  ;;  %v15299_v16 = vpop.f32.mrf.mxu1 }
0x16fd   : > { %v15143_v37 = vadd.f32 %v15142_v1, %v15052_v17 }
0x16fe   : > { %v20026_v18 = vpop.f32.mrf.mxu1 }
0x1704   : > { %v15222_v35 = vpop.f32.mrf.mxu0 }
0x1705   : > { %v15223_v45 = vadd.f32 %v15222_v35, %v15143_v37 }
0x1706   : > { %v20015_v42 = vpop.f32.mrf.mxu0  ;;  %v15457_v32 = vpop.f32.mrf.mxu1 }
0x1707   : > { %v15300_v54 = vadd.f32 %v15299_v16, %v15223_v45 }
0x1708   : > { %v20048_v44 = vpop.f32.mrf.mxu1 }
0x170e   : > { %v15382_v0 = vpop.f32.mrf.mxu0 }
0x170f   : > { %v15383_v51 = vadd.f32 %v15382_v0, %v15300_v54  ;;  %v24318_v63 = vpop.f32.mrf.mxu1 }
0x1710   : > { %v20037_v9 = vpop.f32.mrf.mxu0 }
0x1711   : > { %v15458_v28 = vadd.f32 %v15457_v32, %v15383_v51  ;;  %v20070_v21 = vpop.f32.mrf.mxu1 }
0x1713   : > { %v16445_v36 = vsel %vm2766_vm2, %v15458_v28, 0 }
0x1714   : > { %v24321_v10 = vand.u32 4294901760, %v16445_v36 }
0x1716   : > { %v16517_v30 = vsub.f32 %v16445_v36, %v24321_v10  ;;  %20201 = vmatmul.mubr.f32.vlgmr.msra.gmra.mxu1 %v24321_v10 }
0x1717   : > { %20215 = vmatpush3.msra.mxu1 %v24270_v15  ;;  %20222 = vmatprep.mubr.msk.f32.mxu1 %vm21541_vm9, %v21540_v14 }
0x1718   : > { %v24330_v11 = vpop.f32.mrf.mxu0  ;;  %20216 = vmatprep.subr.mxu1 %v21540_v14  ;;  %v16518_v19 = vand.u32 4294901760, %v16517_v30 }
0x1719   : > { %v24333_v4 = vpop.f32.mrf.mxu1  ;;  %20217 = vmatpush3.msra.mxu1 %v24275_v53 }
0x171a   : > { %v20059_v6 = vpop.f32.mrf.mxu0  ;;  %20218 = vmatprep.subr.mxu1 %v21540_v14  ;;  %v16519_v29 = vsub.f32 %v16517_v30, %v16518_v19 }
0x171b   : > { %v20092_v33 = vpop.f32.mrf.mxu1  ;;  %20219 = vmatpush3.msra.mxu1 %v24283_v60 }
0x171c   : > { %20220 = vmatprep.subr.mxu1 %v21540_v14  ;;  %v16520_v23 = vand.u32 4294901760, %v16519_v29  ;;  %v16443_v29 = vld [vmem:[#allocation31] sm:$0x1] }
0x171d   : > { %20221 = vmatpush3.msra.mxu1 %v24294_v24 }
0x171e   : > { %20223 = vmatmul.mubr.f32.vlgmr.msra.gmra.mxu1 %v16518_v19  ;;  %20236 = vmatprep.subr.mxu1 %v21540_v14 }
0x171f   : > { %20190 = vmatmul.mubr.f32.vlgmr.msra.gmra.mxu0 %v16520_v23  ;;  %20237 = vmatpush3.msra.mxu1 %v24270_v15 }
0x1720   : > { %20204 = vmatpush3.msra.mxu0 %v24273_v20  ;;  %20238 = vmatprep.subr.mxu1 %v21540_v14  ;;  %v15636_v20 = vadd.f32 %v24318_v63, %v24330_v11 }
0x1721   : > { %20205 = vmatprep.subr.mxu0 %v21540_v14  ;;  %20239 = vmatpush3.msra.mxu1 %v24275_v53  ;;  %v17060_v53 = vand.u32 4294901760, %v24356_v59 }
0x1722   : > { %v15715_v52 = vpop.f32.mrf.mxu0  ;;  %20206 = vmatpush3.msra.mxu0 %v24281_v8  ;;  %20240 = vmatprep.subr.mxu1 %v21540_v14 }
0x1723   : > { %v15950_v15 = vpop.f32.mrf.mxu1  ;;  %20207 = vmatprep.subr.mxu0 %v21540_v14  ;;  %20241 = vmatpush3.msra.mxu1 %v24283_v60  ;;  %v17054_v60 = vsub.f32 %v24348_v56, %v17053_v39  ;;  %v17061_v41 = vsub.f32 %v24356_v59, %v17060_v53  ;;  %v15716_v18 = vadd.f32 %v15715_v52, %v15636_v20 }
0x1724   : > { %v20081_v1 = vpop.f32.mrf.mxu0  ;;  %20208 = vmatpush3.msra.mxu0 %v24292_v43  ;;  %20242 = vmatprep.subr.mxu1 %v21540_v14 }
0x1725   : > { %v20114_v26 = vpop.f32.mrf.mxu1  ;;  %20209 = vmatprep.subr.mxu0 %v21540_v14  ;;  %20211 = vmatprep.mubr.msk.f32.mxu0 %vm21541_vm9, %v21540_v14  ;;  %v17062_v16 = vand.u32 4294901760, %v17061_v41 }
0x1726   : > { %20210 = vmatpush3.msra.mxu0 %v24303_v46  ;;  %20243 = vmatpush3.msra.mxu1 %v24294_v24  ;;  %v17055_v24 = vand.u32 4294901760, %v17054_v60 }
0x1727   : > { %20244 = vmatprep.mubr.msk.f32.mxu1 %vm21541_vm9, %v21540_v14  ;;  %20212 = vmatmul.mubr.f32.vlgmr.msra.gmra.mxu0 %v16517_v30 }
0x1728   : > { %20225 = vmatprep.subr.mxu0 %v21540_v14  ;;  %20245 = vmatmul.mubr.f32.vlgmr.msra.gmra.mxu1 %v24321_v10 }
0x1729   : > { %20226 = vmatpush3.msra.mxu0 %v16553_v27  ;;  %20233 = vmatprep.mubr.msk.f32.mxu0 %vm21541_vm9, %v21540_v14 }
0x172a   : > { %20227 = vmatprep.subr.mxu0 %v21540_v14  ;;  %20258 = vmatprep.subr.mxu1 %v21540_v14 }
0x172b   : > { %v15875_v5 = vpop.f32.mrf.mxu0  ;;  %20228 = vmatpush3.msra.mxu0 %v16560_v13  ;;  %20259 = vmatpush3.msra.mxu1 %v17048_v61  ;;  %v15793_v13 = vadd.f32 %v24333_v4, %v15716_v18 }
0x172c   : > { %20229 = vmatprep.subr.mxu0 %v21540_v14  ;;  %20260 = vmatprep.subr.mxu1 %v21540_v14 }
0x172d   : > { %v20103_v27 = vpop.f32.mrf.mxu0  ;;  %20230 = vmatpush3.msra.mxu0 %v16567_v25  ;;  %20261 = vmatpush3.msra.mxu1 %v17055_v24  ;;  %v15876_v46 = vadd.f32 %v15875_v5, %v15793_v13 }
0x172e   : > { %20231 = vmatprep.subr.mxu0 %v21540_v14  ;;  %20262 = vmatprep.subr.mxu1 %v21540_v14 }
0x172f   : > { %20232 = vmatpush3.msra.mxu0 %v16574_v55  ;;  %20263 = vmatpush3.msra.mxu1 %v17062_v16  ;;  %v15951_v34 = vadd.f32 %v15950_v15, %v15876_v46 }
0x1730   : > { %20234 = vmatmul.mubr.f32.vlgmr.msra.gmra.mxu0 %v24321_v10  ;;  %20264 = vmatprep.subr.mxu1 %v21540_v14 }
0x1731   : > { %v16120_v8 = vpop.f32.mrf.mxu1  ;;  %20265 = vmatpush3.msra.mxu1 %v17069_v31  ;;  %20247 = vmatprep.subr.mxu0 %v21540_v14 }
0x1732   : > { %20266 = vmatprep.mubr.msk.f32.mxu1 %vm21541_vm9, %v21540_v14  ;;  %20280 = vmatprep.subr.mxu1 %v21540_v14 }
0x1733   : > { %v16029_v43 = vpop.f32.mrf.mxu0  ;;  %v20136_v25 = vpop.f32.mrf.mxu1  ;;  %20248 = vmatpush3.msra.mxu0 %v24328_v47  ;;  %20255 = vmatprep.mubr.msk.f32.mxu0 %vm21541_vm9, %v21540_v14 }
0x1734   : > { %20249 = vmatprep.subr.mxu0 %v21540_v14  ;;  %v16030_v17 = vadd.f32 %v16029_v43, %v15951_v34 }
0x1735   : > { %v20125_v55 = vpop.f32.mrf.mxu0  ;;  %20250 = vmatpush3.msra.mxu0 %v24336_v22 }
0x1736   : > { %20251 = vmatprep.subr.mxu0 %v21540_v14  ;;  %v16121_v37 = vadd.f32 %v16120_v8, %v16030_v17 }
0x1737   : > { %20252 = vmatpush3.msra.mxu0 %v24343_v40 }
0x1738   : > { %20253 = vmatprep.subr.mxu0 %v21540_v14 }
0x1739   : > { %20254 = vmatpush3.msra.mxu0 %v24350_v12 }
0x173a   : > { %20269 = vmatprep.subr.mxu0 %v21540_v14 }
0x173b   : > { %v16200_v35 = vpop.f32.mrf.mxu0 }
0x173c   : > { %v16201_v45 = vadd.f32 %v16200_v35, %v16121_v37 }
0x173d   : > { %v16277_v42 = vpop.f32.mrf.mxu1  ;;  %v20147_v32 = vpop.f32.mrf.mxu0 }
0x173e   : > { %v16278_v54 = vadd.f32 %v16277_v42, %v16201_v45 }
0x173f   : > { %v20158_v44 = vpop.f32.mrf.mxu1 }
0x1745   : > { %v16360_v0 = vpop.f32.mrf.mxu0 }
0x1746   : > { %v16361_v51 = vadd.f32 %v16360_v0, %v16278_v54  ;;  %v16435_v63 = vpop.f32.mrf.mxu1 }
0x1747   : > { %v20169_v9 = vpop.f32.mrf.mxu0 }
0x1748   : > { %v16436_v28 = vadd.f32 %v16435_v63, %v16361_v51  ;;  %v20180_v21 = vpop.f32.mrf.mxu1 }
0x174a   : > { %v16938_v36 = vsel %vm2766_vm2, %v16436_v28, 0 }
0x174b   : > { %v17009_v10 = vand.u32 4294901760, %v16938_v36 }
0x174d   : > { %v17010_v3 = vsub.f32 %v16938_v36, %v17009_v10  ;;  %20267 = vmatmul.mubr.f32.vlgmr.msra.gmra.mxu1 %v17009_v10 }
0x174e   : > { %20281 = vmatpush3.msra.mxu1 %v24328_v47  ;;  %20288 = vmatprep.mubr.msk.f32.mxu1 %vm21541_vm9, %v21540_v14 }
0x174f   : > { %v17011_v30 = vand.u32 4294901760, %v17010_v3  ;;  %20282 = vmatprep.subr.mxu1 %v21540_v14 }
0x1750   : > { %20283 = vmatpush3.msra.mxu1 %v24336_v22 }
0x1751   : > { %v17012_v50 = vsub.f32 %v17010_v3, %v17011_v30  ;;  %20284 = vmatprep.subr.mxu1 %v21540_v14 }
0x1752   : > { %20285 = vmatpush3.msra.mxu1 %v24343_v40 }
0x1753   : > { %v17013_v11 = vand.u32 4294901760, %v17012_v50  ;;  %20286 = vmatprep.subr.mxu1 %v21540_v14 }
0x1754   : > { %20287 = vmatpush3.msra.mxu1 %v24350_v12 }
0x1755   : > { %20289 = vmatmul.mubr.f32.vlgmr.msra.gmra.mxu1 %v17011_v30  ;;  %20302 = vmatprep.subr.mxu1 %v21540_v14 }
0x1756   : > { %20256 = vmatmul.mubr.f32.vlgmr.msra.gmra.mxu0 %v17013_v11  ;;  %20303 = vmatpush3.msra.mxu1 %v24328_v47 }
0x1757   : > { %20270 = vmatpush3.msra.mxu0 %v24341_v7  ;;  %20304 = vmatprep.subr.mxu1 %v21540_v14 }
0x1758   : > { %20271 = vmatprep.subr.mxu0 %v21540_v14  ;;  %20305 = vmatpush3.msra.mxu1 %v24336_v22 }
0x1759   : > { %20272 = vmatpush3.msra.mxu0 %v24348_v56  ;;  %20306 = vmatprep.subr.mxu1 %v21540_v14 }
0x175a   : > { %20273 = vmatprep.subr.mxu0 %v21540_v14  ;;  %20307 = vmatpush3.msra.mxu1 %v24343_v40 }
0x175b   : > { %20274 = vmatpush3.msra.mxu0 %v24356_v59  ;;  %20308 = vmatprep.subr.mxu1 %v21540_v14 }
0x175c   : > { %20275 = vmatprep.subr.mxu0 %v21540_v14  ;;  %20277 = vmatprep.mubr.msk.f32.mxu0 %vm21541_vm9, %v21540_v14 }
0x175d   : > { %20276 = vmatpush3.msra.mxu0 %v24364_v48  ;;  %20309 = vmatpush3.msra.mxu1 %v24350_v12 }
0x175e   : > { %20310 = vmatprep.mubr.msk.f32.mxu1 %vm21541_vm9, %v21540_v14  ;;  %20278 = vmatmul.mubr.f32.vlgmr.msra.gmra.mxu0 %v17010_v3 }
0x175f   : > { %20291 = vmatprep.subr.mxu0 %v21540_v14  ;;  %20311 = vmatmul.mubr.f32.vlgmr.msra.gmra.mxu1 %v17009_v10 }
0x1760   : > { %20292 = vmatpush3.msra.mxu0 %v17046_v57  ;;  %20299 = vmatprep.mubr.msk.f32.mxu0 %vm21541_vm9, %v21540_v14 }
0x1761   : > { %20293 = vmatprep.subr.mxu0 %v21540_v14 }
0x1762   : > { %20294 = vmatpush3.msra.mxu0 %v17053_v39 }
0x1763   : > { %20295 = vmatprep.subr.mxu0 %v21540_v14 }
0x1764   : > { %20296 = vmatpush3.msra.mxu0 %v17060_v53 }
0x1765   : > { %20297 = vmatprep.subr.mxu0 %v21540_v14 }
0x1766   : > { %20298 = vmatpush3.msra.mxu0 %v17067_v2  ;;  %v16936_v2 = vld [vmem:[%s24717_s9] sm:$0x1] }
0x1767   : > { %20300 = vmatmul.mubr.f32.vlgmr.msra.gmra.mxu0 %v17009_v10 }
0x17d6   : > { %v16613_v47 = vpop.f32.mrf.mxu1 }
0x17d8   : > { %v20202_v19 = vpop.f32.mrf.mxu1 }
0x17de   : > { %v16770_v58 = vpop.f32.mrf.mxu1 }
0x17df   : > { %v16522_v4 = vpop.f32.mrf.mxu0 }
0x17e0   : > { %v20224_v22 = vpop.f32.mrf.mxu1  ;;  %v16523_v38 = vadd.f32 %v16522_v4, %v16443_v29 }
0x17e1   : > { %v20191_v6 = vpop.f32.mrf.mxu0 }
0x17e2   : > { %v16614_v40 = vadd.f32 %v16613_v47, %v16523_v38 }
0x17e7   : > { %v16693_v33 = vpop.f32.mrf.mxu0 }
0x17e8   : > { %v16928_v7 = vpop.f32.mrf.mxu1  ;;  %v16694_v12 = vadd.f32 %v16693_v33, %v16614_v40 }
0x17e9   : > { %v20213_v23 = vpop.f32.mrf.mxu0 }
0x17ea   : > { %v20246_v56 = vpop.f32.mrf.mxu1  ;;  %v16771_v14 = vadd.f32 %v16770_v58, %v16694_v12 }
0x17f0   : > { %v16853_v57 = vpop.f32.mrf.mxu0 }
0x17f1   : > { %v16854_v59 = vadd.f32 %v16853_v57, %v16771_v14 }
0x17f2   : > { %v20235_v39 = vpop.f32.mrf.mxu0 }
0x17f3   : > { %v16929_v48 = vadd.f32 %v16928_v7, %v16854_v59 }
0x17f5   : > { %v17426_v52 = vsel %vm17425_vm11, %v16929_v48, -inf }
0x17f6   : > { %17427 = vmax.xlane.f32.xlu0 %v17426_v52 }
0x180d   : > { %v17106_v15 = vpop.f32.mrf.mxu1 }
0x180f   : > { %v20268_v49 = vpop.f32.mrf.mxu1 }
0x1815   : > { %v17263_v53 = vpop.f32.mrf.mxu1 }
0x1816   : > { %v17015_v1 = vpop.f32.mrf.mxu0 }
0x1817   : > { %v20290_v26 = vpop.f32.mrf.mxu1  ;;  %v17016_v61 = vadd.f32 %v17015_v1, %v16936_v2 }
0x1818   : > { %v20257_v60 = vpop.f32.mrf.mxu0 }
0x1819   : > { %v17107_v62 = vadd.f32 %v17106_v15, %v17016_v61 }
0x181e   : > { %v17186_v41 = vpop.f32.mrf.mxu0 }
0x181f   : > { %v17421_v24 = vpop.f32.mrf.mxu1  ;;  %v17187_v20 = vadd.f32 %v17186_v41, %v17107_v62 }
0x1820   : > { %v20279_v5 = vpop.f32.mrf.mxu0 }
0x1821   : > { %v20312_v16 = vpop.f32.mrf.mxu1  ;;  %v17264_v27 = vadd.f32 %v17263_v53, %v17187_v20 }
0x1827   : > { %v17346_v31 = vpop.f32.mrf.mxu0 }
0x1828   : > { %v17347_v18 = vadd.f32 %v17346_v31, %v17264_v27 }
0x1829   : > { %v20301_v8 = vpop.f32.mrf.mxu0 }
0x182a   : > { %v17422_v13 = vadd.f32 %v17421_v24, %v17347_v18 }
0x182c   : > { %v17439_v43 = vsel %vm17425_vm11, %v17422_v13, -inf }
0x182d   : > { %17440 = vmax.xlane.f32.xlu0 %v17439_v43 }
0x187f   : > { %v17428_v25 = vpop.xlane.xlu0 %17427 }
0x1880   : > { %v17429_v46 = vsub.f32 %v16929_v48, %v17428_v25 }
0x1882   : > { %v17430_v55 = vmul.f32 1.442695, %v17429_v46 }
0x1884   : > { %20691 = vpow2.f32 %v17430_v55 }
0x1891   : > { %v20692_v34 = vpop.eup %20691 }
0x1892   : > { %v17432_v17 = vsel %vm17425_vm11, %v20692_v34, 0.0 }
0x1893   : > { %17433 = vadd.xlane.f32.xlu1 %v17432_v17 }
0x18b6   : > { %v17441_v35 = vpop.xlane.xlu0 %17440 }
0x18b7   : > { %v17442_v42 = vsub.f32 %v17422_v13, %v17441_v35 }
0x18b9   : > { %v17443_v32 = vmul.f32 1.442695, %v17442_v42 }
0x18bb   : > { %20693 = vpow2.f32 %v17443_v32 }
0x18c8   : > { %v20694_v37 = vpop.eup %20693 }
0x18c9   : > { %v17445_v44 = vsel %vm17425_vm11, %v20694_v37, 0.0 }
0x18ca   : > { %17446 = vadd.xlane.f32.xlu1 %v17445_v44 }
0x191c   : > { %v17434_v45 = vpop.xlane.xlu1 %17433 }
0x191d   : > { %20695 = vlog2.f32 %v17434_v45 }
0x192a   : > { %v20696_v54 = vpop.eup %20695 }
0x192b   : > { %v17436_v0 = vmul.f32 0.6931472, %v20696_v54 }
0x192d   : > { %v17437_v51 = vsub.f32 %v17429_v46, %v17436_v0 }
0x192f   : > { %17438 = vst [vmem:[%s1584_s8] sm:$0x1] %v17437_v51 }
0x1953   : > { %v17447_v63 = vpop.xlane.xlu1 %17446 }
0x1954   : > { %20697 = vlog2.f32 %v17447_v63 }
0x1961   : > { %v20698_v9 = vpop.eup %20697 }
0x1962   : > { %v17449_v28 = vmul.f32 0.6931472, %v20698_v9 }
0x1964   : > { %v17450_v21 = vsub.f32 %v17442_v42, %v17449_v28 }
0x1966   : > { %17451 = vst [vmem:[%s1590_s12] sm:$0x1] %v17450_v21 }
0x1967 PF: > { %s24718_s20 = sld [smem:[#allocation84_spill]]  ;;  %s17469_s4 = sshll.u32 %s1584_s8, 4  ;;  %s17470_s4 = int_to_ptr.vmem [resolvable:$true] %s17469_s4 }
0x1968   : > { %s24719_s0 = sld [smem:[#allocation78_spill]]  ;;  %s17453_s6 = scalar_lea.sflag [#allocation7], %s22168_s2 }
0x1969   : > { %s21273_s28 = scalar_lea.vmem %s17470_s4, 16  ;;  %p24721_p7 = scmp.ne.s32.totalorder %s24645_s13, 0 }
0x196a   : > { %p21274_p1 = scmp.ne.s32.totalorder %s17470_s4, %s21273_s28  ;;  %s21542_s24 = smov [#allocation34]  }
0x196b   : > { %s21277_s1 = sshll.u32 %s21542_s24, 4  ;;  %s21278_s1 = int_to_ptr.vmem [resolvable:$false] %s21277_s1 }
0x196c   : > { %p21275_p9 = pnand %p21274_p1, %p24721_p7  ;;  %s21279_s26 = scalar_lea.vmem %s21278_s1, 32 }
0x196d   : > { %s17994_s11 = sshll.u32 %s24718_s20, 4  ;;  %p21280_p10 = scmp.lt.s32.totalorder %s17470_s4, %s21278_s1 }
0x196e   : > { %s24720_s3 = smov %s24719_s0  ;;  %s17467_s16 = scalar_lea.hbm %s24719_s0, %s17994_s11 }
0x196f   : > { %p21276_p13 = pneg %p21275_p9  ;;  %p21281_p4 = scmp.lt.s32.totalorder %s21279_s26, %s21273_s28 }
0x1971   : > { %p21282_p0 = por %p21281_p4, %p21280_p10 }
0x1973   : > { %p21283_p12 = pnand %p21282_p0, %p21276_p13 }
0x1975   : > { %21286 = shalt.err (!%p21283_p12)
}
0x1976   : > { %s21287_s18 = scalar_lea.hbm %s17467_s16, 16  ;;  %s21291_s8 = scalar_lea.hbm %s24720_s3, 32 }
0x1977   : > { %p21288_p5 = scmp.ne.s32.totalorder %s17467_s16, %s21287_s18  ;;  %p21292_p3 = scmp.lt.s32.totalorder %s17467_s16, %s24720_s3 }
0x1978   : > { %p21293_p11 = scmp.lt.s32.totalorder %s21291_s8, %s21287_s18 }
0x1979   : > { %p21289_p6 = pnand %p21288_p5, %p24721_p7 }
0x197a   : > { %p21294_p2 = por %p21293_p11, %p21292_p3 }
0x197b   : > { %p21290_p8 = pneg %p21289_p6 }
0x197d   : > { %p21295_p1 = pnand %p21294_p2, %p21290_p8 }
0x197f   : > { %21298 = shalt.err (!%p21295_p1)
}
0x1980   : > { %s24722_s15 = sld [smem:[#allocation79_spill]]  ;;  %s17482_s9 = sshll.u32 %s1590_s12, 4  ;;  %s17483_s9 = int_to_ptr.vmem [resolvable:$true] %s17482_s9 }
0x1981   : > { %20381 = dma.vmem_to_hbm [thread:$0]  (%p24721_p7), %s17470_s4, 16, %s17467_s16, %s17453_s6  }
0x1982   : > { %s17457_s0 = scalar_lea.sflag [#allocation36], %s22168_s2  ;;  %s21299_s24 = scalar_lea.vmem %s17483_s9, 16 }
0x1983   : > { %p21300_p9 = scmp.ne.s32.totalorder %s17483_s9, %s21299_s24  ;;  %s21543_s1 = smov [#allocation35]  }
0x1984   : > { %s21303_s26 = sshll.u32 %s21543_s1, 4  ;;  %s21304_s26 = int_to_ptr.vmem [resolvable:$false] %s21303_s26 }
0x1985   : > { %p21301_p13 = pnand %p21300_p9, %p24721_p7  ;;  %s21305_s18 = scalar_lea.vmem %s21304_s26, 32 }
0x1986   : > { %s24723_s28 = smov %s24722_s15  ;;  %s17480_s7 = scalar_lea.hbm %s24722_s15, %s17994_s11 }
0x1987   : > { %p21302_p10 = pneg %p21301_p13  ;;  %p21306_p4 = scmp.lt.s32.totalorder %s17483_s9, %s21304_s26 }
0x1988   : > { %p21307_p0 = scmp.lt.s32.totalorder %s21305_s18, %s21299_s24 }
0x198a   : > { %p21308_p12 = por %p21307_p0, %p21306_p4 }
0x198c   : > { %p21309_p5 = pnand %p21308_p12, %p21302_p10 }
0x198e   : > { %21312 = shalt.err (!%p21309_p5)
}
0x198f   : > { %s21313_s20 = scalar_lea.hbm %s17480_s7, 16  ;;  %s21317_s12 = scalar_lea.hbm %s24723_s28, 32 }
0x1990   : > { %p21314_p6 = scmp.ne.s32.totalorder %s17480_s7, %s21313_s20  ;;  %p21318_p11 = scmp.lt.s32.totalorder %s17480_s7, %s24723_s28 }
0x1991   : > { %p21319_p2 = scmp.lt.s32.totalorder %s21317_s12, %s21313_s20 }
0x1992   : > { %p21315_p8 = pnand %p21314_p6, %p24721_p7 }
0x1993   : > { %p21320_p1 = por %p21319_p2, %p21318_p11 }
0x1994   : > { %p21316_p3 = pneg %p21315_p8 }
0x1996   : > { %p21321_p9 = pnand %p21320_p1, %p21316_p3 }
0x1998   : > { %21324 = shalt.err (!%p21321_p9)
}
0x1999   : > { %20382 = dma.vmem_to_hbm [thread:$0]  (%p24721_p7), %s17483_s9, 16, %s17480_s7, %s17457_s0  }
0x199a PF: > { %s24724_s2 = sld [smem:[#allocation87_spill]] }
0x199b   : > { %s24725_s11 = sld [smem:[#allocation80_spill]] }
0x199c   : > { %s24726_s16 = sld [smem:[#allocation93_spill]] }
0x19a0   : > { %p20484_p13 = scmp.ge.s32.totalorder %s24724_s2, 2 }
0x19a1   : > { %s17494_s4 = sand.u32 1, %s24725_s11  }
0x19a2   : > { %p24727_p10 = scmp.ne.s32.totalorder %s24726_s16, 0  ;;  %s17495_s6 = scalar_lea.sflag [#allocation7], %s17494_s4 }
0x19a4   : > { %p20451_p4 = pnand %p20484_p13, %p24727_p10 }
0x19a6   : > { %p20452_p0 = pneg %p20451_p4 }
0x19a8   : > { %21408 = dma.done.wait (%p20452_p0), %s17495_s6, 16  }
0x19a9   : > { %21410 = vsyncadd (%p20452_p0), %s17495_s6, 4294967280  ;;  %s17503_s8 = scalar_lea.sflag [#allocation36], %s17494_s4 }
0x19aa   : > { %21412 = dma.done.wait (%p20452_p0), %s17503_s8, 16  }
0x19ab   : > { %21414 = vsyncadd (%p20452_p0), %s17503_s8, 4294967280  ;;  %s103_s20 = sadd.s32 1, %s24724_s2   ;;  %s24728_s13 = sld [smem:[#allocation81_spill]] }
0x19ac   : > { %p100_p12 = scmp.ge.s32.totalorder %s103_s20, 6   ;;  %s24729_s24 = sld [smem:[#allocation92_spill]] }
0x19ad   : > { %s24730_s15 = sld [smem:[#allocation82_spill]]  ;;  %s24736_s0 = smov %s21421_s29 }
0x19ae   : > { %s24731_s7 = sld [smem:[#allocation91_spill]]  ;;  %s24738_s2 = smov %s21433_s17 }
0x19af   : > { %s24732_s11 = sld [smem:[#allocation85_spill]] }
0x19b0   : > { %s24733_s9 = sld [smem:[#allocation86_spill]] }
0x19b1   : > { %s24734_s1 = sld [smem:[#allocation89_spill]]  ;;  %s24737_s29 = smov %s24728_s13 }
0x19b2   : > { %s24735_s18 = sld [smem:[#allocation90_spill]] }
0x19b3   : > { %s24739_s17 = smov %s24730_s15  ;;  %102 = sbr.rel (!%p100_p12) target bundleno = 93 (0x5d), region = 408 }
0x19b7   : > { %s24740_s15 = smov %s24734_s1 }
0x19b8   :  { %17507 = vsyncpa [#allocation6], 1 }
0x19b9   :  { %17509 = vsyncpa [#allocation6 + $0x1], 1 }
0x19ba   :  { %17510 = vsyncpa [#allocation9], 1 }
0x19bb   :  { %17511 = vsyncpa [#allocation20], 1 }
0x19bc   :  { %17512 = vsyncpa [#allocation23], 1 }
0x19bd   :  { %17513 = vsyncpa [#allocation26], 1 }
0x19be   :  { %17514 = vsyncpa [#allocation29], 1 }
0x19bf   :  { %17515 = vsyncpa [#allocation32], 1 }
0x19c0   :  { %17516 = vsyncpa [#allocation7], 1 }
0x19c1   :  { %17518 = vsyncpa [#allocation7 + $0x1], 1 }
0x19c2   :  { %17519 = vsyncpa [#allocation36], 1 }
0x19c3   :  { %17521 = vsyncpa [#allocation36 + $0x1], 1 }

</bundles_post_ra>
